<compile_context>
chip_gen: v6e
topology: v6e:2x2x1
jax: 0.10.0
libtpu: 0.0.40
codegen_flags: <defaults>
</compile_context>

<pallas_src>
import functools
import math

import numpy as np
import jax
import jax.numpy as jnp
from jax.experimental import pallas as pl
from jax.experimental.pallas import tpu as pltpu


# --------------------------------------------------------------------------- helpers

def _gelu_tanh(y):
    c = 0.7978845608028654  # sqrt(2/pi)
    return 0.5 * y * (1.0 + jnp.tanh(c * (y + 0.044715 * y * y * y)))


def _ln(x, g, b, eps=1e-5):
    mu = jnp.mean(x, axis=-1, keepdims=True)
    xc = x - mu
    var = jnp.mean(xc * xc, axis=-1, keepdims=True)
    return xc * jax.lax.rsqrt(var + eps) * g + b


def _bf16(x):
    return x.astype(jnp.bfloat16)


_PAR_ARB = pltpu.CompilerParams(dimension_semantics=("parallel", "arbitrary"))


def _num_chunks(n, *seq_dims):
    """Batch-chunk count for the fused stacks: keep >=2 chunks so v7x's two
    TensorCores are used, but only when the in-kernel (chunk,T,H)->(chunk*T,H)
    reshape is layout-clean (chunk==1 or every sequence dim % 8 == 0)."""
    seq_ok = all(d % 8 == 0 for d in seq_dims)
    if n >= 2 and n % 2 == 0 and (n // 2 == 1 or seq_ok):
        return 2
    return 1


def _softmax_lastdim(s):
    s = s - jnp.max(s, axis=-1, keepdims=True)
    p = jnp.exp(s)
    return p * pl.reciprocal(jnp.sum(p, axis=-1, keepdims=True), approx=True)


# --------------------------------------------------------------------------- small fused kernels (single invocation, whole arrays in VMEM)

def _linear_kernel(x_ref, w_ref, b_ref, o_ref, *, activation):
    y = jnp.dot(_bf16(x_ref[...]), w_ref[...],
                preferred_element_type=jnp.float32) + b_ref[...]
    if activation == "gelu":
        y = _gelu_tanh(y)
    elif activation == "relu":
        y = jnp.maximum(y, 0.0)
    elif activation == "tanh":
        y = jnp.tanh(y)
    o_ref[...] = y


def linear(x, w, b, activation="none"):
    """y = act(x @ w + b); x: (..., K) f32, w: (K, N) bf16, b: (1, N) f32."""
    orig = x.shape
    K = orig[-1]
    M = int(np.prod(orig[:-1]))
    N = w.shape[1]
    out = pl.pallas_call(
        functools.partial(_linear_kernel, activation=activation),
        out_shape=jax.ShapeDtypeStruct((M, N), jnp.float32),
    )(x.reshape(M, K), w, b)
    return out.reshape(orig[:-1] + (N,))


def _concat_linear_kernel(a_ref, b_ref, w1_ref, w2_ref, bias_ref, o_ref):
    # concat([a, b], -1) @ W == a @ W[:H] + b @ W[H:]  (weight pre-split on host)
    o_ref[...] = (jnp.dot(_bf16(a_ref[...]), w1_ref[...],
                          preferred_element_type=jnp.float32)
                  + jnp.dot(_bf16(b_ref[...]), w2_ref[...],
                            preferred_element_type=jnp.float32)
                  + bias_ref[...])


def concat_linear(a, b, p):
    orig = a.shape
    H = orig[-1]
    M = int(np.prod(orig[:-1]))
    N = p["w1"].shape[1]
    out = pl.pallas_call(
        _concat_linear_kernel,
        out_shape=jax.ShapeDtypeStruct((M, N), jnp.float32),
    )(a.reshape(M, H), b.reshape(M, H), p["w1"], p["w2"], p["b"])
    return out.reshape(orig[:-1] + (N,))


def _proj_pos_kernel(x_ref, w_ref, b_ref, pos_ref, o_ref):
    """Fused modality linear projection + learned positional embedding (all samples
    in one step; the embedding LayerNorm runs at layer 0 of the fused stack)."""
    N, L, D = x_ref.shape
    H = w_ref.shape[1]
    y = jnp.dot(_bf16(x_ref[...].reshape(N * L, D)), w_ref[...],
                preferred_element_type=jnp.float32) + b_ref[...]
    o_ref[...] = y.reshape(N, L, H) + pos_ref[...]


def _addpool_kernel(x_ref, m_ref, w_ref, b_ref, v_ref, o_ref):
    """AdditiveAttention pooling over the utterance axis for ALL samples at once."""
    N, L, H = x_ref.shape
    x = x_ref[...]                                                     # (N, L, H) f32
    h = jnp.tanh(jnp.dot(_bf16(x.reshape(N * L, H)), w_ref[...],
                         preferred_element_type=jnp.float32) + b_ref[...])
    s = jnp.sum(h.reshape(N, L, H) * v_ref[...], axis=-1, keepdims=True)   # (N, L, 1)
    s = s + (1.0 - m_ref[...]) * -10000.0
    s = s - jnp.max(s, axis=1, keepdims=True)
    p = jnp.exp(s)
    p = p * pl.reciprocal(jnp.sum(p, axis=1, keepdims=True), approx=True)
    o_ref[...] = jnp.sum(p * x, axis=1)                                # (N, H)


def additive_attention_pool(x, mask, p):
    """x: (N, L, H), mask: (N, L) -> (N, H)."""
    N, L, H = x.shape
    return pl.pallas_call(
        _addpool_kernel,
        out_shape=jax.ShapeDtypeStruct((N, H), jnp.float32),
    )(x, mask[:, :, None].astype(jnp.float32), p["w"], p["b"], p["v"])


# --------------------------------------------------------------------------- fused self-attention encoder STACK (all layers in one pallas_call)

def _self_stack_kernel(x_ref, m_ref, ing_ref, inb_ref,
                       wqkv_ref, bqkv_ref, wo_ref, bo_ref,
                       ln1g_ref, ln1b_ref, w1_ref, b1_ref, w2_ref, b2_ref,
                       ln2g_ref, ln2b_ref, o_ref, *, num_heads, scale, act):
    l = pl.program_id(1)

    @pl.when(l == 0)
    def _():
        # embedding LayerNorm; o_ref is the layer-to-layer carry (resident in VMEM).
        o_ref[...] = _ln(x_ref[...], ing_ref[...], inb_ref[...])

    x = o_ref[...]                               # (CB, T, H) f32
    CB, T, H = x.shape
    Dh = H // num_heads
    mask = m_ref[...]                            # (CB, 1, T) additive 0 / -10000

    x2 = x.reshape(CB * T, H)
    # one lane-dense QKV projection
    qkv = jnp.dot(_bf16(x2), wqkv_ref[0],
                  preferred_element_type=jnp.float32) + bqkv_ref[0]
    qkv = qkv.reshape(CB, T, 3 * H)

    ctx = []
    for h in range(num_heads):
        q = qkv[:, :, h * Dh:(h + 1) * Dh]
        k = qkv[:, :, H + h * Dh:H + (h + 1) * Dh]
        v = qkv[:, :, 2 * H + h * Dh:2 * H + (h + 1) * Dh]
        s = jnp.einsum('bqd,bkd->bqk', q, k,
                       preferred_element_type=jnp.float32) * scale + mask
        p = _softmax_lastdim(s)
        ctx.append(jnp.einsum('bqk,bkd->bqd', p, v,
                              preferred_element_type=jnp.float32))
    ctx = jnp.concatenate(ctx, axis=-1).reshape(CB * T, H)

    # one lane-dense output projection
    attn = jnp.dot(_bf16(ctx), wo_ref[0],
                   preferred_element_type=jnp.float32) + bo_ref[0]
    h1 = _ln(x2 + attn, ln1g_ref[0], ln1b_ref[0])

    ff = jnp.dot(_bf16(h1), w1_ref[0],
                 preferred_element_type=jnp.float32) + b1_ref[0]
    ff = _gelu_tanh(ff) if act == "gelu" else jnp.maximum(ff, 0.0)
    ff = jnp.dot(_bf16(ff), w2_ref[0],
                 preferred_element_type=jnp.float32) + b2_ref[0]
    o_ref[...] = _ln(h1 + ff, ln2g_ref[0], ln2b_ref[0]).reshape(CB, T, H)


def self_attn_stack(x, add_mask, p, num_heads, act="gelu"):
    """x: (N, T, H) embeddings (pre input-LN), add_mask: (N, 1, T) additive."""
    N, T, H = x.shape
    nl = p["wqkv"].shape[0]
    I = p["w1"].shape[2]
    nc = _num_chunks(N, T)
    CB = N // nc
    Dh = H // num_heads

    xmap = lambda c, l: (c, 0, 0)
    wmap = lambda c, l: (l, 0, 0)
    cmap = lambda c, l: (0, 0)

    return pl.pallas_call(
        functools.partial(_self_stack_kernel, num_heads=num_heads,
                          scale=1.0 / math.sqrt(Dh), act=act),
        out_shape=jax.ShapeDtypeStruct((N, T, H), jnp.float32),
        grid=(nc, nl),
        in_specs=[
            pl.BlockSpec((CB, T, H), xmap),                 # embeddings
            pl.BlockSpec((CB, 1, T), xmap),                 # additive mask
            pl.BlockSpec((1, H), cmap), pl.BlockSpec((1, H), cmap),   # input LN
            pl.BlockSpec((1, H, 3 * H), wmap), pl.BlockSpec((1, 1, 3 * H), wmap),
            pl.BlockSpec((1, H, H), wmap), pl.BlockSpec((1, 1, H), wmap),
            pl.BlockSpec((1, 1, H), wmap), pl.BlockSpec((1, 1, H), wmap),   # ln1
            pl.BlockSpec((1, H, I), wmap), pl.BlockSpec((1, 1, I), wmap),
            pl.BlockSpec((1, I, H), wmap), pl.BlockSpec((1, 1, H), wmap),
            pl.BlockSpec((1, 1, H), wmap), pl.BlockSpec((1, 1, H), wmap),   # ln2
        ],
        out_specs=pl.BlockSpec((CB, T, H), xmap),
        compiler_params=_PAR_ARB,
    )(x, add_mask, p["in_ln_g"], p["in_ln_b"],
      p["wqkv"], p["bqkv"], p["wo"], p["bo"],
      p["ln1_g"], p["ln1_b"], p["w1"], p["b1"], p["w2"], p["b2"],
      p["ln2_g"], p["ln2_b"])


# --------------------------------------------------------------------------- fused cross-modal encoder STACK

def _cm_stack_kernel(xq_ref, xkv_ref, fg_ref, fb_ref,
                     wq_ref, bq_ref, wkv_ref, bkv_ref, wo_ref, bo_ref,
                     ln1g_ref, ln1b_ref, w1_ref, b1_ref, w2_ref, b2_ref,
                     ln2g_ref, ln2b_ref, o_ref, *, num_heads, scale):
    """Pre-LN MulT-style cross-attention layer stack (no attention mask)."""
    l = pl.program_id(1)
    nl = pl.num_programs(1)

    @pl.when(l == 0)
    def _():
        o_ref[...] = xq_ref[...]

    x = o_ref[...]                               # (CB, Lq, H)
    kv = xkv_ref[...]                            # (CB, Lk, H)
    CB, Lq, H = x.shape
    Lk = kv.shape[1]
    Dh = H // num_heads

    # TODO(synk): CrossModalTransformerEncoder source not provided — reconstruction
    # applies the query-side LN params to the k/v stream of the other modality too.
    xn = _ln(x, ln1g_ref[0], ln1b_ref[0])
    kn = _ln(kv, ln1g_ref[0], ln1b_ref[0])

    q_all = (jnp.dot(_bf16(xn.reshape(CB * Lq, H)), wq_ref[0],
                     preferred_element_type=jnp.float32)
             + bq_ref[0]).reshape(CB, Lq, H)
    kv_all = (jnp.dot(_bf16(kn.reshape(CB * Lk, H)), wkv_ref[0],
                      preferred_element_type=jnp.float32)
              + bkv_ref[0]).reshape(CB, Lk, 2 * H)

    ctx = []
    for h in range(num_heads):
        q = q_all[:, :, h * Dh:(h + 1) * Dh]
        k = kv_all[:, :, h * Dh:(h + 1) * Dh]
        v = kv_all[:, :, H + h * Dh:H + (h + 1) * Dh]
        s = jnp.einsum('bqd,bkd->bqk', q, k,
                       preferred_element_type=jnp.float32) * scale
        p = _softmax_lastdim(s)
        ctx.append(jnp.einsum('bqk,bkd->bqd', p, v,
                              preferred_element_type=jnp.float32))
    ctx = jnp.concatenate(ctx, axis=-1).reshape(CB * Lq, H)

    attn = jnp.dot(_bf16(ctx), wo_ref[0],
                   preferred_element_type=jnp.float32) + bo_ref[0]
    x2 = x.reshape(CB * Lq, H) + attn

    xn2 = _ln(x2, ln2g_ref[0], ln2b_ref[0])
    ff = jnp.maximum(jnp.dot(_bf16(xn2), w1_ref[0],
                             preferred_element_type=jnp.float32) + b1_ref[0], 0.0)
    ff = jnp.dot(_bf16(ff), w2_ref[0],
                 preferred_element_type=jnp.float32) + b2_ref[0]
    o_ref[...] = (x2 + ff).reshape(CB, Lq, H)

    @pl.when(l == nl - 1)
    def _():
        o_ref[...] = _ln(o_ref[...], fg_ref[...], fb_ref[...])


def cm_stack(xq, xkv, p, num_heads):
    B, Lq, H = xq.shape
    Lk = xkv.shape[1]
    nl = p["wq"].shape[0]
    I = p["w1"].shape[2]
    nc = _num_chunks(B, Lq, Lk)
    CB = B // nc
    Dh = H // num_heads

    xmap = lambda c, l: (c, 0, 0)
    wmap = lambda c, l: (l, 0, 0)
    cmap = lambda c, l: (0, 0)

    return pl.pallas_call(
        functools.partial(_cm_stack_kernel, num_heads=num_heads,
                          scale=1.0 / math.sqrt(Dh)),
        out_shape=jax.ShapeDtypeStruct((B, Lq, H), jnp.float32),
        grid=(nc, nl),
        in_specs=[
            pl.BlockSpec((CB, Lq, H), xmap),
            pl.BlockSpec((CB, Lk, H), xmap),
            pl.BlockSpec((1, H), cmap), pl.BlockSpec((1, H), cmap),   # final LN
            pl.BlockSpec((1, H, H), wmap), pl.BlockSpec((1, 1, H), wmap),
            pl.BlockSpec((1, H, 2 * H), wmap), pl.BlockSpec((1, 1, 2 * H), wmap),
            pl.BlockSpec((1, H, H), wmap), pl.BlockSpec((1, 1, H), wmap),
            pl.BlockSpec((1, 1, H), wmap), pl.BlockSpec((1, 1, H), wmap),   # ln1
            pl.BlockSpec((1, H, I), wmap), pl.BlockSpec((1, 1, I), wmap),
            pl.BlockSpec((1, I, H), wmap), pl.BlockSpec((1, 1, H), wmap),
            pl.BlockSpec((1, 1, H), wmap), pl.BlockSpec((1, 1, H), wmap),   # ln2
        ],
        out_specs=pl.BlockSpec((CB, Lq, H), xmap),
        compiler_params=_PAR_ARB,
    )(xq, xkv, p["final_ln_g"], p["final_ln_b"],
      p["wq"], p["bq"], p["wkv"], p["bkv"], p["wo"], p["bo"],
      p["ln1_g"], p["ln1_b"], p["w1"], p["b1"], p["w2"], p["b2"],
      p["ln2_g"], p["ln2_b"])


# --------------------------------------------------------------------------- composite modules

def bert_model(input_ids, attention_mask, p, num_heads):
    """Stand-in for BertModel.from_pretrained (deterministic init, same interface)."""
    B, T = input_ids.shape
    emb = (jnp.take(p["word_emb"], input_ids, axis=0)
           + p["pos_emb"][:T][None, :, :]
           + p["type_emb"][0][None, None, :])
    add_mask = ((1.0 - attention_mask.astype(jnp.float32)) * -10000.0)[:, None, :]
    return self_attn_stack(emb, add_mask, p["stack"], num_heads, act="gelu")


def meld_trans_encoder(x_raw, utt_mask, p_lin, p_enc, num_heads):
    # TODO(synk): MELDTransEncoder source not provided — reconstructed as learned
    # positional embedding + LN + N BERT-style self-attention layers, with the
    # modality linear projection fused into the embedding kernel.
    N, L, D = x_raw.shape
    H = p_lin["w"].shape[1]
    emb = pl.pallas_call(
        _proj_pos_kernel,
        out_shape=jax.ShapeDtypeStruct((N, L, H), jnp.float32),
    )(x_raw, p_lin["w"], p_lin["b"], p_enc["pos_emb"][:L])
    add_mask = ((1.0 - utt_mask) * -10000.0)[:, None, :]
    return self_attn_stack(emb, add_mask, p_enc["stack"], num_heads, act="gelu")


def _sinusoidal_pos_emb(L, dim):
    half = dim // 2
    freqs = np.exp(np.arange(half) * -(np.log(10000.0) / max(half - 1, 1)))
    pos = np.arange(L)[:, None] * freqs[None, :]
    return jnp.asarray(np.concatenate([np.sin(pos), np.cos(pos)], axis=1), jnp.float32)


def crossmodal_transformer(x_q, x_kv, p, num_heads):
    # TODO(synk): CrossModalTransformerEncoder source not provided — reconstructed
    # MulT-style: embed-scale + sinusoidal positions, pre-LN cross-attention,
    # ReLU FFN, residuals, final LN.  Batch-first layout (layout-equivalent to the
    # seq-first PyTorch code; the (L,B,H)<->(B,L,H) transposes carry no semantics).
    B, Lq, H = x_q.shape
    Lk = x_kv.shape[1]
    emb_scale = math.sqrt(H)
    xq = emb_scale * x_q + _sinusoidal_pos_emb(Lq, H)[None]
    xkv = emb_scale * x_kv + _sinusoidal_pos_emb(Lk, H)[None]
    return cm_stack(xq, xkv, p, num_heads)


def gather_sep_feats(text_feat, sep_mask, curr_num, max_dia_len):
    """Equivalent of masked_select(sep_mask) + the per-dialogue scatter loop."""
    B, T, H = text_feat.shape
    pos = jnp.where(sep_mask > 0, jnp.arange(T)[None, :], T)          # (B, T)
    pos_sorted = jnp.sort(pos, axis=1)[:, :max_dia_len]               # (B, L)
    safe_pos = jnp.minimum(pos_sorted, T - 1)
    gathered = jnp.take_along_axis(text_feat, safe_pos[:, :, None], axis=1)  # (B, L, H)
    valid = (jnp.arange(max_dia_len)[None, :] < curr_num[:, None])[..., None]
    return jnp.where(valid, gathered, 0.0)


# --------------------------------------------------------------------------- forward

def forward(params, cfg,
            batch_text_input_ids, batch_text_input_mask, batch_text_sep_mask,
            audio_inputs, audio_mask, vision_inputs, vision_mask,
            sel_idx, curr_numUtt_in_dia):
    H = cfg["hidden_size"]
    B, L, A_len, A_dim = audio_inputs.shape

    # ---- audio: fused (proj + pos) -> fused self-attn stack -> additive-attn pooling
    a_in = audio_inputs.reshape(B * L, A_len, A_dim)
    a_mask2 = audio_mask.reshape(B * L, A_len).astype(jnp.float32)
    a_trans = meld_trans_encoder(a_in, a_mask2, params["audio_linear"],
                                 params["audio_utt_transformer"], cfg["utt_heads"])
    audio_utt = additive_attention_pool(a_trans, a_mask2,
                                        params["attention_pooling"]).reshape(B, L, H)

    # ---- text: BERT-style encoder + linear + SEP-token selection into (B, L, H)
    seq_out = bert_model(batch_text_input_ids, batch_text_input_mask,
                         params["roberta"], cfg["bert_heads"])
    text_lin = linear(seq_out, params["text_linear"]["w"], params["text_linear"]["b"])
    text_utt = gather_sep_feats(text_lin, batch_text_sep_mask, curr_numUtt_in_dia, L)

    # ---- vision
    _, _, V_len, V_dim = vision_inputs.shape
    v_in = vision_inputs.reshape(B * L, V_len, V_dim)
    v_mask2 = vision_mask.reshape(B * L, V_len).astype(jnp.float32)
    v_trans = meld_trans_encoder(v_in, v_mask2, params["vision_linear"],
                                 params["vision_utt_transformer"], cfg["utt_heads"])
    vision_utt = additive_attention_pool(v_trans, v_mask2,
                                         params["attention_pooling"]).reshape(B, L, H)

    # ---- crossmodal fusion (batch-first throughout; weight sharing as in PyTorch)
    t_cross_a = crossmodal_transformer(text_utt, audio_utt, params["cmt_ta"], cfg["cm_heads"])
    a_cross_t = crossmodal_transformer(audio_utt, text_utt, params["cmt_ta"], cfg["cm_heads"])
    ta = concat_linear(t_cross_a, a_cross_t, params["mm_linear2"])

    v_cross_ta = crossmodal_transformer(vision_utt, ta, params["cmt_tav"], cfg["cm_heads"])
    ta_cross_v = crossmodal_transformer(ta, vision_utt, params["cmt_tav"], cfg["cm_heads"])
    final = concat_linear(ta_cross_v, v_cross_ta, params["mm_linear2"])

    # masked_select(dia_mask): dynamic-shape op — done with host-precomputed static
    # indices (sel_idx) so the whole forward stays inside jax.jit.
    multimodal_out = final.reshape(B * L, H)[sel_idx]
    # dropout is identity in eval mode
    return linear(multimodal_out, params["classifier"]["w"], params["classifier"]["b"])


# --------------------------------------------------------------------------- parameters

def init_params(key, cfg):
    keys = iter(jax.random.split(key, 512))
    bf = jnp.bfloat16

    def w(shape, dtype=jnp.float32):
        return (jax.random.normal(next(keys), shape, jnp.float32) * 0.02).astype(dtype)

    def lin(in_d, out_d):
        return {"w": w((in_d, out_d), bf), "b": jnp.zeros((1, out_d), jnp.float32)}

    def ones2(d): return jnp.ones((1, d), jnp.float32)
    def zeros2(d): return jnp.zeros((1, d), jnp.float32)

    def self_stack_params(nl, h, inter):
        return {
            "in_ln_g": ones2(h), "in_ln_b": zeros2(h),
            "wqkv": w((nl, h, 3 * h), bf), "bqkv": jnp.zeros((nl, 1, 3 * h), jnp.float32),
            "wo": w((nl, h, h), bf), "bo": jnp.zeros((nl, 1, h), jnp.float32),
            "ln1_g": jnp.ones((nl, 1, h), jnp.float32), "ln1_b": jnp.zeros((nl, 1, h), jnp.float32),
            "w1": w((nl, h, inter), bf), "b1": jnp.zeros((nl, 1, inter), jnp.float32),
            "w2": w((nl, inter, h), bf), "b2": jnp.zeros((nl, 1, h), jnp.float32),
            "ln2_g": jnp.ones((nl, 1, h), jnp.float32), "ln2_b": jnp.zeros((nl, 1, h), jnp.float32),
        }

    def cm_stack_params(nl, h, inter):
        return {
            "wq": w((nl, h, h), bf), "bq": jnp.zeros((nl, 1, h), jnp.float32),
            "wkv": w((nl, h, 2 * h), bf), "bkv": jnp.zeros((nl, 1, 2 * h), jnp.float32),
            "wo": w((nl, h, h), bf), "bo": jnp.zeros((nl, 1, h), jnp.float32),
            "ln1_g": jnp.ones((nl, 1, h), jnp.float32), "ln1_b": jnp.zeros((nl, 1, h), jnp.float32),
            "w1": w((nl, h, inter), bf), "b1": jnp.zeros((nl, 1, inter), jnp.float32),
            "w2": w((nl, inter, h), bf), "b2": jnp.zeros((nl, 1, h), jnp.float32),
            "ln2_g": jnp.ones((nl, 1, h), jnp.float32), "ln2_b": jnp.zeros((nl, 1, h), jnp.float32),
            "final_ln_g": ones2(h), "final_ln_b": zeros2(h),
        }

    H = cfg["hidden_size"]
    BH = cfg["bert_hidden"]

    roberta = {
        "word_emb": w((cfg["vocab_size"], BH)),
        "pos_emb": w((cfg["bert_max_pos"], BH)),
        "type_emb": w((2, BH)),
        "stack": self_stack_params(cfg["bert_layers"], BH, cfg["bert_intermediate"]),
    }

    def meld_enc(num_layers, max_len):
        return {"pos_emb": w((max_len, H)),
                "stack": self_stack_params(num_layers, H, cfg["utt_intermediate"])}

    mm2_w = w((2 * H, H), bf)
    return {
        "roberta": roberta,
        "text_linear": lin(BH, H),
        "audio_linear": lin(cfg["audio_featExtr_dim"], H),
        "vision_linear": lin(cfg["vision_featExtr_dim"], H),
        "audio_utt_transformer": meld_enc(cfg["audio_utt_Transformernum"],
                                          cfg["get_audio_utt_max_lens"]),
        "vision_utt_transformer": meld_enc(cfg["vision_utt_Transformernum"],
                                           cfg["get_vision_utt_max_lens"]),
        "attention_pooling": {"w": w((H, H), bf), "b": zeros2(H), "v": w((1, H))},
        "cmt_ta": cm_stack_params(cfg["crossmodal_layers_TA"], H, cfg["cm_intermediate"]),
        "cmt_tav": cm_stack_params(cfg["crossmodal_layers_TA_V"], H, cfg["cm_intermediate"]),
        "mm_linear2": {"w1": mm2_w[:H], "w2": mm2_w[H:], "b": zeros2(H)},
        "classifier": lin(H, cfg["num_labels"]),
    }


# --------------------------------------------------------------------------- main

if __name__ == "__main__":
    cfg = dict(
        hidden_size=32, num_labels=4,
        audio_featExtr_dim=64, get_audio_utt_max_lens=8, audio_utt_Transformernum=1,
        vision_featExtr_dim=48, get_vision_utt_max_lens=8, vision_utt_Transformernum=1,
        utt_heads=4, utt_intermediate=64,
        bert_hidden=64, bert_layers=1, bert_heads=4, bert_intermediate=128,
        vocab_size=100, bert_max_pos=32,
        crossmodal_layers_TA=1, crossmodal_layers_TA_V=1, cm_heads=4, cm_intermediate=64,
    )

    key = jax.random.PRNGKey(0)
    pkey, dkey = jax.random.split(key)
    params = init_params(pkey, cfg)

    B, L, T = 2, 4, 16
    k1, k2, k3 = jax.random.split(dkey, 3)

    audio_inputs = jax.random.normal(k1, (B, L, 8, cfg["audio_featExtr_dim"]), jnp.float32)
    audio_lens = jnp.array([[6, 8, 5, 7], [8, 4, 6, 8]], jnp.int32)
    audio_mask = (jnp.arange(8)[None, None, :] < audio_lens[:, :, None]).astype(jnp.int32)

    vision_inputs = jax.random.normal(k2, (B, L, 8, cfg["vision_featExtr_dim"]), jnp.float32)
    vision_lens = jnp.array([[5, 7, 8, 6], [8, 8, 3, 5]], jnp.int32)
    vision_mask = (jnp.arange(8)[None, None, :] < vision_lens[:, :, None]).astype(jnp.int32)

    batch_text_input_ids = jax.random.randint(k3, (B, T), 0, cfg["vocab_size"])
    batch_text_input_mask = jnp.ones((B, T), jnp.int32)

    # dialogue 0 has 3 utterances, dialogue 1 has 4 (SEP positions per utterance)
    curr_numUtt_in_dia = jnp.array([3, 4], jnp.int32)
    sep_np = np.zeros((B, T), np.int32)
    sep_np[0, [4, 9, 14]] = 1
    sep_np[1, [3, 7, 11, 15]] = 1
    batch_text_sep_mask = jnp.asarray(sep_np)

    dia_mask = np.array([[1, 1, 1, 0], [1, 1, 1, 1]], np.int32)
    # host-precomputed static indices for the dynamic masked_select(dia_mask)
    sel_idx = jnp.asarray(np.nonzero(dia_mask.reshape(-1))[0], jnp.int32)

    @jax.jit
    def fwd(params, text_ids, text_mask, sep_mask, a_in, a_mask, v_in, v_mask,
            sel, curr_num):
        return forward(params, cfg, text_ids, text_mask, sep_mask,
                       a_in, a_mask, v_in, v_mask, sel, curr_num)

    logits = fwd(params, batch_text_input_ids, batch_text_input_mask,
                 batch_text_sep_mask, audio_inputs, audio_mask,
                 vision_inputs, vision_mask, sel_idx, curr_numUtt_in_dia)
    jax.block_until_ready(logits)
    assert logits.shape == (int(dia_mask.sum()), cfg["num_labels"])
    assert bool(jnp.all(jnp.isfinite(logits)))
    print("KERNEL_OK")
</pallas_src>

<mosaic_0001>
module attributes {stable_mosaic.version = 11 : i64} {
  func.func @_proj_pos_kernel(%arg0: memref<8x8x48xf32, #tpu.memory_space<vmem>>, %arg1: memref<48x32xbf16, #tpu.memory_space<vmem>>, %arg2: memref<1x32xf32, #tpu.memory_space<vmem>>, %arg3: memref<8x32xf32, #tpu.memory_space<vmem>>, %arg4: memref<8x8x32xf32, #tpu.memory_space<vmem>>) attributes {dimension_semantics = [], scalar_prefetch = 0 : i64, scratch_operands = 0 : i64, tpu.core_type = #tpu.core_type<tc>} {
    %c0 = arith.constant 0 : index
    %c0_0 = arith.constant 0 : index
    %c0_1 = arith.constant 0 : index
    %0 = vector.load %arg0[%c0, %c0_0, %c0_1] : memref<8x8x48xf32, #tpu.memory_space<vmem>>, vector<8x8x48xf32>
    %1 = vector.shape_cast %0 : vector<8x8x48xf32> to vector<64x48xf32>
    %2 = arith.truncf %1 : vector<64x48xf32> to vector<64x48xbf16>
    %c0_2 = arith.constant 0 : index
    %c0_3 = arith.constant 0 : index
    %3 = vector.load %arg1[%c0_2, %c0_3] : memref<48x32xbf16, #tpu.memory_space<vmem>>, vector<48x32xbf16>
    %cst = arith.constant dense<0.000000e+00> : vector<64x32xf32>
    %4 = tpu.matmul %2, %3, %cst {dimension_numbers = #tpu.dot_dimension_numbers<[1], [0], [0], [1], [0, 0, 1, 1], [], []>} : vector<64x48xbf16>, vector<48x32xbf16>, vector<64x32xf32> -> vector<64x32xf32>
    %c0_4 = arith.constant 0 : index
    %c0_5 = arith.constant 0 : index
    %5 = vector.load %arg2[%c0_4, %c0_5] : memref<1x32xf32, #tpu.memory_space<vmem>>, vector<1x32xf32>
    %6 = vector.broadcast %5 : vector<1x32xf32> to vector<64x32xf32>
    %7 = arith.addf %4, %6 : vector<64x32xf32>
    %8 = vector.shape_cast %7 : vector<64x32xf32> to vector<8x8x32xf32>
    %c0_6 = arith.constant 0 : index
    %c0_7 = arith.constant 0 : index
    %9 = vector.load %arg3[%c0_6, %c0_7] : memref<8x32xf32, #tpu.memory_space<vmem>>, vector<8x32xf32>
    %10 = vector.shape_cast %9 : vector<8x32xf32> to vector<1x8x32xf32>
    %11 = vector.broadcast %10 : vector<1x8x32xf32> to vector<8x8x32xf32>
    %12 = arith.addf %8, %11 : vector<8x8x32xf32>
    %c0_8 = arith.constant 0 : index
    %c0_9 = arith.constant 0 : index
    %c0_10 = arith.constant 0 : index
    %13 = vector.load %arg4[%c0_8, %c0_9, %c0_10] : memref<8x8x32xf32, #tpu.memory_space<vmem>>, vector<8x8x32xf32>
    tpu.vector_store %arg4[%c0_8, %c0_9, %c0_10], %12 {strides = array<i32>} : memref<8x8x32xf32, #tpu.memory_space<vmem>>, vector<8x8x32xf32>,
    return
  }
}

module attributes {stable_mosaic.version = 11 : i64} {
  func.func @_self_stack_kernel(%arg0: i32, %arg1: i32, %arg2: memref<4x8x32xf32, #tpu.memory_space<vmem>>, %arg3: memref<4x1x8xf32, #tpu.memory_space<vmem>>, %arg4: memref<1x32xf32, #tpu.memory_space<vmem>>, %arg5: memref<1x32xf32, #tpu.memory_space<vmem>>, %arg6: memref<1x32x96xbf16, #tpu.memory_space<vmem>>, %arg7: memref<1x1x96xf32, #tpu.memory_space<vmem>>, %arg8: memref<1x32x32xbf16, #tpu.memory_space<vmem>>, %arg9: memref<1x1x32xf32, #tpu.memory_space<vmem>>, %arg10: memref<1x1x32xf32, #tpu.memory_space<vmem>>, %arg11: memref<1x1x32xf32, #tpu.memory_space<vmem>>, %arg12: memref<1x32x64xbf16, #tpu.memory_space<vmem>>, %arg13: memref<1x1x64xf32, #tpu.memory_space<vmem>>, %arg14: memref<1x64x32xbf16, #tpu.memory_space<vmem>>, %arg15: memref<1x1x32xf32, #tpu.memory_space<vmem>>, %arg16: memref<1x1x32xf32, #tpu.memory_space<vmem>>, %arg17: memref<1x1x32xf32, #tpu.memory_space<vmem>>, %arg18: memref<4x8x32xf32, #tpu.memory_space<vmem>>) attributes {dimension_semantics = [#tpu.dimension_semantics<parallel>, #tpu.dimension_semantics<arbitrary>], iteration_bounds = array<i64: 2, 1>, scalar_prefetch = 0 : i64, scratch_operands = 0 : i64, tpu.core_type = #tpu.core_type<tc>, window_params = [{transform_indices = @transform_0, window_bounds = array<i64: 4, 8, 32>}, {transform_indices = @transform_1, window_bounds = array<i64: 4, 1, 8>}, {pipeline_mode = #tpu.pipeline_mode<synchronous>, transform_indices = @transform_2, window_bounds = array<i64: 1, 32>}, {pipeline_mode = #tpu.pipeline_mode<synchronous>, transform_indices = @transform_3, window_bounds = array<i64: 1, 32>}, {transform_indices = @transform_4, window_bounds = array<i64: 1, 32, 96>}, {transform_indices = @transform_5, window_bounds = array<i64: 1, 1, 96>}, {transform_indices = @transform_6, window_bounds = array<i64: 1, 32, 32>}, {transform_indices = @transform_7, window_bounds = array<i64: 1, 1, 32>}, {transform_indices = @transform_8, window_bounds = array<i64: 1, 1, 32>}, {transform_indices = @transform_9, window_bounds = array<i64: 1, 1, 32>}, {transform_indices = @transform_10, window_bounds = array<i64: 1, 32, 64>}, {transform_indices = @transform_11, window_bounds = array<i64: 1, 1, 64>}, {transform_indices = @transform_12, window_bounds = array<i64: 1, 64, 32>}, {transform_indices = @transform_13, window_bounds = array<i64: 1, 1, 32>}, {transform_indices = @transform_14, window_bounds = array<i64: 1, 1, 32>}, {transform_indices = @transform_15, window_bounds = array<i64: 1, 1, 32>}, {transform_indices = @transform_16, window_bounds = array<i64: 4, 8, 32>}]} {
    %c0_i32 = arith.constant 0 : i32
    %0 = arith.cmpi eq, %arg1, %c0_i32 : i32
    %1 = arith.extui %0 : i1 to i32
    %c0_i32_0 = arith.constant 0 : i32
    %2 = arith.cmpi ne, %1, %c0_i32_0 : i32
    scf.if %2 {
      %c0_82 = arith.constant 0 : index
      %c0_83 = arith.constant 0 : index
      %c0_84 = arith.constant 0 : index
      %182 = vector.load %arg2[%c0_82, %c0_83, %c0_84] : memref<4x8x32xf32, #tpu.memory_space<vmem>>, vector<4x8x32xf32>
      %c0_85 = arith.constant 0 : index
      %c0_86 = arith.constant 0 : index
      %183 = vector.load %arg4[%c0_85, %c0_86] : memref<1x32xf32, #tpu.memory_space<vmem>>, vector<1x32xf32>
      %c0_87 = arith.constant 0 : index
      %c0_88 = arith.constant 0 : index
      %184 = vector.load %arg5[%c0_87, %c0_88] : memref<1x32xf32, #tpu.memory_space<vmem>>, vector<1x32xf32>
      %cst_89 = arith.constant dense<0.000000e+00> : vector<4x8xf32>
      %185 = vector.multi_reduction <add>, %182, %cst_89 [2] : vector<4x8x32xf32> to vector<4x8xf32>
      %186 = vector.shape_cast %185 : vector<4x8xf32> to vector<4x8x1xf32>
      %cst_90 = arith.constant 3.200000e+01 : f32
      %187 = vector.broadcast %cst_90 : f32 to vector<4x8x1xf32>
      %188 = arith.divf %186, %187 : vector<4x8x1xf32>
      %189 = vector.broadcast %188 : vector<4x8x1xf32> to vector<4x8x32xf32>
      %190 = arith.subf %182, %189 : vector<4x8x32xf32>
      %191 = arith.mulf %190, %190 : vector<4x8x32xf32>
      %cst_91 = arith.constant dense<0.000000e+00> : vector<4x8xf32>
      %192 = vector.multi_reduction <add>, %191, %cst_91 [2] : vector<4x8x32xf32> to vector<4x8xf32>
      %193 = vector.shape_cast %192 : vector<4x8xf32> to vector<4x8x1xf32>
      %cst_92 = arith.constant 3.200000e+01 : f32
      %194 = vector.broadcast %cst_92 : f32 to vector<4x8x1xf32>
      %195 = arith.divf %193, %194 : vector<4x8x1xf32>
      %cst_93 = arith.constant 9.99999974E-6 : f32
      %196 = vector.broadcast %cst_93 : f32 to vector<4x8x1xf32>
      %197 = arith.addf %195, %196 : vector<4x8x1xf32>
      %198 = math.rsqrt %197 : vector<4x8x1xf32>
      %199 = vector.broadcast %198 : vector<4x8x1xf32> to vector<4x8x32xf32>
      %200 = arith.mulf %190, %199 : vector<4x8x32xf32>
      %201 = vector.shape_cast %183 : vector<1x32xf32> to vector<1x1x32xf32>
      %202 = vector.broadcast %201 : vector<1x1x32xf32> to vector<4x8x32xf32>
      %203 = arith.mulf %200, %202 : vector<4x8x32xf32>
      %204 = vector.shape_cast %184 : vector<1x32xf32> to vector<1x1x32xf32>
      %205 = vector.broadcast %204 : vector<1x1x32xf32> to vector<4x8x32xf32>
      %206 = arith.addf %203, %205 : vector<4x8x32xf32>
      %c0_94 = arith.constant 0 : index
      %c0_95 = arith.constant 0 : index
      %c0_96 = arith.constant 0 : index
      %207 = vector.load %arg18[%c0_94, %c0_95, %c0_96] : memref<4x8x32xf32, #tpu.memory_space<vmem>>, vector<4x8x32xf32>
      tpu.vector_store %arg18[%c0_94, %c0_95, %c0_96], %206 {strides = array<i32>} : memref<4x8x32xf32, #tpu.memory_space<vmem>>, vector<4x8x32xf32>,
    } else {
    }
    %c0 = arith.constant 0 : index
    %c0_1 = arith.constant 0 : index
    %c0_2 = arith.constant 0 : index
    %3 = vector.load %arg18[%c0, %c0_1, %c0_2] : memref<4x8x32xf32, #tpu.memory_space<vmem>>, vector<4x8x32xf32>
    %c0_3 = arith.constant 0 : index
    %c0_4 = arith.constant 0 : index
    %c0_5 = arith.constant 0 : index
    %4 = vector.load %arg3[%c0_3, %c0_4, %c0_5] : memref<4x1x8xf32, #tpu.memory_space<vmem>>, vector<4x1x8xf32>
    %5 = vector.shape_cast %3 : vector<4x8x32xf32> to vector<32x32xf32>
    %6 = arith.truncf %5 : vector<32x32xf32> to vector<32x32xbf16>
    %c0_6 = arith.constant 0 : index
    %c0_7 = arith.constant 0 : index
    %c0_8 = arith.constant 0 : index
    %7 = vector.load %arg6[%c0_6, %c0_7, %c0_8] : memref<1x32x96xbf16, #tpu.memory_space<vmem>>, vector<1x32x96xbf16>
    %8 = vector.shape_cast %7 : vector<1x32x96xbf16> to vector<32x96xbf16>
    %cst = arith.constant dense<0.000000e+00> : vector<32x96xf32>
    %9 = tpu.matmul %6, %8, %cst {dimension_numbers = #tpu.dot_dimension_numbers<[1], [0], [0], [1], [0, 0, 1, 1], [], []>} : vector<32x32xbf16>, vector<32x96xbf16>, vector<32x96xf32> -> vector<32x96xf32>
    %c0_9 = arith.constant 0 : index
    %c0_10 = arith.constant 0 : index
    %c0_11 = arith.constant 0 : index
    %10 = vector.load %arg7[%c0_9, %c0_10, %c0_11] : memref<1x1x96xf32, #tpu.memory_space<vmem>>, vector<1x1x96xf32>
    %11 = vector.shape_cast %10 : vector<1x1x96xf32> to vector<1x96xf32>
    %12 = vector.broadcast %11 : vector<1x96xf32> to vector<32x96xf32>
    %13 = arith.addf %9, %12 : vector<32x96xf32>
    %14 = vector.shape_cast %13 : vector<32x96xf32> to vector<4x8x96xf32>
    %15 = vector.extract_strided_slice %14 {offsets = [0, 0, 0], sizes = [4, 8, 8], strides = [1, 1, 1]} : vector<4x8x96xf32> to vector<4x8x8xf32>
    %16 = vector.extract_strided_slice %14 {offsets = [0, 0, 32], sizes = [4, 8, 8], strides = [1, 1, 1]} : vector<4x8x96xf32> to vector<4x8x8xf32>
    %17 = vector.extract_strided_slice %14 {offsets = [0, 0, 64], sizes = [4, 8, 8], strides = [1, 1, 1]} : vector<4x8x96xf32> to vector<4x8x8xf32>
    "tpu.trace_start"() <{level = 10 : i32, message = "bqd,bkd->bqk"}> : () -> ()
    %cst_12 = arith.constant dense<0.000000e+00> : vector<4x8x8xf32>
    %18 = tpu.matmul %15, %16, %cst_12 {dimension_numbers = #tpu.dot_dimension_numbers<[2], [2], [1], [1], [0, 0, 0, 1, 1, 1], [0], [0]>} : vector<4x8x8xf32>, vector<4x8x8xf32>, vector<4x8x8xf32> -> vector<4x8x8xf32>
    "tpu.trace_stop"() : () -> ()
    %cst_13 = arith.constant 0.353553385 : f32
    %19 = vector.broadcast %cst_13 : f32 to vector<4x8x8xf32>
    %20 = arith.mulf %18, %19 : vector<4x8x8xf32>
    %21 = vector.broadcast %4 : vector<4x1x8xf32> to vector<4x8x8xf32>
    %22 = arith.addf %20, %21 : vector<4x8x8xf32>
    %cst_14 = arith.constant dense<0xFF800000> : vector<4x8xf32>
    %23 = vector.multi_reduction <maximumf>, %22, %cst_14 [2] : vector<4x8x8xf32> to vector<4x8xf32>
    %24 = vector.shape_cast %23 : vector<4x8xf32> to vector<4x8x1xf32>
    %25 = vector.broadcast %24 : vector<4x8x1xf32> to vector<4x8x8xf32>
    %26 = arith.subf %22, %25 : vector<4x8x8xf32>
    %27 = math.exp %26 : vector<4x8x8xf32>
    %cst_15 = arith.constant dense<0.000000e+00> : vector<4x8xf32>
    %28 = vector.multi_reduction <add>, %27, %cst_15 [2] : vector<4x8x8xf32> to vector<4x8xf32>
    %29 = vector.shape_cast %28 : vector<4x8xf32> to vector<4x8x1xf32>
    %30 = tpu.reciprocal %29 {approx = true} : vector<4x8x1xf32> -> vector<4x8x1xf32>
    %31 = vector.broadcast %30 : vector<4x8x1xf32> to vector<4x8x8xf32>
    %32 = arith.mulf %27, %31 : vector<4x8x8xf32>
    "tpu.trace_start"() <{level = 10 : i32, message = "bqk,bkd->bqd"}> : () -> ()
    %cst_16 = arith.constant dense<0.000000e+00> : vector<4x8x8xf32>
    %33 = tpu.matmul %32, %17, %cst_16 {dimension_numbers = #tpu.dot_dimension_numbers<[2], [1], [1], [2], [0, 0, 0, 1, 1, 2], [0], [0]>} : vector<4x8x8xf32>, vector<4x8x8xf32>, vector<4x8x8xf32> -> vector<4x8x8xf32>
    "tpu.trace_stop"() : () -> ()
    %34 = vector.extract_strided_slice %14 {offsets = [0, 0, 8], sizes = [4, 8, 8], strides = [1, 1, 1]} : vector<4x8x96xf32> to vector<4x8x8xf32>
    %35 = vector.extract_strided_slice %14 {offsets = [0, 0, 40], sizes = [4, 8, 8], strides = [1, 1, 1]} : vector<4x8x96xf32> to vector<4x8x8xf32>
    %36 = vector.extract_strided_slice %14 {offsets = [0, 0, 72], sizes = [4, 8, 8], strides = [1, 1, 1]} : vector<4x8x96xf32> to vector<4x8x8xf32>
    "tpu.trace_start"() <{level = 10 : i32, message = "bqd,bkd->bqk"}> : () -> ()
    %cst_17 = arith.constant dense<0.000000e+00> : vector<4x8x8xf32>
    %37 = tpu.matmul %34, %35, %cst_17 {dimension_numbers = #tpu.dot_dimension_numbers<[2], [2], [1], [1], [0, 0, 0, 1, 1, 1], [0], [0]>} : vector<4x8x8xf32>, vector<4x8x8xf32>, vector<4x8x8xf32> -> vector<4x8x8xf32>
    "tpu.trace_stop"() : () -> ()
    %cst_18 = arith.constant 0.353553385 : f32
    %38 = vector.broadcast %cst_18 : f32 to vector<4x8x8xf32>
    %39 = arith.mulf %37, %38 : vector<4x8x8xf32>
    %40 = vector.broadcast %4 : vector<4x1x8xf32> to vector<4x8x8xf32>
    %41 = arith.addf %39, %40 : vector<4x8x8xf32>
    %cst_19 = arith.constant dense<0xFF800000> : vector<4x8xf32>
    %42 = vector.multi_reduction <maximumf>, %41, %cst_19 [2] : vector<4x8x8xf32> to vector<4x8xf32>
    %43 = vector.shape_cast %42 : vector<4x8xf32> to vector<4x8x1xf32>
    %44 = vector.broadcast %43 : vector<4x8x1xf32> to vector<4x8x8xf32>
    %45 = arith.subf %41, %44 : vector<4x8x8xf32>
    %46 = math.exp %45 : vector<4x8x8xf32>
    %cst_20 = arith.constant dense<0.000000e+00> : vector<4x8xf32>
    %47 = vector.multi_reduction <add>, %46, %cst_20 [2] : vector<4x8x8xf32> to vector<4x8xf32>
    %48 = vector.shape_cast %47 : vector<4x8xf32> to vector<4x8x1xf32>
    %49 = tpu.reciprocal %48 {approx = true} : vector<4x8x1xf32> -> vector<4x8x1xf32>
    %50 = vector.broadcast %49 : vector<4x8x1xf32> to vector<4x8x8xf32>
    %51 = arith.mulf %46, %50 : vector<4x8x8xf32>
    "tpu.trace_start"() <{level = 10 : i32, message = "bqk,bkd->bqd"}> : () -> ()
    %cst_21 = arith.constant dense<0.000000e+00> : vector<4x8x8xf32>
    %52 = tpu.matmul %51, %36, %cst_21 {dimension_numbers = #tpu.dot_dimension_numbers<[2], [1], [1], [2], [0, 0, 0, 1, 1, 2], [0], [0]>} : vector<4x8x8xf32>, vector<4x8x8xf32>, vector<4x8x8xf32> -> vector<4x8x8xf32>
    "tpu.trace_stop"() : () -> ()
    %53 = vector.extract_strided_slice %14 {offsets = [0, 0, 16], sizes = [4, 8, 8], strides = [1, 1, 1]} : vector<4x8x96xf32> to vector<4x8x8xf32>
    %54 = vector.extract_strided_slice %14 {offsets = [0, 0, 48], sizes = [4, 8, 8], strides = [1, 1, 1]} : vector<4x8x96xf32> to vector<4x8x8xf32>
    %55 = vector.extract_strided_slice %14 {offsets = [0, 0, 80], sizes = [4, 8, 8], strides = [1, 1, 1]} : vector<4x8x96xf32> to vector<4x8x8xf32>
    "tpu.trace_start"() <{level = 10 : i32, message = "bqd,bkd->bqk"}> : () -> ()
    %cst_22 = arith.constant dense<0.000000e+00> : vector<4x8x8xf32>
    %56 = tpu.matmul %53, %54, %cst_22 {dimension_numbers = #tpu.dot_dimension_numbers<[2], [2], [1], [1], [0, 0, 0, 1, 1, 1], [0], [0]>} : vector<4x8x8xf32>, vector<4x8x8xf32>, vector<4x8x8xf32> -> vector<4x8x8xf32>
    "tpu.trace_stop"() : () -> ()
    %cst_23 = arith.constant 0.353553385 : f32
    %57 = vector.broadcast %cst_23 : f32 to vector<4x8x8xf32>
    %58 = arith.mulf %56, %57 : vector<4x8x8xf32>
    %59 = vector.broadcast %4 : vector<4x1x8xf32> to vector<4x8x8xf32>
    %60 = arith.addf %58, %59 : vector<4x8x8xf32>
    %cst_24 = arith.constant dense<0xFF800000> : vector<4x8xf32>
    %61 = vector.multi_reduction <maximumf>, %60, %cst_24 [2] : vector<4x8x8xf32> to vector<4x8xf32>
    %62 = vector.shape_cast %61 : vector<4x8xf32> to vector<4x8x1xf32>
    %63 = vector.broadcast %62 : vector<4x8x1xf32> to vector<4x8x8xf32>
    %64 = arith.subf %60, %63 : vector<4x8x8xf32>
    %65 = math.exp %64 : vector<4x8x8xf32>
    %cst_25 = arith.constant dense<0.000000e+00> : vector<4x8xf32>
    %66 = vector.multi_reduction <add>, %65, %cst_25 [2] : vector<4x8x8xf32> to vector<4x8xf32>
    %67 = vector.shape_cast %66 : vector<4x8xf32> to vector<4x8x1xf32>
    %68 = tpu.reciprocal %67 {approx = true} : vector<4x8x1xf32> -> vector<4x8x1xf32>
    %69 = vector.broadcast %68 : vector<4x8x1xf32> to vector<4x8x8xf32>
    %70 = arith.mulf %65, %69 : vector<4x8x8xf32>
    "tpu.trace_start"() <{level = 10 : i32, message = "bqk,bkd->bqd"}> : () -> ()
    %cst_26 = arith.constant dense<0.000000e+00> : vector<4x8x8xf32>
    %71 = tpu.matmul %70, %55, %cst_26 {dimension_numbers = #tpu.dot_dimension_numbers<[2], [1], [1], [2], [0, 0, 0, 1, 1, 2], [0], [0]>} : vector<4x8x8xf32>, vector<4x8x8xf32>, vector<4x8x8xf32> -> vector<4x8x8xf32>
    "tpu.trace_stop"() : () -> ()
    %72 = vector.extract_strided_slice %14 {offsets = [0, 0, 24], sizes = [4, 8, 8], strides = [1, 1, 1]} : vector<4x8x96xf32> to vector<4x8x8xf32>
    %73 = vector.extract_strided_slice %14 {offsets = [0, 0, 56], sizes = [4, 8, 8], strides = [1, 1, 1]} : vector<4x8x96xf32> to vector<4x8x8xf32>
    %74 = vector.extract_strided_slice %14 {offsets = [0, 0, 88], sizes = [4, 8, 8], strides = [1, 1, 1]} : vector<4x8x96xf32> to vector<4x8x8xf32>
    "tpu.trace_start"() <{level = 10 : i32, message = "bqd,bkd->bqk"}> : () -> ()
    %cst_27 = arith.constant dense<0.000000e+00> : vector<4x8x8xf32>
    %75 = tpu.matmul %72, %73, %cst_27 {dimension_numbers = #tpu.dot_dimension_numbers<[2], [2], [1], [1], [0, 0, 0, 1, 1, 1], [0], [0]>} : vector<4x8x8xf32>, vector<4x8x8xf32>, vector<4x8x8xf32> -> vector<4x8x8xf32>
    "tpu.trace_stop"() : () -> ()
    %cst_28 = arith.constant 0.353553385 : f32
    %76 = vector.broadcast %cst_28 : f32 to vector<4x8x8xf32>
    %77 = arith.mulf %75, %76 : vector<4x8x8xf32>
    %78 = vector.broadcast %4 : vector<4x1x8xf32> to vector<4x8x8xf32>
    %79 = arith.addf %77, %78 : vector<4x8x8xf32>
    %cst_29 = arith.constant dense<0xFF800000> : vector<4x8xf32>
    %80 = vector.multi_reduction <maximumf>, %79, %cst_29 [2] : vector<4x8x8xf32> to vector<4x8xf32>
    %81 = vector.shape_cast %80 : vector<4x8xf32> to vector<4x8x1xf32>
    %82 = vector.broadcast %81 : vector<4x8x1xf32> to vector<4x8x8xf32>
    %83 = arith.subf %79, %82 : vector<4x8x8xf32>
    %84 = math.exp %83 : vector<4x8x8xf32>
    %cst_30 = arith.constant dense<0.000000e+00> : vector<4x8xf32>
    %85 = vector.multi_reduction <add>, %84, %cst_30 [2] : vector<4x8x8xf32> to vector<4x8xf32>
    %86 = vector.shape_cast %85 : vector<4x8xf32> to vector<4x8x1xf32>
    %87 = tpu.reciprocal %86 {approx = true} : vector<4x8x1xf32> -> vector<4x8x1xf32>
    %88 = vector.broadcast %87 : vector<4x8x1xf32> to vector<4x8x8xf32>
    %89 = arith.mulf %84, %88 : vector<4x8x8xf32>
    "tpu.trace_start"() <{level = 10 : i32, message = "bqk,bkd->bqd"}> : () -> ()
    %cst_31 = arith.constant dense<0.000000e+00> : vector<4x8x8xf32>
    %90 = tpu.matmul %89, %74, %cst_31 {dimension_numbers = #tpu.dot_dimension_numbers<[2], [1], [1], [2], [0, 0, 0, 1, 1, 2], [0], [0]>} : vector<4x8x8xf32>, vector<4x8x8xf32>, vector<4x8x8xf32> -> vector<4x8x8xf32>
    "tpu.trace_stop"() : () -> ()
    %91 = tpu.concatenate %33, %52, %71, %90 in 2 : vector<4x8x8xf32>, vector<4x8x8xf32>, vector<4x8x8xf32>, vector<4x8x8xf32> -> vector<4x8x32xf32>
    %92 = vector.shape_cast %91 : vector<4x8x32xf32> to vector<32x32xf32>
    %93 = arith.truncf %92 : vector<32x32xf32> to vector<32x32xbf16>
    %c0_32 = arith.constant 0 : index
    %c0_33 = arith.constant 0 : index
    %c0_34 = arith.constant 0 : index
    %94 = vector.load %arg8[%c0_32, %c0_33, %c0_34] : memref<1x32x32xbf16, #tpu.memory_space<vmem>>, vector<1x32x32xbf16>
    %95 = vector.shape_cast %94 : vector<1x32x32xbf16> to vector<32x32xbf16>
    %cst_35 = arith.constant dense<0.000000e+00> : vector<32x32xf32>
    %96 = tpu.matmul %93, %95, %cst_35 {dimension_numbers = #tpu.dot_dimension_numbers<[1], [0], [0], [1], [0, 0, 1, 1], [], []>} : vector<32x32xbf16>, vector<32x32xbf16>, vector<32x32xf32> -> vector<32x32xf32>
    %c0_36 = arith.constant 0 : index
    %c0_37 = arith.constant 0 : index
    %c0_38 = arith.constant 0 : index
    %97 = vector.load %arg9[%c0_36, %c0_37, %c0_38] : memref<1x1x32xf32, #tpu.memory_space<vmem>>, vector<1x1x32xf32>
    %98 = vector.shape_cast %97 : vector<1x1x32xf32> to vector<1x32xf32>
    %99 = vector.broadcast %98 : vector<1x32xf32> to vector<32x32xf32>
    %100 = arith.addf %96, %99 : vector<32x32xf32>
    %101 = arith.addf %5, %100 : vector<32x32xf32>
    %c0_39 = arith.constant 0 : index
    %c0_40 = arith.constant 0 : index
    %c0_41 = arith.constant 0 : index
    %102 = vector.load %arg10[%c0_39, %c0_40, %c0_41] : memref<1x1x32xf32, #tpu.memory_space<vmem>>, vector<1x1x32xf32>
    %103 = vector.shape_cast %102 : vector<1x1x32xf32> to vector<1x32xf32>
    %c0_42 = arith.constant 0 : index
    %c0_43 = arith.constant 0 : index
    %c0_44 = arith.constant 0 : index
    %104 = vector.load %arg11[%c0_42, %c0_43, %c0_44] : memref<1x1x32xf32, #tpu.memory_space<vmem>>, vector<1x1x32xf32>
    %105 = vector.shape_cast %104 : vector<1x1x32xf32> to vector<1x32xf32>
    %cst_45 = arith.constant dense<0.000000e+00> : vector<32xf32>
    %106 = vector.multi_reduction <add>, %101, %cst_45 [1] : vector<32x32xf32> to vector<32xf32>
    %107 = vector.shape_cast %106 : vector<32xf32> to vector<32x1xf32>
    %cst_46 = arith.constant 3.200000e+01 : f32
    %108 = vector.broadcast %cst_46 : f32 to vector<32x1xf32>
    %109 = arith.divf %107, %108 : vector<32x1xf32>
    %110 = vector.broadcast %109 : vector<32x1xf32> to vector<32x32xf32>
    %111 = arith.subf %101, %110 : vector<32x32xf32>
    %112 = arith.mulf %111, %111 : vector<32x32xf32>
    %cst_47 = arith.constant dense<0.000000e+00> : vector<32xf32>
    %113 = vector.multi_reduction <add>, %112, %cst_47 [1] : vector<32x32xf32> to vector<32xf32>
    %114 = vector.shape_cast %113 : vector<32xf32> to vector<32x1xf32>
    %cst_48 = arith.constant 3.200000e+01 : f32
    %115 = vector.broadcast %cst_48 : f32 to vector<32x1xf32>
    %116 = arith.divf %114, %115 : vector<32x1xf32>
    %cst_49 = arith.constant 9.99999974E-6 : f32
    %117 = vector.broadcast %cst_49 : f32 to vector<32x1xf32>
    %118 = arith.addf %116, %117 : vector<32x1xf32>
    %119 = math.rsqrt %118 : vector<32x1xf32>
    %120 = vector.broadcast %119 : vector<32x1xf32> to vector<32x32xf32>
    %121 = arith.mulf %111, %120 : vector<32x32xf32>
    %122 = vector.broadcast %103 : vector<1x32xf32> to vector<32x32xf32>
    %123 = arith.mulf %121, %122 : vector<32x32xf32>
    %124 = vector.broadcast %105 : vector<1x32xf32> to vector<32x32xf32>
    %125 = arith.addf %123, %124 : vector<32x32xf32>
    %126 = arith.truncf %125 : vector<32x32xf32> to vector<32x32xbf16>
    %c0_50 = arith.constant 0 : index
    %c0_51 = arith.constant 0 : index
    %c0_52 = arith.constant 0 : index
    %127 = vector.load %arg12[%c0_50, %c0_51, %c0_52] : memref<1x32x64xbf16, #tpu.memory_space<vmem>>, vector<1x32x64xbf16>
    %128 = vector.shape_cast %127 : vector<1x32x64xbf16> to vector<32x64xbf16>
    %cst_53 = arith.constant dense<0.000000e+00> : vector<32x64xf32>
    %129 = tpu.matmul %126, %128, %cst_53 {dimension_numbers = #tpu.dot_dimension_numbers<[1], [0], [0], [1], [0, 0, 1, 1], [], []>} : vector<32x32xbf16>, vector<32x64xbf16>, vector<32x64xf32> -> vector<32x64xf32>
    %c0_54 = arith.constant 0 : index
    %c0_55 = arith.constant 0 : index
    %c0_56 = arith.constant 0 : index
    %130 = vector.load %arg13[%c0_54, %c0_55, %c0_56] : memref<1x1x64xf32, #tpu.memory_space<vmem>>, vector<1x1x64xf32>
    %131 = vector.shape_cast %130 : vector<1x1x64xf32> to vector<1x64xf32>
    %132 = vector.broadcast %131 : vector<1x64xf32> to vector<32x64xf32>
    %133 = arith.addf %129, %132 : vector<32x64xf32>
    %cst_57 = arith.constant 5.000000e-01 : f32
    %134 = vector.broadcast %cst_57 : f32 to vector<32x64xf32>
    %135 = arith.mulf %134, %133 : vector<32x64xf32>
    %cst_58 = arith.constant 4.471500e-02 : f32
    %136 = vector.broadcast %cst_58 : f32 to vector<32x64xf32>
    %137 = arith.mulf %136, %133 : vector<32x64xf32>
    %138 = arith.mulf %137, %133 : vector<32x64xf32>
    %139 = arith.mulf %138, %133 : vector<32x64xf32>
    %140 = arith.addf %133, %139 : vector<32x64xf32>
    %cst_59 = arith.constant 0.797884583 : f32
    %141 = vector.broadcast %cst_59 : f32 to vector<32x64xf32>
    %142 = arith.mulf %141, %140 : vector<32x64xf32>
    %143 = math.tanh %142 : vector<32x64xf32>
    %cst_60 = arith.constant 1.000000e+00 : f32
    %144 = vector.broadcast %cst_60 : f32 to vector<32x64xf32>
    %145 = arith.addf %144, %143 : vector<32x64xf32>
    %146 = arith.mulf %135, %145 : vector<32x64xf32>
    %147 = arith.truncf %146 : vector<32x64xf32> to vector<32x64xbf16>
    %c0_61 = arith.constant 0 : index
    %c0_62 = arith.constant 0 : index
    %c0_63 = arith.constant 0 : index
    %148 = vector.load %arg14[%c0_61, %c0_62, %c0_63] : memref<1x64x32xbf16, #tpu.memory_space<vmem>>, vector<1x64x32xbf16>
    %149 = vector.shape_cast %148 : vector<1x64x32xbf16> to vector<64x32xbf16>
    %cst_64 = arith.constant dense<0.000000e+00> : vector<32x32xf32>
    %150 = tpu.matmul %147, %149, %cst_64 {dimension_numbers = #tpu.dot_dimension_numbers<[1], [0], [0], [1], [0, 0, 1, 1], [], []>} : vector<32x64xbf16>, vector<64x32xbf16>, vector<32x32xf32> -> vector<32x32xf32>
    %c0_65 = arith.constant 0 : index
    %c0_66 = arith.constant 0 : index
    %c0_67 = arith.constant 0 : index
    %151 = vector.load %arg15[%c0_65, %c0_66, %c0_67] : memref<1x1x32xf32, #tpu.memory_space<vmem>>, vector<1x1x32xf32>
    %152 = vector.shape_cast %151 : vector<1x1x32xf32> to vector<1x32xf32>
    %153 = vector.broadcast %152 : vector<1x32xf32> to vector<32x32xf32>
    %154 = arith.addf %150, %153 : vector<32x32xf32>
    %155 = arith.addf %125, %154 : vector<32x32xf32>
    %c0_68 = arith.constant 0 : index
    %c0_69 = arith.constant 0 : index
    %c0_70 = arith.constant 0 : index
    %156 = vector.load %arg16[%c0_68, %c0_69, %c0_70] : memref<1x1x32xf32, #tpu.memory_space<vmem>>, vector<1x1x32xf32>
    %157 = vector.shape_cast %156 : vector<1x1x32xf32> to vector<1x32xf32>
    %c0_71 = arith.constant 0 : index
    %c0_72 = arith.constant 0 : index
    %c0_73 = arith.constant 0 : index
    %158 = vector.load %arg17[%c0_71, %c0_72, %c0_73] : memref<1x1x32xf32, #tpu.memory_space<vmem>>, vector<1x1x32xf32>
    %159 = vector.shape_cast %158 : vector<1x1x32xf32> to vector<1x32xf32>
    %cst_74 = arith.constant dense<0.000000e+00> : vector<32xf32>
    %160 = vector.multi_reduction <add>, %155, %cst_74 [1] : vector<32x32xf32> to vector<32xf32>
    %161 = vector.shape_cast %160 : vector<32xf32> to vector<32x1xf32>
    %cst_75 = arith.constant 3.200000e+01 : f32
    %162 = vector.broadcast %cst_75 : f32 to vector<32x1xf32>
    %163 = arith.divf %161, %162 : vector<32x1xf32>
    %164 = vector.broadcast %163 : vector<32x1xf32> to vector<32x32xf32>
    %165 = arith.subf %155, %164 : vector<32x32xf32>
    %166 = arith.mulf %165, %165 : vector<32x32xf32>
    %cst_76 = arith.constant dense<0.000000e+00> : vector<32xf32>
    %167 = vector.multi_reduction <add>, %166, %cst_76 [1] : vector<32x32xf32> to vector<32xf32>
    %168 = vector.shape_cast %167 : vector<32xf32> to vector<32x1xf32>
    %cst_77 = arith.constant 3.200000e+01 : f32
    %169 = vector.broadcast %cst_77 : f32 to vector<32x1xf32>
    %170 = arith.divf %168, %169 : vector<32x1xf32>
    %cst_78 = arith.constant 9.99999974E-6 : f32
    %171 = vector.broadcast %cst_78 : f32 to vector<32x1xf32>
    %172 = arith.addf %170, %171 : vector<32x1xf32>
    %173 = math.rsqrt %172 : vector<32x1xf32>
    %174 = vector.broadcast %173 : vector<32x1xf32> to vector<32x32xf32>
    %175 = arith.mulf %165, %174 : vector<32x32xf32>
    %176 = vector.broadcast %157 : vector<1x32xf32> to vector<32x32xf32>
    %177 = arith.mulf %175, %176 : vector<32x32xf32>
    %178 = vector.broadcast %159 : vector<1x32xf32> to vector<32x32xf32>
    %179 = arith.addf %177, %178 : vector<32x32xf32>
    %180 = vector.shape_cast %179 : vector<32x32xf32> to vector<4x8x32xf32>
    %c0_79 = arith.constant 0 : index
    %c0_80 = arith.constant 0 : index
    %c0_81 = arith.constant 0 : index
    %181 = vector.load %arg18[%c0_79, %c0_80, %c0_81] : memref<4x8x32xf32, #tpu.memory_space<vmem>>, vector<4x8x32xf32>
    tpu.vector_store %arg18[%c0_79, %c0_80, %c0_81], %180 {strides = array<i32>} : memref<4x8x32xf32, #tpu.memory_space<vmem>>, vector<4x8x32xf32>,
    return
  }
  func.func @transform_0(%arg0: i32, %arg1: i32) -> (i32, i32, i32) {
    %c0_i32 = arith.constant 0 : i32
    %c0_i32_0 = arith.constant 0 : i32
    %c0_i32_1 = arith.constant 0 : i32
    return %arg0, %c0_i32, %c0_i32_0 : i32, i32, i32
  }
  func.func @transform_1(%arg0: i32, %arg1: i32) -> (i32, i32, i32) {
    %c0_i32 = arith.constant 0 : i32
    %c0_i32_0 = arith.constant 0 : i32
    %c0_i32_1 = arith.constant 0 : i32
    return %arg0, %c0_i32, %c0_i32_0 : i32, i32, i32
  }
  func.func @transform_2(%arg0: i32, %arg1: i32) -> (i32, i32) {
    %c0_i32 = arith.constant 0 : i32
    %c0_i32_0 = arith.constant 0 : i32
    %c0_i32_1 = arith.constant 0 : i32
    return %c0_i32, %c0_i32_0 : i32, i32
  }
  func.func @transform_3(%arg0: i32, %arg1: i32) -> (i32, i32) {
    %c0_i32 = arith.constant 0 : i32
    %c0_i32_0 = arith.constant 0 : i32
    %c0_i32_1 = arith.constant 0 : i32
    return %c0_i32, %c0_i32_0 : i32, i32
  }
  func.func @transform_4(%arg0: i32, %arg1: i32) -> (i32, i32, i32) {
    %c0_i32 = arith.constant 0 : i32
    %c0_i32_0 = arith.constant 0 : i32
    %c0_i32_1 = arith.constant 0 : i32
    return %arg1, %c0_i32, %c0_i32_0 : i32, i32, i32
  }
  func.func @transform_5(%arg0: i32, %arg1: i32) -> (i32, i32, i32) {
    %c0_i32 = arith.constant 0 : i32
    %c0_i32_0 = arith.constant 0 : i32
    %c0_i32_1 = arith.constant 0 : i32
    return %arg1, %c0_i32, %c0_i32_0 : i32, i32, i32
  }
  func.func @transform_6(%arg0: i32, %arg1: i32) -> (i32, i32, i32) {
    %c0_i32 = arith.constant 0 : i32
    %c0_i32_0 = arith.constant 0 : i32
    %c0_i32_1 = arith.constant 0 : i32
    return %arg1, %c0_i32, %c0_i32_0 : i32, i32, i32
  }
  func.func @transform_7(%arg0: i32, %arg1: i32) -> (i32, i32, i32) {
    %c0_i32 = arith.constant 0 : i32
    %c0_i32_0 = arith.constant 0 : i32
    %c0_i32_1 = arith.constant 0 : i32
    return %arg1, %c0_i32, %c0_i32_0 : i32, i32, i32
  }
  func.func @transform_8(%arg0: i32, %arg1: i32) -> (i32, i32, i32) {
    %c0_i32 = arith.constant 0 : i32
    %c0_i32_0 = arith.constant 0 : i32
    %c0_i32_1 = arith.constant 0 : i32
    return %arg1, %c0_i32, %c0_i32_0 : i32, i32, i32
  }
  func.func @transform_9(%arg0: i32, %arg1: i32) -> (i32, i32, i32) {
    %c0_i32 = arith.constant 0 : i32
    %c0_i32_0 = arith.constant 0 : i32
    %c0_i32_1 = arith.constant 0 : i32
    return %arg1, %c0_i32, %c0_i32_0 : i32, i32, i32
  }
  func.func @transform_10(%arg0: i32, %arg1: i32) -> (i32, i32, i32) {
    %c0_i32 = arith.constant 0 : i32
    %c0_i32_0 = arith.constant 0 : i32
    %c0_i32_1 = arith.constant 0 : i32
    return %arg1, %c0_i32, %c0_i32_0 : i32, i32, i32
  }
  func.func @transform_11(%arg0: i32, %arg1: i32) -> (i32, i32, i32) {
    %c0_i32 = arith.constant 0 : i32
    %c0_i32_0 = arith.constant 0 : i32
    %c0_i32_1 = arith.constant 0 : i32
    return %arg1, %c0_i32, %c0_i32_0 : i32, i32, i32
  }
  func.func @transform_12(%arg0: i32, %arg1: i32) -> (i32, i32, i32) {
    %c0_i32 = arith.constant 0 : i32
    %c0_i32_0 = arith.constant 0 : i32
    %c0_i32_1 = arith.constant 0 : i32
    return %arg1, %c0_i32, %c0_i32_0 : i32, i32, i32
  }
  func.func @transform_13(%arg0: i32, %arg1: i32) -> (i32, i32, i32) {
    %c0_i32 = arith.constant 0 : i32
    %c0_i32_0 = arith.constant 0 : i32
    %c0_i32_1 = arith.constant 0 : i32
    return %arg1, %c0_i32, %c0_i32_0 : i32, i32, i32
  }
  func.func @transform_14(%arg0: i32, %arg1: i32) -> (i32, i32, i32) {
    %c0_i32 = arith.constant 0 : i32
    %c0_i32_0 = arith.constant 0 : i32
    %c0_i32_1 = arith.constant 0 : i32
    return %arg1, %c0_i32, %c0_i32_0 : i32, i32, i32
  }
  func.func @transform_15(%arg0: i32, %arg1: i32) -> (i32, i32, i32) {
    %c0_i32 = arith.constant 0 : i32
    %c0_i32_0 = arith.constant 0 : i32
    %c0_i32_1 = arith.constant 0 : i32
    return %arg1, %c0_i32, %c0_i32_0 : i32, i32, i32
  }
  func.func @transform_16(%arg0: i32, %arg1: i32) -> (i32, i32, i32) {
    %c0_i32 = arith.constant 0 : i32
    %c0_i32_0 = arith.constant 0 : i32
    %c0_i32_1 = arith.constant 0 : i32
    return %arg0, %c0_i32, %c0_i32_0 : i32, i32, i32
  }
}

module attributes {stable_mosaic.version = 11 : i64} {
  func.func @_addpool_kernel(%arg0: memref<8x8x32xf32, #tpu.memory_space<vmem>>, %arg1: memref<8x8x1xf32, #tpu.memory_space<vmem>>, %arg2: memref<32x32xbf16, #tpu.memory_space<vmem>>, %arg3: memref<1x32xf32, #tpu.memory_space<vmem>>, %arg4: memref<1x32xf32, #tpu.memory_space<vmem>>, %arg5: memref<8x32xf32, #tpu.memory_space<vmem>>) attributes {dimension_semantics = [], scalar_prefetch = 0 : i64, scratch_operands = 0 : i64, tpu.core_type = #tpu.core_type<tc>} {
    %c0 = arith.constant 0 : index
    %c0_0 = arith.constant 0 : index
    %c0_1 = arith.constant 0 : index
    %0 = vector.load %arg0[%c0, %c0_0, %c0_1] : memref<8x8x32xf32, #tpu.memory_space<vmem>>, vector<8x8x32xf32>
    %1 = vector.shape_cast %0 : vector<8x8x32xf32> to vector<64x32xf32>
    %2 = arith.truncf %1 : vector<64x32xf32> to vector<64x32xbf16>
    %c0_2 = arith.constant 0 : index
    %c0_3 = arith.constant 0 : index
    %3 = vector.load %arg2[%c0_2, %c0_3] : memref<32x32xbf16, #tpu.memory_space<vmem>>, vector<32x32xbf16>
    %cst = arith.constant dense<0.000000e+00> : vector<64x32xf32>
    %4 = tpu.matmul %2, %3, %cst {dimension_numbers = #tpu.dot_dimension_numbers<[1], [0], [0], [1], [0, 0, 1, 1], [], []>} : vector<64x32xbf16>, vector<32x32xbf16>, vector<64x32xf32> -> vector<64x32xf32>
    %c0_4 = arith.constant 0 : index
    %c0_5 = arith.constant 0 : index
    %5 = vector.load %arg3[%c0_4, %c0_5] : memref<1x32xf32, #tpu.memory_space<vmem>>, vector<1x32xf32>
    %6 = vector.broadcast %5 : vector<1x32xf32> to vector<64x32xf32>
    %7 = arith.addf %4, %6 : vector<64x32xf32>
    %8 = math.tanh %7 : vector<64x32xf32>
    %9 = vector.shape_cast %8 : vector<64x32xf32> to vector<8x8x32xf32>
    %c0_6 = arith.constant 0 : index
    %c0_7 = arith.constant 0 : index
    %10 = vector.load %arg4[%c0_6, %c0_7] : memref<1x32xf32, #tpu.memory_space<vmem>>, vector<1x32xf32>
    %11 = vector.shape_cast %10 : vector<1x32xf32> to vector<1x1x32xf32>
    %12 = vector.broadcast %11 : vector<1x1x32xf32> to vector<8x8x32xf32>
    %13 = arith.mulf %9, %12 : vector<8x8x32xf32>
    %cst_8 = arith.constant dense<0.000000e+00> : vector<8x8xf32>
    %14 = vector.multi_reduction <add>, %13, %cst_8 [2] : vector<8x8x32xf32> to vector<8x8xf32>
    %15 = vector.shape_cast %14 : vector<8x8xf32> to vector<8x8x1xf32>
    %c0_9 = arith.constant 0 : index
    %c0_10 = arith.constant 0 : index
    %c0_11 = arith.constant 0 : index
    %16 = vector.load %arg1[%c0_9, %c0_10, %c0_11] : memref<8x8x1xf32, #tpu.memory_space<vmem>>, vector<8x8x1xf32>
    %cst_12 = arith.constant 1.000000e+00 : f32
    %17 = vector.broadcast %cst_12 : f32 to vector<8x8x1xf32>
    %18 = arith.subf %17, %16 : vector<8x8x1xf32>
    %cst_13 = arith.constant -1.000000e+04 : f32
    %19 = vector.broadcast %cst_13 : f32 to vector<8x8x1xf32>
    %20 = arith.mulf %18, %19 : vector<8x8x1xf32>
    %21 = arith.addf %15, %20 : vector<8x8x1xf32>
    %cst_14 = arith.constant dense<0xFF800000> : vector<8x1xf32>
    %22 = vector.multi_reduction <maximumf>, %21, %cst_14 [1] : vector<8x8x1xf32> to vector<8x1xf32>
    %23 = vector.shape_cast %22 : vector<8x1xf32> to vector<8x1x1xf32>
    %24 = vector.broadcast %23 : vector<8x1x1xf32> to vector<8x8x1xf32>
    %25 = arith.subf %21, %24 : vector<8x8x1xf32>
    %26 = math.exp %25 : vector<8x8x1xf32>
    %cst_15 = arith.constant dense<0.000000e+00> : vector<8x1xf32>
    %27 = vector.multi_reduction <add>, %26, %cst_15 [1] : vector<8x8x1xf32> to vector<8x1xf32>
    %28 = vector.shape_cast %27 : vector<8x1xf32> to vector<8x1x1xf32>
    %29 = tpu.reciprocal %28 {approx = true} : vector<8x1x1xf32> -> vector<8x1x1xf32>
    %30 = vector.broadcast %29 : vector<8x1x1xf32> to vector<8x8x1xf32>
    %31 = arith.mulf %26, %30 : vector<8x8x1xf32>
    %32 = vector.broadcast %31 : vector<8x8x1xf32> to vector<8x8x32xf32>
    %33 = arith.mulf %32, %0 : vector<8x8x32xf32>
    %cst_16 = arith.constant dense<0.000000e+00> : vector<8x32xf32>
    %34 = vector.multi_reduction <add>, %33, %cst_16 [1] : vector<8x8x32xf32> to vector<8x32xf32>
    %c0_17 = arith.constant 0 : index
    %c0_18 = arith.constant 0 : index
    %35 = vector.load %arg5[%c0_17, %c0_18] : memref<8x32xf32, #tpu.memory_space<vmem>>, vector<8x32xf32>
    tpu.vector_store %arg5[%c0_17, %c0_18], %34 {strides = array<i32>} : memref<8x32xf32, #tpu.memory_space<vmem>>, vector<8x32xf32>,
    return
  }
}

module attributes {stable_mosaic.version = 11 : i64} {
  func.func @_proj_pos_kernel(%arg0: memref<8x8x64xf32, #tpu.memory_space<vmem>>, %arg1: memref<64x32xbf16, #tpu.memory_space<vmem>>, %arg2: memref<1x32xf32, #tpu.memory_space<vmem>>, %arg3: memref<8x32xf32, #tpu.memory_space<vmem>>, %arg4: memref<8x8x32xf32, #tpu.memory_space<vmem>>) attributes {dimension_semantics = [], scalar_prefetch = 0 : i64, scratch_operands = 0 : i64, tpu.core_type = #tpu.core_type<tc>} {
    %c0 = arith.constant 0 : index
    %c0_0 = arith.constant 0 : index
    %c0_1 = arith.constant 0 : index
    %0 = vector.load %arg0[%c0, %c0_0, %c0_1] : memref<8x8x64xf32, #tpu.memory_space<vmem>>, vector<8x8x64xf32>
    %1 = vector.shape_cast %0 : vector<8x8x64xf32> to vector<64x64xf32>
    %2 = arith.truncf %1 : vector<64x64xf32> to vector<64x64xbf16>
    %c0_2 = arith.constant 0 : index
    %c0_3 = arith.constant 0 : index
    %3 = vector.load %arg1[%c0_2, %c0_3] : memref<64x32xbf16, #tpu.memory_space<vmem>>, vector<64x32xbf16>
    %cst = arith.constant dense<0.000000e+00> : vector<64x32xf32>
    %4 = tpu.matmul %2, %3, %cst {dimension_numbers = #tpu.dot_dimension_numbers<[1], [0], [0], [1], [0, 0, 1, 1], [], []>} : vector<64x64xbf16>, vector<64x32xbf16>, vector<64x32xf32> -> vector<64x32xf32>
    %c0_4 = arith.constant 0 : index
    %c0_5 = arith.constant 0 : index
    %5 = vector.load %arg2[%c0_4, %c0_5] : memref<1x32xf32, #tpu.memory_space<vmem>>, vector<1x32xf32>
    %6 = vector.broadcast %5 : vector<1x32xf32> to vector<64x32xf32>
    %7 = arith.addf %4, %6 : vector<64x32xf32>
    %8 = vector.shape_cast %7 : vector<64x32xf32> to vector<8x8x32xf32>
    %c0_6 = arith.constant 0 : index
    %c0_7 = arith.constant 0 : index
    %9 = vector.load %arg3[%c0_6, %c0_7] : memref<8x32xf32, #tpu.memory_space<vmem>>, vector<8x32xf32>
    %10 = vector.shape_cast %9 : vector<8x32xf32> to vector<1x8x32xf32>
    %11 = vector.broadcast %10 : vector<1x8x32xf32> to vector<8x8x32xf32>
    %12 = arith.addf %8, %11 : vector<8x8x32xf32>
    %c0_8 = arith.constant 0 : index
    %c0_9 = arith.constant 0 : index
    %c0_10 = arith.constant 0 : index
    %13 = vector.load %arg4[%c0_8, %c0_9, %c0_10] : memref<8x8x32xf32, #tpu.memory_space<vmem>>, vector<8x8x32xf32>
    tpu.vector_store %arg4[%c0_8, %c0_9, %c0_10], %12 {strides = array<i32>} : memref<8x8x32xf32, #tpu.memory_space<vmem>>, vector<8x8x32xf32>,
    return
  }
}

module attributes {stable_mosaic.version = 11 : i64} {
  func.func @_self_stack_kernel(%arg0: i32, %arg1: i32, %arg2: memref<1x16x64xf32, #tpu.memory_space<vmem>>, %arg3: memref<1x1x16xf32, #tpu.memory_space<vmem>>, %arg4: memref<1x64xf32, #tpu.memory_space<vmem>>, %arg5: memref<1x64xf32, #tpu.memory_space<vmem>>, %arg6: memref<1x64x192xbf16, #tpu.memory_space<vmem>>, %arg7: memref<1x1x192xf32, #tpu.memory_space<vmem>>, %arg8: memref<1x64x64xbf16, #tpu.memory_space<vmem>>, %arg9: memref<1x1x64xf32, #tpu.memory_space<vmem>>, %arg10: memref<1x1x64xf32, #tpu.memory_space<vmem>>, %arg11: memref<1x1x64xf32, #tpu.memory_space<vmem>>, %arg12: memref<1x64x128xbf16, #tpu.memory_space<vmem>>, %arg13: memref<1x1x128xf32, #tpu.memory_space<vmem>>, %arg14: memref<1x128x64xbf16, #tpu.memory_space<vmem>>, %arg15: memref<1x1x64xf32, #tpu.memory_space<vmem>>, %arg16: memref<1x1x64xf32, #tpu.memory_space<vmem>>, %arg17: memref<1x1x64xf32, #tpu.memory_space<vmem>>, %arg18: memref<1x16x64xf32, #tpu.memory_space<vmem>>) attributes {dimension_semantics = [#tpu.dimension_semantics<parallel>, #tpu.dimension_semantics<arbitrary>], iteration_bounds = array<i64: 2, 1>, scalar_prefetch = 0 : i64, scratch_operands = 0 : i64, tpu.core_type = #tpu.core_type<tc>, window_params = [{transform_indices = @transform_0, window_bounds = array<i64: 1, 16, 64>}, {transform_indices = @transform_1, window_bounds = array<i64: 1, 1, 16>}, {pipeline_mode = #tpu.pipeline_mode<synchronous>, transform_indices = @transform_2, window_bounds = array<i64: 1, 64>}, {pipeline_mode = #tpu.pipeline_mode<synchronous>, transform_indices = @transform_3, window_bounds = array<i64: 1, 64>}, {transform_indices = @transform_4, window_bounds = array<i64: 1, 64, 192>}, {transform_indices = @transform_5, window_bounds = array<i64: 1, 1, 192>}, {transform_indices = @transform_6, window_bounds = array<i64: 1, 64, 64>}, {transform_indices = @transform_7, window_bounds = array<i64: 1, 1, 64>}, {transform_indices = @transform_8, window_bounds = array<i64: 1, 1, 64>}, {transform_indices = @transform_9, window_bounds = array<i64: 1, 1, 64>}, {transform_indices = @transform_10, window_bounds = array<i64: 1, 64, 128>}, {transform_indices = @transform_11, window_bounds = array<i64: 1, 1, 128>}, {transform_indices = @transform_12, window_bounds = array<i64: 1, 128, 64>}, {transform_indices = @transform_13, window_bounds = array<i64: 1, 1, 64>}, {transform_indices = @transform_14, window_bounds = array<i64: 1, 1, 64>}, {transform_indices = @transform_15, window_bounds = array<i64: 1, 1, 64>}, {transform_indices = @transform_16, window_bounds = array<i64: 1, 16, 64>}]} {
    %c0_i32 = arith.constant 0 : i32
    %0 = arith.cmpi eq, %arg1, %c0_i32 : i32
    %1 = arith.extui %0 : i1 to i32
    %c0_i32_0 = arith.constant 0 : i32
    %2 = arith.cmpi ne, %1, %c0_i32_0 : i32
    scf.if %2 {
      %c0_82 = arith.constant 0 : index
      %c0_83 = arith.constant 0 : index
      %c0_84 = arith.constant 0 : index
      %182 = vector.load %arg2[%c0_82, %c0_83, %c0_84] : memref<1x16x64xf32, #tpu.memory_space<vmem>>, vector<1x16x64xf32>
      %c0_85 = arith.constant 0 : index
      %c0_86 = arith.constant 0 : index
      %183 = vector.load %arg4[%c0_85, %c0_86] : memref<1x64xf32, #tpu.memory_space<vmem>>, vector<1x64xf32>
      %c0_87 = arith.constant 0 : index
      %c0_88 = arith.constant 0 : index
      %184 = vector.load %arg5[%c0_87, %c0_88] : memref<1x64xf32, #tpu.memory_space<vmem>>, vector<1x64xf32>
      %cst_89 = arith.constant dense<0.000000e+00> : vector<1x16xf32>
      %185 = vector.multi_reduction <add>, %182, %cst_89 [2] : vector<1x16x64xf32> to vector<1x16xf32>
      %186 = vector.shape_cast %185 : vector<1x16xf32> to vector<1x16x1xf32>
      %cst_90 = arith.constant 6.400000e+01 : f32
      %187 = vector.broadcast %cst_90 : f32 to vector<1x16x1xf32>
      %188 = arith.divf %186, %187 : vector<1x16x1xf32>
      %189 = vector.broadcast %188 : vector<1x16x1xf32> to vector<1x16x64xf32>
      %190 = arith.subf %182, %189 : vector<1x16x64xf32>
      %191 = arith.mulf %190, %190 : vector<1x16x64xf32>
      %cst_91 = arith.constant dense<0.000000e+00> : vector<1x16xf32>
      %192 = vector.multi_reduction <add>, %191, %cst_91 [2] : vector<1x16x64xf32> to vector<1x16xf32>
      %193 = vector.shape_cast %192 : vector<1x16xf32> to vector<1x16x1xf32>
      %cst_92 = arith.constant 6.400000e+01 : f32
      %194 = vector.broadcast %cst_92 : f32 to vector<1x16x1xf32>
      %195 = arith.divf %193, %194 : vector<1x16x1xf32>
      %cst_93 = arith.constant 9.99999974E-6 : f32
      %196 = vector.broadcast %cst_93 : f32 to vector<1x16x1xf32>
      %197 = arith.addf %195, %196 : vector<1x16x1xf32>
      %198 = math.rsqrt %197 : vector<1x16x1xf32>
      %199 = vector.broadcast %198 : vector<1x16x1xf32> to vector<1x16x64xf32>
      %200 = arith.mulf %190, %199 : vector<1x16x64xf32>
      %201 = vector.shape_cast %183 : vector<1x64xf32> to vector<1x1x64xf32>
      %202 = vector.broadcast %201 : vector<1x1x64xf32> to vector<1x16x64xf32>
      %203 = arith.mulf %200, %202 : vector<1x16x64xf32>
      %204 = vector.shape_cast %184 : vector<1x64xf32> to vector<1x1x64xf32>
      %205 = vector.broadcast %204 : vector<1x1x64xf32> to vector<1x16x64xf32>
      %206 = arith.addf %203, %205 : vector<1x16x64xf32>
      %c0_94 = arith.constant 0 : index
      %c0_95 = arith.constant 0 : index
      %c0_96 = arith.constant 0 : index
      %207 = vector.load %arg18[%c0_94, %c0_95, %c0_96] : memref<1x16x64xf32, #tpu.memory_space<vmem>>, vector<1x16x64xf32>
      tpu.vector_store %arg18[%c0_94, %c0_95, %c0_96], %206 {strides = array<i32>} : memref<1x16x64xf32, #tpu.memory_space<vmem>>, vector<1x16x64xf32>,
    } else {
    }
    %c0 = arith.constant 0 : index
    %c0_1 = arith.constant 0 : index
    %c0_2 = arith.constant 0 : index
    %3 = vector.load %arg18[%c0, %c0_1, %c0_2] : memref<1x16x64xf32, #tpu.memory_space<vmem>>, vector<1x16x64xf32>
    %c0_3 = arith.constant 0 : index
    %c0_4 = arith.constant 0 : index
    %c0_5 = arith.constant 0 : index
    %4 = vector.load %arg3[%c0_3, %c0_4, %c0_5] : memref<1x1x16xf32, #tpu.memory_space<vmem>>, vector<1x1x16xf32>
    %5 = vector.shape_cast %3 : vector<1x16x64xf32> to vector<16x64xf32>
    %6 = arith.truncf %5 : vector<16x64xf32> to vector<16x64xbf16>
    %c0_6 = arith.constant 0 : index
    %c0_7 = arith.constant 0 : index
    %c0_8 = arith.constant 0 : index
    %7 = vector.load %arg6[%c0_6, %c0_7, %c0_8] : memref<1x64x192xbf16, #tpu.memory_space<vmem>>, vector<1x64x192xbf16>
    %8 = vector.shape_cast %7 : vector<1x64x192xbf16> to vector<64x192xbf16>
    %cst = arith.constant dense<0.000000e+00> : vector<16x192xf32>
    %9 = tpu.matmul %6, %8, %cst {dimension_numbers = #tpu.dot_dimension_numbers<[1], [0], [0], [1], [0, 0, 1, 1], [], []>} : vector<16x64xbf16>, vector<64x192xbf16>, vector<16x192xf32> -> vector<16x192xf32>
    %c0_9 = arith.constant 0 : index
    %c0_10 = arith.constant 0 : index
    %c0_11 = arith.constant 0 : index
    %10 = vector.load %arg7[%c0_9, %c0_10, %c0_11] : memref<1x1x192xf32, #tpu.memory_space<vmem>>, vector<1x1x192xf32>
    %11 = vector.shape_cast %10 : vector<1x1x192xf32> to vector<1x192xf32>
    %12 = vector.broadcast %11 : vector<1x192xf32> to vector<16x192xf32>
    %13 = arith.addf %9, %12 : vector<16x192xf32>
    %14 = vector.shape_cast %13 : vector<16x192xf32> to vector<1x16x192xf32>
    %15 = vector.extract_strided_slice %14 {offsets = [0, 0, 0], sizes = [1, 16, 16], strides = [1, 1, 1]} : vector<1x16x192xf32> to vector<1x16x16xf32>
    %16 = vector.extract_strided_slice %14 {offsets = [0, 0, 64], sizes = [1, 16, 16], strides = [1, 1, 1]} : vector<1x16x192xf32> to vector<1x16x16xf32>
    %17 = vector.extract_strided_slice %14 {offsets = [0, 0, 128], sizes = [1, 16, 16], strides = [1, 1, 1]} : vector<1x16x192xf32> to vector<1x16x16xf32>
    "tpu.trace_start"() <{level = 10 : i32, message = "bqd,bkd->bqk"}> : () -> ()
    %cst_12 = arith.constant dense<0.000000e+00> : vector<1x16x16xf32>
    %18 = tpu.matmul %15, %16, %cst_12 {dimension_numbers = #tpu.dot_dimension_numbers<[2], [2], [1], [1], [0, 0, 0, 1, 1, 1], [0], [0]>} : vector<1x16x16xf32>, vector<1x16x16xf32>, vector<1x16x16xf32> -> vector<1x16x16xf32>
    "tpu.trace_stop"() : () -> ()
    %cst_13 = arith.constant 2.500000e-01 : f32
    %19 = vector.broadcast %cst_13 : f32 to vector<1x16x16xf32>
    %20 = arith.mulf %18, %19 : vector<1x16x16xf32>
    %21 = vector.broadcast %4 : vector<1x1x16xf32> to vector<1x16x16xf32>
    %22 = arith.addf %20, %21 : vector<1x16x16xf32>
    %cst_14 = arith.constant dense<0xFF800000> : vector<1x16xf32>
    %23 = vector.multi_reduction <maximumf>, %22, %cst_14 [2] : vector<1x16x16xf32> to vector<1x16xf32>
    %24 = vector.shape_cast %23 : vector<1x16xf32> to vector<1x16x1xf32>
    %25 = vector.broadcast %24 : vector<1x16x1xf32> to vector<1x16x16xf32>
    %26 = arith.subf %22, %25 : vector<1x16x16xf32>
    %27 = math.exp %26 : vector<1x16x16xf32>
    %cst_15 = arith.constant dense<0.000000e+00> : vector<1x16xf32>
    %28 = vector.multi_reduction <add>, %27, %cst_15 [2] : vector<1x16x16xf32> to vector<1x16xf32>
    %29 = vector.shape_cast %28 : vector<1x16xf32> to vector<1x16x1xf32>
    %30 = tpu.reciprocal %29 {approx = true} : vector<1x16x1xf32> -> vector<1x16x1xf32>
    %31 = vector.broadcast %30 : vector<1x16x1xf32> to vector<1x16x16xf32>
    %32 = arith.mulf %27, %31 : vector<1x16x16xf32>
    "tpu.trace_start"() <{level = 10 : i32, message = "bqk,bkd->bqd"}> : () -> ()
    %cst_16 = arith.constant dense<0.000000e+00> : vector<1x16x16xf32>
    %33 = tpu.matmul %32, %17, %cst_16 {dimension_numbers = #tpu.dot_dimension_numbers<[2], [1], [1], [2], [0, 0, 0, 1, 1, 2], [0], [0]>} : vector<1x16x16xf32>, vector<1x16x16xf32>, vector<1x16x16xf32> -> vector<1x16x16xf32>
    "tpu.trace_stop"() : () -> ()
    %34 = vector.extract_strided_slice %14 {offsets = [0, 0, 16], sizes = [1, 16, 16], strides = [1, 1, 1]} : vector<1x16x192xf32> to vector<1x16x16xf32>
    %35 = vector.extract_strided_slice %14 {offsets = [0, 0, 80], sizes = [1, 16, 16], strides = [1, 1, 1]} : vector<1x16x192xf32> to vector<1x16x16xf32>
    %36 = vector.extract_strided_slice %14 {offsets = [0, 0, 144], sizes = [1, 16, 16], strides = [1, 1, 1]} : vector<1x16x192xf32> to vector<1x16x16xf32>
    "tpu.trace_start"() <{level = 10 : i32, message = "bqd,bkd->bqk"}> : () -> ()
    %cst_17 = arith.constant dense<0.000000e+00> : vector<1x16x16xf32>
    %37 = tpu.matmul %34, %35, %cst_17 {dimension_numbers = #tpu.dot_dimension_numbers<[2], [2], [1], [1], [0, 0, 0, 1, 1, 1], [0], [0]>} : vector<1x16x16xf32>, vector<1x16x16xf32>, vector<1x16x16xf32> -> vector<1x16x16xf32>
    "tpu.trace_stop"() : () -> ()
    %cst_18 = arith.constant 2.500000e-01 : f32
    %38 = vector.broadcast %cst_18 : f32 to vector<1x16x16xf32>
    %39 = arith.mulf %37, %38 : vector<1x16x16xf32>
    %40 = vector.broadcast %4 : vector<1x1x16xf32> to vector<1x16x16xf32>
    %41 = arith.addf %39, %40 : vector<1x16x16xf32>
    %cst_19 = arith.constant dense<0xFF800000> : vector<1x16xf32>
    %42 = vector.multi_reduction <maximumf>, %41, %cst_19 [2] : vector<1x16x16xf32> to vector<1x16xf32>
    %43 = vector.shape_cast %42 : vector<1x16xf32> to vector<1x16x1xf32>
    %44 = vector.broadcast %43 : vector<1x16x1xf32> to vector<1x16x16xf32>
    %45 = arith.subf %41, %44 : vector<1x16x16xf32>
    %46 = math.exp %45 : vector<1x16x16xf32>
    %cst_20 = arith.constant dense<0.000000e+00> : vector<1x16xf32>
    %47 = vector.multi_reduction <add>, %46, %cst_20 [2] : vector<1x16x16xf32> to vector<1x16xf32>
    %48 = vector.shape_cast %47 : vector<1x16xf32> to vector<1x16x1xf32>
    %49 = tpu.reciprocal %48 {approx = true} : vector<1x16x1xf32> -> vector<1x16x1xf32>
    %50 = vector.broadcast %49 : vector<1x16x1xf32> to vector<1x16x16xf32>
    %51 = arith.mulf %46, %50 : vector<1x16x16xf32>
    "tpu.trace_start"() <{level = 10 : i32, message = "bqk,bkd->bqd"}> : () -> ()
    %cst_21 = arith.constant dense<0.000000e+00> : vector<1x16x16xf32>
    %52 = tpu.matmul %51, %36, %cst_21 {dimension_numbers = #tpu.dot_dimension_numbers<[2], [1], [1], [2], [0, 0, 0, 1, 1, 2], [0], [0]>} : vector<1x16x16xf32>, vector<1x16x16xf32>, vector<1x16x16xf32> -> vector<1x16x16xf32>
    "tpu.trace_stop"() : () -> ()
    %53 = vector.extract_strided_slice %14 {offsets = [0, 0, 32], sizes = [1, 16, 16], strides = [1, 1, 1]} : vector<1x16x192xf32> to vector<1x16x16xf32>
    %54 = vector.extract_strided_slice %14 {offsets = [0, 0, 96], sizes = [1, 16, 16], strides = [1, 1, 1]} : vector<1x16x192xf32> to vector<1x16x16xf32>
    %55 = vector.extract_strided_slice %14 {offsets = [0, 0, 160], sizes = [1, 16, 16], strides = [1, 1, 1]} : vector<1x16x192xf32> to vector<1x16x16xf32>
    "tpu.trace_start"() <{level = 10 : i32, message = "bqd,bkd->bqk"}> : () -> ()
    %cst_22 = arith.constant dense<0.000000e+00> : vector<1x16x16xf32>
    %56 = tpu.matmul %53, %54, %cst_22 {dimension_numbers = #tpu.dot_dimension_numbers<[2], [2], [1], [1], [0, 0, 0, 1, 1, 1], [0], [0]>} : vector<1x16x16xf32>, vector<1x16x16xf32>, vector<1x16x16xf32> -> vector<1x16x16xf32>
    "tpu.trace_stop"() : () -> ()
    %cst_23 = arith.constant 2.500000e-01 : f32
    %57 = vector.broadcast %cst_23 : f32 to vector<1x16x16xf32>
    %58 = arith.mulf %56, %57 : vector<1x16x16xf32>
    %59 = vector.broadcast %4 : vector<1x1x16xf32> to vector<1x16x16xf32>
    %60 = arith.addf %58, %59 : vector<1x16x16xf32>
    %cst_24 = arith.constant dense<0xFF800000> : vector<1x16xf32>
    %61 = vector.multi_reduction <maximumf>, %60, %cst_24 [2] : vector<1x16x16xf32> to vector<1x16xf32>
    %62 = vector.shape_cast %61 : vector<1x16xf32> to vector<1x16x1xf32>
    %63 = vector.broadcast %62 : vector<1x16x1xf32> to vector<1x16x16xf32>
    %64 = arith.subf %60, %63 : vector<1x16x16xf32>
    %65 = math.exp %64 : vector<1x16x16xf32>
    %cst_25 = arith.constant dense<0.000000e+00> : vector<1x16xf32>
    %66 = vector.multi_reduction <add>, %65, %cst_25 [2] : vector<1x16x16xf32> to vector<1x16xf32>
    %67 = vector.shape_cast %66 : vector<1x16xf32> to vector<1x16x1xf32>
    %68 = tpu.reciprocal %67 {approx = true} : vector<1x16x1xf32> -> vector<1x16x1xf32>
    %69 = vector.broadcast %68 : vector<1x16x1xf32> to vector<1x16x16xf32>
    %70 = arith.mulf %65, %69 : vector<1x16x16xf32>
    "tpu.trace_start"() <{level = 10 : i32, message = "bqk,bkd->bqd"}> : () -> ()
    %cst_26 = arith.constant dense<0.000000e+00> : vector<1x16x16xf32>
    %71 = tpu.matmul %70, %55, %cst_26 {dimension_numbers = #tpu.dot_dimension_numbers<[2], [1], [1], [2], [0, 0, 0, 1, 1, 2], [0], [0]>} : vector<1x16x16xf32>, vector<1x16x16xf32>, vector<1x16x16xf32> -> vector<1x16x16xf32>
    "tpu.trace_stop"() : () -> ()
    %72 = vector.extract_strided_slice %14 {offsets = [0, 0, 48], sizes = [1, 16, 16], strides = [1, 1, 1]} : vector<1x16x192xf32> to vector<1x16x16xf32>
    %73 = vector.extract_strided_slice %14 {offsets = [0, 0, 112], sizes = [1, 16, 16], strides = [1, 1, 1]} : vector<1x16x192xf32> to vector<1x16x16xf32>
    %74 = vector.extract_strided_slice %14 {offsets = [0, 0, 176], sizes = [1, 16, 16], strides = [1, 1, 1]} : vector<1x16x192xf32> to vector<1x16x16xf32>
    "tpu.trace_start"() <{level = 10 : i32, message = "bqd,bkd->bqk"}> : () -> ()
    %cst_27 = arith.constant dense<0.000000e+00> : vector<1x16x16xf32>
    %75 = tpu.matmul %72, %73, %cst_27 {dimension_numbers = #tpu.dot_dimension_numbers<[2], [2], [1], [1], [0, 0, 0, 1, 1, 1], [0], [0]>} : vector<1x16x16xf32>, vector<1x16x16xf32>, vector<1x16x16xf32> -> vector<1x16x16xf32>
    "tpu.trace_stop"() : () -> ()
    %cst_28 = arith.constant 2.500000e-01 : f32
    %76 = vector.broadcast %cst_28 : f32 to vector<1x16x16xf32>
    %77 = arith.mulf %75, %76 : vector<1x16x16xf32>
    %78 = vector.broadcast %4 : vector<1x1x16xf32> to vector<1x16x16xf32>
    %79 = arith.addf %77, %78 : vector<1x16x16xf32>
    %cst_29 = arith.constant dense<0xFF800000> : vector<1x16xf32>
    %80 = vector.multi_reduction <maximumf>, %79, %cst_29 [2] : vector<1x16x16xf32> to vector<1x16xf32>
    %81 = vector.shape_cast %80 : vector<1x16xf32> to vector<1x16x1xf32>
    %82 = vector.broadcast %81 : vector<1x16x1xf32> to vector<1x16x16xf32>
    %83 = arith.subf %79, %82 : vector<1x16x16xf32>
    %84 = math.exp %83 : vector<1x16x16xf32>
    %cst_30 = arith.constant dense<0.000000e+00> : vector<1x16xf32>
    %85 = vector.multi_reduction <add>, %84, %cst_30 [2] : vector<1x16x16xf32> to vector<1x16xf32>
    %86 = vector.shape_cast %85 : vector<1x16xf32> to vector<1x16x1xf32>
    %87 = tpu.reciprocal %86 {approx = true} : vector<1x16x1xf32> -> vector<1x16x1xf32>
    %88 = vector.broadcast %87 : vector<1x16x1xf32> to vector<1x16x16xf32>
    %89 = arith.mulf %84, %88 : vector<1x16x16xf32>
    "tpu.trace_start"() <{level = 10 : i32, message = "bqk,bkd->bqd"}> : () -> ()
    %cst_31 = arith.constant dense<0.000000e+00> : vector<1x16x16xf32>
    %90 = tpu.matmul %89, %74, %cst_31 {dimension_numbers = #tpu.dot_dimension_numbers<[2], [1], [1], [2], [0, 0, 0, 1, 1, 2], [0], [0]>} : vector<1x16x16xf32>, vector<1x16x16xf32>, vector<1x16x16xf32> -> vector<1x16x16xf32>
    "tpu.trace_stop"() : () -> ()
    %91 = tpu.concatenate %33, %52, %71, %90 in 2 : vector<1x16x16xf32>, vector<1x16x16xf32>, vector<1x16x16xf32>, vector<1x16x16xf32> -> vector<1x16x64xf32>
    %92 = vector.shape_cast %91 : vector<1x16x64xf32> to vector<16x64xf32>
    %93 = arith.truncf %92 : vector<16x64xf32> to vector<16x64xbf16>
    %c0_32 = arith.constant 0 : index
    %c0_33 = arith.constant 0 : index
    %c0_34 = arith.constant 0 : index
    %94 = vector.load %arg8[%c0_32, %c0_33, %c0_34] : memref<1x64x64xbf16, #tpu.memory_space<vmem>>, vector<1x64x64xbf16>
    %95 = vector.shape_cast %94 : vector<1x64x64xbf16> to vector<64x64xbf16>
    %cst_35 = arith.constant dense<0.000000e+00> : vector<16x64xf32>
    %96 = tpu.matmul %93, %95, %cst_35 {dimension_numbers = #tpu.dot_dimension_numbers<[1], [0], [0], [1], [0, 0, 1, 1], [], []>} : vector<16x64xbf16>, vector<64x64xbf16>, vector<16x64xf32> -> vector<16x64xf32>
    %c0_36 = arith.constant 0 : index
    %c0_37 = arith.constant 0 : index
    %c0_38 = arith.constant 0 : index
    %97 = vector.load %arg9[%c0_36, %c0_37, %c0_38] : memref<1x1x64xf32, #tpu.memory_space<vmem>>, vector<1x1x64xf32>
    %98 = vector.shape_cast %97 : vector<1x1x64xf32> to vector<1x64xf32>
    %99 = vector.broadcast %98 : vector<1x64xf32> to vector<16x64xf32>
    %100 = arith.addf %96, %99 : vector<16x64xf32>
    %101 = arith.addf %5, %100 : vector<16x64xf32>
    %c0_39 = arith.constant 0 : index
    %c0_40 = arith.constant 0 : index
    %c0_41 = arith.constant 0 : index
    %102 = vector.load %arg10[%c0_39, %c0_40, %c0_41] : memref<1x1x64xf32, #tpu.memory_space<vmem>>, vector<1x1x64xf32>
    %103 = vector.shape_cast %102 : vector<1x1x64xf32> to vector<1x64xf32>
    %c0_42 = arith.constant 0 : index
    %c0_43 = arith.constant 0 : index
    %c0_44 = arith.constant 0 : index
    %104 = vector.load %arg11[%c0_42, %c0_43, %c0_44] : memref<1x1x64xf32, #tpu.memory_space<vmem>>, vector<1x1x64xf32>
    %105 = vector.shape_cast %104 : vector<1x1x64xf32> to vector<1x64xf32>
    %cst_45 = arith.constant dense<0.000000e+00> : vector<16xf32>
    %106 = vector.multi_reduction <add>, %101, %cst_45 [1] : vector<16x64xf32> to vector<16xf32>
    %107 = vector.shape_cast %106 : vector<16xf32> to vector<16x1xf32>
    %cst_46 = arith.constant 6.400000e+01 : f32
    %108 = vector.broadcast %cst_46 : f32 to vector<16x1xf32>
    %109 = arith.divf %107, %108 : vector<16x1xf32>
    %110 = vector.broadcast %109 : vector<16x1xf32> to vector<16x64xf32>
    %111 = arith.subf %101, %110 : vector<16x64xf32>
    %112 = arith.mulf %111, %111 : vector<16x64xf32>
    %cst_47 = arith.constant dense<0.000000e+00> : vector<16xf32>
    %113 = vector.multi_reduction <add>, %112, %cst_47 [1] : vector<16x64xf32> to vector<16xf32>
    %114 = vector.shape_cast %113 : vector<16xf32> to vector<16x1xf32>
    %cst_48 = arith.constant 6.400000e+01 : f32
    %115 = vector.broadcast %cst_48 : f32 to vector<16x1xf32>
    %116 = arith.divf %114, %115 : vector<16x1xf32>
    %cst_49 = arith.constant 9.99999974E-6 : f32
    %117 = vector.broadcast %cst_49 : f32 to vector<16x1xf32>
    %118 = arith.addf %116, %117 : vector<16x1xf32>
    %119 = math.rsqrt %118 : vector<16x1xf32>
    %120 = vector.broadcast %119 : vector<16x1xf32> to vector<16x64xf32>
    %121 = arith.mulf %111, %120 : vector<16x64xf32>
    %122 = vector.broadcast %103 : vector<1x64xf32> to vector<16x64xf32>
    %123 = arith.mulf %121, %122 : vector<16x64xf32>
    %124 = vector.broadcast %105 : vector<1x64xf32> to vector<16x64xf32>
    %125 = arith.addf %123, %124 : vector<16x64xf32>
    %126 = arith.truncf %125 : vector<16x64xf32> to vector<16x64xbf16>
    %c0_50 = arith.constant 0 : index
    %c0_51 = arith.constant 0 : index
    %c0_52 = arith.constant 0 : index
    %127 = vector.load %arg12[%c0_50, %c0_51, %c0_52] : memref<1x64x128xbf16, #tpu.memory_space<vmem>>, vector<1x64x128xbf16>
    %128 = vector.shape_cast %127 : vector<1x64x128xbf16> to vector<64x128xbf16>
    %cst_53 = arith.constant dense<0.000000e+00> : vector<16x128xf32>
    %129 = tpu.matmul %126, %128, %cst_53 {dimension_numbers = #tpu.dot_dimension_numbers<[1], [0], [0], [1], [0, 0, 1, 1], [], []>} : vector<16x64xbf16>, vector<64x128xbf16>, vector<16x128xf32> -> vector<16x128xf32>
    %c0_54 = arith.constant 0 : index
    %c0_55 = arith.constant 0 : index
    %c0_56 = arith.constant 0 : index
    %130 = vector.load %arg13[%c0_54, %c0_55, %c0_56] : memref<1x1x128xf32, #tpu.memory_space<vmem>>, vector<1x1x128xf32>
    %131 = vector.shape_cast %130 : vector<1x1x128xf32> to vector<1x128xf32>
    %132 = vector.broadcast %131 : vector<1x128xf32> to vector<16x128xf32>
    %133 = arith.addf %129, %132 : vector<16x128xf32>
    %cst_57 = arith.constant 5.000000e-01 : f32
    %134 = vector.broadcast %cst_57 : f32 to vector<16x128xf32>
    %135 = arith.mulf %134, %133 : vector<16x128xf32>
    %cst_58 = arith.constant 4.471500e-02 : f32
    %136 = vector.broadcast %cst_58 : f32 to vector<16x128xf32>
    %137 = arith.mulf %136, %133 : vector<16x128xf32>
    %138 = arith.mulf %137, %133 : vector<16x128xf32>
    %139 = arith.mulf %138, %133 : vector<16x128xf32>
    %140 = arith.addf %133, %139 : vector<16x128xf32>
    %cst_59 = arith.constant 0.797884583 : f32
    %141 = vector.broadcast %cst_59 : f32 to vector<16x128xf32>
    %142 = arith.mulf %141, %140 : vector<16x128xf32>
    %143 = math.tanh %142 : vector<16x128xf32>
    %cst_60 = arith.constant 1.000000e+00 : f32
    %144 = vector.broadcast %cst_60 : f32 to vector<16x128xf32>
    %145 = arith.addf %144, %143 : vector<16x128xf32>
    %146 = arith.mulf %135, %145 : vector<16x128xf32>
    %147 = arith.truncf %146 : vector<16x128xf32> to vector<16x128xbf16>
    %c0_61 = arith.constant 0 : index
    %c0_62 = arith.constant 0 : index
    %c0_63 = arith.constant 0 : index
    %148 = vector.load %arg14[%c0_61, %c0_62, %c0_63] : memref<1x128x64xbf16, #tpu.memory_space<vmem>>, vector<1x128x64xbf16>
    %149 = vector.shape_cast %148 : vector<1x128x64xbf16> to vector<128x64xbf16>
    %cst_64 = arith.constant dense<0.000000e+00> : vector<16x64xf32>
    %150 = tpu.matmul %147, %149, %cst_64 {dimension_numbers = #tpu.dot_dimension_numbers<[1], [0], [0], [1], [0, 0, 1, 1], [], []>} : vector<16x128xbf16>, vector<128x64xbf16>, vector<16x64xf32> -> vector<16x64xf32>
    %c0_65 = arith.constant 0 : index
    %c0_66 = arith.constant 0 : index
    %c0_67 = arith.constant 0 : index
    %151 = vector.load %arg15[%c0_65, %c0_66, %c0_67] : memref<1x1x64xf32, #tpu.memory_space<vmem>>, vector<1x1x64xf32>
    %152 = vector.shape_cast %151 : vector<1x1x64xf32> to vector<1x64xf32>
    %153 = vector.broadcast %152 : vector<1x64xf32> to vector<16x64xf32>
    %154 = arith.addf %150, %153 : vector<16x64xf32>
    %155 = arith.addf %125, %154 : vector<16x64xf32>
    %c0_68 = arith.constant 0 : index
    %c0_69 = arith.constant 0 : index
    %c0_70 = arith.constant 0 : index
    %156 = vector.load %arg16[%c0_68, %c0_69, %c0_70] : memref<1x1x64xf32, #tpu.memory_space<vmem>>, vector<1x1x64xf32>
    %157 = vector.shape_cast %156 : vector<1x1x64xf32> to vector<1x64xf32>
    %c0_71 = arith.constant 0 : index
    %c0_72 = arith.constant 0 : index
    %c0_73 = arith.constant 0 : index
    %158 = vector.load %arg17[%c0_71, %c0_72, %c0_73] : memref<1x1x64xf32, #tpu.memory_space<vmem>>, vector<1x1x64xf32>
    %159 = vector.shape_cast %158 : vector<1x1x64xf32> to vector<1x64xf32>
    %cst_74 = arith.constant dense<0.000000e+00> : vector<16xf32>
    %160 = vector.multi_reduction <add>, %155, %cst_74 [1] : vector<16x64xf32> to vector<16xf32>
    %161 = vector.shape_cast %160 : vector<16xf32> to vector<16x1xf32>
    %cst_75 = arith.constant 6.400000e+01 : f32
    %162 = vector.broadcast %cst_75 : f32 to vector<16x1xf32>
    %163 = arith.divf %161, %162 : vector<16x1xf32>
    %164 = vector.broadcast %163 : vector<16x1xf32> to vector<16x64xf32>
    %165 = arith.subf %155, %164 : vector<16x64xf32>
    %166 = arith.mulf %165, %165 : vector<16x64xf32>
    %cst_76 = arith.constant dense<0.000000e+00> : vector<16xf32>
    %167 = vector.multi_reduction <add>, %166, %cst_76 [1] : vector<16x64xf32> to vector<16xf32>
    %168 = vector.shape_cast %167 : vector<16xf32> to vector<16x1xf32>
    %cst_77 = arith.constant 6.400000e+01 : f32
    %169 = vector.broadcast %cst_77 : f32 to vector<16x1xf32>
    %170 = arith.divf %168, %169 : vector<16x1xf32>
    %cst_78 = arith.constant 9.99999974E-6 : f32
    %171 = vector.broadcast %cst_78 : f32 to vector<16x1xf32>
    %172 = arith.addf %170, %171 : vector<16x1xf32>
    %173 = math.rsqrt %172 : vector<16x1xf32>
    %174 = vector.broadcast %173 : vector<16x1xf32> to vector<16x64xf32>
    %175 = arith.mulf %165, %174 : vector<16x64xf32>
    %176 = vector.broadcast %157 : vector<1x64xf32> to vector<16x64xf32>
    %177 = arith.mulf %175, %176 : vector<16x64xf32>
    %178 = vector.broadcast %159 : vector<1x64xf32> to vector<16x64xf32>
    %179 = arith.addf %177, %178 : vector<16x64xf32>
    %180 = vector.shape_cast %179 : vector<16x64xf32> to vector<1x16x64xf32>
    %c0_79 = arith.constant 0 : index
    %c0_80 = arith.constant 0 : index
    %c0_81 = arith.constant 0 : index
    %181 = vector.load %arg18[%c0_79, %c0_80, %c0_81] : memref<1x16x64xf32, #tpu.memory_space<vmem>>, vector<1x16x64xf32>
    tpu.vector_store %arg18[%c0_79, %c0_80, %c0_81], %180 {strides = array<i32>} : memref<1x16x64xf32, #tpu.memory_space<vmem>>, vector<1x16x64xf32>,
    return
  }
  func.func @transform_0(%arg0: i32, %arg1: i32) -> (i32, i32, i32) {
    %c0_i32 = arith.constant 0 : i32
    %c0_i32_0 = arith.constant 0 : i32
    %c0_i32_1 = arith.constant 0 : i32
    return %arg0, %c0_i32, %c0_i32_0 : i32, i32, i32
  }
  func.func @transform_1(%arg0: i32, %arg1: i32) -> (i32, i32, i32) {
    %c0_i32 = arith.constant 0 : i32
    %c0_i32_0 = arith.constant 0 : i32
    %c0_i32_1 = arith.constant 0 : i32
    return %arg0, %c0_i32, %c0_i32_0 : i32, i32, i32
  }
  func.func @transform_2(%arg0: i32, %arg1: i32) -> (i32, i32) {
    %c0_i32 = arith.constant 0 : i32
    %c0_i32_0 = arith.constant 0 : i32
    %c0_i32_1 = arith.constant 0 : i32
    return %c0_i32, %c0_i32_0 : i32, i32
  }
  func.func @transform_3(%arg0: i32, %arg1: i32) -> (i32, i32) {
    %c0_i32 = arith.constant 0 : i32
    %c0_i32_0 = arith.constant 0 : i32
    %c0_i32_1 = arith.constant 0 : i32
    return %c0_i32, %c0_i32_0 : i32, i32
  }
  func.func @transform_4(%arg0: i32, %arg1: i32) -> (i32, i32, i32) {
    %c0_i32 = arith.constant 0 : i32
    %c0_i32_0 = arith.constant 0 : i32
    %c0_i32_1 = arith.constant 0 : i32
    return %arg1, %c0_i32, %c0_i32_0 : i32, i32, i32
  }
  func.func @transform_5(%arg0: i32, %arg1: i32) -> (i32, i32, i32) {
    %c0_i32 = arith.constant 0 : i32
    %c0_i32_0 = arith.constant 0 : i32
    %c0_i32_1 = arith.constant 0 : i32
    return %arg1, %c0_i32, %c0_i32_0 : i32, i32, i32
  }
  func.func @transform_6(%arg0: i32, %arg1: i32) -> (i32, i32, i32) {
    %c0_i32 = arith.constant 0 : i32
    %c0_i32_0 = arith.constant 0 : i32
    %c0_i32_1 = arith.constant 0 : i32
    return %arg1, %c0_i32, %c0_i32_0 : i32, i32, i32
  }
  func.func @transform_7(%arg0: i32, %arg1: i32) -> (i32, i32, i32) {
    %c0_i32 = arith.constant 0 : i32
    %c0_i32_0 = arith.constant 0 : i32
    %c0_i32_1 = arith.constant 0 : i32
    return %arg1, %c0_i32, %c0_i32_0 : i32, i32, i32
  }
  func.func @transform_8(%arg0: i32, %arg1: i32) -> (i32, i32, i32) {
    %c0_i32 = arith.constant 0 : i32
    %c0_i32_0 = arith.constant 0 : i32
    %c0_i32_1 = arith.constant 0 : i32
    return %arg1, %c0_i32, %c0_i32_0 : i32, i32, i32
  }
  func.func @transform_9(%arg0: i32, %arg1: i32) -> (i32, i32, i32) {
    %c0_i32 = arith.constant 0 : i32
    %c0_i32_0 = arith.constant 0 : i32
    %c0_i32_1 = arith.constant 0 : i32
    return %arg1, %c0_i32, %c0_i32_0 : i32, i32, i32
  }
  func.func @transform_10(%arg0: i32, %arg1: i32) -> (i32, i32, i32) {
    %c0_i32 = arith.constant 0 : i32
    %c0_i32_0 = arith.constant 0 : i32
    %c0_i32_1 = arith.constant 0 : i32
    return %arg1, %c0_i32, %c0_i32_0 : i32, i32, i32
  }
  func.func @transform_11(%arg0: i32, %arg1: i32) -> (i32, i32, i32) {
    %c0_i32 = arith.constant 0 : i32
    %c0_i32_0 = arith.constant 0 : i32
    %c0_i32_1 = arith.constant 0 : i32
    return %arg1, %c0_i32, %c0_i32_0 : i32, i32, i32
  }
  func.func @transform_12(%arg0: i32, %arg1: i32) -> (i32, i32, i32) {
    %c0_i32 = arith.constant 0 : i32
    %c0_i32_0 = arith.constant 0 : i32
    %c0_i32_1 = arith.constant 0 : i32
    return %arg1, %c0_i32, %c0_i32_0 : i32, i32, i32
  }
  func.func @transform_13(%arg0: i32, %arg1: i32) -> (i32, i32, i32) {
    %c0_i32 = arith.constant 0 : i32
    %c0_i32_0 = arith.constant 0 : i32
    %c0_i32_1 = arith.constant 0 : i32
    return %arg1, %c0_i32, %c0_i32_0 : i32, i32, i32
  }
  func.func @transform_14(%arg0: i32, %arg1: i32) -> (i32, i32, i32) {
    %c0_i32 = arith.constant 0 : i32
    %c0_i32_0 = arith.constant 0 : i32
    %c0_i32_1 = arith.constant 0 : i32
    return %arg1, %c0_i32, %c0_i32_0 : i32, i32, i32
  }
  func.func @transform_15(%arg0: i32, %arg1: i32) -> (i32, i32, i32) {
    %c0_i32 = arith.constant 0 : i32
    %c0_i32_0 = arith.constant 0 : i32
    %c0_i32_1 = arith.constant 0 : i32
    return %arg1, %c0_i32, %c0_i32_0 : i32, i32, i32
  }
  func.func @transform_16(%arg0: i32, %arg1: i32) -> (i32, i32, i32) {
    %c0_i32 = arith.constant 0 : i32
    %c0_i32_0 = arith.constant 0 : i32
    %c0_i32_1 = arith.constant 0 : i32
    return %arg0, %c0_i32, %c0_i32_0 : i32, i32, i32
  }
}

module attributes {stable_mosaic.version = 11 : i64} {
  func.func @_linear_kernel(%arg0: memref<32x64xf32, #tpu.memory_space<vmem>>, %arg1: memref<64x32xbf16, #tpu.memory_space<vmem>>, %arg2: memref<1x32xf32, #tpu.memory_space<vmem>>, %arg3: memref<32x32xf32, #tpu.memory_space<vmem>>) attributes {dimension_semantics = [], scalar_prefetch = 0 : i64, scratch_operands = 0 : i64, tpu.core_type = #tpu.core_type<tc>} {
    %c0 = arith.constant 0 : index
    %c0_0 = arith.constant 0 : index
    %0 = vector.load %arg0[%c0, %c0_0] : memref<32x64xf32, #tpu.memory_space<vmem>>, vector<32x64xf32>
    %1 = arith.truncf %0 : vector<32x64xf32> to vector<32x64xbf16>
    %c0_1 = arith.constant 0 : index
    %c0_2 = arith.constant 0 : index
    %2 = vector.load %arg1[%c0_1, %c0_2] : memref<64x32xbf16, #tpu.memory_space<vmem>>, vector<64x32xbf16>
    %cst = arith.constant dense<0.000000e+00> : vector<32x32xf32>
    %3 = tpu.matmul %1, %2, %cst {dimension_numbers = #tpu.dot_dimension_numbers<[1], [0], [0], [1], [0, 0, 1, 1], [], []>} : vector<32x64xbf16>, vector<64x32xbf16>, vector<32x32xf32> -> vector<32x32xf32>
    %c0_3 = arith.constant 0 : index
    %c0_4 = arith.constant 0 : index
    %4 = vector.load %arg2[%c0_3, %c0_4] : memref<1x32xf32, #tpu.memory_space<vmem>>, vector<1x32xf32>
    %5 = vector.broadcast %4 : vector<1x32xf32> to vector<32x32xf32>
    %6 = arith.addf %3, %5 : vector<32x32xf32>
    %c0_5 = arith.constant 0 : index
    %c0_6 = arith.constant 0 : index
    %7 = vector.load %arg3[%c0_5, %c0_6] : memref<32x32xf32, #tpu.memory_space<vmem>>, vector<32x32xf32>
    tpu.vector_store %arg3[%c0_5, %c0_6], %6 {strides = array<i32>} : memref<32x32xf32, #tpu.memory_space<vmem>>, vector<32x32xf32>,
    return
  }
}

module attributes {stable_mosaic.version = 11 : i64} {
  func.func @_cm_stack_kernel(%arg0: i32, %arg1: i32, %arg2: memref<1x4x32xf32, #tpu.memory_space<vmem>>, %arg3: memref<1x4x32xf32, #tpu.memory_space<vmem>>, %arg4: memref<1x32xf32, #tpu.memory_space<vmem>>, %arg5: memref<1x32xf32, #tpu.memory_space<vmem>>, %arg6: memref<1x32x32xbf16, #tpu.memory_space<vmem>>, %arg7: memref<1x1x32xf32, #tpu.memory_space<vmem>>, %arg8: memref<1x32x64xbf16, #tpu.memory_space<vmem>>, %arg9: memref<1x1x64xf32, #tpu.memory_space<vmem>>, %arg10: memref<1x32x32xbf16, #tpu.memory_space<vmem>>, %arg11: memref<1x1x32xf32, #tpu.memory_space<vmem>>, %arg12: memref<1x1x32xf32, #tpu.memory_space<vmem>>, %arg13: memref<1x1x32xf32, #tpu.memory_space<vmem>>, %arg14: memref<1x32x64xbf16, #tpu.memory_space<vmem>>, %arg15: memref<1x1x64xf32, #tpu.memory_space<vmem>>, %arg16: memref<1x64x32xbf16, #tpu.memory_space<vmem>>, %arg17: memref<1x1x32xf32, #tpu.memory_space<vmem>>, %arg18: memref<1x1x32xf32, #tpu.memory_space<vmem>>, %arg19: memref<1x1x32xf32, #tpu.memory_space<vmem>>, %arg20: memref<1x4x32xf32, #tpu.memory_space<vmem>>) attributes {dimension_semantics = [#tpu.dimension_semantics<parallel>, #tpu.dimension_semantics<arbitrary>], iteration_bounds = array<i64: 2, 1>, scalar_prefetch = 0 : i64, scratch_operands = 0 : i64, tpu.core_type = #tpu.core_type<tc>, window_params = [{transform_indices = @transform_0, window_bounds = array<i64: 1, 4, 32>}, {transform_indices = @transform_1, window_bounds = array<i64: 1, 4, 32>}, {pipeline_mode = #tpu.pipeline_mode<synchronous>, transform_indices = @transform_2, window_bounds = array<i64: 1, 32>}, {pipeline_mode = #tpu.pipeline_mode<synchronous>, transform_indices = @transform_3, window_bounds = array<i64: 1, 32>}, {transform_indices = @transform_4, window_bounds = array<i64: 1, 32, 32>}, {transform_indices = @transform_5, window_bounds = array<i64: 1, 1, 32>}, {transform_indices = @transform_6, window_bounds = array<i64: 1, 32, 64>}, {transform_indices = @transform_7, window_bounds = array<i64: 1, 1, 64>}, {transform_indices = @transform_8, window_bounds = array<i64: 1, 32, 32>}, {transform_indices = @transform_9, window_bounds = array<i64: 1, 1, 32>}, {transform_indices = @transform_10, window_bounds = array<i64: 1, 1, 32>}, {transform_indices = @transform_11, window_bounds = array<i64: 1, 1, 32>}, {transform_indices = @transform_12, window_bounds = array<i64: 1, 32, 64>}, {transform_indices = @transform_13, window_bounds = array<i64: 1, 1, 64>}, {transform_indices = @transform_14, window_bounds = array<i64: 1, 64, 32>}, {transform_indices = @transform_15, window_bounds = array<i64: 1, 1, 32>}, {transform_indices = @transform_16, window_bounds = array<i64: 1, 1, 32>}, {transform_indices = @transform_17, window_bounds = array<i64: 1, 1, 32>}, {transform_indices = @transform_18, window_bounds = array<i64: 1, 4, 32>}]} {
    %c0_i32 = arith.constant 0 : i32
    %0 = arith.cmpi eq, %arg1, %c0_i32 : i32
    %1 = arith.extui %0 : i1 to i32
    %c0_i32_0 = arith.constant 0 : i32
    %2 = arith.cmpi ne, %1, %c0_i32_0 : i32
    scf.if %2 {
      %c0_99 = arith.constant 0 : index
      %c0_100 = arith.constant 0 : index
      %c0_101 = arith.constant 0 : index
      %205 = vector.load %arg2[%c0_99, %c0_100, %c0_101] : memref<1x4x32xf32, #tpu.memory_space<vmem>>, vector<1x4x32xf32>
      %c0_102 = arith.constant 0 : index
      %c0_103 = arith.constant 0 : index
      %c0_104 = arith.constant 0 : index
      %206 = vector.load %arg20[%c0_102, %c0_103, %c0_104] : memref<1x4x32xf32, #tpu.memory_space<vmem>>, vector<1x4x32xf32>
      tpu.vector_store %arg20[%c0_102, %c0_103, %c0_104], %205 {strides = array<i32>} : memref<1x4x32xf32, #tpu.memory_space<vmem>>, vector<1x4x32xf32>,
    } else {
    }
    %c0 = arith.constant 0 : index
    %c0_1 = arith.constant 0 : index
    %c0_2 = arith.constant 0 : index
    %3 = vector.load %arg20[%c0, %c0_1, %c0_2] : memref<1x4x32xf32, #tpu.memory_space<vmem>>, vector<1x4x32xf32>
    %c0_3 = arith.constant 0 : index
    %c0_4 = arith.constant 0 : index
    %c0_5 = arith.constant 0 : index
    %4 = vector.load %arg3[%c0_3, %c0_4, %c0_5] : memref<1x4x32xf32, #tpu.memory_space<vmem>>, vector<1x4x32xf32>
    %c0_6 = arith.constant 0 : index
    %c0_7 = arith.constant 0 : index
    %c0_8 = arith.constant 0 : index
    %5 = vector.load %arg12[%c0_6, %c0_7, %c0_8] : memref<1x1x32xf32, #tpu.memory_space<vmem>>, vector<1x1x32xf32>
    %6 = vector.shape_cast %5 : vector<1x1x32xf32> to vector<1x32xf32>
    %c0_9 = arith.constant 0 : index
    %c0_10 = arith.constant 0 : index
    %c0_11 = arith.constant 0 : index
    %7 = vector.load %arg13[%c0_9, %c0_10, %c0_11] : memref<1x1x32xf32, #tpu.memory_space<vmem>>, vector<1x1x32xf32>
    %8 = vector.shape_cast %7 : vector<1x1x32xf32> to vector<1x32xf32>
    %cst = arith.constant dense<0.000000e+00> : vector<1x4xf32>
    %9 = vector.multi_reduction <add>, %3, %cst [2] : vector<1x4x32xf32> to vector<1x4xf32>
    %10 = vector.shape_cast %9 : vector<1x4xf32> to vector<1x4x1xf32>
    %cst_12 = arith.constant 3.200000e+01 : f32
    %11 = vector.broadcast %cst_12 : f32 to vector<1x4x1xf32>
    %12 = arith.divf %10, %11 : vector<1x4x1xf32>
    %13 = vector.broadcast %12 : vector<1x4x1xf32> to vector<1x4x32xf32>
    %14 = arith.subf %3, %13 : vector<1x4x32xf32>
    %15 = arith.mulf %14, %14 : vector<1x4x32xf32>
    %cst_13 = arith.constant dense<0.000000e+00> : vector<1x4xf32>
    %16 = vector.multi_reduction <add>, %15, %cst_13 [2] : vector<1x4x32xf32> to vector<1x4xf32>
    %17 = vector.shape_cast %16 : vector<1x4xf32> to vector<1x4x1xf32>
    %cst_14 = arith.constant 3.200000e+01 : f32
    %18 = vector.broadcast %cst_14 : f32 to vector<1x4x1xf32>
    %19 = arith.divf %17, %18 : vector<1x4x1xf32>
    %cst_15 = arith.constant 9.99999974E-6 : f32
    %20 = vector.broadcast %cst_15 : f32 to vector<1x4x1xf32>
    %21 = arith.addf %19, %20 : vector<1x4x1xf32>
    %22 = math.rsqrt %21 : vector<1x4x1xf32>
    %23 = vector.broadcast %22 : vector<1x4x1xf32> to vector<1x4x32xf32>
    %24 = arith.mulf %14, %23 : vector<1x4x32xf32>
    %25 = vector.shape_cast %6 : vector<1x32xf32> to vector<1x1x32xf32>
    %26 = vector.broadcast %25 : vector<1x1x32xf32> to vector<1x4x32xf32>
    %27 = arith.mulf %24, %26 : vector<1x4x32xf32>
    %28 = vector.shape_cast %8 : vector<1x32xf32> to vector<1x1x32xf32>
    %29 = vector.broadcast %28 : vector<1x1x32xf32> to vector<1x4x32xf32>
    %30 = arith.addf %27, %29 : vector<1x4x32xf32>
    %c0_16 = arith.constant 0 : index
    %c0_17 = arith.constant 0 : index
    %c0_18 = arith.constant 0 : index
    %31 = vector.load %arg12[%c0_16, %c0_17, %c0_18] : memref<1x1x32xf32, #tpu.memory_space<vmem>>, vector<1x1x32xf32>
    %32 = vector.shape_cast %31 : vector<1x1x32xf32> to vector<1x32xf32>
    %c0_19 = arith.constant 0 : index
    %c0_20 = arith.constant 0 : index
    %c0_21 = arith.constant 0 : index
    %33 = vector.load %arg13[%c0_19, %c0_20, %c0_21] : memref<1x1x32xf32, #tpu.memory_space<vmem>>, vector<1x1x32xf32>
    %34 = vector.shape_cast %33 : vector<1x1x32xf32> to vector<1x32xf32>
    %cst_22 = arith.constant dense<0.000000e+00> : vector<1x4xf32>
    %35 = vector.multi_reduction <add>, %4, %cst_22 [2] : vector<1x4x32xf32> to vector<1x4xf32>
    %36 = vector.shape_cast %35 : vector<1x4xf32> to vector<1x4x1xf32>
    %cst_23 = arith.constant 3.200000e+01 : f32
    %37 = vector.broadcast %cst_23 : f32 to vector<1x4x1xf32>
    %38 = arith.divf %36, %37 : vector<1x4x1xf32>
    %39 = vector.broadcast %38 : vector<1x4x1xf32> to vector<1x4x32xf32>
    %40 = arith.subf %4, %39 : vector<1x4x32xf32>
    %41 = arith.mulf %40, %40 : vector<1x4x32xf32>
    %cst_24 = arith.constant dense<0.000000e+00> : vector<1x4xf32>
    %42 = vector.multi_reduction <add>, %41, %cst_24 [2] : vector<1x4x32xf32> to vector<1x4xf32>
    %43 = vector.shape_cast %42 : vector<1x4xf32> to vector<1x4x1xf32>
    %cst_25 = arith.constant 3.200000e+01 : f32
    %44 = vector.broadcast %cst_25 : f32 to vector<1x4x1xf32>
    %45 = arith.divf %43, %44 : vector<1x4x1xf32>
    %cst_26 = arith.constant 9.99999974E-6 : f32
    %46 = vector.broadcast %cst_26 : f32 to vector<1x4x1xf32>
    %47 = arith.addf %45, %46 : vector<1x4x1xf32>
    %48 = math.rsqrt %47 : vector<1x4x1xf32>
    %49 = vector.broadcast %48 : vector<1x4x1xf32> to vector<1x4x32xf32>
    %50 = arith.mulf %40, %49 : vector<1x4x32xf32>
    %51 = vector.shape_cast %32 : vector<1x32xf32> to vector<1x1x32xf32>
    %52 = vector.broadcast %51 : vector<1x1x32xf32> to vector<1x4x32xf32>
    %53 = arith.mulf %50, %52 : vector<1x4x32xf32>
    %54 = vector.shape_cast %34 : vector<1x32xf32> to vector<1x1x32xf32>
    %55 = vector.broadcast %54 : vector<1x1x32xf32> to vector<1x4x32xf32>
    %56 = arith.addf %53, %55 : vector<1x4x32xf32>
    %57 = vector.shape_cast %30 : vector<1x4x32xf32> to vector<4x32xf32>
    %58 = arith.truncf %57 : vector<4x32xf32> to vector<4x32xbf16>
    %c0_27 = arith.constant 0 : index
    %c0_28 = arith.constant 0 : index
    %c0_29 = arith.constant 0 : index
    %59 = vector.load %arg6[%c0_27, %c0_28, %c0_29] : memref<1x32x32xbf16, #tpu.memory_space<vmem>>, vector<1x32x32xbf16>
    %60 = vector.shape_cast %59 : vector<1x32x32xbf16> to vector<32x32xbf16>
    %cst_30 = arith.constant dense<0.000000e+00> : vector<4x32xf32>
    %61 = tpu.matmul %58, %60, %cst_30 {dimension_numbers = #tpu.dot_dimension_numbers<[1], [0], [0], [1], [0, 0, 1, 1], [], []>} : vector<4x32xbf16>, vector<32x32xbf16>, vector<4x32xf32> -> vector<4x32xf32>
    %c0_31 = arith.constant 0 : index
    %c0_32 = arith.constant 0 : index
    %c0_33 = arith.constant 0 : index
    %62 = vector.load %arg7[%c0_31, %c0_32, %c0_33] : memref<1x1x32xf32, #tpu.memory_space<vmem>>, vector<1x1x32xf32>
    %63 = vector.shape_cast %62 : vector<1x1x32xf32> to vector<1x32xf32>
    %64 = vector.broadcast %63 : vector<1x32xf32> to vector<4x32xf32>
    %65 = arith.addf %61, %64 : vector<4x32xf32>
    %66 = vector.shape_cast %65 : vector<4x32xf32> to vector<1x4x32xf32>
    %67 = vector.shape_cast %56 : vector<1x4x32xf32> to vector<4x32xf32>
    %68 = arith.truncf %67 : vector<4x32xf32> to vector<4x32xbf16>
    %c0_34 = arith.constant 0 : index
    %c0_35 = arith.constant 0 : index
    %c0_36 = arith.constant 0 : index
    %69 = vector.load %arg8[%c0_34, %c0_35, %c0_36] : memref<1x32x64xbf16, #tpu.memory_space<vmem>>, vector<1x32x64xbf16>
    %70 = vector.shape_cast %69 : vector<1x32x64xbf16> to vector<32x64xbf16>
    %cst_37 = arith.constant dense<0.000000e+00> : vector<4x64xf32>
    %71 = tpu.matmul %68, %70, %cst_37 {dimension_numbers = #tpu.dot_dimension_numbers<[1], [0], [0], [1], [0, 0, 1, 1], [], []>} : vector<4x32xbf16>, vector<32x64xbf16>, vector<4x64xf32> -> vector<4x64xf32>
    %c0_38 = arith.constant 0 : index
    %c0_39 = arith.constant 0 : index
    %c0_40 = arith.constant 0 : index
    %72 = vector.load %arg9[%c0_38, %c0_39, %c0_40] : memref<1x1x64xf32, #tpu.memory_space<vmem>>, vector<1x1x64xf32>
    %73 = vector.shape_cast %72 : vector<1x1x64xf32> to vector<1x64xf32>
    %74 = vector.broadcast %73 : vector<1x64xf32> to vector<4x64xf32>
    %75 = arith.addf %71, %74 : vector<4x64xf32>
    %76 = vector.shape_cast %75 : vector<4x64xf32> to vector<1x4x64xf32>
    %77 = vector.extract_strided_slice %66 {offsets = [0, 0, 0], sizes = [1, 4, 8], strides = [1, 1, 1]} : vector<1x4x32xf32> to vector<1x4x8xf32>
    %78 = vector.extract_strided_slice %76 {offsets = [0, 0, 0], sizes = [1, 4, 8], strides = [1, 1, 1]} : vector<1x4x64xf32> to vector<1x4x8xf32>
    %79 = vector.extract_strided_slice %76 {offsets = [0, 0, 32], sizes = [1, 4, 8], strides = [1, 1, 1]} : vector<1x4x64xf32> to vector<1x4x8xf32>
    "tpu.trace_start"() <{level = 10 : i32, message = "bqd,bkd->bqk"}> : () -> ()
    %cst_41 = arith.constant dense<0.000000e+00> : vector<1x4x4xf32>
    %80 = tpu.matmul %77, %78, %cst_41 {dimension_numbers = #tpu.dot_dimension_numbers<[2], [2], [1], [1], [0, 0, 0, 1, 1, 1], [0], [0]>} : vector<1x4x8xf32>, vector<1x4x8xf32>, vector<1x4x4xf32> -> vector<1x4x4xf32>
    "tpu.trace_stop"() : () -> ()
    %cst_42 = arith.constant 0.353553385 : f32
    %81 = vector.broadcast %cst_42 : f32 to vector<1x4x4xf32>
    %82 = arith.mulf %80, %81 : vector<1x4x4xf32>
    %cst_43 = arith.constant dense<0xFF800000> : vector<1x4xf32>
    %83 = vector.multi_reduction <maximumf>, %82, %cst_43 [2] : vector<1x4x4xf32> to vector<1x4xf32>
    %84 = vector.shape_cast %83 : vector<1x4xf32> to vector<1x4x1xf32>
    %85 = vector.broadcast %84 : vector<1x4x1xf32> to vector<1x4x4xf32>
    %86 = arith.subf %82, %85 : vector<1x4x4xf32>
    %87 = math.exp %86 : vector<1x4x4xf32>
    %cst_44 = arith.constant dense<0.000000e+00> : vector<1x4xf32>
    %88 = vector.multi_reduction <add>, %87, %cst_44 [2] : vector<1x4x4xf32> to vector<1x4xf32>
    %89 = vector.shape_cast %88 : vector<1x4xf32> to vector<1x4x1xf32>
    %90 = tpu.reciprocal %89 {approx = true} : vector<1x4x1xf32> -> vector<1x4x1xf32>
    %91 = vector.broadcast %90 : vector<1x4x1xf32> to vector<1x4x4xf32>
    %92 = arith.mulf %87, %91 : vector<1x4x4xf32>
    "tpu.trace_start"() <{level = 10 : i32, message = "bqk,bkd->bqd"}> : () -> ()
    %cst_45 = arith.constant dense<0.000000e+00> : vector<1x4x8xf32>
    %93 = tpu.matmul %92, %79, %cst_45 {dimension_numbers = #tpu.dot_dimension_numbers<[2], [1], [1], [2], [0, 0, 0, 1, 1, 2], [0], [0]>} : vector<1x4x4xf32>, vector<1x4x8xf32>, vector<1x4x8xf32> -> vector<1x4x8xf32>
    "tpu.trace_stop"() : () -> ()
    %94 = vector.extract_strided_slice %66 {offsets = [0, 0, 8], sizes = [1, 4, 8], strides = [1, 1, 1]} : vector<1x4x32xf32> to vector<1x4x8xf32>
    %95 = vector.extract_strided_slice %76 {offsets = [0, 0, 8], sizes = [1, 4, 8], strides = [1, 1, 1]} : vector<1x4x64xf32> to vector<1x4x8xf32>
    %96 = vector.extract_strided_slice %76 {offsets = [0, 0, 40], sizes = [1, 4, 8], strides = [1, 1, 1]} : vector<1x4x64xf32> to vector<1x4x8xf32>
    "tpu.trace_start"() <{level = 10 : i32, message = "bqd,bkd->bqk"}> : () -> ()
    %cst_46 = arith.constant dense<0.000000e+00> : vector<1x4x4xf32>
    %97 = tpu.matmul %94, %95, %cst_46 {dimension_numbers = #tpu.dot_dimension_numbers<[2], [2], [1], [1], [0, 0, 0, 1, 1, 1], [0], [0]>} : vector<1x4x8xf32>, vector<1x4x8xf32>, vector<1x4x4xf32> -> vector<1x4x4xf32>
    "tpu.trace_stop"() : () -> ()
    %cst_47 = arith.constant 0.353553385 : f32
    %98 = vector.broadcast %cst_47 : f32 to vector<1x4x4xf32>
    %99 = arith.mulf %97, %98 : vector<1x4x4xf32>
    %cst_48 = arith.constant dense<0xFF800000> : vector<1x4xf32>
    %100 = vector.multi_reduction <maximumf>, %99, %cst_48 [2] : vector<1x4x4xf32> to vector<1x4xf32>
    %101 = vector.shape_cast %100 : vector<1x4xf32> to vector<1x4x1xf32>
    %102 = vector.broadcast %101 : vector<1x4x1xf32> to vector<1x4x4xf32>
    %103 = arith.subf %99, %102 : vector<1x4x4xf32>
    %104 = math.exp %103 : vector<1x4x4xf32>
    %cst_49 = arith.constant dense<0.000000e+00> : vector<1x4xf32>
    %105 = vector.multi_reduction <add>, %104, %cst_49 [2] : vector<1x4x4xf32> to vector<1x4xf32>
    %106 = vector.shape_cast %105 : vector<1x4xf32> to vector<1x4x1xf32>
    %107 = tpu.reciprocal %106 {approx = true} : vector<1x4x1xf32> -> vector<1x4x1xf32>
    %108 = vector.broadcast %107 : vector<1x4x1xf32> to vector<1x4x4xf32>
    %109 = arith.mulf %104, %108 : vector<1x4x4xf32>
    "tpu.trace_start"() <{level = 10 : i32, message = "bqk,bkd->bqd"}> : () -> ()
    %cst_50 = arith.constant dense<0.000000e+00> : vector<1x4x8xf32>
    %110 = tpu.matmul %109, %96, %cst_50 {dimension_numbers = #tpu.dot_dimension_numbers<[2], [1], [1], [2], [0, 0, 0, 1, 1, 2], [0], [0]>} : vector<1x4x4xf32>, vector<1x4x8xf32>, vector<1x4x8xf32> -> vector<1x4x8xf32>
    "tpu.trace_stop"() : () -> ()
    %111 = vector.extract_strided_slice %66 {offsets = [0, 0, 16], sizes = [1, 4, 8], strides = [1, 1, 1]} : vector<1x4x32xf32> to vector<1x4x8xf32>
    %112 = vector.extract_strided_slice %76 {offsets = [0, 0, 16], sizes = [1, 4, 8], strides = [1, 1, 1]} : vector<1x4x64xf32> to vector<1x4x8xf32>
    %113 = vector.extract_strided_slice %76 {offsets = [0, 0, 48], sizes = [1, 4, 8], strides = [1, 1, 1]} : vector<1x4x64xf32> to vector<1x4x8xf32>
    "tpu.trace_start"() <{level = 10 : i32, message = "bqd,bkd->bqk"}> : () -> ()
    %cst_51 = arith.constant dense<0.000000e+00> : vector<1x4x4xf32>
    %114 = tpu.matmul %111, %112, %cst_51 {dimension_numbers = #tpu.dot_dimension_numbers<[2], [2], [1], [1], [0, 0, 0, 1, 1, 1], [0], [0]>} : vector<1x4x8xf32>, vector<1x4x8xf32>, vector<1x4x4xf32> -> vector<1x4x4xf32>
    "tpu.trace_stop"() : () -> ()
    %cst_52 = arith.constant 0.353553385 : f32
    %115 = vector.broadcast %cst_52 : f32 to vector<1x4x4xf32>
    %116 = arith.mulf %114, %115 : vector<1x4x4xf32>
    %cst_53 = arith.constant dense<0xFF800000> : vector<1x4xf32>
    %117 = vector.multi_reduction <maximumf>, %116, %cst_53 [2] : vector<1x4x4xf32> to vector<1x4xf32>
    %118 = vector.shape_cast %117 : vector<1x4xf32> to vector<1x4x1xf32>
    %119 = vector.broadcast %118 : vector<1x4x1xf32> to vector<1x4x4xf32>
    %120 = arith.subf %116, %119 : vector<1x4x4xf32>
    %121 = math.exp %120 : vector<1x4x4xf32>
    %cst_54 = arith.constant dense<0.000000e+00> : vector<1x4xf32>
    %122 = vector.multi_reduction <add>, %121, %cst_54 [2] : vector<1x4x4xf32> to vector<1x4xf32>
    %123 = vector.shape_cast %122 : vector<1x4xf32> to vector<1x4x1xf32>
    %124 = tpu.reciprocal %123 {approx = true} : vector<1x4x1xf32> -> vector<1x4x1xf32>
    %125 = vector.broadcast %124 : vector<1x4x1xf32> to vector<1x4x4xf32>
    %126 = arith.mulf %121, %125 : vector<1x4x4xf32>
    "tpu.trace_start"() <{level = 10 : i32, message = "bqk,bkd->bqd"}> : () -> ()
    %cst_55 = arith.constant dense<0.000000e+00> : vector<1x4x8xf32>
    %127 = tpu.matmul %126, %113, %cst_55 {dimension_numbers = #tpu.dot_dimension_numbers<[2], [1], [1], [2], [0, 0, 0, 1, 1, 2], [0], [0]>} : vector<1x4x4xf32>, vector<1x4x8xf32>, vector<1x4x8xf32> -> vector<1x4x8xf32>
    "tpu.trace_stop"() : () -> ()
    %128 = vector.extract_strided_slice %66 {offsets = [0, 0, 24], sizes = [1, 4, 8], strides = [1, 1, 1]} : vector<1x4x32xf32> to vector<1x4x8xf32>
    %129 = vector.extract_strided_slice %76 {offsets = [0, 0, 24], sizes = [1, 4, 8], strides = [1, 1, 1]} : vector<1x4x64xf32> to vector<1x4x8xf32>
    %130 = vector.extract_strided_slice %76 {offsets = [0, 0, 56], sizes = [1, 4, 8], strides = [1, 1, 1]} : vector<1x4x64xf32> to vector<1x4x8xf32>
    "tpu.trace_start"() <{level = 10 : i32, message = "bqd,bkd->bqk"}> : () -> ()
    %cst_56 = arith.constant dense<0.000000e+00> : vector<1x4x4xf32>
    %131 = tpu.matmul %128, %129, %cst_56 {dimension_numbers = #tpu.dot_dimension_numbers<[2], [2], [1], [1], [0, 0, 0, 1, 1, 1], [0], [0]>} : vector<1x4x8xf32>, vector<1x4x8xf32>, vector<1x4x4xf32> -> vector<1x4x4xf32>
    "tpu.trace_stop"() : () -> ()
    %cst_57 = arith.constant 0.353553385 : f32
    %132 = vector.broadcast %cst_57 : f32 to vector<1x4x4xf32>
    %133 = arith.mulf %131, %132 : vector<1x4x4xf32>
    %cst_58 = arith.constant dense<0xFF800000> : vector<1x4xf32>
    %134 = vector.multi_reduction <maximumf>, %133, %cst_58 [2] : vector<1x4x4xf32> to vector<1x4xf32>
    %135 = vector.shape_cast %134 : vector<1x4xf32> to vector<1x4x1xf32>
    %136 = vector.broadcast %135 : vector<1x4x1xf32> to vector<1x4x4xf32>
    %137 = arith.subf %133, %136 : vector<1x4x4xf32>
    %138 = math.exp %137 : vector<1x4x4xf32>
    %cst_59 = arith.constant dense<0.000000e+00> : vector<1x4xf32>
    %139 = vector.multi_reduction <add>, %138, %cst_59 [2] : vector<1x4x4xf32> to vector<1x4xf32>
    %140 = vector.shape_cast %139 : vector<1x4xf32> to vector<1x4x1xf32>
    %141 = tpu.reciprocal %140 {approx = true} : vector<1x4x1xf32> -> vector<1x4x1xf32>
    %142 = vector.broadcast %141 : vector<1x4x1xf32> to vector<1x4x4xf32>
    %143 = arith.mulf %138, %142 : vector<1x4x4xf32>
    "tpu.trace_start"() <{level = 10 : i32, message = "bqk,bkd->bqd"}> : () -> ()
    %cst_60 = arith.constant dense<0.000000e+00> : vector<1x4x8xf32>
    %144 = tpu.matmul %143, %130, %cst_60 {dimension_numbers = #tpu.dot_dimension_numbers<[2], [1], [1], [2], [0, 0, 0, 1, 1, 2], [0], [0]>} : vector<1x4x4xf32>, vector<1x4x8xf32>, vector<1x4x8xf32> -> vector<1x4x8xf32>
    "tpu.trace_stop"() : () -> ()
    %145 = tpu.concatenate %93, %110, %127, %144 in 2 : vector<1x4x8xf32>, vector<1x4x8xf32>, vector<1x4x8xf32>, vector<1x4x8xf32> -> vector<1x4x32xf32>
    %146 = vector.shape_cast %145 : vector<1x4x32xf32> to vector<4x32xf32>
    %147 = arith.truncf %146 : vector<4x32xf32> to vector<4x32xbf16>
    %c0_61 = arith.constant 0 : index
    %c0_62 = arith.constant 0 : index
    %c0_63 = arith.constant 0 : index
    %148 = vector.load %arg10[%c0_61, %c0_62, %c0_63] : memref<1x32x32xbf16, #tpu.memory_space<vmem>>, vector<1x32x32xbf16>
    %149 = vector.shape_cast %148 : vector<1x32x32xbf16> to vector<32x32xbf16>
    %cst_64 = arith.constant dense<0.000000e+00> : vector<4x32xf32>
    %150 = tpu.matmul %147, %149, %cst_64 {dimension_numbers = #tpu.dot_dimension_numbers<[1], [0], [0], [1], [0, 0, 1, 1], [], []>} : vector<4x32xbf16>, vector<32x32xbf16>, vector<4x32xf32> -> vector<4x32xf32>
    %c0_65 = arith.constant 0 : index
    %c0_66 = arith.constant 0 : index
    %c0_67 = arith.constant 0 : index
    %151 = vector.load %arg11[%c0_65, %c0_66, %c0_67] : memref<1x1x32xf32, #tpu.memory_space<vmem>>, vector<1x1x32xf32>
    %152 = vector.shape_cast %151 : vector<1x1x32xf32> to vector<1x32xf32>
    %153 = vector.broadcast %152 : vector<1x32xf32> to vector<4x32xf32>
    %154 = arith.addf %150, %153 : vector<4x32xf32>
    %155 = vector.shape_cast %3 : vector<1x4x32xf32> to vector<4x32xf32>
    %156 = arith.addf %155, %154 : vector<4x32xf32>
    %c0_68 = arith.constant 0 : index
    %c0_69 = arith.constant 0 : index
    %c0_70 = arith.constant 0 : index
    %157 = vector.load %arg18[%c0_68, %c0_69, %c0_70] : memref<1x1x32xf32, #tpu.memory_space<vmem>>, vector<1x1x32xf32>
    %158 = vector.shape_cast %157 : vector<1x1x32xf32> to vector<1x32xf32>
    %c0_71 = arith.constant 0 : index
    %c0_72 = arith.constant 0 : index
    %c0_73 = arith.constant 0 : index
    %159 = vector.load %arg19[%c0_71, %c0_72, %c0_73] : memref<1x1x32xf32, #tpu.memory_space<vmem>>, vector<1x1x32xf32>
    %160 = vector.shape_cast %159 : vector<1x1x32xf32> to vector<1x32xf32>
    %cst_74 = arith.constant dense<0.000000e+00> : vector<4xf32>
    %161 = vector.multi_reduction <add>, %156, %cst_74 [1] : vector<4x32xf32> to vector<4xf32>
    %162 = vector.shape_cast %161 : vector<4xf32> to vector<4x1xf32>
    %cst_75 = arith.constant 3.200000e+01 : f32
    %163 = vector.broadcast %cst_75 : f32 to vector<4x1xf32>
    %164 = arith.divf %162, %163 : vector<4x1xf32>
    %165 = vector.broadcast %164 : vector<4x1xf32> to vector<4x32xf32>
    %166 = arith.subf %156, %165 : vector<4x32xf32>
    %167 = arith.mulf %166, %166 : vector<4x32xf32>
    %cst_76 = arith.constant dense<0.000000e+00> : vector<4xf32>
    %168 = vector.multi_reduction <add>, %167, %cst_76 [1] : vector<4x32xf32> to vector<4xf32>
    %169 = vector.shape_cast %168 : vector<4xf32> to vector<4x1xf32>
    %cst_77 = arith.constant 3.200000e+01 : f32
    %170 = vector.broadcast %cst_77 : f32 to vector<4x1xf32>
    %171 = arith.divf %169, %170 : vector<4x1xf32>
    %cst_78 = arith.constant 9.99999974E-6 : f32
    %172 = vector.broadcast %cst_78 : f32 to vector<4x1xf32>
    %173 = arith.addf %171, %172 : vector<4x1xf32>
    %174 = math.rsqrt %173 : vector<4x1xf32>
    %175 = vector.broadcast %174 : vector<4x1xf32> to vector<4x32xf32>
    %176 = arith.mulf %166, %175 : vector<4x32xf32>
    %177 = vector.broadcast %158 : vector<1x32xf32> to vector<4x32xf32>
    %178 = arith.mulf %176, %177 : vector<4x32xf32>
    %179 = vector.broadcast %160 : vector<1x32xf32> to vector<4x32xf32>
    %180 = arith.addf %178, %179 : vector<4x32xf32>
    %181 = arith.truncf %180 : vector<4x32xf32> to vector<4x32xbf16>
    %c0_79 = arith.constant 0 : index
    %c0_80 = arith.constant 0 : index
    %c0_81 = arith.constant 0 : index
    %182 = vector.load %arg14[%c0_79, %c0_80, %c0_81] : memref<1x32x64xbf16, #tpu.memory_space<vmem>>, vector<1x32x64xbf16>
    %183 = vector.shape_cast %182 : vector<1x32x64xbf16> to vector<32x64xbf16>
    %cst_82 = arith.constant dense<0.000000e+00> : vector<4x64xf32>
    %184 = tpu.matmul %181, %183, %cst_82 {dimension_numbers = #tpu.dot_dimension_numbers<[1], [0], [0], [1], [0, 0, 1, 1], [], []>} : vector<4x32xbf16>, vector<32x64xbf16>, vector<4x64xf32> -> vector<4x64xf32>
    %c0_83 = arith.constant 0 : index
    %c0_84 = arith.constant 0 : index
    %c0_85 = arith.constant 0 : index
    %185 = vector.load %arg15[%c0_83, %c0_84, %c0_85] : memref<1x1x64xf32, #tpu.memory_space<vmem>>, vector<1x1x64xf32>
    %186 = vector.shape_cast %185 : vector<1x1x64xf32> to vector<1x64xf32>
    %187 = vector.broadcast %186 : vector<1x64xf32> to vector<4x64xf32>
    %188 = arith.addf %184, %187 : vector<4x64xf32>
    %cst_86 = arith.constant 0.000000e+00 : f32
    %189 = vector.broadcast %cst_86 : f32 to vector<4x64xf32>
    %190 = arith.maximumf %188, %189 : vector<4x64xf32>
    %191 = arith.truncf %190 : vector<4x64xf32> to vector<4x64xbf16>
    %c0_87 = arith.constant 0 : index
    %c0_88 = arith.constant 0 : index
    %c0_89 = arith.constant 0 : index
    %192 = vector.load %arg16[%c0_87, %c0_88, %c0_89] : memref<1x64x32xbf16, #tpu.memory_space<vmem>>, vector<1x64x32xbf16>
    %193 = vector.shape_cast %192 : vector<1x64x32xbf16> to vector<64x32xbf16>
    %cst_90 = arith.constant dense<0.000000e+00> : vector<4x32xf32>
    %194 = tpu.matmul %191, %193, %cst_90 {dimension_numbers = #tpu.dot_dimension_numbers<[1], [0], [0], [1], [0, 0, 1, 1], [], []>} : vector<4x64xbf16>, vector<64x32xbf16>, vector<4x32xf32> -> vector<4x32xf32>
    %c0_91 = arith.constant 0 : index
    %c0_92 = arith.constant 0 : index
    %c0_93 = arith.constant 0 : index
    %195 = vector.load %arg17[%c0_91, %c0_92, %c0_93] : memref<1x1x32xf32, #tpu.memory_space<vmem>>, vector<1x1x32xf32>
    %196 = vector.shape_cast %195 : vector<1x1x32xf32> to vector<1x32xf32>
    %197 = vector.broadcast %196 : vector<1x32xf32> to vector<4x32xf32>
    %198 = arith.addf %194, %197 : vector<4x32xf32>
    %199 = arith.addf %156, %198 : vector<4x32xf32>
    %200 = vector.shape_cast %199 : vector<4x32xf32> to vector<1x4x32xf32>
    %c0_94 = arith.constant 0 : index
    %c0_95 = arith.constant 0 : index
    %c0_96 = arith.constant 0 : index
    %201 = vector.load %arg20[%c0_94, %c0_95, %c0_96] : memref<1x4x32xf32, #tpu.memory_space<vmem>>, vector<1x4x32xf32>
    tpu.vector_store %arg20[%c0_94, %c0_95, %c0_96], %200 {strides = array<i32>} : memref<1x4x32xf32, #tpu.memory_space<vmem>>, vector<1x4x32xf32>,
    %c0_i32_97 = arith.constant 0 : i32
    %202 = arith.cmpi eq, %arg1, %c0_i32_97 : i32
    %203 = arith.extui %202 : i1 to i32
    %c0_i32_98 = arith.constant 0 : i32
    %204 = arith.cmpi ne, %203, %c0_i32_98 : i32
    scf.if %204 {
      %c0_99 = arith.constant 0 : index
      %c0_100 = arith.constant 0 : index
      %c0_101 = arith.constant 0 : index
      %205 = vector.load %arg20[%c0_99, %c0_100, %c0_101] : memref<1x4x32xf32, #tpu.memory_space<vmem>>, vector<1x4x32xf32>
      %c0_102 = arith.constant 0 : index
      %c0_103 = arith.constant 0 : index
      %206 = vector.load %arg4[%c0_102, %c0_103] : memref<1x32xf32, #tpu.memory_space<vmem>>, vector<1x32xf32>
      %c0_104 = arith.constant 0 : index
      %c0_105 = arith.constant 0 : index
      %207 = vector.load %arg5[%c0_104, %c0_105] : memref<1x32xf32, #tpu.memory_space<vmem>>, vector<1x32xf32>
      %cst_106 = arith.constant dense<0.000000e+00> : vector<1x4xf32>
      %208 = vector.multi_reduction <add>, %205, %cst_106 [2] : vector<1x4x32xf32> to vector<1x4xf32>
      %209 = vector.shape_cast %208 : vector<1x4xf32> to vector<1x4x1xf32>
      %cst_107 = arith.constant 3.200000e+01 : f32
      %210 = vector.broadcast %cst_107 : f32 to vector<1x4x1xf32>
      %211 = arith.divf %209, %210 : vector<1x4x1xf32>
      %212 = vector.broadcast %211 : vector<1x4x1xf32> to vector<1x4x32xf32>
      %213 = arith.subf %205, %212 : vector<1x4x32xf32>
      %214 = arith.mulf %213, %213 : vector<1x4x32xf32>
      %cst_108 = arith.constant dense<0.000000e+00> : vector<1x4xf32>
      %215 = vector.multi_reduction <add>, %214, %cst_108 [2] : vector<1x4x32xf32> to vector<1x4xf32>
      %216 = vector.shape_cast %215 : vector<1x4xf32> to vector<1x4x1xf32>
      %cst_109 = arith.constant 3.200000e+01 : f32
      %217 = vector.broadcast %cst_109 : f32 to vector<1x4x1xf32>
      %218 = arith.divf %216, %217 : vector<1x4x1xf32>
      %cst_110 = arith.constant 9.99999974E-6 : f32
      %219 = vector.broadcast %cst_110 : f32 to vector<1x4x1xf32>
      %220 = arith.addf %218, %219 : vector<1x4x1xf32>
      %221 = math.rsqrt %220 : vector<1x4x1xf32>
      %222 = vector.broadcast %221 : vector<1x4x1xf32> to vector<1x4x32xf32>
      %223 = arith.mulf %213, %222 : vector<1x4x32xf32>
      %224 = vector.shape_cast %206 : vector<1x32xf32> to vector<1x1x32xf32>
      %225 = vector.broadcast %224 : vector<1x1x32xf32> to vector<1x4x32xf32>
      %226 = arith.mulf %223, %225 : vector<1x4x32xf32>
      %227 = vector.shape_cast %207 : vector<1x32xf32> to vector<1x1x32xf32>
      %228 = vector.broadcast %227 : vector<1x1x32xf32> to vector<1x4x32xf32>
      %229 = arith.addf %226, %228 : vector<1x4x32xf32>
      %c0_111 = arith.constant 0 : index
      %c0_112 = arith.constant 0 : index
      %c0_113 = arith.constant 0 : index
      %230 = vector.load %arg20[%c0_111, %c0_112, %c0_113] : memref<1x4x32xf32, #tpu.memory_space<vmem>>, vector<1x4x32xf32>
      tpu.vector_store %arg20[%c0_111, %c0_112, %c0_113], %229 {strides = array<i32>} : memref<1x4x32xf32, #tpu.memory_space<vmem>>, vector<1x4x32xf32>,
    } else {
    }
    return
  }
  func.func @transform_0(%arg0: i32, %arg1: i32) -> (i32, i32, i32) {
    %c0_i32 = arith.constant 0 : i32
    %c0_i32_0 = arith.constant 0 : i32
    %c0_i32_1 = arith.constant 0 : i32
    return %arg0, %c0_i32, %c0_i32_0 : i32, i32, i32
  }
  func.func @transform_1(%arg0: i32, %arg1: i32) -> (i32, i32, i32) {
    %c0_i32 = arith.constant 0 : i32
    %c0_i32_0 = arith.constant 0 : i32
    %c0_i32_1 = arith.constant 0 : i32
    return %arg0, %c0_i32, %c0_i32_0 : i32, i32, i32
  }
  func.func @transform_2(%arg0: i32, %arg1: i32) -> (i32, i32) {
    %c0_i32 = arith.constant 0 : i32
    %c0_i32_0 = arith.constant 0 : i32
    %c0_i32_1 = arith.constant 0 : i32
    return %c0_i32, %c0_i32_0 : i32, i32
  }
  func.func @transform_3(%arg0: i32, %arg1: i32) -> (i32, i32) {
    %c0_i32 = arith.constant 0 : i32
    %c0_i32_0 = arith.constant 0 : i32
    %c0_i32_1 = arith.constant 0 : i32
    return %c0_i32, %c0_i32_0 : i32, i32
  }
  func.func @transform_4(%arg0: i32, %arg1: i32) -> (i32, i32, i32) {
    %c0_i32 = arith.constant 0 : i32
    %c0_i32_0 = arith.constant 0 : i32
    %c0_i32_1 = arith.constant 0 : i32
    return %arg1, %c0_i32, %c0_i32_0 : i32, i32, i32
  }
  func.func @transform_5(%arg0: i32, %arg1: i32) -> (i32, i32, i32) {
    %c0_i32 = arith.constant 0 : i32
    %c0_i32_0 = arith.constant 0 : i32
    %c0_i32_1 = arith.constant 0 : i32
    return %arg1, %c0_i32, %c0_i32_0 : i32, i32, i32
  }
  func.func @transform_6(%arg0: i32, %arg1: i32) -> (i32, i32, i32) {
    %c0_i32 = arith.constant 0 : i32
    %c0_i32_0 = arith.constant 0 : i32
    %c0_i32_1 = arith.constant 0 : i32
    return %arg1, %c0_i32, %c0_i32_0 : i32, i32, i32
  }
  func.func @transform_7(%arg0: i32, %arg1: i32) -> (i32, i32, i32) {
    %c0_i32 = arith.constant 0 : i32
    %c0_i32_0 = arith.constant 0 : i32
    %c0_i32_1 = arith.constant 0 : i32
    return %arg1, %c0_i32, %c0_i32_0 : i32, i32, i32
  }
  func.func @transform_8(%arg0: i32, %arg1: i32) -> (i32, i32, i32) {
    %c0_i32 = arith.constant 0 : i32
    %c0_i32_0 = arith.constant 0 : i32
    %c0_i32_1 = arith.constant 0 : i32
    return %arg1, %c0_i32, %c0_i32_0 : i32, i32, i32
  }
  func.func @transform_9(%arg0: i32, %arg1: i32) -> (i32, i32, i32) {
    %c0_i32 = arith.constant 0 : i32
    %c0_i32_0 = arith.constant 0 : i32
    %c0_i32_1 = arith.constant 0 : i32
    return %arg1, %c0_i32, %c0_i32_0 : i32, i32, i32
  }
  func.func @transform_10(%arg0: i32, %arg1: i32) -> (i32, i32, i32) {
    %c0_i32 = arith.constant 0 : i32
    %c0_i32_0 = arith.constant 0 : i32
    %c0_i32_1 = arith.constant 0 : i32
    return %arg1, %c0_i32, %c0_i32_0 : i32, i32, i32
  }
  func.func @transform_11(%arg0: i32, %arg1: i32) -> (i32, i32, i32) {
    %c0_i32 = arith.constant 0 : i32
    %c0_i32_0 = arith.constant 0 : i32
    %c0_i32_1 = arith.constant 0 : i32
    return %arg1, %c0_i32, %c0_i32_0 : i32, i32, i32
  }
  func.func @transform_12(%arg0: i32, %arg1: i32) -> (i32, i32, i32) {
    %c0_i32 = arith.constant 0 : i32
    %c0_i32_0 = arith.constant 0 : i32
    %c0_i32_1 = arith.constant 0 : i32
    return %arg1, %c0_i32, %c0_i32_0 : i32, i32, i32
  }
  func.func @transform_13(%arg0: i32, %arg1: i32) -> (i32, i32, i32) {
    %c0_i32 = arith.constant 0 : i32
    %c0_i32_0 = arith.constant 0 : i32
    %c0_i32_1 = arith.constant 0 : i32
    return %arg1, %c0_i32, %c0_i32_0 : i32, i32, i32
  }
  func.func @transform_14(%arg0: i32, %arg1: i32) -> (i32, i32, i32) {
    %c0_i32 = arith.constant 0 : i32
    %c0_i32_0 = arith.constant 0 : i32
    %c0_i32_1 = arith.constant 0 : i32
    return %arg1, %c0_i32, %c0_i32_0 : i32, i32, i32
  }
  func.func @transform_15(%arg0: i32, %arg1: i32) -> (i32, i32, i32) {
    %c0_i32 = arith.constant 0 : i32
    %c0_i32_0 = arith.constant 0 : i32
    %c0_i32_1 = arith.constant 0 : i32
    return %arg1, %c0_i32, %c0_i32_0 : i32, i32, i32
  }
  func.func @transform_16(%arg0: i32, %arg1: i32) -> (i32, i32, i32) {
    %c0_i32 = arith.constant 0 : i32
    %c0_i32_0 = arith.constant 0 : i32
    %c0_i32_1 = arith.constant 0 : i32
    return %arg1, %c0_i32, %c0_i32_0 : i32, i32, i32
  }
  func.func @transform_17(%arg0: i32, %arg1: i32) -> (i32, i32, i32) {
    %c0_i32 = arith.constant 0 : i32
    %c0_i32_0 = arith.constant 0 : i32
    %c0_i32_1 = arith.constant 0 : i32
    return %arg1, %c0_i32, %c0_i32_0 : i32, i32, i32
  }
  func.func @transform_18(%arg0: i32, %arg1: i32) -> (i32, i32, i32) {
    %c0_i32 = arith.constant 0 : i32
    %c0_i32_0 = arith.constant 0 : i32
    %c0_i32_1 = arith.constant 0 : i32
    return %arg0, %c0_i32, %c0_i32_0 : i32, i32, i32
  }
}

module attributes {stable_mosaic.version = 11 : i64} {
  func.func @_concat_linear_kernel(%arg0: memref<8x32xf32, #tpu.memory_space<vmem>>, %arg1: memref<8x32xf32, #tpu.memory_space<vmem>>, %arg2: memref<32x32xbf16, #tpu.memory_space<vmem>>, %arg3: memref<32x32xbf16, #tpu.memory_space<vmem>>, %arg4: memref<1x32xf32, #tpu.memory_space<vmem>>, %arg5: memref<8x32xf32, #tpu.memory_space<vmem>>) attributes {dimension_semantics = [], scalar_prefetch = 0 : i64, scratch_operands = 0 : i64, tpu.core_type = #tpu.core_type<tc>} {
    %c0 = arith.constant 0 : index
    %c0_0 = arith.constant 0 : index
    %0 = vector.load %arg0[%c0, %c0_0] : memref<8x32xf32, #tpu.memory_space<vmem>>, vector<8x32xf32>
    %1 = arith.truncf %0 : vector<8x32xf32> to vector<8x32xbf16>
    %c0_1 = arith.constant 0 : index
    %c0_2 = arith.constant 0 : index
    %2 = vector.load %arg2[%c0_1, %c0_2] : memref<32x32xbf16, #tpu.memory_space<vmem>>, vector<32x32xbf16>
    %cst = arith.constant dense<0.000000e+00> : vector<8x32xf32>
    %3 = tpu.matmul %1, %2, %cst {dimension_numbers = #tpu.dot_dimension_numbers<[1], [0], [0], [1], [0, 0, 1, 1], [], []>} : vector<8x32xbf16>, vector<32x32xbf16>, vector<8x32xf32> -> vector<8x32xf32>
    %c0_3 = arith.constant 0 : index
    %c0_4 = arith.constant 0 : index
    %4 = vector.load %arg1[%c0_3, %c0_4] : memref<8x32xf32, #tpu.memory_space<vmem>>, vector<8x32xf32>
    %5 = arith.truncf %4 : vector<8x32xf32> to vector<8x32xbf16>
    %c0_5 = arith.constant 0 : index
    %c0_6 = arith.constant 0 : index
    %6 = vector.load %arg3[%c0_5, %c0_6] : memref<32x32xbf16, #tpu.memory_space<vmem>>, vector<32x32xbf16>
    %cst_7 = arith.constant dense<0.000000e+00> : vector<8x32xf32>
    %7 = tpu.matmul %5, %6, %cst_7 {dimension_numbers = #tpu.dot_dimension_numbers<[1], [0], [0], [1], [0, 0, 1, 1], [], []>} : vector<8x32xbf16>, vector<32x32xbf16>, vector<8x32xf32> -> vector<8x32xf32>
    %8 = arith.addf %3, %7 : vector<8x32xf32>
    %c0_8 = arith.constant 0 : index
    %c0_9 = arith.constant 0 : index
    %9 = vector.load %arg4[%c0_8, %c0_9] : memref<1x32xf32, #tpu.memory_space<vmem>>, vector<1x32xf32>
    %10 = vector.broadcast %9 : vector<1x32xf32> to vector<8x32xf32>
    %11 = arith.addf %8, %10 : vector<8x32xf32>
    %c0_10 = arith.constant 0 : index
    %c0_11 = arith.constant 0 : index
    %12 = vector.load %arg5[%c0_10, %c0_11] : memref<8x32xf32, #tpu.memory_space<vmem>>, vector<8x32xf32>
    tpu.vector_store %arg5[%c0_10, %c0_11], %11 {strides = array<i32>} : memref<8x32xf32, #tpu.memory_space<vmem>>, vector<8x32xf32>,
    return
  }
}

module attributes {stable_mosaic.version = 11 : i64} {
  func.func @_linear_kernel(%arg0: memref<7x32xf32, #tpu.memory_space<vmem>>, %arg1: memref<32x4xbf16, #tpu.memory_space<vmem>>, %arg2: memref<1x4xf32, #tpu.memory_space<vmem>>, %arg3: memref<7x4xf32, #tpu.memory_space<vmem>>) attributes {dimension_semantics = [], scalar_prefetch = 0 : i64, scratch_operands = 0 : i64, tpu.core_type = #tpu.core_type<tc>} {
    %c0 = arith.constant 0 : index
    %c0_0 = arith.constant 0 : index
    %0 = vector.load %arg0[%c0, %c0_0] : memref<7x32xf32, #tpu.memory_space<vmem>>, vector<7x32xf32>
    %1 = arith.truncf %0 : vector<7x32xf32> to vector<7x32xbf16>
    %c0_1 = arith.constant 0 : index
    %c0_2 = arith.constant 0 : index
    %2 = vector.load %arg1[%c0_1, %c0_2] : memref<32x4xbf16, #tpu.memory_space<vmem>>, vector<32x4xbf16>
    %cst = arith.constant dense<0.000000e+00> : vector<7x4xf32>
    %3 = tpu.matmul %1, %2, %cst {dimension_numbers = #tpu.dot_dimension_numbers<[1], [0], [0], [1], [0, 0, 1, 1], [], []>} : vector<7x32xbf16>, vector<32x4xbf16>, vector<7x4xf32> -> vector<7x4xf32>
    %c0_3 = arith.constant 0 : index
    %c0_4 = arith.constant 0 : index
    %4 = vector.load %arg2[%c0_3, %c0_4] : memref<1x4xf32, #tpu.memory_space<vmem>>, vector<1x4xf32>
    %5 = vector.broadcast %4 : vector<1x4xf32> to vector<7x4xf32>
    %6 = arith.addf %3, %5 : vector<7x4xf32>
    %c0_5 = arith.constant 0 : index
    %c0_6 = arith.constant 0 : index
    %7 = vector.load %arg3[%c0_5, %c0_6] : memref<7x4xf32, #tpu.memory_space<vmem>>, vector<7x4xf32>
    tpu.vector_store %arg3[%c0_5, %c0_6], %6 {strides = array<i32>} : memref<7x4xf32, #tpu.memory_space<vmem>>, vector<7x4xf32>,
    return
  }
}

</mosaic_0001>

<bundles_post_ra>
// kernel: fwd.20
= control target key start
LH: loop header
LB: loop body
LE: loop exit
PB: predicated region body
PF: predicated region fallthrough
CT: control target
= control target key end

     0   :  { %vm61_vm0 = vcmask 392192   ;;  %vm148_vm1 = vcmask 261120   ;;  %s299_s1 = inlined_call_operand.vmem [shape: bf16[48,32], index: 1, kind: input, shape index: {}]   ;;  %s300_s0 = inlined_call_operand.vmem [shape: f32[8,8,48], index: 0, kind: input, shape index: {}]   ;;  %s301_s2 = inlined_call_operand.vmem [shape: f32[1,32], index: 2, kind: input, shape index: {}]   ;;  %s302_s3 = inlined_call_operand.vmem [shape: f32[8,32], index: 3, kind: input, shape index: {}]   ;;  %s303_s4 = inlined_call_operand.vmem [shape: f32[8,8,32], index: 4, kind: output, shape index: {}]  }
   0x1   :  { %v196_v0 = vld [vmem:[%s299_s1 + $0x10] sm:$0xff]   ;;  %v197_v1 = vld [vmem:[%s299_s1 + $0x8] sm:$0xff]   ;;  %v18_v2 = vld [vmem:[%s300_s0] sm:$0xff] }
   0x2   :  { %176 = vmatprep.subr.bf16.mxu0 %v196_v0  ;;  %190 = vmatprep.subr.bf16.mxu1 %v196_v0  ;;  %v19_v3 = vld [vmem:[%s300_s0 + $0x8] sm:$0xff]  ;;  %v22_v4 = vld [vmem:[%s300_s0 + $0x20] sm:$0xff]  ;;  %v20_v9 = vld [vmem:[%s300_s0 + $0x10] sm:$0xff] }
   0x3   :  { %177 = vmatpush3.bf16.msra.mxu0 %v196_v0  ;;  %193 = vmatpush3.bf16.msra.mxu1 %v196_v0  ;;  %v198_v5 = vld [vmem:[%s299_s1] sm:$0xff]   ;;  %v26_v6 = vpack.c.bf16 %v19_v3, %v18_v2  ;;  %v23_v7 = vld [vmem:[%s300_s0 + $0x28] sm:$0xff]  ;;  %v21_v10 = vld [vmem:[%s300_s0 + $0x18] sm:$0xff] }
   0x4   :  { %178 = vmatprep.subr.bf16.mxu0 %v197_v1  ;;  %191 = vmatprep.subr.bf16.mxu1 %v197_v1  ;;  %v28_v8 = vpack.c.bf16 %v23_v7, %v22_v4  ;;  %v24_v11 = vld [vmem:[%s300_s0 + $0x30] sm:$0xff]  ;;  %v25_v12 = vld [vmem:[%s300_s0 + $0x38] sm:$0xff]  ;;  %v27_v13 = vpack.c.bf16 %v21_v10, %v20_v9  ;;  %v161_v15 = vld [vmem:[%s301_s2] ss:$0 sm:$0xff] }
   0x5   :  { %182 = vmatprep.mubr.msk.bf16.mxu0 %vm61_vm0, %v26_v6  ;;  %v29_v14 = vpack.c.bf16 %v25_v12, %v24_v11  ;;  %v139_v17 = vld [vmem:[%s302_s3] sm:$0xff] }
   0x6   :  { %186 = vmatprep.mubr.msk.bf16.mxu1 %vm61_vm0, %v28_v8 }
   0x7   :  { %179 = vmatpush3.bf16.msra.mxu0 %v197_v1  ;;  %194 = vmatpush3.bf16.msra.mxu1 %v197_v1 }
   0x8   :  { %180 = vmatprep.subr.bf16.mxu0 %v198_v5  ;;  %192 = vmatprep.subr.bf16.mxu1 %v198_v5 }
   0xb   :  { %181 = vmatpush3.bf16.msra.mxu0 %v198_v5  ;;  %195 = vmatpush3.bf16.msra.mxu1 %v198_v5 }
   0xe   :  { %183 = vmatmul.mubr.msk.bf16.vlgmr.msra.gmra.mxu0 %vm61_vm0, %v27_v13  ;;  %187 = vmatmul.mubr.msk.bf16.vlgmr.msra.gmra.mxu1 %vm61_vm0, %v29_v14 }
  0xce   :  { %v184_v16 = vpop.f32.mrf.mxu0  ;;  %v188_v18 = vpop.f32.mrf.mxu1 }
  0xcf   :  { %v117_v19 = vadd.f32 %v184_v16, %v161_v15  ;;  %v133_v20 = vadd.f32 %v188_v18, %v161_v15 }
  0xd0   :  { %v108_v21 = vpop.f32.mrf.mxu0  ;;  %v124_v22 = vpop.f32.mrf.mxu1 }
  0xd1   :  { %v142_v23 = vadd.f32 %v139_v17, %v117_v19  ;;  %v146_v24 = vadd.f32 %v139_v17, %v133_v20  ;;  %v109_v25 = vadd.f32 %v161_v15, %v108_v21  ;;  %v125_v26 = vadd.f32 %v161_v15, %v124_v22 }
  0xd2   :  { %v185_v27 = vpop.f32.mrf.mxu0  ;;  %v189_v28 = vpop.f32.mrf.mxu1 }
  0xd3   :  { %151 = vst.msk [vmem:[%s303_s4 + $0x10] sm:$0xff] %vm148_vm1, %v142_v23  ;;  %155 = vst.msk [vmem:[%s303_s4 + $0x30] sm:$0xff] %vm148_vm1, %v146_v24  ;;  %v140_v29 = vadd.f32 %v139_v17, %v109_v25  ;;  %v144_v30 = vadd.f32 %v139_v17, %v125_v26  ;;  %v120_v31 = vadd.f32 %v185_v27, %v161_v15 }
  0xd4   :  { %v136_v32 = vadd.f32 %v189_v28, %v161_v15  ;;  %v111_v33 = vpop.f32.mrf.mxu0  ;;  %v127_v34 = vpop.f32.mrf.mxu1 }
  0xd5   :  { %149 = vst.msk [vmem:[%s303_s4] sm:$0xff] %vm148_vm1, %v140_v29  ;;  %153 = vst.msk [vmem:[%s303_s4 + $0x20] sm:$0xff] %vm148_vm1, %v144_v30  ;;  %v143_v35 = vadd.f32 %v139_v17, %v120_v31  ;;  %v112_v37 = vadd.f32 %v161_v15, %v111_v33  ;;  %v128_v38 = vadd.f32 %v161_v15, %v127_v34 }
  0xd6   :  { %v147_v36 = vadd.f32 %v139_v17, %v136_v32 }
  0xd7   :  { %152 = vst.msk [vmem:[%s303_s4 + $0x18] sm:$0xff] %vm148_vm1, %v143_v35  ;;  %v141_v39 = vadd.f32 %v139_v17, %v112_v37  ;;  %v145_v40 = vadd.f32 %v139_v17, %v128_v38 }
  0xd8   :  { %156 = vst.msk [vmem:[%s303_s4 + $0x38] sm:$0xff] %vm148_vm1, %v147_v36 }
  0xd9   :  { %150 = vst.msk [vmem:[%s303_s4 + $0x8] sm:$0xff] %vm148_vm1, %v141_v39  ;;  %154 = vst.msk [vmem:[%s303_s4 + $0x28] sm:$0xff] %vm148_vm1, %v145_v40 }

// kernel: fwd.15
= control target key start
LH: loop header
LB: loop body
LE: loop exit
PB: predicated region body
PF: predicated region fallthrough
CT: control target
= control target key end

     0   :  { %vm69_vm0 = vcmask 523264   ;;  %vm156_vm1 = vcmask 261120   ;;  %s317_s1 = inlined_call_operand.vmem [shape: bf16[64,32], index: 1, kind: input, shape index: {}]   ;;  %s318_s0 = inlined_call_operand.vmem [shape: f32[8,8,64], index: 0, kind: input, shape index: {}]   ;;  %s319_s2 = inlined_call_operand.vmem [shape: f32[1,32], index: 2, kind: input, shape index: {}]   ;;  %s320_s3 = inlined_call_operand.vmem [shape: f32[8,32], index: 3, kind: input, shape index: {}]   ;;  %s321_s4 = inlined_call_operand.vmem [shape: f32[8,8,32], index: 4, kind: output, shape index: {}]  }
   0x1   :  { %v210_v0 = vld [vmem:[%s317_s1 + $0x18] sm:$0xff]   ;;  %v211_v1 = vld [vmem:[%s317_s1 + $0x10] sm:$0xff]   ;;  %v212_v2 = vld [vmem:[%s317_s1 + $0x8] sm:$0xff]  }
   0x2   :  { %186 = vmatprep.subr.bf16.mxu0 %v210_v0  ;;  %202 = vmatprep.subr.bf16.mxu1 %v210_v0  ;;  %v18_v3 = vld [vmem:[%s318_s0] sm:$0xff]  ;;  %v19_v4 = vld [vmem:[%s318_s0 + $0x8] sm:$0xff]  ;;  %v20_v10 = vld [vmem:[%s318_s0 + $0x10] sm:$0xff] }
   0x3   :  { %187 = vmatpush3.bf16.msra.mxu0 %v210_v0  ;;  %206 = vmatpush3.bf16.msra.mxu1 %v210_v0  ;;  %v22_v5 = vld [vmem:[%s318_s0 + $0x20] sm:$0xff]  ;;  %v26_v6 = vpack.c.bf16 %v19_v4, %v18_v3  ;;  %v23_v7 = vld [vmem:[%s318_s0 + $0x28] sm:$0xff]  ;;  %v21_v11 = vld [vmem:[%s318_s0 + $0x18] sm:$0xff] }
   0x4   :  { %188 = vmatprep.subr.bf16.mxu0 %v211_v1  ;;  %203 = vmatprep.subr.bf16.mxu1 %v211_v1  ;;  %v28_v8 = vpack.c.bf16 %v23_v7, %v22_v5  ;;  %v213_v9 = vld [vmem:[%s317_s1] sm:$0xff]   ;;  %v24_v12 = vld [vmem:[%s318_s0 + $0x30] sm:$0xff]  ;;  %v25_v13 = vld [vmem:[%s318_s0 + $0x38] sm:$0xff]  ;;  %v27_v14 = vpack.c.bf16 %v21_v11, %v20_v10 }
   0x5   :  { %194 = vmatprep.mubr.msk.bf16.mxu0 %vm69_vm0, %v26_v6  ;;  %v29_v15 = vpack.c.bf16 %v25_v13, %v24_v12  ;;  %v169_v16 = vld [vmem:[%s319_s2] ss:$0 sm:$0xff] }
   0x6   :  { %198 = vmatprep.mubr.msk.bf16.mxu1 %vm69_vm0, %v28_v8  ;;  %v147_v18 = vld [vmem:[%s320_s3] sm:$0xff] }
   0x7   :  { %189 = vmatpush3.bf16.msra.mxu0 %v211_v1  ;;  %207 = vmatpush3.bf16.msra.mxu1 %v211_v1 }
   0x8   :  { %190 = vmatprep.subr.bf16.mxu0 %v212_v2  ;;  %204 = vmatprep.subr.bf16.mxu1 %v212_v2 }
   0xb   :  { %191 = vmatpush3.bf16.msra.mxu0 %v212_v2  ;;  %208 = vmatpush3.bf16.msra.mxu1 %v212_v2 }
   0xc   :  { %192 = vmatprep.subr.bf16.mxu0 %v213_v9  ;;  %205 = vmatprep.subr.bf16.mxu1 %v213_v9 }
   0xf   :  { %193 = vmatpush3.bf16.msra.mxu0 %v213_v9  ;;  %209 = vmatpush3.bf16.msra.mxu1 %v213_v9 }
  0x12   :  { %195 = vmatmul.mubr.msk.bf16.vlgmr.msra.gmra.mxu0 %vm69_vm0, %v27_v14  ;;  %199 = vmatmul.mubr.msk.bf16.vlgmr.msra.gmra.mxu1 %vm69_vm0, %v29_v15 }
  0xd2   :  { %v196_v17 = vpop.f32.mrf.mxu0  ;;  %v200_v19 = vpop.f32.mrf.mxu1 }
  0xd3   :  { %v125_v20 = vadd.f32 %v196_v17, %v169_v16  ;;  %v141_v21 = vadd.f32 %v200_v19, %v169_v16 }
  0xd4   :  { %v116_v22 = vpop.f32.mrf.mxu0  ;;  %v132_v23 = vpop.f32.mrf.mxu1 }
  0xd5   :  { %v150_v24 = vadd.f32 %v147_v18, %v125_v20  ;;  %v154_v25 = vadd.f32 %v147_v18, %v141_v21  ;;  %v117_v26 = vadd.f32 %v169_v16, %v116_v22  ;;  %v133_v27 = vadd.f32 %v169_v16, %v132_v23 }
  0xd6   :  { %v197_v28 = vpop.f32.mrf.mxu0  ;;  %v201_v29 = vpop.f32.mrf.mxu1 }
  0xd7   :  { %159 = vst.msk [vmem:[%s321_s4 + $0x10] sm:$0xff] %vm156_vm1, %v150_v24  ;;  %163 = vst.msk [vmem:[%s321_s4 + $0x30] sm:$0xff] %vm156_vm1, %v154_v25  ;;  %v148_v30 = vadd.f32 %v147_v18, %v117_v26  ;;  %v152_v31 = vadd.f32 %v147_v18, %v133_v27  ;;  %v128_v32 = vadd.f32 %v197_v28, %v169_v16 }
  0xd8   :  { %v144_v33 = vadd.f32 %v201_v29, %v169_v16  ;;  %v119_v34 = vpop.f32.mrf.mxu0  ;;  %v135_v35 = vpop.f32.mrf.mxu1 }
  0xd9   :  { %157 = vst.msk [vmem:[%s321_s4] sm:$0xff] %vm156_vm1, %v148_v30  ;;  %161 = vst.msk [vmem:[%s321_s4 + $0x20] sm:$0xff] %vm156_vm1, %v152_v31  ;;  %v151_v36 = vadd.f32 %v147_v18, %v128_v32  ;;  %v120_v38 = vadd.f32 %v169_v16, %v119_v34  ;;  %v136_v39 = vadd.f32 %v169_v16, %v135_v35 }
  0xda   :  { %v155_v37 = vadd.f32 %v147_v18, %v144_v33 }
  0xdb   :  { %160 = vst.msk [vmem:[%s321_s4 + $0x18] sm:$0xff] %vm156_vm1, %v151_v36  ;;  %v149_v40 = vadd.f32 %v147_v18, %v120_v38  ;;  %v153_v41 = vadd.f32 %v147_v18, %v136_v39 }
  0xdc   :  { %164 = vst.msk [vmem:[%s321_s4 + $0x38] sm:$0xff] %vm156_vm1, %v155_v37 }
  0xdd   :  { %158 = vst.msk [vmem:[%s321_s4 + $0x8] sm:$0xff] %vm156_vm1, %v149_v40  ;;  %162 = vst.msk [vmem:[%s321_s4 + $0x28] sm:$0xff] %vm156_vm1, %v153_v41 }

// kernel: fwd.22
= control target key start
LH: loop header
LB: loop body
LE: loop exit
PB: predicated region body
PF: predicated region fallthrough
CT: control target
= control target key end

     0   :  { %vm56_vm0 = vcmask 261120   ;;  %v581_v56 = vmov 0   ;;  %vm213_vm1 = vcmask 7168   ;;  %vm478_vm2 = vcmask 1041409   ;;  %s784_s2 = inlined_call_operand.vmem [shape: bf16[32,32], index: 2, kind: input, shape index: {}]   ;;  %s785_s0 = inlined_call_operand.vmem [shape: f32[8,8,32], index: 0, kind: input, shape index: {}]   ;;  %s786_s3 = inlined_call_operand.vmem [shape: f32[1,32], index: 3, kind: input, shape index: {}]   ;;  %s787_s4 = inlined_call_operand.vmem [shape: f32[1,32], index: 4, kind: input, shape index: {}]   ;;  %s788_s1 = inlined_call_operand.vmem [shape: f32[8,8,1], index: 1, kind: input, shape index: {}]   ;;  %s789_s5 = inlined_call_operand.vmem [shape: f32[8,32], index: 5, kind: output, shape index: {}]  }
   0x1   :  { %v531_v0 = vld [vmem:[%s784_s2 + $0x8] sm:$0xff]   ;;  %v532_v1 = vld [vmem:[%s784_s2] sm:$0xff]   ;;  %v631_v4 = vld [vmem:[%s785_s0 + $0x10] sm:$0xff]  ;;  %530 = vset.pattern.permute.xlu1 %v581_v56  ;;  %529 = vset.pattern.permute.xlu0 %v581_v56  ;;  %vm480_vm3 = vcmask 1042434   ;;  %vm482_vm4 = vcmask 1043459   ;;  %vm484_vm5 = vcmask 1044484  }
   0x2   :  { %512 = vmatprep.subr.bf16.mxu0 %v531_v0  ;;  %524 = vmatprep.subr.bf16.mxu1 %v531_v0  ;;  %v621_v2 = vld [vmem:[%s785_s0] sm:$0xff]  ;;  %v626_v3 = vld [vmem:[%s785_s0 + $0x8] sm:$0xff]  ;;  %v638_v6 = vld [vmem:[%s785_s0 + $0x18] sm:$0xff]  ;;  %vm486_vm6 = vcmask 1045509   ;;  %vm488_vm7 = vcmask 1046534   ;;  %vm490_vm8 = vcmask 1047559  }
   0x3   :  { %513 = vmatpush3.bf16.msra.mxu0 %v531_v0  ;;  %526 = vmatpush3.bf16.msra.mxu1 %v531_v0  ;;  %v29_v5 = vpack.c.bf16 %v626_v3, %v621_v2  ;;  %v643_v7 = vld [vmem:[%s785_s0 + $0x20] sm:$0xff]  ;;  %v648_v8 = vld [vmem:[%s785_s0 + $0x28] sm:$0xff]  ;;  %v655_v10 = vld [vmem:[%s785_s0 + $0x30] sm:$0xff]  ;;  %v30_v12 = vpack.c.bf16 %v638_v6, %v631_v4 }
   0x4   :  { %514 = vmatprep.subr.bf16.mxu0 %v532_v1  ;;  %525 = vmatprep.subr.bf16.mxu1 %v532_v1  ;;  %v31_v9 = vpack.c.bf16 %v648_v8, %v643_v7  ;;  %v660_v11 = vld [vmem:[%s785_s0 + $0x38] sm:$0xff]  ;;  %v498_v14 = vld [vmem:[%s786_s3] ss:$0 sm:$0xff]  ;;  %v183_v57 = vld [vmem:[%s788_s1 + $0x10] sm:$0xff] }
   0x5   :  { %516 = vmatprep.mubr.msk.bf16.mxu0 %vm56_vm0, %v29_v5  ;;  %v32_v13 = vpack.c.bf16 %v660_v11, %v655_v10  ;;  %v505_v31 = vld [vmem:[%s787_s4] ss:$0 sm:$0xff]  ;;  %v191_v59 = vsub.f32 1.0, %v183_v57  ;;  %v184_v60 = vld [vmem:[%s788_s1 + $0x18] sm:$0xff]  ;;  %v182_v62 = vld [vmem:[%s788_s1 + $0x8] sm:$0xff] }
   0x6   :  { %520 = vmatprep.mubr.msk.bf16.mxu1 %vm56_vm0, %v31_v9  ;;  %v181_v58 = vld [vmem:[%s788_s1] sm:$0xff]  ;;  %v192_v0 = vsub.f32 1.0, %v184_v60  ;;  %v190_v9 = vsub.f32 1.0, %v182_v62 }
   0x7   :  { %515 = vmatpush3.bf16.msra.mxu0 %v532_v1  ;;  %527 = vmatpush3.bf16.msra.mxu1 %v532_v1  ;;  %v189_v61 = vsub.f32 1.0, %v181_v58  ;;  %v199_v63 = vmul.f32 -10000.0, %v191_v59  ;;  %v186_v1 = vld [vmem:[%s788_s1 + $0x28] sm:$0xff] }
   0x9   :  { %v197_v5 = vmul.f32 -10000.0, %v189_v61 }
   0xa   :  { %517 = vmatmul.mubr.msk.bf16.vlgmr.msra.gmra.mxu0 %vm56_vm0, %v30_v12  ;;  %521 = vmatmul.mubr.msk.bf16.vlgmr.msra.gmra.mxu1 %vm56_vm0, %v32_v13  ;;  %v185_v13 = vld [vmem:[%s788_s1 + $0x20] sm:$0xff] }
  0xca   :  { %v518_v15 = vpop.f32.mrf.mxu0  ;;  %v522_v16 = vpop.f32.mrf.mxu1 }
  0xcb   :  { %v112_v17 = vadd.f32 %v518_v15, %v498_v14  ;;  %v128_v30 = vadd.f32 %v522_v16, %v498_v14  ;;  %v200_v15 = vmul.f32 -10000.0, %v192_v0  ;;  %v194_v16 = vsub.f32 1.0, %v186_v1 }
  0xcc   :  { %v103_v18 = vpop.f32.mrf.mxu0  ;;  %v119_v19 = vpop.f32.mrf.mxu1 }
  0xcd   :  { %533 = vtanh.f32 %v112_v17  ;;  %v104_v20 = vadd.f32 %v498_v14, %v103_v18  ;;  %v120_v22 = vadd.f32 %v498_v14, %v119_v19  ;;  %v188_v18 = vld [vmem:[%s788_s1 + $0x38] sm:$0xff] }
  0xce   :  { %v519_v21 = vpop.f32.mrf.mxu0  ;;  %v523_v23 = vpop.f32.mrf.mxu1 }
  0xcf   :  { %535 = vtanh.f32 %v104_v20  ;;  %v115_v24 = vadd.f32 %v519_v21, %v498_v14  ;;  %v131_v28 = vadd.f32 %v523_v23, %v498_v14  ;;  %v198_v21 = vmul.f32 -10000.0, %v190_v9 }
  0xd0   :  { %v106_v25 = vpop.f32.mrf.mxu0  ;;  %v122_v26 = vpop.f32.mrf.mxu1 }
  0xd1   :  { %537 = vtanh.f32 %v115_v24  ;;  %v107_v27 = vadd.f32 %v498_v14, %v106_v25  ;;  %v123_v29 = vadd.f32 %v498_v14, %v122_v26  ;;  %v187_v25 = vld [vmem:[%s788_s1 + $0x30] sm:$0xff] }
  0xd2   :  { %539 = vtanh.f32 %v120_v22  ;;  %v193_v22 = vsub.f32 1.0, %v185_v13 }
  0xd3   :  { %541 = vtanh.f32 %v107_v27 }
  0xd4   :  { %543 = vtanh.f32 %v123_v29  ;;  %v196_v29 = vsub.f32 1.0, %v188_v18 }
  0xd5   :  { %545 = vtanh.f32 %v131_v28  ;;  %v202_v28 = vmul.f32 -10000.0, %v194_v16 }
  0xd6   :  { %547 = vtanh.f32 %v128_v30 }
  0xda   :  { %v534_v32 = vpop.eup %533 }
  0xdb   :  { %v151_v33 = vmul.f32 %v534_v32, %v505_v31 }
  0xdc   :  { %v536_v34 = vpop.eup %535 }
  0xdd   :  { %v163_v35 = vsel %vm56_vm0, %v151_v33, 0.0  ;;  %v149_v36 = vmul.f32 %v536_v34, %v505_v31 }
  0xde   :  { %v538_v37 = vpop.eup %537  ;;  %164 = vadd.xlane.f32.xlu1 %v163_v35  ;;  %v201_v35 = vmul.f32 -10000.0, %v193_v22 }
  0xdf   :  { %v540_v38 = vpop.eup %539  ;;  %v157_v39 = vsel %vm56_vm0, %v149_v36, 0.0  ;;  %v152_v40 = vmul.f32 %v538_v37, %v505_v31  ;;  %v195_v36 = vsub.f32 1.0, %v187_v25 }
  0xe0   :  { %v542_v41 = vpop.eup %541  ;;  %158 = vadd.xlane.f32.xlu0 %v157_v39  ;;  %v153_v48 = vmul.f32 %v540_v38, %v505_v31 }
  0xe1   :  { %v544_v42 = vpop.eup %543  ;;  %v166_v43 = vsel %vm56_vm0, %v152_v40, 0.0  ;;  %v150_v44 = vmul.f32 %v542_v41, %v505_v31 }
  0xe2   :  { %v546_v45 = vpop.eup %545  ;;  %167 = vadd.xlane.f32.xlu1 %v166_v43  ;;  %v154_v46 = vmul.f32 %v544_v42, %v505_v31  ;;  %v169_v52 = vsel %vm56_vm0, %v153_v48, 0.0  ;;  %v204_v43 = vmul.f32 -10000.0, %v196_v29 }
  0xe3   :  { %v160_v47 = vsel %vm56_vm0, %v150_v44, 0.0  ;;  %v548_v49 = vpop.eup %547  ;;  %v156_v51 = vmul.f32 %v546_v45, %v505_v31 }
  0xe4   :  { %161 = vadd.xlane.f32.xlu0 %v160_v47  ;;  %v172_v50 = vsel %vm56_vm0, %v154_v46, 0.0  ;;  %v155_v53 = vmul.f32 %v548_v49, %v505_v31 }
  0xe5   :  { %v178_v54 = vsel %vm56_vm0, %v156_v51, 0.0  ;;  %v203_v51 = vmul.f32 -10000.0, %v195_v36 }
  0xe6   :  { %173 = vadd.xlane.f32.xlu1 %v172_v50  ;;  %v175_v55 = vsel %vm56_vm0, %v155_v53, 0.0 }
  0xe8   :  { %170 = vadd.xlane.f32.xlu0 %v169_v52 }
  0xea   :  { %179 = vadd.xlane.f32.xlu1 %v178_v54 }
  0xec   :  { %176 = vadd.xlane.f32.xlu0 %v175_v55 }
 0x167   :  { %v165_v12 = vpop.xlane.xlu1 %164 }
 0x168   :  { %v702_v14 = vadd.f32 %v199_v63, %v165_v12 }
 0x169   :  { %v159_v17 = vpop.xlane.xlu0 %158 }
 0x16a   :  { %v228_v19 = vsel %vm213_vm1, %v702_v14, -inf  ;;  %v709_v20 = vadd.f32 %v197_v5, %v159_v17 }
 0x16b   :  { %v229_v23 = vrot.slane %v228_v19, 4  ;;  %v168_v24 = vpop.xlane.xlu1 %167 }
 0x16c   :  { %v214_v26 = vsel %vm213_vm1, %v709_v20, -inf  ;;  %v716_v27 = vadd.f32 %v200_v15, %v168_v24 }
 0x16d   :  { %v230_v30 = vmax.f32 %v228_v19, %v229_v23  ;;  %v215_v31 = vrot.slane %v214_v26, 4  ;;  %v162_v32 = vpop.xlane.xlu0 %161 }
 0x16e   :  { %v235_v33 = vsel %vm213_vm1, %v716_v27, -inf  ;;  %v720_v34 = vadd.f32 %v198_v21, %v162_v32 }
 0x16f   :  { %v231_v37 = vrot.slane %v230_v30, 2  ;;  %v216_v38 = vmax.f32 %v214_v26, %v215_v31  ;;  %v236_v39 = vrot.slane %v235_v33, 4  ;;  %v174_v40 = vpop.xlane.xlu1 %173 }
 0x170   :  { %v221_v41 = vsel %vm213_vm1, %v720_v34, -inf  ;;  %v724_v42 = vadd.f32 %v202_v28, %v174_v40 }
 0x171   :  { %v232_v44 = vmax.f32 %v230_v30, %v231_v37  ;;  %v217_v45 = vrot.slane %v216_v38, 2  ;;  %v237_v46 = vmax.f32 %v235_v33, %v236_v39  ;;  %v222_v47 = vrot.slane %v221_v41, 4  ;;  %v171_v48 = vpop.xlane.xlu0 %170 }
 0x172   :  { %v249_v49 = vsel %vm213_vm1, %v724_v42, -inf  ;;  %v209_v50 = vadd.f32 %v201_v35, %v171_v48 }
 0x173   :  { %v233_v52 = vrot.slane %v232_v44, 1  ;;  %v218_v53 = vmax.f32 %v216_v38, %v217_v45  ;;  %v238_v54 = vrot.slane %v237_v46, 2  ;;  %v223_v55 = vmax.f32 %v221_v41, %v222_v47  ;;  %v180_v56 = vpop.xlane.xlu1 %179 }
 0x174   :  { %v250_v57 = vrot.slane %v249_v49, 4  ;;  %v242_v58 = vsel %vm213_vm1, %v209_v50, -inf  ;;  %v212_v59 = vadd.f32 %v204_v43, %v180_v56 }
 0x175   :  { %v234_v60 = vmax.f32 %v232_v44, %v233_v52  ;;  %v219_v61 = vrot.slane %v218_v53, 1  ;;  %v239_v62 = vmax.f32 %v237_v46, %v238_v54  ;;  %v224_v63 = vrot.slane %v223_v55, 2  ;;  %v177_v0 = vpop.xlane.xlu0 %176 }
 0x176   :  { %v251_v1 = vmax.f32 %v249_v49, %v250_v57  ;;  %v243_v5 = vrot.slane %v242_v58, 4  ;;  %v263_v9 = vsel %vm213_vm1, %v212_v59, -inf  ;;  %v211_v12 = vadd.f32 %v203_v51, %v177_v0 }
 0x177   :  { %v272_v13 = vsub.f32 %v702_v14, %v234_v60  ;;  %v220_v15 = vmax.f32 %v218_v53, %v219_v61  ;;  %v240_v16 = vrot.slane %v239_v62, 1  ;;  %v225_v17 = vmax.f32 %v223_v55, %v224_v63 }
 0x178   :  { %v252_v18 = vrot.slane %v251_v1, 2  ;;  %v244_v19 = vmax.f32 %v242_v58, %v243_v5  ;;  %v264_v21 = vrot.slane %v263_v9, 4  ;;  %v256_v22 = vsel %vm213_vm1, %v211_v12, -inf }
 0x179   :  { %v282_v23 = vmul.f32 1.442695, %v272_v13  ;;  %v270_v24 = vsub.f32 %v709_v20, %v220_v15  ;;  %v241_v25 = vmax.f32 %v239_v62, %v240_v16  ;;  %v226_v26 = vrot.slane %v225_v17, 1 }
 0x17a   :  { %v253_v28 = vmax.f32 %v251_v1, %v252_v18  ;;  %v245_v29 = vrot.slane %v244_v19, 2  ;;  %v265_v30 = vmax.f32 %v263_v9, %v264_v21  ;;  %v257_v31 = vrot.slane %v256_v22, 4 }
 0x17b   :  { %549 = vpow2.f32 %v282_v23  ;;  %v278_v32 = vmul.f32 1.442695, %v270_v24  ;;  %v273_v14 = vsub.f32 %v716_v27, %v241_v25  ;;  %v227_v33 = vmax.f32 %v225_v17, %v226_v26 }
 0x17c   :  { %v254_v35 = vrot.slane %v253_v28, 1  ;;  %v246_v36 = vmax.f32 %v244_v19, %v245_v29  ;;  %v266_v37 = vrot.slane %v265_v30, 2  ;;  %v258_v38 = vmax.f32 %v256_v22, %v257_v31 }
 0x17d   :  { %551 = vpow2.f32 %v278_v32  ;;  %v284_v39 = vmul.f32 1.442695, %v273_v14  ;;  %v271_v40 = vsub.f32 %v720_v34, %v227_v33 }
 0x17e   :  { %v255_v20 = vmax.f32 %v253_v28, %v254_v35  ;;  %v247_v41 = vrot.slane %v246_v36, 1  ;;  %v267_v43 = vmax.f32 %v265_v30, %v266_v37  ;;  %v259_v44 = vrot.slane %v258_v38, 2 }
 0x17f   :  { %553 = vpow2.f32 %v284_v39  ;;  %v280_v45 = vmul.f32 1.442695, %v271_v40 }
 0x180   :  { %v275_v46 = vsub.f32 %v724_v42, %v255_v20  ;;  %v248_v47 = vmax.f32 %v246_v36, %v247_v41  ;;  %v268_v48 = vrot.slane %v267_v43, 1  ;;  %v260_v27 = vmax.f32 %v258_v38, %v259_v44 }
 0x181   :  { %555 = vpow2.f32 %v280_v45 }
 0x182   :  { %v274_v49 = vsub.f32 %v209_v50, %v248_v47  ;;  %v269_v51 = vmax.f32 %v267_v43, %v268_v48  ;;  %v261_v52 = vrot.slane %v260_v27, 1  ;;  %v288_v53 = vmul.f32 1.442695, %v275_v46 }
 0x184   :  { %v286_v54 = vmul.f32 1.442695, %v274_v49  ;;  %v277_v55 = vsub.f32 %v212_v59, %v269_v51  ;;  %v262_v56 = vmax.f32 %v260_v27, %v261_v52 }
 0x186   :  { %557 = vpow2.f32 %v286_v54  ;;  %v276_v34 = vsub.f32 %v211_v12, %v262_v56  ;;  %v292_v58 = vmul.f32 1.442695, %v277_v55 }
 0x187   :  { %559 = vpow2.f32 %v288_v53 }
 0x188   :  { %v550_v57 = vpop.eup %549  ;;  %v290_v60 = vmul.f32 1.442695, %v276_v34 }
 0x189   :  { %v308_v61 = vsel %vm213_vm1, %v550_v57, 0.0 }
 0x18a   :  { %v737_v42 = vpop.eup %551  ;;  %v309_v62 = vrot.slane %v308_v61, 4  ;;  %561 = vpow2.f32 %v290_v60 }
 0x18b   :  { %v294_v50 = vsel %vm213_vm1, %v737_v42, 0.0  ;;  %563 = vpow2.f32 %v292_v58 }
 0x18c   :  { %v741_v63 = vpop.eup %553  ;;  %v310_v0 = vadd.f32 %v309_v62, %v308_v61  ;;  %v295_v59 = vrot.slane %v294_v50, 4 }
 0x18d   :  { %v315_v9 = vsel %vm213_vm1, %v741_v63, 0.0 }
 0x18e   :  { %v311_v1 = vrot.slane %v310_v0, 2  ;;  %v296_v5 = vadd.f32 %v295_v59, %v294_v50  ;;  %v745_v12 = vpop.eup %555  ;;  %v316_v16 = vrot.slane %v315_v9, 4 }
 0x18f   :  { %v301_v19 = vsel %vm213_vm1, %v745_v12, 0.0 }
 0x190   :  { %v297_v13 = vrot.slane %v296_v5, 2  ;;  %v312_v15 = vadd.f32 %v311_v1, %v310_v0  ;;  %v317_v28 = vadd.f32 %v316_v16, %v315_v9  ;;  %v302_v29 = vrot.slane %v301_v19, 4 }
 0x192   :  { %v313_v17 = vrot.slane %v312_v15, 1  ;;  %v298_v21 = vadd.f32 %v297_v13, %v296_v5  ;;  %v318_v38 = vrot.slane %v317_v28, 2  ;;  %v303_v39 = vadd.f32 %v302_v29, %v301_v19 }
 0x193   :  { %v747_v18 = vpop.eup %557 }
 0x194   :  { %v322_v22 = vsel %vm213_vm1, %v747_v18, 0.0  ;;  %v314_v23 = vadd.f32 %v313_v17, %v312_v15  ;;  %v753_v24 = vpop.eup %559  ;;  %v299_v26 = vrot.slane %v298_v21, 1  ;;  %v304_v45 = vrot.slane %v303_v39, 2 }
 0x195   :  { %v323_v25 = vrot.slane %v322_v22, 4  ;;  %v329_v14 = vsel %vm213_vm1, %v753_v24, 0.0  ;;  %v319_v46 = vadd.f32 %v318_v38, %v317_v28 }
 0x196   :  { %565 = vrcp.f32 %v314_v23  ;;  %v300_v32 = vadd.f32 %v299_v26, %v298_v21  ;;  %v330_v40 = vrot.slane %v329_v14, 4  ;;  %v305_v53 = vadd.f32 %v304_v45, %v303_v39 }
 0x197   :  { %v562_v30 = vpop.eup %561  ;;  %v324_v31 = vadd.f32 %v323_v25, %v322_v22  ;;  %v320_v52 = vrot.slane %v319_v46, 1 }
 0x198   :  { %v336_v33 = vsel %vm213_vm1, %v562_v30, 0.0  ;;  %v564_v35 = vpop.eup %563  ;;  %567 = vrcp.f32 %v300_v32  ;;  %v331_v47 = vadd.f32 %v330_v40, %v329_v14  ;;  %v306_v50 = vrot.slane %v305_v53, 1 }
 0x199   :  { %v325_v36 = vrot.slane %v324_v31, 2  ;;  %v337_v37 = vrot.slane %v336_v33, 4  ;;  %v343_v43 = vsel %vm213_vm1, %v564_v35, 0.0  ;;  %v321_v62 = vadd.f32 %v320_v52, %v319_v46 }
 0x19a   :  { %v344_v48 = vrot.slane %v343_v43, 4  ;;  %v332_v55 = vrot.slane %v331_v47, 2  ;;  %v307_v5 = vadd.f32 %v306_v50, %v305_v53 }
 0x19b   :  { %v338_v20 = vadd.f32 %v337_v37, %v336_v33  ;;  %v326_v41 = vadd.f32 %v325_v36, %v324_v31 }
 0x19c   :  { %v345_v56 = vadd.f32 %v344_v48, %v343_v43  ;;  %v333_v1 = vadd.f32 %v332_v55, %v331_v47 }
 0x19d   :  { %v339_v44 = vrot.slane %v338_v20, 2  ;;  %v327_v49 = vrot.slane %v326_v41, 1 }
 0x19e   :  { %v346_v0 = vrot.slane %v345_v56, 2  ;;  %v334_v9 = vrot.slane %v333_v1, 1 }
 0x19f   :  { %v340_v27 = vadd.f32 %v339_v44, %v338_v20  ;;  %v328_v58 = vadd.f32 %v327_v49, %v326_v41 }
 0x1a0   :  { %v347_v13 = vadd.f32 %v346_v0, %v345_v56  ;;  %v335_v15 = vadd.f32 %v334_v9, %v333_v1 }
 0x1a1   :  { %v341_v51 = vrot.slane %v340_v27, 1 }
 0x1a2   :  { %v348_v16 = vrot.slane %v347_v13, 1 }
 0x1a3   :  { %v566_v54 = vpop.eup %565  ;;  %v342_v34 = vadd.f32 %v341_v51, %v340_v27 }
 0x1a4   :  { %v360_v60 = vmul.f32 %v566_v54, %v550_v57  ;;  %v349_v19 = vadd.f32 %v348_v16, %v347_v13 }
 0x1a5   :  { %569 = vrcp.f32 %v342_v34  ;;  %v568_v61 = vpop.eup %567 }
 0x1a6   :  { %378 = vperm.xlu1 %530, %v360_v60   ;;  %v358_v59 = vmul.f32 %v568_v61, %v737_v42  ;;  %571 = vrcp.f32 %v328_v58 }
 0x1a7   :  { %573 = vrcp.f32 %v321_v62 }
 0x1a8   :  { %368 = vperm.xlu0 %529, %v358_v59   ;;  %575 = vrcp.f32 %v307_v5 }
 0x1a9   :  { %577 = vrcp.f32 %v335_v15 }
 0x1aa   :  { %579 = vrcp.f32 %v349_v19 }
 0x1b2   :  { %v570_v17 = vpop.eup %569 }
 0x1b3   :  { %v364_v57 = vmul.f32 %v570_v17, %v562_v30  ;;  %v572_v21 = vpop.eup %571 }
 0x1b4   :  { %v362_v22 = vmul.f32 %v572_v21, %v747_v18  ;;  %v574_v42 = vpop.eup %573 }
 0x1b5   :  { %398 = vperm.xlu1 %530, %v364_v57   ;;  %v361_v23 = vmul.f32 %v574_v42, %v741_v63  ;;  %v576_v25 = vpop.eup %575 }
 0x1b6   :  { %v359_v26 = vmul.f32 %v576_v25, %v745_v12  ;;  %v578_v28 = vpop.eup %577 }
 0x1b7   :  { %v363_v29 = vmul.f32 %v578_v28, %v753_v24  ;;  %v580_v30 = vpop.eup %579 }
 0x1b8   :  { %v365_v31 = vmul.f32 %v580_v30, %v564_v35 }
 0x1b9   :  { %388 = vperm.xlu1 %530, %v362_v22  }
 0x1bd   :  { %383 = vperm.xlu1 %530, %v361_v23  }
 0x1c1   :  { %373 = vperm.xlu1 %530, %v359_v26  }
 0x1c5   :  { %393 = vperm.xlu1 %530, %v363_v29  }
 0x1c9   :  { %403 = vperm.xlu1 %530, %v365_v31  }
 0x221   :  { %v379_v32 = vpop.permute.xlu1 %378 }
 0x222   :  { %v408_v33 = vmul.f32 %v379_v32, %v631_v4 }
 0x223   :  { %v369_v14 = vpop.permute.xlu0 %368 }
 0x224   :  { %v406_v18 = vmul.f32 %v369_v14, %v621_v2  ;;  %v428_v37 = vsel %vm56_vm0, %v408_v33, 0.0 }
 0x225   :  { %v429_v40 = vrot.slane %v428_v37, 4 }
 0x226   :  { %v414_v63 = vsel %vm56_vm0, %v406_v18, 0.0 }
 0x227   :  { %v415_v39 = vrot.slane %v414_v63, 4  ;;  %v430_v44 = vadd.f32 %v429_v40, %v428_v37 }
 0x229   :  { %v416_v43 = vadd.f32 %v415_v39, %v414_v63  ;;  %v431_v51 = vrot.slane %v430_v44, 2 }
 0x22b   :  { %v432_v61 = vadd.f32 %v431_v51, %v430_v44 }
 0x22d   :  { %v433_v17 = vrot.slane %v432_v61, 1 }
 0x22f   :  { %v434_v30 = vadd.f32 %v433_v17, %v432_v61 }
 0x230   :  { %v399_v36 = vpop.permute.xlu1 %398 }
 0x231   :  { %v412_v24 = vmul.f32 %v399_v36, %v655_v10  ;;  %v417_v10 = vrot.slane %v416_v43, 2 }
 0x233   :  { %v456_v4 = vsel %vm56_vm0, %v412_v24, 0.0  ;;  %v418_v58 = vadd.f32 %v417_v10, %v416_v43 }
 0x234   :  { %v389_v12 = vpop.permute.xlu1 %388  ;;  %v457_v48 = vrot.slane %v456_v4, 4 }
 0x235   :  { %v410_v38 = vmul.f32 %v389_v12, %v643_v7  ;;  %v419_v13 = vrot.slane %v418_v58, 1 }
 0x236   :  { %v458_v55 = vadd.f32 %v457_v48, %v456_v4 }
 0x237   :  { %v442_v35 = vsel %vm56_vm0, %v410_v38, 0.0  ;;  %v420_v25 = vadd.f32 %v419_v13, %v418_v58 }
 0x238   :  { %v384_v20 = vpop.permute.xlu1 %383  ;;  %v443_v41 = vrot.slane %v442_v35, 4  ;;  %v459_v1 = vrot.slane %v458_v55, 2 }
 0x239   :  { %v409_v2 = vmul.f32 %v384_v20, %v638_v6 }
 0x23a   :  { %v444_v7 = vadd.f32 %v443_v41, %v442_v35  ;;  %v460_v42 = vadd.f32 %v459_v1, %v458_v55 }
 0x23b   :  { %v435_v45 = vsel %vm56_vm0, %v409_v2, 0.0 }
 0x23c   :  { %v436_v46 = vrot.slane %v435_v45, 4  ;;  %v374_v47 = vpop.permute.xlu1 %373  ;;  %v445_v56 = vrot.slane %v444_v7, 2  ;;  %v461_v18 = vrot.slane %v460_v42, 1 }
 0x23d   :  { %v407_v27 = vmul.f32 %v374_v47, %v626_v3 }
 0x23e   :  { %v437_v49 = vadd.f32 %v436_v46, %v435_v45  ;;  %v446_v5 = vadd.f32 %v445_v56, %v444_v7  ;;  %v462_v40 = vadd.f32 %v461_v18, %v460_v42 }
 0x23f   :  { %v421_v52 = vsel %vm56_vm0, %v407_v27, 0.0 }
 0x240   :  { %v438_v53 = vrot.slane %v437_v49, 2  ;;  %v422_v54 = vrot.slane %v421_v52, 4  ;;  %v394_v6 = vpop.permute.xlu1 %393  ;;  %v447_v23 = vrot.slane %v446_v5, 1 }
 0x241   :  { %v411_v34 = vmul.f32 %v394_v6, %v648_v8 }
 0x242   :  { %v423_v60 = vadd.f32 %v422_v54, %v421_v52  ;;  %v439_v50 = vadd.f32 %v438_v53, %v437_v49  ;;  %v448_v33 = vadd.f32 %v447_v23, %v446_v5 }
 0x243   :  { %v449_v62 = vsel %vm56_vm0, %v411_v34, 0.0 }
 0x244   :  { %v424_v0 = vrot.slane %v423_v60, 2  ;;  %v450_v3 = vrot.slane %v449_v62, 4  ;;  %v404_v59 = vpop.permute.xlu1 %403  ;;  %v440_v8 = vrot.slane %v439_v50, 1 }
 0x245   :  { %v413_v9 = vmul.f32 %v404_v59, %v660_v11 }
 0x246   :  { %v425_v15 = vadd.f32 %v424_v0, %v423_v60  ;;  %v451_v16 = vadd.f32 %v450_v3, %v449_v62  ;;  %v441_v11 = vadd.f32 %v440_v8, %v439_v50 }
 0x247   :  { %v463_v57 = vsel %vm56_vm0, %v413_v9, 0.0 }
 0x248   :  { %v426_v19 = vrot.slane %v425_v15, 1  ;;  %v452_v21 = vrot.slane %v451_v16, 2  ;;  %v464_v22 = vrot.slane %v463_v57, 4 }
 0x24a   :  { %v427_v26 = vadd.f32 %v426_v19, %v425_v15  ;;  %v453_v28 = vadd.f32 %v452_v21, %v451_v16  ;;  %v465_v29 = vadd.f32 %v464_v22, %v463_v57 }
 0x24c   :  { %v479_v31 = vsel %vm478_vm2, %v427_v26, %v420_v25  ;;  %v454_v32 = vrot.slane %v453_v28, 1  ;;  %v466_v14 = vrot.slane %v465_v29, 2 }
 0x24d   :  { %v481_v36 = vsel %vm480_vm3, %v434_v30, %v479_v31 }
 0x24e   :  { %v455_v63 = vadd.f32 %v454_v32, %v453_v28  ;;  %v483_v37 = vsel %vm482_vm4, %v441_v11, %v481_v36  ;;  %v467_v12 = vadd.f32 %v466_v14, %v465_v29 }
 0x24f   :  { %v485_v38 = vsel %vm484_vm5, %v448_v33, %v483_v37 }
 0x250   :  { %v487_v39 = vsel %vm486_vm6, %v455_v63, %v485_v38  ;;  %v468_v24 = vrot.slane %v467_v12, 1 }
 0x251   :  { %v489_v20 = vsel %vm488_vm7, %v462_v40, %v487_v39 }
 0x252   :  { %v469_v35 = vadd.f32 %v468_v24, %v467_v12 }
 0x254   :  { %v491_v41 = vsel %vm490_vm8, %v469_v35, %v489_v20 }
 0x255   :  { %493 = vst.msk [vmem:[%s789_s5] sm:$0xff] %vm56_vm0, %v491_v41 }

// kernel: fwd.19
= control target key start
LH: loop header
LB: loop body
LE: loop exit
PB: predicated region body
PF: predicated region fallthrough
CT: control target
= control target key end

     0   :  { %vm60_vm0 = vcmask 523264   ;;  %vm116_vm1 = vcmask 261120   ;;  %s213_s1 = inlined_call_operand.vmem [shape: bf16[64,32], index: 1, kind: input, shape index: {}]   ;;  %s214_s0 = inlined_call_operand.vmem [shape: f32[32,64], index: 0, kind: input, shape index: {}]   ;;  %s215_s2 = inlined_call_operand.vmem [shape: f32[1,32], index: 2, kind: input, shape index: {}]   ;;  %s216_s3 = inlined_call_operand.vmem [shape: f32[32,32], index: 3, kind: output, shape index: {}]  }
   0x1   :  { %v150_v0 = vld [vmem:[%s213_s1 + $0x18] sm:$0xff]   ;;  %v151_v1 = vld [vmem:[%s213_s1 + $0x10] sm:$0xff]   ;;  %v152_v2 = vld [vmem:[%s213_s1 + $0x8] sm:$0xff]  }
   0x2   :  { %138 = vmatprep.subr.bf16.mxu0 %v150_v0  ;;  %v15_v3 = vld [vmem:[%s214_s0] sm:$0xff]  ;;  %v16_v4 = vld [vmem:[%s214_s0 + $0x8] sm:$0xff]  ;;  %v17_v7 = vld [vmem:[%s214_s0 + $0x10] sm:$0xff] }
   0x3   :  { %139 = vmatpush3.bf16.msra.mxu0 %v150_v0  ;;  %v19_v5 = vpack.c.bf16 %v16_v4, %v15_v3  ;;  %v153_v6 = vld [vmem:[%s213_s1] sm:$0xff]   ;;  %v18_v8 = vld [vmem:[%s214_s0 + $0x18] sm:$0xff] }
   0x4   :  { %140 = vmatprep.subr.bf16.mxu0 %v151_v1  ;;  %v20_v9 = vpack.c.bf16 %v18_v8, %v17_v7  ;;  %v125_v10 = vld [vmem:[%s215_s2] ss:$0 sm:$0xff] }
   0x5   :  { %146 = vmatprep.mubr.msk.bf16.mxu0 %vm60_vm0, %v19_v5 }
   0x7   :  { %141 = vmatpush3.bf16.msra.mxu0 %v151_v1 }
   0x8   :  { %142 = vmatprep.subr.bf16.mxu0 %v152_v2 }
   0xb   :  { %143 = vmatpush3.bf16.msra.mxu0 %v152_v2 }
   0xc   :  { %144 = vmatprep.subr.bf16.mxu0 %v153_v6 }
   0xf   :  { %145 = vmatpush3.bf16.msra.mxu0 %v153_v6 }
  0x12   :  { %147 = vmatmul.mubr.msk.bf16.vlgmr.msra.gmra.mxu0 %vm60_vm0, %v20_v9 }
  0xd2   :  { %v148_v11 = vpop.f32.mrf.mxu0 }
  0xd3   :  { %v110_v12 = vadd.f32 %v148_v11, %v125_v10 }
  0xd4   :  { %v101_v13 = vpop.f32.mrf.mxu0 }
  0xd5   :  { %119 = vst.msk [vmem:[%s216_s3 + $0x10] sm:$0xff] %vm116_vm1, %v110_v12  ;;  %v102_v14 = vadd.f32 %v125_v10, %v101_v13 }
  0xd6   :  { %v149_v15 = vpop.f32.mrf.mxu0 }
  0xd7   :  { %117 = vst.msk [vmem:[%s216_s3] sm:$0xff] %vm116_vm1, %v102_v14  ;;  %v113_v16 = vadd.f32 %v149_v15, %v125_v10 }
  0xd8   :  { %v104_v17 = vpop.f32.mrf.mxu0 }
  0xd9   :  { %120 = vst.msk [vmem:[%s216_s3 + $0x18] sm:$0xff] %vm116_vm1, %v113_v16  ;;  %v105_v18 = vadd.f32 %v125_v10, %v104_v17 }
  0xdb   :  { %118 = vst.msk [vmem:[%s216_s3 + $0x8] sm:$0xff] %vm116_vm1, %v105_v18 }

// kernel: fwd.21
= control target key start
LH: loop header
LB: loop body
LE: loop exit
PB: predicated region body
PF: predicated region fallthrough
CT: control target
= control target key end

     0   :  { %s5052_s21 = smov 0   ;;  %s5054_s22 = smov 0   ;;  %s5552_s0 = inlined_call_operand.vmem [shape: f32[8,8,32], index: 0, kind: input, shape index: {}]   ;;  %s5553_s1 = inlined_call_operand.vmem [shape: f32[8,1,8], index: 1, kind: input, shape index: {}]   ;;  %s5554_s2 = inlined_call_operand.vmem [shape: f32[1,32], index: 2, kind: input, shape index: {}]   ;;  %s5555_s3 = inlined_call_operand.vmem [shape: f32[1,32], index: 3, kind: input, shape index: {}]   ;;  %s5556_s4 = inlined_call_operand.vmem [shape: bf16[1,32,96], index: 4, kind: input, shape index: {}]   ;;  %s5557_s5 = inlined_call_operand.vmem [shape: f32[1,1,96], index: 5, kind: input, shape index: {}]   ;;  %s5558_s6 = inlined_call_operand.vmem [shape: bf16[1,32,32], index: 6, kind: input, shape index: {}]   ;;  %s5559_s7 = inlined_call_operand.vmem [shape: f32[1,1,32], index: 7, kind: input, shape index: {}]   ;;  %s5560_s8 = inlined_call_operand.vmem [shape: f32[1,1,32], index: 8, kind: input, shape index: {}]   ;;  %s5561_s9 = inlined_call_operand.vmem [shape: f32[1,1,32], index: 9, kind: input, shape index: {}]   ;;  %s5562_s10 = inlined_call_operand.vmem [shape: bf16[1,32,64], index: 10, kind: input, shape index: {}]   ;;  %s5563_s11 = inlined_call_operand.vmem [shape: f32[1,1,64], index: 11, kind: input, shape index: {}]   ;;  %s5564_s12 = inlined_call_operand.vmem [shape: bf16[1,64,32], index: 12, kind: input, shape index: {}]   ;;  %s5565_s13 = inlined_call_operand.vmem [shape: f32[1,1,32], index: 13, kind: input, shape index: {}]   ;;  %s5566_s14 = inlined_call_operand.vmem [shape: f32[1,1,32], index: 14, kind: input, shape index: {}]   ;;  %s5567_s15 = inlined_call_operand.vmem [shape: f32[1,1,32], index: 15, kind: input, shape index: {}]   ;;  %s5568_s16 = inlined_call_operand.vmem [shape: f32[8,8,32], index: 16, kind: output, shape index: {}]  }
   0x1   :  { %5569 = sst [smem:[#allocation2_spill]] %s5552_s0  ;;  %s5056_s23 = smov 0  }
   0x2 LB: > { %s38_s24 = sadd.s32 1, %s4945_s22  ;;  %p4381_p0 = scmp.ge.s32.totalorder %s4949_s23, 1  ;;  %s4949_s23 = sphi %s5056_s23, %s26_s23   ;;  %s4945_s22 = sphi %s5054_s22, %s5572_s22   ;;  %s4941_s21 = sphi %s5052_s21, %s5571_s21  }
   0x3   : > { %p40_p1 = scmp.ge.s32.totalorder %s38_s24, 2  ;;  %p589_p2 = scmp.lt.s32.totalorder %s4949_s23, 3 }
   0x5   : > { %s5574_s24 = smov (%p40_p1, %s38_s24), 0  ;;  %p590_p3 = pnand %p4381_p0, %p589_p2 }
   0x6   : > { %s4382_s25 = sshll.u32 (!%p590_p3), %s4941_s21, 2  ;;  %s5570_s29 = sld [smem:[#allocation2_spill]] (!%p590_p3) }
   0x7   : > { %593 = sbr.rel (%p590_p3) target bundleno = 4469 (0x1175), region = 84  ;;  %p688_p4 = scmp.lt.s32.totalorder (!%p590_p3), %s4382_s25, 7 }
   0x8   : > { %s4953_s18 = smov (!%p590_p3), 96   ;;  %s4955_s27 = smov (!%p590_p3), 88  }
   0x9   : > { %s4956_s28 = smov (!%p590_p3), 120   ;;  %s4960_s17 = smov (!%p590_p3), 48  }
   0xa   : > { %s4962_s19 = smov (!%p590_p3), 104   ;;  %s4963_s20 = smov (!%p590_p3), 40  }
   0xc   : > { %s5576_s25 = smov (!%p688_p4, %s4382_s25), 7  ;;  %vm759_vm0 = vcmask 261120   ;;  %v4817_v28 = vld [vmem:[%s5556_s4 + $0x8] sm:$0xff]   ;;  %v4818_v29 = vld [vmem:[%s5556_s4] sm:$0xff]   ;;  %vm4952_vm1 = vmmov 0   ;;  %vm929_vm2 = vcmask 64512  }
   0xd   : > { %s4383_s26 = sshll.u32 %s5576_s25, 3  ;;  %4551 = vmatprep.subr.bf16.mxu0 %v4817_v28  ;;  %v4387_v43 = vld [vmem:[%s5554_s2] ss:$0 sm:$0xff]  ;;  %s696_s21 = scalar_lea.vmem %s5553_s1, %s5576_s25  ;;  %vm3671_vm3 = vcmask 130048   ;;  %vm3676_vm4 = vcmask 195584   ;;  %vm3997_vm5 = vcmask 523264  }
   0xe   : > { %s691_s30 = scalar_lea.vmem %s5570_s29, %s4383_s26  ;;  %4552 = vmatpush3.bf16.msra.mxu0 %v4817_v28  ;;  %v4388_v45 = vld [vmem:[%s5555_s3] ss:$0 sm:$0xff]  ;;  %s5103_s0 = scalar_lea.vmem %s5568_s16, %s4383_s26 }
   0xf   : > { %v753_v0 = vld [vmem:[%s691_s30] sm:$0xff]  ;;  %v755_v1 = vld [vmem:[%s691_s30 + $0x10] sm:$0xff]  ;;  %v754_v2 = vld [vmem:[%s691_s30 + $0x8] sm:$0xff]  ;;  %4553 = vmatprep.subr.bf16.mxu0 %v4818_v29  ;;  %s4954_s25 = smov 64   ;;  %s4957_s29 = smov 56  }
  0x10   : > { %v760_v3 = vsel %vm759_vm0, %v753_v0, 0.0  ;;  %v766_v4 = vsel %vm759_vm0, %v755_v1, 0.0  ;;  %v756_v5 = vld [vmem:[%s691_s30 + $0x18] sm:$0xff]  ;;  %v763_v6 = vsel %vm759_vm0, %v754_v2, 0.0  ;;  %s4958_s30 = smov 80   ;;  %s4959_s26 = smov 112  }
  0x11   : > { %761 = vadd.xlane.f32.xlu0 %v760_v3  ;;  %767 = vadd.xlane.f32.xlu1 %v766_v4  ;;  %v769_v7 = vsel %vm759_vm0, %v756_v5, 0.0  ;;  %v4389_v3 = vld [vmem:[%s5557_s5] ss:$0 sm:$0xff] }
  0x12   : > { %4554 = vmatpush3.bf16.msra.mxu0 %v4818_v29  ;;  %v5175_v29 = vld [vmem:[%s696_s21 + $0x2] ss:$0 sm:$0xff] }
  0x15   : > { %764 = vadd.xlane.f32.xlu0 %v763_v6  ;;  %770 = vadd.xlane.f32.xlu1 %v769_v7 }
  0x9a   : > { %v762_v8 = vpop.xlane.xlu0 %761  ;;  %v768_v9 = vpop.xlane.xlu1 %767 }
  0x9b   : > { %v773_v10 = vmul.f32 0.03125, %v762_v8  ;;  %v775_v11 = vmul.f32 0.03125, %v768_v9 }
  0x9d   : > { %v777_v12 = vsub.f32 %v753_v0, %v773_v10  ;;  %v779_v13 = vsub.f32 %v755_v1, %v775_v11 }
  0x9e   : > { %v765_v14 = vpop.xlane.xlu0 %764  ;;  %v771_v15 = vpop.xlane.xlu1 %770 }
  0x9f   : > { %v774_v16 = vmul.f32 0.03125, %v765_v14  ;;  %v776_v17 = vmul.f32 0.03125, %v771_v15  ;;  %v781_v18 = vmul.f32 %v777_v12, %v777_v12  ;;  %v783_v19 = vmul.f32 %v779_v13, %v779_v13 }
  0xa1   : > { %v778_v20 = vsub.f32 %v754_v2, %v774_v16  ;;  %v780_v21 = vsub.f32 %v756_v5, %v776_v17  ;;  %v785_v22 = vsel %vm759_vm0, %v781_v18, 0.0  ;;  %v791_v23 = vsel %vm759_vm0, %v783_v19, 0.0  ;;  %v5168_v17 = vld [vmem:[%s696_s21] ss:$0 sm:$0xff] }
  0xa2   : > { %786 = vadd.xlane.f32.xlu0 %v785_v22  ;;  %v4951_v2 = vmov 0.0   ;;  %v5171_v22 = vld [vmem:[%s696_s21 + $0x1] ss:$0 sm:$0xff] }
  0xa3   : > { %v782_v24 = vmul.f32 %v778_v20, %v778_v20  ;;  %v784_v25 = vmul.f32 %v780_v21, %v780_v21  ;;  %4559 = vmatprep.subr.mxu0 %v4951_v2  ;;  %4564 = vmatprep.subr.mxu1 %v4951_v2 }
  0xa4   : > { %4566 = vmatprep.mubr.msk.f32.mxu1 %vm4952_vm1, %v4951_v2 }
  0xa5   : > { %v788_v26 = vsel %vm759_vm0, %v782_v24, 0.0  ;;  %v794_v27 = vsel %vm759_vm0, %v784_v25, 0.0 }
  0xa6   : > { %792 = vadd.xlane.f32.xlu0 %v791_v23  ;;  %789 = vadd.xlane.f32.xlu1 %v788_v26 }
  0xaa   : > { %795 = vadd.xlane.f32.xlu1 %v794_v27 }
 0x12b   : > { %v787_v30 = vpop.xlane.xlu0 %786 }
 0x12c   : > { %v797_v31 = vmul.f32 0.03125, %v787_v30 }
 0x12e   : > { %v801_v32 = vadd.f32 1e-05, %v797_v31 }
 0x12f   : > { %v790_v33 = vpop.xlane.xlu1 %789  ;;  %v793_v34 = vpop.xlane.xlu0 %792 }
 0x130   : > { %4827 = vrsqrt.f32 %v801_v32  ;;  %v798_v35 = vmul.f32 0.03125, %v790_v33  ;;  %v799_v36 = vmul.f32 0.03125, %v793_v34 }
 0x132   : > { %v802_v37 = vadd.f32 1e-05, %v798_v35  ;;  %v803_v38 = vadd.f32 1e-05, %v799_v36  ;;  %v5178_v35 = vld [vmem:[%s696_s21 + $0x3] ss:$0 sm:$0xff] }
 0x133   : > { %v796_v39 = vpop.xlane.xlu1 %795  ;;  %s4964_s21 = smov 8  }
 0x134   : > { %4829 = vrsqrt.f32 %v802_v37  ;;  %v800_v40 = vmul.f32 0.03125, %v796_v39 }
 0x135   : > { %4831 = vrsqrt.f32 %v803_v38 }
 0x136   : > { %v804_v41 = vadd.f32 1e-05, %v800_v40 }
 0x138   : > { %4833 = vrsqrt.f32 %v804_v41 }
 0x13d   : > { %v4828_v42 = vpop.eup %4827 }
 0x13e   : > { %v809_v44 = vmul.f32 %v4828_v42, %v777_v12 }
 0x140   : > { %v819_v46 = vmul.f32 %v4387_v43, %v809_v44 }
 0x141   : > { %v4830_v47 = vpop.eup %4829 }
 0x142   : > { %v4832_v48 = vpop.eup %4831  ;;  %v829_v49 = vadd.f32 %v4388_v45, %v819_v46  ;;  %v810_v50 = vmul.f32 %v4830_v47, %v778_v20 }
 0x143   : > { %v811_v51 = vmul.f32 %v4832_v48, %v779_v13 }
 0x144   : > { %833 = vst.msk [vmem:[%s5103_s0] sm:$0xff] %vm759_vm0, %v829_v49  ;;  %v820_v52 = vmul.f32 %v4387_v43, %v810_v50 }
 0x145   : > { %v4834_v53 = vpop.eup %4833  ;;  %v821_v54 = vmul.f32 %v4387_v43, %v811_v51 }
 0x146   : > { %v830_v55 = vadd.f32 %v4388_v45, %v820_v52  ;;  %v812_v56 = vmul.f32 %v4834_v53, %v780_v21 }
 0x147   : > { %v831_v57 = vadd.f32 %v4388_v45, %v821_v54 }
 0x148   : > { %834 = vst.msk [vmem:[%s5103_s0 + $0x8] sm:$0xff] %vm759_vm0, %v830_v55  ;;  %v822_v58 = vmul.f32 %v4387_v43, %v812_v56 }
 0x149   : > { %835 = vst.msk [vmem:[%s5103_s0 + $0x10] sm:$0xff] %vm759_vm0, %v831_v57 }
 0x14a   : > { %v832_v59 = vadd.f32 %v4388_v45, %v822_v58 }
 0x14b   : > { %v837_v60 = vld [vmem:[%s5103_s0] sm:$0xff] }
 0x14c   : > { %836 = vst.msk [vmem:[%s5103_s0 + $0x18] sm:$0xff] %vm759_vm0, %v832_v59 }
 0x14f   : > { %v838_v61 = vld [vmem:[%s5103_s0 + $0x8] sm:$0xff] }
 0x150   : > { %v839_v62 = vld [vmem:[%s5103_s0 + $0x10] sm:$0xff]  ;;  %v845_v63 = vpack.c.bf16 %v838_v61, %v837_v60 }
 0x152   : > { %4555 = vmatprep.mubr.msk.bf16.mxu0 %vm759_vm0, %v845_v63 }
 0x153   : > { %v840_v0 = vld [vmem:[%s5103_s0 + $0x18] sm:$0xff] }
 0x154   : > { %v846_v1 = vpack.c.bf16 %v840_v0, %v839_v62 }
 0x156   : > { %4556 = vmatmul.mubr.msk.bf16.vlgmr.msra.gmra.mxu0 %vm759_vm0, %v846_v1 }
 0x157   : > { %4561 = vmatprep.mubr.msk.f32.mxu0 %vm4952_vm1, %v4951_v2 }
 0x216   : > { %v4557_v4 = vpop.f32.mrf.mxu0 }
 0x217   : > { %v5128_v5 = vadd.f32 %v4557_v4, %v4389_v3 }
 0x218   : > { %v911_v6 = vpop.f32.mrf.mxu0 }
 0x219   : > { %v5130_v7 = vadd.f32 %v4389_v3, %v911_v6  ;;  %1082 = vrot.lane.b32.xlu1 %v5128_v5, %s4953_s18 }
 0x21a   : > { %v4558_v8 = vpop.f32.mrf.mxu0 }
 0x21b   : > { %927 = vrot.lane.b32.xlu0 %v5130_v7, %s4953_s18  ;;  %v5137_v11 = vadd.f32 %v4558_v8, %v4389_v3 }
 0x21c   : > { %v914_v9 = vpop.f32.mrf.mxu0 }
 0x21d   : > { %v5134_v10 = vadd.f32 %v4389_v3, %v914_v9 }
 0x21f   : > { %1005 = vrot.lane.b32.xlu1 %v5134_v10, %s4953_s18 }
 0x223   : > { %1159 = vrot.lane.b32.xlu1 %v5137_v11, %s4953_s18  ;;  %s4961_s18 = smov 72  }
 0x28b   : > { %v1083_v12 = vpop.permute.xlu1 %1082 }
 0x28d   : > { %v928_v13 = vpop.permute.xlu0 %927 }
 0x28e   : > { %4560 = vmatpush3.xpose.msk.msra.mxu0 %vm929_vm2, %v928_v13 }
 0x28f   : > { %4574 = vmatprep.subr.mxu0 %v4951_v2 }
 0x291   : > { %v1006_v14 = vpop.permute.xlu1 %1005  ;;  %4562 = vmatmul.mubr.msk.f32.vlgmr.msra.gmra.mxu0 %vm929_vm2, %v5130_v7 }
 0x292   : > { %4565 = vmatpush3.xpose.msk.msra.mxu1 %vm929_vm2, %v1006_v14  ;;  %4576 = vmatprep.mubr.msk.f32.mxu0 %vm4952_vm1, %v4951_v2 }
 0x293   : > { %4569 = vmatprep.subr.mxu1 %v4951_v2 }
 0x295   : > { %4567 = vmatmul.mubr.msk.f32.vlgmr.msra.gmra.mxu1 %vm929_vm2, %v5134_v10  ;;  %v1160_v15 = vpop.permute.xlu1 %1159 }
 0x296   : > { %4570 = vmatpush3.xpose.msk.msra.mxu1 %vm929_vm2, %v1083_v12  ;;  %4575 = vmatpush3.xpose.msk.msra.mxu0 %vm929_vm2, %v1160_v15 }
 0x297   : > { %4571 = vmatprep.mubr.msk.f32.mxu1 %vm4952_vm1, %v4951_v2  ;;  %4584 = vmatprep.subr.mxu0 %v4951_v2 }
 0x298   : > { %4579 = vmatprep.subr.mxu1 %v4951_v2 }
 0x299   : > { %4572 = vmatmul.mubr.msk.f32.vlgmr.msra.gmra.mxu1 %vm929_vm2, %v5128_v5  ;;  %4577 = vmatmul.mubr.msk.f32.vlgmr.msra.gmra.mxu0 %vm929_vm2, %v5137_v11 }
 0x29a   : > { %4581 = vmatprep.mubr.msk.f32.mxu1 %vm4952_vm1, %v4951_v2  ;;  %4586 = vmatprep.mubr.msk.f32.mxu0 %vm4952_vm1, %v4951_v2 }
 0x351   : > { %v1000_v16 = vpop.f32.mrf.mxu0 }
 0x352   : > { %v1235_v18 = vmul.f32 0.35355338, %v1000_v16 }
 0x353   : > { %v4563_v19 = vpop.f32.mrf.mxu0 }
 0x354   : > { %v1263_v20 = vadd.f32 %v5168_v17, %v1235_v18 }
 0x355   : > { %v1077_v21 = vpop.f32.mrf.mxu1 }
 0x356   : > { %v1236_v23 = vmul.f32 0.35355338, %v1077_v21  ;;  %v1267_v24 = vsel %vm929_vm2, %v1263_v20, -inf }
 0x357   : > { %v4568_v25 = vpop.f32.mrf.mxu1  ;;  %1268 = vmax.xlane.f32.xlu0 %v1267_v24 }
 0x358   : > { %v1264_v26 = vadd.f32 %v5171_v22, %v1236_v23 }
 0x359   : > { %v1154_v27 = vpop.f32.mrf.mxu1  ;;  %v1231_v28 = vpop.f32.mrf.mxu0 }
 0x35a   : > { %v1237_v30 = vmul.f32 0.35355338, %v1154_v27  ;;  %v1238_v31 = vmul.f32 0.35355338, %v1231_v28  ;;  %v1270_v32 = vsel %vm929_vm2, %v1264_v26, -inf }
 0x35b   : > { %1271 = vmax.xlane.f32.xlu1 %v1270_v32  ;;  %v4573_v33 = vpop.f32.mrf.mxu1  ;;  %v4578_v34 = vpop.f32.mrf.mxu0 }
 0x35c   : > { %v1265_v36 = vadd.f32 %v5175_v29, %v1237_v30  ;;  %v1266_v38 = vadd.f32 %v5178_v35, %v1238_v31 }
 0x35e   : > { %v1273_v37 = vsel %vm929_vm2, %v1265_v36, -inf  ;;  %v1276_v39 = vsel %vm929_vm2, %v1266_v38, -inf }
 0x35f   : > { %1274 = vmax.xlane.f32.xlu0 %v1273_v37 }
 0x363   : > { %1277 = vmax.xlane.f32.xlu0 %v1276_v39 }
 0x36c   : > { %1387 = vrot.lane.b32.xlu1 %v5134_v10, %s4954_s25 }
 0x370   : > { %1463 = vrot.lane.b32.xlu1 %v5128_v5, %s4954_s25 }
 0x374   : > { %1539 = vrot.lane.b32.xlu1 %v5137_v11, %s4954_s25 }
 0x378   : > { %1695 = vrot.lane.b32.xlu1 %v5134_v10, %s4955_s27 }
 0x379   : > { %1311 = vrot.lane.b32.xlu0 %v5130_v7, %s4954_s25  ;;  %s4965_s25 = smov 16  }
 0x37d   : > { %1617 = vrot.lane.b32.xlu0 %v5130_v7, %s4955_s27 }
 0x3e0   : > { %v1269_v40 = vpop.xlane.xlu0 %1268 }
 0x3e1   : > { %v1279_v41 = vsub.f32 %v1263_v20, %v1269_v40 }
 0x3e3   : > { %v1283_v42 = vmul.f32 1.442695, %v1279_v41 }
 0x3e4   : > { %v1272_v43 = vpop.xlane.xlu1 %1271 }
 0x3e5   : > { %4835 = vpow2.f32 %v1283_v42  ;;  %v1280_v44 = vsub.f32 %v1264_v26, %v1272_v43 }
 0x3e7   : > { %v1285_v45 = vmul.f32 1.442695, %v1280_v44 }
 0x3e8   : > { %v1388_v46 = vpop.permute.xlu1 %1387  ;;  %v1275_v47 = vpop.xlane.xlu0 %1274 }
 0x3e9   : > { %4837 = vpow2.f32 %v1285_v45  ;;  %v1281_v48 = vsub.f32 %v1265_v36, %v1275_v47  ;;  %4585 = vmatpush3.msra.mxu0 %v1388_v46 }
 0x3ea   : > { %4594 = vmatprep.subr.mxu0 %v4951_v2 }
 0x3eb   : > { %v1287_v49 = vmul.f32 1.442695, %v1281_v48 }
 0x3ec   : > { %v1278_v50 = vpop.xlane.xlu0 %1277  ;;  %v1464_v62 = vpop.permute.xlu1 %1463 }
 0x3ed   : > { %4839 = vpow2.f32 %v1287_v49  ;;  %v1282_v51 = vsub.f32 %v1266_v38, %v1278_v50 }
 0x3ef   : > { %v1289_v52 = vmul.f32 1.442695, %v1282_v51 }
 0x3f0   : > { %v1312_v53 = vpop.permute.xlu0 %1311  ;;  %v1540_v63 = vpop.permute.xlu1 %1539 }
 0x3f1   : > { %4841 = vpow2.f32 %v1289_v52  ;;  %4580 = vmatpush3.msra.mxu1 %v1312_v53 }
 0x3f2   : > { %v4836_v54 = vpop.eup %4835  ;;  %4589 = vmatprep.subr.mxu1 %v4951_v2 }
 0x3f3   : > { %v1291_v55 = vsel %vm929_vm2, %v4836_v54, 0.0 }
 0x3f4   : > { %1292 = vadd.xlane.f32.xlu0 %v1291_v55  ;;  %v1618_v0 = vpop.permute.xlu0 %1617  ;;  %v1696_v1 = vpop.permute.xlu1 %1695 }
 0x3f6   : > { %v4838_v56 = vpop.eup %4837 }
 0x3f7   : > { %v1294_v57 = vsel %vm929_vm2, %v4838_v56, 0.0 }
 0x3f8   : > { %1295 = vadd.xlane.f32.xlu1 %v1294_v57 }
 0x3fa   : > { %v4840_v58 = vpop.eup %4839 }
 0x3fb   : > { %v1297_v59 = vsel %vm929_vm2, %v4840_v58, 0.0 }
 0x3fc   : > { %1298 = vadd.xlane.f32.xlu0 %v1297_v59 }
 0x3fe   : > { %v4842_v60 = vpop.eup %4841 }
 0x3ff   : > { %v1300_v61 = vsel %vm929_vm2, %v4842_v60, 0.0 }
 0x400   : > { %1301 = vadd.xlane.f32.xlu1 %v1300_v61 }
 0x411   : > { %1693 = vrot.lane.b32.xlu1 %v5134_v10, %s4956_s28 }
 0x412   : > { %1615 = vrot.lane.b32.xlu0 %v5130_v7, %s4956_s28 }
 0x415   : > { %1851 = vrot.lane.b32.xlu1 %v5137_v11, %s4955_s27 }
 0x416   : > { %1773 = vrot.lane.b32.xlu0 %v5128_v5, %s4955_s27 }
 0x419   : > { %1849 = vrot.lane.b32.xlu1 %v5137_v11, %s4956_s28 }
 0x41a   : > { %1771 = vrot.lane.b32.xlu0 %v5128_v5, %s4956_s28 }
 0x47d   : > { %v1293_v3 = vpop.xlane.xlu0 %1292 }
 0x47e   : > { %4843 = vrcp.f32 %v1293_v3 }
 0x481   : > { %v1296_v4 = vpop.xlane.xlu1 %1295 }
 0x482   : > { %4845 = vrcp.f32 %v1296_v4 }
 0x485   : > { %v1299_v6 = vpop.xlane.xlu0 %1298 }
 0x486   : > { %4847 = vrcp.f32 %v1299_v6 }
 0x489   : > { %v1302_v8 = vpop.xlane.xlu1 %1301  ;;  %v1616_v15 = vpop.permute.xlu0 %1615 }
 0x48a   : > { %4849 = vrcp.f32 %v1302_v8 }
 0x48b   : > { %v4844_v9 = vpop.eup %4843 }
 0x48c   : > { %v1307_v12 = vmul.f32 %v4844_v9, %v4836_v54 }
 0x48d   : > { %v1694_v19 = vpop.permute.xlu1 %1693  ;;  %v1774_v21 = vpop.permute.xlu0 %1773 }
 0x48e   : > { %4582 = vmatmul.mubr.msk.f32.vlgmr.msra.gmra.mxu1 %vm929_vm2, %v1307_v12 }
 0x48f   : > { %v4846_v13 = vpop.eup %4845  ;;  %4590 = vmatpush3.msra.mxu1 %v1464_v62  ;;  %4591 = vmatprep.mubr.msk.f32.mxu1 %vm4952_vm1, %v4951_v2 }
 0x490   : > { %v1308_v14 = vmul.f32 %v4846_v13, %v4838_v56  ;;  %4599 = vmatprep.subr.mxu1 %v4951_v2 }
 0x491   : > { %v1852_v24 = vpop.permute.xlu1 %1851  ;;  %v1772_v25 = vpop.permute.xlu0 %1771 }
 0x492   : > { %4587 = vmatmul.mubr.msk.f32.vlgmr.msra.gmra.mxu0 %vm929_vm2, %v1308_v14 }
 0x493   : > { %v4848_v16 = vpop.eup %4847  ;;  %4595 = vmatpush3.msra.mxu0 %v1540_v63  ;;  %4596 = vmatprep.mubr.msk.f32.mxu0 %vm4952_vm1, %v4951_v2 }
 0x494   : > { %v1309_v18 = vmul.f32 %v4848_v16, %v4840_v58  ;;  %4604 = vmatprep.subr.mxu0 %v4951_v2 }
 0x495   : > { %v1850_v26 = vpop.permute.xlu1 %1849 }
 0x496   : > { %4592 = vmatmul.mubr.msk.f32.vlgmr.msra.gmra.mxu1 %vm929_vm2, %v1309_v18 }
 0x497   : > { %v4850_v20 = vpop.eup %4849  ;;  %4600 = vmatpush3.xpose.msk.msra.mxu1 %vm929_vm2, %v1618_v0  ;;  %4601 = vmatprep.mubr.msk.f32.mxu1 %vm4952_vm1, %v4951_v2 }
 0x498   : > { %4609 = vmatprep.subr.mxu1 %v4951_v2  ;;  %v1310_v23 = vmul.f32 %v4850_v20, %v4842_v60 }
 0x49a   : > { %4597 = vmatmul.mubr.msk.f32.vlgmr.msra.gmra.mxu0 %vm929_vm2, %v1310_v23  ;;  %4602 = vmatmul.mubr.msk.f32.vlgmr.msra.gmra.mxu1 %vm929_vm2, %v1616_v15 }
 0x49b   : > { %4605 = vmatpush3.xpose.msk.msra.mxu0 %vm929_vm2, %v1696_v1  ;;  %4610 = vmatpush3.xpose.msk.msra.mxu1 %vm929_vm2, %v1774_v21 }
 0x49c   : > { %4606 = vmatprep.mubr.msk.f32.mxu0 %vm4952_vm1, %v4951_v2  ;;  %4611 = vmatprep.mubr.msk.f32.mxu1 %vm4952_vm1, %v4951_v2 }
 0x49d   : > { %4614 = vmatprep.subr.mxu0 %v4951_v2  ;;  %4619 = vmatprep.subr.mxu1 %v4951_v2 }
 0x49e   : > { %4607 = vmatmul.mubr.msk.f32.vlgmr.msra.gmra.mxu0 %vm929_vm2, %v1694_v19  ;;  %4612 = vmatmul.mubr.msk.f32.vlgmr.msra.gmra.mxu1 %vm929_vm2, %v1772_v25 }
 0x49f   : > { %4615 = vmatpush3.xpose.msk.msra.mxu0 %vm929_vm2, %v1852_v24  ;;  %4616 = vmatprep.mubr.msk.f32.mxu0 %vm4952_vm1, %v4951_v2 }
 0x4a0   : > { %4624 = vmatprep.subr.mxu0 %v4951_v2  ;;  %4621 = vmatprep.mubr.msk.f32.mxu1 %vm4952_vm1, %v4951_v2 }
 0x4a2   : > { %4617 = vmatmul.mubr.msk.f32.vlgmr.msra.gmra.mxu0 %vm929_vm2, %v1850_v26 }
 0x4a3   : > { %4626 = vmatprep.mubr.msk.f32.mxu0 %vm4952_vm1, %v4951_v2 }
 0x54e   : > { %v5240_v27 = vpop.f32.mrf.mxu1 }
 0x550   : > { %v4583_v28 = vpop.f32.mrf.mxu1 }
 0x552   : > { %v5242_v30 = vpop.f32.mrf.mxu0 }
 0x554   : > { %v4588_v31 = vpop.f32.mrf.mxu0 }
 0x556   : > { %v5244_v32 = vpop.f32.mrf.mxu1 }
 0x558   : > { %v4593_v33 = vpop.f32.mrf.mxu1 }
 0x55a   : > { %v5246_v34 = vpop.f32.mrf.mxu0  ;;  %v1689_v36 = vpop.f32.mrf.mxu1 }
 0x55b   : > { %v1927_v37 = vmul.f32 0.35355338, %v1689_v36 }
 0x55c   : > { %v4598_v38 = vpop.f32.mrf.mxu0  ;;  %v4603_v39 = vpop.f32.mrf.mxu1 }
 0x55d   : > { %v1931_v40 = vadd.f32 %v5168_v17, %v1927_v37 }
 0x55e   : > { %v1767_v41 = vpop.f32.mrf.mxu0  ;;  %v1845_v42 = vpop.f32.mrf.mxu1 }
 0x55f   : > { %v1928_v43 = vmul.f32 0.35355338, %v1767_v41  ;;  %v1929_v44 = vmul.f32 0.35355338, %v1845_v42  ;;  %v1935_v45 = vsel %vm929_vm2, %v1931_v40, -inf }
 0x560   : > { %1936 = vmax.xlane.f32.xlu0 %v1935_v45  ;;  %v4608_v46 = vpop.f32.mrf.mxu0  ;;  %v4613_v47 = vpop.f32.mrf.mxu1 }
 0x561   : > { %v1933_v48 = vadd.f32 %v5175_v29, %v1929_v44  ;;  %v1932_v49 = vadd.f32 %v5171_v22, %v1928_v43 }
 0x562   : > { %v1923_v50 = vpop.f32.mrf.mxu0 }
 0x563   : > { %v1930_v51 = vmul.f32 0.35355338, %v1923_v50  ;;  %v1941_v52 = vsel %vm929_vm2, %v1933_v48, -inf  ;;  %v1938_v53 = vsel %vm929_vm2, %v1932_v49, -inf }
 0x564   : > { %1942 = vmax.xlane.f32.xlu0 %v1941_v52  ;;  %1939 = vmax.xlane.f32.xlu1 %v1938_v53  ;;  %v4618_v54 = vpop.f32.mrf.mxu0 }
 0x565   : > { %v1934_v55 = vadd.f32 %v5178_v35, %v1930_v51 }
 0x567   : > { %v1944_v56 = vsel %vm929_vm2, %v1934_v55, -inf }
 0x568   : > { %1945 = vmax.xlane.f32.xlu0 %v1944_v56 }
 0x575   : > { %2055 = vrot.lane.b32.xlu1 %v5134_v10, %s4957_s29 }
 0x579   : > { %2131 = vrot.lane.b32.xlu1 %v5128_v5, %s4957_s29 }
 0x57d   : > { %2207 = vrot.lane.b32.xlu1 %v5137_v11, %s4957_s29 }
 0x57e   : > { %1979 = vrot.lane.b32.xlu0 %v5130_v7, %s4957_s29  ;;  %s4966_s29 = smov 24  }
 0x581   : > { %2363 = vrot.lane.b32.xlu1 %v5134_v10, %s4958_s30 }
 0x582   : > { %2285 = vrot.lane.b32.xlu0 %v5130_v7, %s4958_s30 }
 0x5e9   : > { %v1937_v57 = vpop.xlane.xlu0 %1936 }
 0x5ea   : > { %v1947_v58 = vsub.f32 %v1931_v40, %v1937_v57 }
 0x5ec   : > { %v1951_v59 = vmul.f32 1.442695, %v1947_v58 }
 0x5ed   : > { %v1943_v60 = vpop.xlane.xlu0 %1942  ;;  %v1940_v61 = vpop.xlane.xlu1 %1939 }
 0x5ee   : > { %4851 = vpow2.f32 %v1951_v59  ;;  %v1949_v62 = vsub.f32 %v1933_v48, %v1943_v60  ;;  %v1948_v63 = vsub.f32 %v1932_v49, %v1940_v61 }
 0x5f0   : > { %v1955_v0 = vmul.f32 1.442695, %v1949_v62  ;;  %v1953_v1 = vmul.f32 1.442695, %v1948_v63 }
 0x5f1   : > { %v2056_v3 = vpop.permute.xlu1 %2055  ;;  %v1946_v4 = vpop.xlane.xlu0 %1945 }
 0x5f2   : > { %4853 = vpow2.f32 %v1955_v0  ;;  %4625 = vmatpush3.msra.mxu0 %v2056_v3  ;;  %v1950_v16 = vsub.f32 %v1934_v55, %v1946_v4 }
 0x5f3   : > { %4855 = vpow2.f32 %v1953_v1  ;;  %4634 = vmatprep.subr.mxu0 %v4951_v2 }
 0x5f4   : > { %v1957_v18 = vmul.f32 1.442695, %v1950_v16 }
 0x5f5   : > { %v1980_v6 = vpop.permute.xlu0 %1979  ;;  %v2132_v21 = vpop.permute.xlu1 %2131 }
 0x5f6   : > { %4620 = vmatpush3.msra.mxu1 %v1980_v6  ;;  %4857 = vpow2.f32 %v1957_v18 }
 0x5f7   : > { %4629 = vmatprep.subr.mxu1 %v4951_v2 }
 0x5f9   : > { %v2208_v23 = vpop.permute.xlu1 %2207  ;;  %v2286_v24 = vpop.permute.xlu0 %2285 }
 0x5fb   : > { %v4852_v8 = vpop.eup %4851 }
 0x5fc   : > { %v1959_v9 = vsel %vm929_vm2, %v4852_v8, 0.0 }
 0x5fd   : > { %1960 = vadd.xlane.f32.xlu0 %v1959_v9  ;;  %v2364_v26 = vpop.permute.xlu1 %2363 }
 0x5ff   : > { %v4854_v12 = vpop.eup %4853 }
 0x600   : > { %v4856_v13 = vpop.eup %4855  ;;  %v1965_v14 = vsel %vm929_vm2, %v4854_v12, 0.0 }
 0x601   : > { %v1962_v15 = vsel %vm929_vm2, %v4856_v13, 0.0  ;;  %1966 = vadd.xlane.f32.xlu0 %v1965_v14 }
 0x602   : > { %1963 = vadd.xlane.f32.xlu1 %v1962_v15 }
 0x603   : > { %v4858_v19 = vpop.eup %4857 }
 0x604   : > { %v1968_v20 = vsel %vm929_vm2, %v4858_v19, 0.0 }
 0x613   : > { %2361 = vrot.lane.b32.xlu1 %v5134_v10, %s4959_s26 }
 0x617   : > { %2519 = vrot.lane.b32.xlu1 %v5137_v11, %s4958_s30  ;;  %2283 = vrot.lane.b32.xlu0 %v5130_v7, %s4959_s26 }
 0x61b   : > { %2441 = vrot.lane.b32.xlu0 %v5128_v5, %s4958_s30 }
 0x61f   : > { %2439 = vrot.lane.b32.xlu0 %v5128_v5, %s4959_s26 }
 0x63b   : > { %1969 = vadd.xlane.f32.xlu1 %v1968_v20 }
 0x64c   : > { %2517 = vrot.lane.b32.xlu1 %v5137_v11, %s4959_s26 }
 0x686   : > { %v1961_v25 = vpop.xlane.xlu0 %1960 }
 0x687   : > { %4859 = vrcp.f32 %v1961_v25 }
 0x68a   : > { %v1967_v28 = vpop.xlane.xlu0 %1966 }
 0x68b   : > { %v1964_v31 = vpop.xlane.xlu1 %1963  ;;  %4861 = vrcp.f32 %v1967_v28 }
 0x68c   : > { %4863 = vrcp.f32 %v1964_v31 }
 0x68e   : > { %v2284_v37 = vpop.permute.xlu0 %2283 }
 0x68f   : > { %v2362_v44 = vpop.permute.xlu1 %2361 }
 0x692   : > { %v2442_v42 = vpop.permute.xlu0 %2441 }
 0x693   : > { %v2520_v45 = vpop.permute.xlu1 %2519 }
 0x694   : > { %v4860_v33 = vpop.eup %4859 }
 0x695   : > { %v1975_v36 = vmul.f32 %v4860_v33, %v4852_v8 }
 0x696   : > { %v2440_v43 = vpop.permute.xlu0 %2439 }
 0x697   : > { %4622 = vmatmul.mubr.msk.f32.vlgmr.msra.gmra.mxu1 %vm929_vm2, %v1975_v36 }
 0x698   : > { %v4862_v38 = vpop.eup %4861  ;;  %4630 = vmatpush3.msra.mxu1 %v2132_v21  ;;  %4631 = vmatprep.mubr.msk.f32.mxu1 %vm4952_vm1, %v4951_v2 }
 0x699   : > { %v4864_v39 = vpop.eup %4863  ;;  %4639 = vmatprep.subr.mxu1 %v4951_v2  ;;  %v1977_v40 = vmul.f32 %v4862_v38, %v4854_v12 }
 0x69a   : > { %v1976_v41 = vmul.f32 %v4864_v39, %v4856_v13 }
 0x69b   : > { %4632 = vmatmul.mubr.msk.f32.vlgmr.msra.gmra.mxu1 %vm929_vm2, %v1977_v40 }
 0x69c   : > { %4627 = vmatmul.mubr.msk.f32.vlgmr.msra.gmra.mxu0 %vm929_vm2, %v1976_v41  ;;  %4640 = vmatpush3.xpose.msk.msra.mxu1 %vm929_vm2, %v2286_v24 }
 0x69d   : > { %4635 = vmatpush3.msra.mxu0 %v2208_v23  ;;  %4641 = vmatprep.mubr.msk.f32.mxu1 %vm4952_vm1, %v4951_v2 }
 0x69e   : > { %4649 = vmatprep.subr.mxu1 %v4951_v2  ;;  %4636 = vmatprep.mubr.msk.f32.mxu0 %vm4952_vm1, %v4951_v2 }
 0x69f   : > { %4642 = vmatmul.mubr.msk.f32.vlgmr.msra.gmra.mxu1 %vm929_vm2, %v2284_v37  ;;  %4644 = vmatprep.subr.mxu0 %v4951_v2 }
 0x6a0   : > { %4650 = vmatpush3.xpose.msk.msra.mxu1 %vm929_vm2, %v2442_v42  ;;  %4651 = vmatprep.mubr.msk.f32.mxu1 %vm4952_vm1, %v4951_v2 }
 0x6a1   : > { %4659 = vmatprep.subr.mxu1 %v4951_v2 }
 0x6a3   : > { %4652 = vmatmul.mubr.msk.f32.vlgmr.msra.gmra.mxu1 %vm929_vm2, %v2440_v43 }
 0x6a4   : > { %4661 = vmatprep.mubr.msk.f32.mxu1 %vm4952_vm1, %v4951_v2 }
 0x6c4   : > { %v1970_v46 = vpop.xlane.xlu1 %1969 }
 0x6c5   : > { %4865 = vrcp.f32 %v1970_v46 }
 0x6c8   : > { %v2518_v49 = vpop.permute.xlu1 %2517 }
 0x6d2   : > { %v4866_v47 = vpop.eup %4865 }
 0x6d3   : > { %v1978_v48 = vmul.f32 %v4866_v47, %v4858_v19 }
 0x6d5   : > { %4637 = vmatmul.mubr.msk.f32.vlgmr.msra.gmra.mxu0 %vm929_vm2, %v1978_v48 }
 0x6d6   : > { %4645 = vmatpush3.xpose.msk.msra.mxu0 %vm929_vm2, %v2364_v26  ;;  %4646 = vmatprep.mubr.msk.f32.mxu0 %vm4952_vm1, %v4951_v2 }
 0x6d7   : > { %4654 = vmatprep.subr.mxu0 %v4951_v2 }
 0x6d9   : > { %4647 = vmatmul.mubr.msk.f32.vlgmr.msra.gmra.mxu0 %vm929_vm2, %v2362_v44 }
 0x6da   : > { %4655 = vmatpush3.xpose.msk.msra.mxu0 %vm929_vm2, %v2520_v45  ;;  %4656 = vmatprep.mubr.msk.f32.mxu0 %vm4952_vm1, %v4951_v2 }
 0x6db   : > { %4664 = vmatprep.subr.mxu0 %v4951_v2 }
 0x6dd   : > { %4657 = vmatmul.mubr.msk.f32.vlgmr.msra.gmra.mxu0 %vm929_vm2, %v2518_v49 }
 0x6de   : > { %4666 = vmatprep.mubr.msk.f32.mxu0 %vm4952_vm1, %v4951_v2 }
 0x757   : > { %v5312_v50 = vpop.f32.mrf.mxu1 }
 0x759   : > { %v4623_v51 = vpop.f32.mrf.mxu1 }
 0x75b   : > { %v5314_v52 = vpop.f32.mrf.mxu1 }
 0x75c   : > { %v5316_v53 = vpop.f32.mrf.mxu0 }
 0x75d   : > { %v4787_v54 = vpack.i.bf16 %v5316_v53, %v5312_v50  ;;  %v4633_v55 = vpop.f32.mrf.mxu1 }
 0x75e   : > { %v4628_v56 = vpop.f32.mrf.mxu0 }
 0x75f   : > { %v2357_v57 = vpop.f32.mrf.mxu1 }
 0x760   : > { %v2595_v58 = vmul.f32 0.35355338, %v2357_v57 }
 0x761   : > { %v4643_v59 = vpop.f32.mrf.mxu1 }
 0x762   : > { %v2599_v60 = vadd.f32 %v5168_v17, %v2595_v58 }
 0x763   : > { %v2513_v61 = vpop.f32.mrf.mxu1 }
 0x764   : > { %v2597_v62 = vmul.f32 0.35355338, %v2513_v61  ;;  %v2603_v63 = vsel %vm929_vm2, %v2599_v60, -inf }
 0x765   : > { %2604 = vmax.xlane.f32.xlu0 %v2603_v63  ;;  %v4653_v0 = vpop.f32.mrf.mxu1 }
 0x766   : > { %v2601_v1 = vadd.f32 %v5175_v29, %v2597_v62 }
 0x768   : > { %v2609_v3 = vsel %vm929_vm2, %v2601_v1, -inf }
 0x769   : > { %2610 = vmax.xlane.f32.xlu0 %v2609_v3 }
 0x795   : > { %v5324_v4 = vpop.f32.mrf.mxu0 }
 0x796   : > { %v4792_v6 = vpack.i.bf16 %v5324_v4, %v5314_v52 }
 0x797   : > { %v4638_v8 = vpop.f32.mrf.mxu0 }
 0x799   : > { %v2435_v9 = vpop.f32.mrf.mxu0 }
 0x79a   : > { %v2596_v12 = vmul.f32 0.35355338, %v2435_v9 }
 0x79b   : > { %v4648_v13 = vpop.f32.mrf.mxu0 }
 0x79c   : > { %v2600_v14 = vadd.f32 %v5171_v22, %v2596_v12 }
 0x79d   : > { %v2591_v15 = vpop.f32.mrf.mxu0 }
 0x79e   : > { %v2598_v16 = vmul.f32 0.35355338, %v2591_v15  ;;  %v2606_v18 = vsel %vm929_vm2, %v2600_v14, -inf }
 0x79f   : > { %2607 = vmax.xlane.f32.xlu1 %v2606_v18  ;;  %v4658_v19 = vpop.f32.mrf.mxu0 }
 0x7a0   : > { %v2602_v20 = vadd.f32 %v5178_v35, %v2598_v16 }
 0x7a2   : > { %v2612_v21 = vsel %vm929_vm2, %v2602_v20, -inf }
 0x7a3   : > { %2613 = vmax.xlane.f32.xlu0 %v2612_v21 }
 0x7b0   : > { %2723 = vrot.lane.b32.xlu1 %v5134_v10, %s4960_s17 }
 0x7b4   : > { %2799 = vrot.lane.b32.xlu1 %v5128_v5, %s4960_s17 }
 0x7b8   : > { %2875 = vrot.lane.b32.xlu1 %v5137_v11, %s4960_s17 }
 0x7b9   : > { %2647 = vrot.lane.b32.xlu0 %v5130_v7, %s4960_s17 }
 0x7bc   : > { %3031 = vrot.lane.b32.xlu1 %v5134_v10, %s4961_s18 }
 0x7bd   : > { %2953 = vrot.lane.b32.xlu0 %v5130_v7, %s4961_s18 }
 0x7ee   : > { %v2605_v23 = vpop.xlane.xlu0 %2604 }
 0x7ef   : > { %v2615_v24 = vsub.f32 %v2599_v60, %v2605_v23 }
 0x7f1   : > { %v2619_v25 = vmul.f32 1.442695, %v2615_v24 }
 0x7f2   : > { %v2611_v26 = vpop.xlane.xlu0 %2610 }
 0x7f3   : > { %4867 = vpow2.f32 %v2619_v25  ;;  %v2617_v28 = vsub.f32 %v2601_v1, %v2611_v26 }
 0x7f5   : > { %v2623_v31 = vmul.f32 1.442695, %v2617_v28 }
 0x7f7   : > { %4869 = vpow2.f32 %v2623_v31 }
 0x800   : > { %v4868_v33 = vpop.eup %4867 }
 0x801   : > { %v2627_v36 = vsel %vm929_vm2, %v4868_v33, 0.0 }
 0x802   : > { %2628 = vadd.xlane.f32.xlu0 %v2627_v36 }
 0x804   : > { %v4870_v37 = vpop.eup %4869 }
 0x805   : > { %v2633_v38 = vsel %vm929_vm2, %v4870_v37, 0.0 }
 0x806   : > { %2634 = vadd.xlane.f32.xlu0 %v2633_v38 }
 0x81c   : > { %2951 = vrot.lane.b32.xlu0 %v5130_v7, %s4962_s19 }
 0x820   : > { %3109 = vrot.lane.b32.xlu0 %v5128_v5, %s4961_s18 }
 0x824   : > { %3107 = vrot.lane.b32.xlu0 %v5128_v5, %s4962_s19 }
 0x828   : > { %v2608_v39 = vpop.xlane.xlu1 %2607 }
 0x829   : > { %v2616_v40 = vsub.f32 %v2600_v14, %v2608_v39 }
 0x82b   : > { %v2621_v41 = vmul.f32 1.442695, %v2616_v40 }
 0x82c   : > { %v2724_v42 = vpop.permute.xlu1 %2723  ;;  %v2614_v43 = vpop.xlane.xlu0 %2613 }
 0x82d   : > { %4871 = vpow2.f32 %v2621_v41  ;;  %4665 = vmatpush3.msra.mxu0 %v2724_v42  ;;  %v2618_v47 = vsub.f32 %v2602_v20, %v2614_v43 }
 0x82e   : > { %4674 = vmatprep.subr.mxu0 %v4951_v2 }
 0x82f   : > { %v2625_v48 = vmul.f32 1.442695, %v2618_v47 }
 0x830   : > { %v2648_v44 = vpop.permute.xlu0 %2647  ;;  %v2800_v61 = vpop.permute.xlu1 %2799 }
 0x831   : > { %4660 = vmatpush3.msra.mxu1 %v2648_v44  ;;  %4873 = vpow2.f32 %v2625_v48 }
 0x832   : > { %4669 = vmatprep.subr.mxu1 %v4951_v2 }
 0x834   : > { %v2954_v55 = vpop.permute.xlu0 %2953  ;;  %v2876_v3 = vpop.permute.xlu1 %2875 }
 0x838   : > { %v3032_v8 = vpop.permute.xlu1 %3031 }
 0x83a   : > { %v4872_v45 = vpop.eup %4871 }
 0x83b   : > { %v2630_v46 = vsel %vm929_vm2, %v4872_v45, 0.0 }
 0x83c   : > { %2631 = vadd.xlane.f32.xlu1 %v2630_v46 }
 0x83e   : > { %v4874_v49 = vpop.eup %4873 }
 0x83f   : > { %v2636_v51 = vsel %vm929_vm2, %v4874_v49, 0.0 }
 0x84d   : > { %3029 = vrot.lane.b32.xlu1 %v5134_v10, %s4962_s19 }
 0x851   : > { %3187 = vrot.lane.b32.xlu1 %v5137_v11, %s4961_s18 }
 0x875   : > { %2637 = vadd.xlane.f32.xlu1 %v2636_v51 }
 0x886   : > { %3185 = vrot.lane.b32.xlu1 %v5137_v11, %s4962_s19 }
 0x88b   : > { %v2629_v56 = vpop.xlane.xlu0 %2628 }
 0x88c   : > { %4875 = vrcp.f32 %v2629_v56 }
 0x88f   : > { %v2635_v57 = vpop.xlane.xlu0 %2634 }
 0x890   : > { %4877 = vrcp.f32 %v2635_v57 }
 0x893   : > { %v2952_v60 = vpop.permute.xlu0 %2951 }
 0x897   : > { %v3110_v0 = vpop.permute.xlu0 %3109 }
 0x899   : > { %v4876_v58 = vpop.eup %4875 }
 0x89a   : > { %v2643_v59 = vmul.f32 %v4876_v58, %v4868_v33 }
 0x89b   : > { %v3108_v1 = vpop.permute.xlu0 %3107 }
 0x89c   : > { %4662 = vmatmul.mubr.msk.f32.vlgmr.msra.gmra.mxu1 %vm929_vm2, %v2643_v59 }
 0x89d   : > { %v4878_v62 = vpop.eup %4877  ;;  %4670 = vmatpush3.msra.mxu1 %v2800_v61  ;;  %4671 = vmatprep.mubr.msk.f32.mxu1 %vm4952_vm1, %v4951_v2 }
 0x89e   : > { %4679 = vmatprep.subr.mxu1 %v4951_v2  ;;  %v2645_v63 = vmul.f32 %v4878_v62, %v4870_v37 }
 0x8a0   : > { %4672 = vmatmul.mubr.msk.f32.vlgmr.msra.gmra.mxu1 %vm929_vm2, %v2645_v63 }
 0x8a1   : > { %4680 = vmatpush3.xpose.msk.msra.mxu1 %vm929_vm2, %v2954_v55  ;;  %4681 = vmatprep.mubr.msk.f32.mxu1 %vm4952_vm1, %v4951_v2 }
 0x8a2   : > { %4689 = vmatprep.subr.mxu1 %v4951_v2 }
 0x8a4   : > { %4682 = vmatmul.mubr.msk.f32.vlgmr.msra.gmra.mxu1 %vm929_vm2, %v2952_v60 }
 0x8a5   : > { %4690 = vmatpush3.xpose.msk.msra.mxu1 %vm929_vm2, %v3110_v0  ;;  %4691 = vmatprep.mubr.msk.f32.mxu1 %vm4952_vm1, %v4951_v2 }
 0x8a6   : > { %4699 = vmatprep.subr.mxu1 %v4951_v2 }
 0x8a8   : > { %4692 = vmatmul.mubr.msk.f32.vlgmr.msra.gmra.mxu1 %vm929_vm2, %v3108_v1 }
 0x8a9   : > { %4701 = vmatprep.mubr.msk.f32.mxu1 %vm4952_vm1, %v4951_v2 }
 0x8c5   : > { %v2632_v9 = vpop.xlane.xlu1 %2631 }
 0x8c6   : > { %4879 = vrcp.f32 %v2632_v9 }
 0x8c9   : > { %v3030_v14 = vpop.permute.xlu1 %3029 }
 0x8cd   : > { %v3188_v15 = vpop.permute.xlu1 %3187 }
 0x8d3   : > { %v4880_v12 = vpop.eup %4879 }
 0x8d4   : > { %v2644_v13 = vmul.f32 %v4880_v12, %v4872_v45 }
 0x8d6   : > { %4667 = vmatmul.mubr.msk.f32.vlgmr.msra.gmra.mxu0 %vm929_vm2, %v2644_v13 }
 0x8d7   : > { %4675 = vmatpush3.msra.mxu0 %v2876_v3  ;;  %4676 = vmatprep.mubr.msk.f32.mxu0 %vm4952_vm1, %v4951_v2 }
 0x8d8   : > { %4684 = vmatprep.subr.mxu0 %v4951_v2 }
 0x8fe   : > { %v2638_v16 = vpop.xlane.xlu1 %2637 }
 0x8ff   : > { %4881 = vrcp.f32 %v2638_v16 }
 0x902   : > { %v3186_v20 = vpop.permute.xlu1 %3185 }
 0x90c   : > { %v4882_v18 = vpop.eup %4881 }
 0x90d   : > { %v2646_v19 = vmul.f32 %v4882_v18, %v4874_v49 }
 0x90f   : > { %4677 = vmatmul.mubr.msk.f32.vlgmr.msra.gmra.mxu0 %vm929_vm2, %v2646_v19 }
 0x910   : > { %4685 = vmatpush3.xpose.msk.msra.mxu0 %vm929_vm2, %v3032_v8  ;;  %4686 = vmatprep.mubr.msk.f32.mxu0 %vm4952_vm1, %v4951_v2 }
 0x911   : > { %4694 = vmatprep.subr.mxu0 %v4951_v2 }
 0x913   : > { %4687 = vmatmul.mubr.msk.f32.vlgmr.msra.gmra.mxu0 %vm929_vm2, %v3030_v14 }
 0x914   : > { %4695 = vmatpush3.xpose.msk.msra.mxu0 %vm929_vm2, %v3188_v15  ;;  %4696 = vmatprep.mubr.msk.f32.mxu0 %vm4952_vm1, %v4951_v2 }
 0x915   : > { %4704 = vmatprep.subr.mxu0 %v4951_v2 }
 0x917   : > { %4697 = vmatmul.mubr.msk.f32.vlgmr.msra.gmra.mxu0 %vm929_vm2, %v3186_v20 }
 0x918   : > { %4706 = vmatprep.mubr.msk.f32.mxu0 %vm4952_vm1, %v4951_v2 }
 0x95c   : > { %v2719_v21 = vpop.f32.mrf.mxu1 }
 0x95e   : > { %v4663_v23 = vpop.f32.mrf.mxu1 }
 0x960   : > { %v5388_v24 = vpop.f32.mrf.mxu1 }
 0x962   : > { %v4673_v25 = vpop.f32.mrf.mxu1 }
 0x964   : > { %v3025_v26 = vpop.f32.mrf.mxu1 }
 0x965   : > { %v3263_v28 = vmul.f32 0.35355338, %v3025_v26 }
 0x966   : > { %v4683_v31 = vpop.f32.mrf.mxu1 }
 0x967   : > { %v3267_v33 = vadd.f32 %v5168_v17, %v3263_v28 }
 0x968   : > { %v3181_v36 = vpop.f32.mrf.mxu1 }
 0x969   : > { %v3265_v37 = vmul.f32 0.35355338, %v3181_v36  ;;  %v3271_v38 = vsel %vm929_vm2, %v3267_v33, -inf }
 0x96a   : > { %3272 = vmax.xlane.f32.xlu0 %v3271_v38  ;;  %v4693_v39 = vpop.f32.mrf.mxu1 }
 0x96b   : > { %v3269_v40 = vadd.f32 %v5175_v29, %v3265_v37  ;;  %v4819_v39 = vld [vmem:[%s5558_s6 + $0x8] sm:$0xff]  }
 0x96d   : > { %v3277_v41 = vsel %vm929_vm2, %v3269_v40, -inf }
 0x96e   : > { %3278 = vmax.xlane.f32.xlu0 %v3277_v41 }
 0x996   : > { %v2795_v42 = vpop.f32.mrf.mxu0 }
 0x997   : > { %v4797_v43 = vpack.i.bf16 %v2795_v42, %v2719_v21  ;;  %v4820_v42 = vld [vmem:[%s5558_s6] sm:$0xff]  }
 0x998   : > { %v4668_v44 = vpop.f32.mrf.mxu0 }
 0x9cf   : > { %v5394_v45 = vpop.f32.mrf.mxu0 }
 0x9d0   : > { %v4802_v20 = vpack.i.bf16 %v5394_v45, %v5388_v24 }
 0x9d1   : > { %v4678_v46 = vpop.f32.mrf.mxu0 }
 0x9d3   : > { %v3103_v47 = vpop.f32.mrf.mxu0 }
 0x9d4   : > { %v3264_v48 = vmul.f32 0.35355338, %v3103_v47 }
 0x9d5   : > { %v4688_v17 = vpop.f32.mrf.mxu0 }
 0x9d6   : > { %v3268_v49 = vadd.f32 %v5171_v22, %v3264_v48 }
 0x9d7   : > { %v3259_v51 = vpop.f32.mrf.mxu0 }
 0x9d8   : > { %v3266_v55 = vmul.f32 0.35355338, %v3259_v51  ;;  %v3274_v56 = vsel %vm929_vm2, %v3268_v49, -inf }
 0x9d9   : > { %3275 = vmax.xlane.f32.xlu1 %v3274_v56  ;;  %v4698_v29 = vpop.f32.mrf.mxu0 }
 0x9da   : > { %v3270_v57 = vadd.f32 %v5178_v35, %v3266_v55 }
 0x9dc   : > { %v3280_v58 = vsel %vm929_vm2, %v3270_v57, -inf }
 0x9dd   : > { %3281 = vmax.xlane.f32.xlu0 %v3280_v58 }
 0x9f3   : > { %v3273_v59 = vpop.xlane.xlu0 %3272 }
 0x9f4   : > { %v3283_v60 = vsub.f32 %v3267_v33, %v3273_v59 }
 0x9f6   : > { %v3287_v61 = vmul.f32 1.442695, %v3283_v60 }
 0x9f7   : > { %v3279_v62 = vpop.xlane.xlu0 %3278 }
 0x9f8   : > { %4883 = vpow2.f32 %v3287_v61  ;;  %v3285_v63 = vsub.f32 %v3269_v40, %v3279_v62 }
 0x9fa   : > { %v3291_v0 = vmul.f32 1.442695, %v3285_v63 }
 0x9fc   : > { %4885 = vpow2.f32 %v3291_v0 }
 0xa05   : > { %v4884_v22 = vpop.eup %4883 }
 0xa06   : > { %v3295_v1 = vsel %vm929_vm2, %v4884_v22, 0.0 }
 0xa07   : > { %3296 = vadd.xlane.f32.xlu0 %v3295_v1 }
 0xa09   : > { %v4886_v3 = vpop.eup %4885 }
 0xa0a   : > { %v3301_v8 = vsel %vm929_vm2, %v4886_v3, 0.0 }
 0xa0b   : > { %3302 = vadd.xlane.f32.xlu0 %v3301_v8 }
 0xa21   : > { %3315 = vrot.lane.b32.xlu0 %v5130_v7, %s4963_s20 }
 0xa25   : > { %4788 = vrot.lane.b32.xlu0 %v4787_v54, %s4964_s21 }
 0xa29   : > { %4798 = vrot.lane.b32.xlu0 %v4797_v43, %s4965_s25 }
 0xa62   : > { %v3276_v35 = vpop.xlane.xlu1 %3275 }
 0xa63   : > { %v3284_v9 = vsub.f32 %v3268_v49, %v3276_v35 }
 0xa65   : > { %v3289_v12 = vmul.f32 1.442695, %v3284_v9 }
 0xa66   : > { %v3282_v7 = vpop.xlane.xlu0 %3281 }
 0xa67   : > { %4887 = vpow2.f32 %v3289_v12  ;;  %v3286_v54 = vsub.f32 %v3270_v57, %v3282_v7 }
 0xa69   : > { %v3293_v16 = vmul.f32 1.442695, %v3286_v54 }
 0xa74   : > { %v4888_v13 = vpop.eup %4887 }
 0xa75   : > { %v3298_v14 = vsel %vm929_vm2, %v4888_v13, 0.0 }
 0xa76   : > { %3299 = vadd.xlane.f32.xlu1 %v3298_v14 }
 0xa87   : > { %3391 = vrot.lane.b32.xlu1 %v5134_v10, %s4963_s20 }
 0xa8b   : > { %3467 = vrot.lane.b32.xlu1 %v5128_v5, %s4963_s20 }
 0xa90   : > { %v3297_v50 = vpop.xlane.xlu0 %3296 }
 0xa91   : > { %4889 = vrcp.f32 %v3297_v50 }
 0xa92   : > { %4891 = vpow2.f32 %v3293_v16 }
 0xa94   : > { %v3303_v53 = vpop.xlane.xlu0 %3302 }
 0xa95   : > { %4893 = vrcp.f32 %v3303_v53 }
 0xa98   : > { %v3316_v15 = vpop.permute.xlu0 %3315 }
 0xa99   : > { %4700 = vmatpush3.msra.mxu1 %v3316_v15 }
 0xa9a   : > { %4709 = vmatprep.subr.mxu1 %v4951_v2 }
 0xa9c   : > { %v4789_v46 = vpop.permute.xlu0 %4788 }
 0xa9d   : > { %v4791_v48 = vunpack.i.h.bf16 %v4789_v46  ;;  %v4790_v17 = vunpack.i.l.bf16 %v4789_v46 }
 0xa9e   : > { %v4890_v18 = vpop.eup %4889 }
 0xa9f   : > { %v3311_v19 = vmul.f32 %v4890_v18, %v4884_v22  ;;  %v4892_v10 = vpop.eup %4891  ;;  %v3668_v56 = vsel %vm929_vm2, %v5242_v30, %v4791_v48  ;;  %v3667_v29 = vsel %vm929_vm2, %v5240_v27, %v4790_v17 }
 0xaa0   : > { %v3304_v5 = vsel %vm929_vm2, %v4892_v10, 0.0  ;;  %v4799_v47 = vpop.permute.xlu0 %4798 }
 0xaa1   : > { %4702 = vmatmul.mubr.msk.f32.vlgmr.msra.gmra.mxu1 %vm929_vm2, %v3311_v19  ;;  %v4801_v49 = vunpack.i.h.bf16 %v4799_v47  ;;  %v4800_v51 = vunpack.i.l.bf16 %v4799_v47 }
 0xaa2   : > { %4711 = vmatprep.mubr.msk.f32.mxu1 %vm4952_vm1, %v4951_v2  ;;  %v4894_v25 = vpop.eup %4893 }
 0xaa3   : > { %v3672_v59 = vsel %vm3671_vm3, %v3667_v29, %v4800_v51  ;;  %v3673_v60 = vsel %vm3671_vm3, %v3668_v56, %v4801_v49 }
 0xaaf   : > { %3305 = vadd.xlane.f32.xlu1 %v3304_v5 }
 0xac0   : > { %3543 = vrot.lane.b32.xlu1 %v5137_v11, %s4963_s20  ;;  %v3313_v11 = vmul.f32 %v4894_v25, %v4886_v3 }
 0xac4   : > { %4793 = vrot.lane.b32.xlu1 %v4792_v6, %s4964_s21 }
 0xac8   : > { %4803 = vrot.lane.b32.xlu1 %v4802_v20, %s4965_s25 }
 0xaff   : > { %v3300_v21 = vpop.xlane.xlu1 %3299 }
 0xb00   : > { %4895 = vrcp.f32 %v3300_v21 }
 0xb03   : > { %v3392_v23 = vpop.permute.xlu1 %3391 }
 0xb04   : > { %4705 = vmatpush3.msra.mxu0 %v3392_v23 }
 0xb05   : > { %4714 = vmatprep.subr.mxu0 %v4951_v2 }
 0xb07   : > { %v3468_v26 = vpop.permute.xlu1 %3467 }
 0xb08   : > { %4710 = vmatpush3.msra.mxu1 %v3468_v26  ;;  %v4924_v26 = vld [vmem:[%s5103_s0 + $0x10] sm:$0xff] }
 0xb09   : > { %4712 = vmatmul.mubr.msk.f32.vlgmr.msra.gmra.mxu1 %vm929_vm2, %v3313_v11  ;;  %4719 = vmatprep.subr.bf16.mxu1 %v4819_v39 }
 0xb0a   : > { %4720 = vmatpush3.bf16.msra.mxu1 %v4819_v39 }
 0xb0b   : > { %4721 = vmatprep.subr.bf16.mxu1 %v4820_v42 }
 0xb0d   : > { %v4896_v52 = vpop.eup %4895 }
 0xb0e   : > { %v3312_v4 = vmul.f32 %v4896_v52, %v4888_v13  ;;  %4722 = vmatpush3.bf16.msra.mxu1 %v4820_v42  ;;  %v4925_v52 = vld [vmem:[%s5103_s0 + $0x8] sm:$0xff] }
 0xb10   : > { %4707 = vmatmul.mubr.msk.f32.vlgmr.msra.gmra.mxu0 %vm929_vm2, %v3312_v4 }
 0xb11   : > { %4716 = vmatprep.mubr.msk.f32.mxu0 %vm4952_vm1, %v4951_v2 }
 0xb38   : > { %v3306_v6 = vpop.xlane.xlu1 %3305 }
 0xb39   : > { %4897 = vrcp.f32 %v3306_v6 }
 0xb3c   : > { %v3544_v24 = vpop.permute.xlu1 %3543 }
 0xb3d   : > { %4715 = vmatpush3.msra.mxu0 %v3544_v24 }
 0xb40   : > { %v4794_v0 = vpop.permute.xlu1 %4793 }
 0xb41   : > { %v4796_v1 = vunpack.i.h.bf16 %v4794_v0  ;;  %v4795_v30 = vunpack.i.l.bf16 %v4794_v0 }
 0xb43   : > { %v3670_v35 = vsel %vm929_vm2, %v5246_v34, %v4796_v1  ;;  %v3669_v9 = vsel %vm929_vm2, %v5244_v32, %v4795_v30  ;;  %v4446_v32 = vld [vmem:[%s5559_s7] ss:$0 sm:$0xff] }
 0xb44   : > { %v4804_v22 = vpop.permute.xlu1 %4803 }
 0xb45   : > { %v4806_v3 = vunpack.i.h.bf16 %v4804_v22  ;;  %v4805_v8 = vunpack.i.l.bf16 %v4804_v22 }
 0xb46   : > { %v4898_v28 = vpop.eup %4897 }
 0xb47   : > { %v3314_v31 = vmul.f32 %v4898_v28, %v4892_v10  ;;  %v3674_v14 = vsel %vm3671_vm3, %v3669_v9, %v4805_v8  ;;  %v3675_v7 = vsel %vm3671_vm3, %v3670_v35, %v4806_v3  ;;  %v4923_v10 = vld [vmem:[%s5103_s0] sm:$0xff]  ;;  %v4926_v28 = vld [vmem:[%s5103_s0 + $0x18] sm:$0xff] }
 0xb49   : > { %4717 = vmatmul.mubr.msk.f32.vlgmr.msra.gmra.mxu0 %vm929_vm2, %v3314_v31 }
 0xb61   : > { %v3387_v33 = vpop.f32.mrf.mxu1 }
 0xb63   : > { %v4703_v36 = vpop.f32.mrf.mxu1 }
 0xbc9   : > { %v3539_v37 = vpop.f32.mrf.mxu1 }
 0xbcb   : > { %v4713_v38 = vpop.f32.mrf.mxu1 }
 0xbd0   : > { %v3463_v40 = vpop.f32.mrf.mxu0 }
 0xbd1   : > { %v4807_v2 = vpack.i.bf16 %v3463_v40, %v3387_v33 }
 0xbd2   : > { %v4708_v41 = vpop.f32.mrf.mxu0 }
 0xbd3   : > { %4808 = vrot.lane.b32.xlu0 %v4807_v2, %s4966_s29 }
 0xc09   : > { %v3615_v43 = vpop.f32.mrf.mxu0 }
 0xc0a   : > { %v4812_v44 = vpack.i.bf16 %v3615_v43, %v3539_v37 }
 0xc0b   : > { %v4718_v45 = vpop.f32.mrf.mxu0 }
 0xc0c   : > { %4813 = vrot.lane.b32.xlu1 %v4812_v44, %s4966_s29 }
 0xc45   : > { %v4809_v55 = vpop.permute.xlu0 %4808 }
 0xc46   : > { %v4811_v57 = vunpack.i.h.bf16 %v4809_v55  ;;  %v4810_v58 = vunpack.i.l.bf16 %v4809_v55 }
 0xc48   : > { %v3678_v61 = vsel %vm3676_vm4, %v3673_v60, %v4811_v57  ;;  %v3677_v62 = vsel %vm3676_vm4, %v3672_v59, %v4810_v58  ;;  %v4821_v57 = vld [vmem:[%s5562_s10 + $0x8] sm:$0xff]   ;;  %v4822_v58 = vld [vmem:[%s5562_s10] sm:$0xff]  }
 0xc49   : > { %v3681_v63 = vpack.c.bf16 %v3678_v61, %v3677_v62  ;;  %4727 = vmatprep.subr.bf16.mxu0 %v4821_v57 }
 0xc4a   : > { %4728 = vmatpush3.bf16.msra.mxu0 %v4821_v57 }
 0xc4b   : > { %4723 = vmatprep.mubr.msk.bf16.mxu1 %vm759_vm0, %v3681_v63  ;;  %4729 = vmatprep.subr.bf16.mxu0 %v4822_v58 }
 0xc4e   : > { %4730 = vmatpush3.bf16.msra.mxu0 %v4822_v58 }
 0xc7e   : > { %v4814_v27 = vpop.permute.xlu1 %4813 }
 0xc7f   : > { %v4816_v12 = vunpack.i.h.bf16 %v4814_v27  ;;  %v4815_v13 = vunpack.i.l.bf16 %v4814_v27 }
 0xc81   : > { %v3680_v50 = vsel %vm3676_vm4, %v3675_v7, %v4816_v12  ;;  %v3679_v53 = vsel %vm3676_vm4, %v3674_v14, %v4815_v13  ;;  %v4451_v12 = vld [vmem:[%s5560_s8] ss:$0 sm:$0xff] }
 0xc82   : > { %v3682_v54 = vpack.c.bf16 %v3680_v50, %v3679_v53 }
 0xc84   : > { %4724 = vmatmul.mubr.msk.bf16.vlgmr.msra.gmra.mxu1 %vm759_vm0, %v3682_v54  ;;  %v4452_v54 = vld [vmem:[%s5561_s9] ss:$0 sm:$0xff] }
 0xd44   : > { %v4725_v34 = vpop.f32.mrf.mxu1 }
 0xd45   : > { %v3755_v16 = vadd.f32 %v4725_v34, %v4446_v32 }
 0xd46   : > { %v3746_v15 = vpop.f32.mrf.mxu1 }
 0xd47   : > { %v3747_v18 = vadd.f32 %v4446_v32, %v3746_v15  ;;  %v3763_v11 = vadd.f32 %v4924_v26, %v3755_v16  ;;  %v4824_v26 = vld [vmem:[%s5564_s12 + $0x10] sm:$0xff]  }
 0xd48   : > { %v4726_v19 = vpop.f32.mrf.mxu1 }
 0xd49   : > { %v3761_v5 = vadd.f32 %v4923_v10, %v3747_v18  ;;  %v3758_v21 = vadd.f32 %v4726_v19, %v4446_v32  ;;  %v3773_v24 = vsel %vm759_vm0, %v3763_v11, 0.0 }
 0xd4a   : > { %v3749_v20 = vpop.f32.mrf.mxu1 }
 0xd4b   : > { %v3750_v23 = vadd.f32 %v4446_v32, %v3749_v20  ;;  %v3767_v25 = vsel %vm759_vm0, %v3761_v5, 0.0  ;;  %v3764_v31 = vadd.f32 %v4926_v28, %v3758_v21 }
 0xd4c   : > { %3768 = vadd.xlane.f32.xlu0 %v3767_v25  ;;  %v4823_v25 = vld [vmem:[%s5564_s12 + $0x18] sm:$0xff]  }
 0xd4d   : > { %v3762_v4 = vadd.f32 %v4925_v52, %v3750_v23  ;;  %v3776_v33 = vsel %vm759_vm0, %v3764_v31, 0.0  ;;  %4735 = vmatprep.subr.bf16.mxu1 %v4823_v25  ;;  %v4826_v52 = vld [vmem:[%s5564_s12] sm:$0xff]  }
 0xd4e   : > { %4736 = vmatpush3.bf16.msra.mxu1 %v4823_v25 }
 0xd4f   : > { %v3770_v6 = vsel %vm759_vm0, %v3762_v4, 0.0  ;;  %4737 = vmatprep.subr.bf16.mxu1 %v4824_v26 }
 0xd50   : > { %3771 = vadd.xlane.f32.xlu1 %v3770_v6  ;;  %3774 = vadd.xlane.f32.xlu0 %v3773_v24 }
 0xd52   : > { %4738 = vmatpush3.bf16.msra.mxu1 %v4824_v26 }
 0xd54   : > { %3777 = vadd.xlane.f32.xlu0 %v3776_v33 }
 0xdd5   : > { %v3769_v36 = vpop.xlane.xlu0 %3768 }
 0xdd6   : > { %v3780_v37 = vmul.f32 0.03125, %v3769_v36 }
 0xdd8   : > { %v3784_v38 = vsub.f32 %v3761_v5, %v3780_v37 }
 0xdd9   : > { %v3772_v39 = vpop.xlane.xlu1 %3771  ;;  %v3775_v40 = vpop.xlane.xlu0 %3774 }
 0xdda   : > { %v3781_v2 = vmul.f32 0.03125, %v3772_v39  ;;  %v3782_v41 = vmul.f32 0.03125, %v3775_v40  ;;  %v3788_v42 = vmul.f32 %v3784_v38, %v3784_v38 }
 0xddc   : > { %v3785_v43 = vsub.f32 %v3762_v4, %v3781_v2  ;;  %v3786_v44 = vsub.f32 %v3763_v11, %v3782_v41  ;;  %v3792_v45 = vsel %vm759_vm0, %v3788_v42, 0.0  ;;  %v4825_v11 = vld [vmem:[%s5564_s12 + $0x8] sm:$0xff]   ;;  %v4453_v4 = vld [vmem:[%s5563_s11] ss:$0 sm:$0xff] }
 0xddd   : > { %3793 = vadd.xlane.f32.xlu0 %v3792_v45  ;;  %v3778_v46 = vpop.xlane.xlu0 %3777  ;;  %4739 = vmatprep.subr.bf16.mxu1 %v4825_v11 }
 0xdde   : > { %v3783_v47 = vmul.f32 0.03125, %v3778_v46  ;;  %v3789_v48 = vmul.f32 %v3785_v43, %v3785_v43  ;;  %v3790_v17 = vmul.f32 %v3786_v44, %v3786_v44  ;;  %4740 = vmatpush3.bf16.msra.mxu1 %v4825_v11 }
 0xddf   : > { %4741 = vmatprep.subr.bf16.mxu1 %v4826_v52 }
 0xde0   : > { %v3787_v49 = vsub.f32 %v3764_v31, %v3783_v47  ;;  %v3795_v51 = vsel %vm759_vm0, %v3789_v48, 0.0  ;;  %v3798_v55 = vsel %vm759_vm0, %v3790_v17, 0.0 }
 0xde1   : > { %3796 = vadd.xlane.f32.xlu1 %v3795_v51  ;;  %3799 = vadd.xlane.f32.xlu0 %v3798_v55 }
 0xde2   : > { %v3791_v56 = vmul.f32 %v3787_v49, %v3787_v49  ;;  %4742 = vmatpush3.bf16.msra.mxu1 %v4826_v52 }
 0xde4   : > { %v3801_v29 = vsel %vm759_vm0, %v3791_v56, 0.0 }
 0xde5   : > { %3802 = vadd.xlane.f32.xlu1 %v3801_v29 }
 0xe66   : > { %v3794_v59 = vpop.xlane.xlu0 %3793 }
 0xe67   : > { %v3804_v60 = vmul.f32 0.03125, %v3794_v59 }
 0xe69   : > { %v3808_v61 = vadd.f32 1e-05, %v3804_v60 }
 0xe6a   : > { %v3797_v62 = vpop.xlane.xlu1 %3796  ;;  %v3800_v63 = vpop.xlane.xlu0 %3799 }
 0xe6b   : > { %4899 = vrsqrt.f32 %v3808_v61  ;;  %v3805_v0 = vmul.f32 0.03125, %v3797_v62  ;;  %v3806_v22 = vmul.f32 0.03125, %v3800_v63 }
 0xe6d   : > { %v3809_v1 = vadd.f32 1e-05, %v3805_v0  ;;  %v3810_v30 = vadd.f32 1e-05, %v3806_v22 }
 0xe6e   : > { %v3803_v3 = vpop.xlane.xlu1 %3802 }
 0xe6f   : > { %4901 = vrsqrt.f32 %v3809_v1  ;;  %v3807_v8 = vmul.f32 0.03125, %v3803_v3 }
 0xe70   : > { %4903 = vrsqrt.f32 %v3810_v30 }
 0xe71   : > { %v3811_v27 = vadd.f32 1e-05, %v3807_v8 }
 0xe73   : > { %4905 = vrsqrt.f32 %v3811_v27 }
 0xe78   : > { %v4900_v35 = vpop.eup %4899 }
 0xe79   : > { %v3816_v9 = vmul.f32 %v4900_v35, %v3784_v38 }
 0xe7b   : > { %v3826_v50 = vmul.f32 %v4451_v12, %v3816_v9 }
 0xe7c   : > { %v4902_v13 = vpop.eup %4901 }
 0xe7d   : > { %v4904_v14 = vpop.eup %4903  ;;  %v3817_v7 = vmul.f32 %v4902_v13, %v3785_v43  ;;  %v5485_v16 = vadd.f32 %v4452_v54, %v3826_v50 }
 0xe7e   : > { %v3818_v53 = vmul.f32 %v4904_v14, %v3786_v44 }
 0xe7f   : > { %v3827_v34 = vmul.f32 %v4451_v12, %v3817_v7 }
 0xe80   : > { %v4906_v32 = vpop.eup %4905  ;;  %v3828_v19 = vmul.f32 %v4451_v12, %v3818_v53 }
 0xe81   : > { %v3819_v15 = vmul.f32 %v4906_v32, %v3787_v49  ;;  %v5487_v18 = vadd.f32 %v4452_v54, %v3827_v34 }
 0xe82   : > { %v5492_v20 = vadd.f32 %v4452_v54, %v3828_v19 }
 0xe83   : > { %v3840_v10 = vpack.c.bf16 %v5487_v18, %v5485_v16  ;;  %v3829_v5 = vmul.f32 %v4451_v12, %v3819_v15 }
 0xe85   : > { %4731 = vmatprep.mubr.msk.bf16.mxu0 %vm759_vm0, %v3840_v10  ;;  %v5494_v21 = vadd.f32 %v4452_v54, %v3829_v5  ;;  %v4458_v54 = vld [vmem:[%s5565_s13] ss:$0 sm:$0xff] }
 0xe87   : > { %v3841_v23 = vpack.c.bf16 %v5494_v21, %v5492_v20 }
 0xe89   : > { %4732 = vmatmul.mubr.msk.bf16.vlgmr.msra.gmra.mxu0 %vm759_vm0, %v3841_v23 }
 0xf49   : > { %v4733_v6 = vpop.f32.mrf.mxu0 }
 0xf4a   : > { %v3914_v24 = vadd.f32 %v4733_v6, %v4453_v4 }
 0xf4b   : > { %v3905_v28 = vpop.f32.mrf.mxu0 }
 0xf4c   : > { %v3926_v31 = vmul.f32 0.044715, %v3914_v24  ;;  %v3906_v33 = vadd.f32 %v4453_v4, %v3905_v28  ;;  %v3922_v35 = vmul.f32 0.5, %v3914_v24 }
 0xf4d   : > { %v4734_v36 = vpop.f32.mrf.mxu0 }
 0xf4e   : > { %v3930_v37 = vmul.f32 %v3926_v31, %v3914_v24  ;;  %v3924_v38 = vmul.f32 0.044715, %v3906_v33  ;;  %v3917_v39 = vadd.f32 %v4734_v36, %v4453_v4  ;;  %v3920_v3 = vmul.f32 0.5, %v3906_v33 }
 0xf4f   : > { %v3908_v40 = vpop.f32.mrf.mxu0 }
 0xf50   : > { %v3934_v2 = vmul.f32 %v3930_v37, %v3914_v24  ;;  %v3928_v41 = vmul.f32 %v3924_v38, %v3906_v33  ;;  %v3927_v42 = vmul.f32 0.044715, %v3917_v39  ;;  %v3909_v43 = vadd.f32 %v4453_v4, %v3908_v40 }
 0xf51   : > { %v3923_v1 = vmul.f32 0.5, %v3917_v39 }
 0xf52   : > { %v3938_v44 = vadd.f32 %v3934_v2, %v3914_v24  ;;  %v3932_v45 = vmul.f32 %v3928_v41, %v3906_v33  ;;  %v3931_v46 = vmul.f32 %v3927_v42, %v3917_v39  ;;  %v3925_v47 = vmul.f32 0.044715, %v3909_v43 }
 0xf53   : > { %v3921_v8 = vmul.f32 0.5, %v3909_v43 }
 0xf54   : > { %v3942_v48 = vmul.f32 0.7978846, %v3938_v44  ;;  %v3936_v17 = vadd.f32 %v3932_v45, %v3906_v33  ;;  %v3935_v49 = vmul.f32 %v3931_v46, %v3917_v39  ;;  %v3929_v51 = vmul.f32 %v3925_v47, %v3909_v43 }
 0xf56   : > { %v3940_v55 = vmul.f32 0.7978846, %v3936_v17  ;;  %v3939_v56 = vadd.f32 %v3935_v49, %v3917_v39  ;;  %v3933_v29 = vmul.f32 %v3929_v51, %v3909_v43  ;;  %4907 = vtanh.f32 %v3942_v48 }
 0xf58   : > { %v3943_v57 = vmul.f32 0.7978846, %v3939_v56  ;;  %4909 = vtanh.f32 %v3940_v55  ;;  %v3937_v58 = vadd.f32 %v3933_v29, %v3909_v43 }
 0xf5a   : > { %4911 = vtanh.f32 %v3943_v57  ;;  %v3941_v59 = vmul.f32 0.7978846, %v3937_v58 }
 0xf5c   : > { %4913 = vtanh.f32 %v3941_v59 }
 0xf63   : > { %v4908_v60 = vpop.eup %4907 }
 0xf64   : > { %v3950_v30 = vadd.f32 1.0, %v4908_v60 }
 0xf65   : > { %v4910_v61 = vpop.eup %4909 }
 0xf66   : > { %v3948_v0 = vadd.f32 1.0, %v4910_v61  ;;  %v3954_v14 = vmul.f32 %v3950_v30, %v3922_v35 }
 0xf67   : > { %v4912_v62 = vpop.eup %4911 }
 0xf68   : > { %v3951_v63 = vadd.f32 1.0, %v4912_v62  ;;  %v3952_v12 = vmul.f32 %v3948_v0, %v3920_v3  ;;  %v4465_v0 = vld [vmem:[%s5566_s14] ss:$0 sm:$0xff] }
 0xf69   : > { %v4914_v22 = vpop.eup %4913 }
 0xf6a   : > { %v3949_v27 = vadd.f32 1.0, %v4914_v22  ;;  %v3955_v9 = vmul.f32 %v3951_v63, %v3923_v1  ;;  %v4466_v1 = vld [vmem:[%s5567_s15] ss:$0 sm:$0xff] }
 0xf6c   : > { %v3953_v13 = vmul.f32 %v3949_v27, %v3921_v8  ;;  %v3957_v50 = vpack.c.bf16 %v3955_v9, %v3954_v14 }
 0xf6e   : > { %v3956_v7 = vpack.c.bf16 %v3953_v13, %v3952_v12 }
 0xf70   : > { %4743 = vmatprep.mubr.msk.bf16.mxu1 %vm3997_vm5, %v3956_v7 }
 0xf71   : > { %4744 = vmatmul.mubr.msk.bf16.vlgmr.msra.gmra.mxu1 %vm3997_vm5, %v3957_v50 }
0x1031   : > { %v4745_v53 = vpop.f32.mrf.mxu1 }
0x1032   : > { %v4047_v32 = vadd.f32 %v4745_v53, %v4458_v54 }
0x1033   : > { %v4038_v34 = vpop.f32.mrf.mxu1 }
0x1034   : > { %v4039_v15 = vadd.f32 %v4458_v54, %v4038_v34  ;;  %v4055_v23 = vadd.f32 %v4047_v32, %v5492_v20 }
0x1035   : > { %v4746_v19 = vpop.f32.mrf.mxu1 }
0x1036   : > { %v4053_v10 = vadd.f32 %v4039_v15, %v5485_v16  ;;  %v4050_v25 = vadd.f32 %v4746_v19, %v4458_v54  ;;  %v4065_v24 = vsel %vm759_vm0, %v4055_v23, 0.0 }
0x1037   : > { %v4041_v5 = vpop.f32.mrf.mxu1 }
0x1038   : > { %v4042_v26 = vadd.f32 %v4458_v54, %v4041_v5  ;;  %v4059_v11 = vsel %vm759_vm0, %v4053_v10, 0.0  ;;  %v4056_v4 = vadd.f32 %v4050_v25, %v5494_v21 }
0x1039   : > { %4060 = vadd.xlane.f32.xlu0 %v4059_v11 }
0x103a   : > { %v4054_v52 = vadd.f32 %v4042_v26, %v5487_v18  ;;  %v4068_v16 = vsel %vm759_vm0, %v4056_v4, 0.0 }
0x103c   : > { %v4062_v6 = vsel %vm759_vm0, %v4054_v52, 0.0 }
0x103d   : > { %4063 = vadd.xlane.f32.xlu1 %v4062_v6  ;;  %4066 = vadd.xlane.f32.xlu0 %v4065_v24 }
0x1041   : > { %4069 = vadd.xlane.f32.xlu1 %v4068_v16 }
0x10c2   : > { %v4061_v28 = vpop.xlane.xlu0 %4060 }
0x10c3   : > { %v4071_v20 = vmul.f32 0.03125, %v4061_v28 }
0x10c5   : > { %v4075_v31 = vsub.f32 %v4053_v10, %v4071_v20 }
0x10c6   : > { %v4064_v33 = vpop.xlane.xlu1 %4063  ;;  %v4067_v36 = vpop.xlane.xlu0 %4066 }
0x10c7   : > { %v4072_v37 = vmul.f32 0.03125, %v4064_v33  ;;  %v4073_v38 = vmul.f32 0.03125, %v4067_v36  ;;  %v4079_v39 = vmul.f32 %v4075_v31, %v4075_v31 }
0x10c9   : > { %v4076_v18 = vsub.f32 %v4054_v52, %v4072_v37  ;;  %v4077_v40 = vsub.f32 %v4055_v23, %v4073_v38  ;;  %v4083_v21 = vsel %vm759_vm0, %v4079_v39, 0.0 }
0x10ca   : > { %v4070_v2 = vpop.xlane.xlu1 %4069  ;;  %4084 = vadd.xlane.f32.xlu0 %v4083_v21 }
0x10cb   : > { %v4074_v41 = vmul.f32 0.03125, %v4070_v2  ;;  %v4080_v42 = vmul.f32 %v4076_v18, %v4076_v18  ;;  %v4081_v43 = vmul.f32 %v4077_v40, %v4077_v40 }
0x10cd   : > { %v4078_v44 = vsub.f32 %v4056_v4, %v4074_v41  ;;  %v4086_v45 = vsel %vm759_vm0, %v4080_v42, 0.0  ;;  %v4089_v46 = vsel %vm759_vm0, %v4081_v43, 0.0 }
0x10ce   : > { %4087 = vadd.xlane.f32.xlu1 %v4086_v45  ;;  %4090 = vadd.xlane.f32.xlu0 %v4089_v46 }
0x10cf   : > { %v4082_v47 = vmul.f32 %v4078_v44, %v4078_v44 }
0x10d1   : > { %v4092_v48 = vsel %vm759_vm0, %v4082_v47, 0.0 }
0x10d2   : > { %4093 = vadd.xlane.f32.xlu1 %v4092_v48 }
0x1153   : > { %v4085_v17 = vpop.xlane.xlu0 %4084 }
0x1154   : > { %v4095_v49 = vmul.f32 0.03125, %v4085_v17 }
0x1156   : > { %v4099_v51 = vadd.f32 1e-05, %v4095_v49 }
0x1157   : > { %v4088_v55 = vpop.xlane.xlu1 %4087  ;;  %v4091_v56 = vpop.xlane.xlu0 %4090 }
0x1158   : > { %4915 = vrsqrt.f32 %v4099_v51  ;;  %v4096_v29 = vmul.f32 0.03125, %v4088_v55  ;;  %v4097_v57 = vmul.f32 0.03125, %v4091_v56 }
0x115a   : > { %v4100_v58 = vadd.f32 1e-05, %v4096_v29  ;;  %v4101_v59 = vadd.f32 1e-05, %v4097_v57 }
0x115b   : > { %v4094_v60 = vpop.xlane.xlu1 %4093 }
0x115c   : > { %4917 = vrsqrt.f32 %v4100_v58  ;;  %v4098_v61 = vmul.f32 0.03125, %v4094_v60 }
0x115d   : > { %4919 = vrsqrt.f32 %v4101_v59 }
0x115e   : > { %v4102_v62 = vadd.f32 1e-05, %v4098_v61 }
0x1160   : > { %4921 = vrsqrt.f32 %v4102_v62 }
0x1165   : > { %v4916_v63 = vpop.eup %4915 }
0x1166   : > { %v4107_v22 = vmul.f32 %v4916_v63, %v4075_v31 }
0x1168   : > { %v4117_v30 = vmul.f32 %v4465_v0, %v4107_v22 }
0x1169   : > { %v4918_v3 = vpop.eup %4917 }
0x116a   : > { %v4920_v8 = vpop.eup %4919  ;;  %v4127_v27 = vadd.f32 %v4466_v1, %v4117_v30  ;;  %v4108_v35 = vmul.f32 %v4918_v3, %v4076_v18 }
0x116b   : > { %v4109_v9 = vmul.f32 %v4920_v8, %v4077_v40 }
0x116c   : > { %4131 = vst.msk [vmem:[%s5103_s0] sm:$0xff] %vm759_vm0, %v4127_v27  ;;  %v4118_v12 = vmul.f32 %v4465_v0, %v4108_v35 }
0x116d   : > { %v4922_v13 = vpop.eup %4921  ;;  %v4119_v14 = vmul.f32 %v4465_v0, %v4109_v9 }
0x116e   : > { %v4128_v7 = vadd.f32 %v4466_v1, %v4118_v12  ;;  %v4110_v50 = vmul.f32 %v4922_v13, %v4078_v44 }
0x116f   : > { %v4129_v53 = vadd.f32 %v4466_v1, %v4119_v14 }
0x1170   : > { %4132 = vst.msk [vmem:[%s5103_s0 + $0x8] sm:$0xff] %vm759_vm0, %v4128_v7  ;;  %v4120_v54 = vmul.f32 %v4465_v0, %v4110_v50 }
0x1171   : > { %4133 = vst.msk [vmem:[%s5103_s0 + $0x10] sm:$0xff] %vm759_vm0, %v4129_v53 }
0x1172   : > { %v4130_v34 = vadd.f32 %v4466_v1, %v4120_v54 }
0x1174   : > { %4134 = vst.msk [vmem:[%s5103_s0 + $0x18] sm:$0xff] %vm759_vm0, %v4130_v34 }
0x1175 PF: > { %s26_s23 = sadd.s32 1, %s4949_s23   ;;  %s5571_s21 = smov %s4945_s22 }
0x1176   : > { %p23_p5 = scmp.ge.s32.totalorder %s26_s23, 4   ;;  %s5572_s22 = smov %s5574_s24 }
0x1178   :  { %25 = sbr.rel (!%p23_p5) target bundleno = 2 (0x2), region = 157 }

// kernel: fwd.18
= control target key start
LH: loop header
LB: loop body
LE: loop exit
PB: predicated region body
PF: predicated region fallthrough
CT: control target
= control target key end

     0   :  { %s2865_s21 = smov 0   ;;  %s2867_s22 = smov 0   ;;  %s3193_s0 = inlined_call_operand.vmem [shape: f32[2,16,64], index: 0, kind: input, shape index: {}]   ;;  %s3194_s1 = inlined_call_operand.vmem [shape: f32[2,1,16], index: 1, kind: input, shape index: {}]   ;;  %s3195_s2 = inlined_call_operand.vmem [shape: f32[1,64], index: 2, kind: input, shape index: {}]   ;;  %s3196_s3 = inlined_call_operand.vmem [shape: f32[1,64], index: 3, kind: input, shape index: {}]   ;;  %s3197_s4 = inlined_call_operand.vmem [shape: bf16[1,64,192], index: 4, kind: input, shape index: {}]   ;;  %s3198_s5 = inlined_call_operand.vmem [shape: f32[1,1,192], index: 5, kind: input, shape index: {}]   ;;  %s3199_s6 = inlined_call_operand.vmem [shape: bf16[1,64,64], index: 6, kind: input, shape index: {}]   ;;  %s3200_s7 = inlined_call_operand.vmem [shape: f32[1,1,64], index: 7, kind: input, shape index: {}]   ;;  %s3201_s8 = inlined_call_operand.vmem [shape: f32[1,1,64], index: 8, kind: input, shape index: {}]   ;;  %s3202_s9 = inlined_call_operand.vmem [shape: f32[1,1,64], index: 9, kind: input, shape index: {}]   ;;  %s3203_s10 = inlined_call_operand.vmem [shape: bf16[1,64,128], index: 10, kind: input, shape index: {}]   ;;  %s3204_s11 = inlined_call_operand.vmem [shape: f32[1,1,128], index: 11, kind: input, shape index: {}]   ;;  %s3205_s12 = inlined_call_operand.vmem [shape: bf16[1,128,64], index: 12, kind: input, shape index: {}]   ;;  %s3206_s13 = inlined_call_operand.vmem [shape: f32[1,1,64], index: 13, kind: input, shape index: {}]   ;;  %s3207_s14 = inlined_call_operand.vmem [shape: f32[1,1,64], index: 14, kind: input, shape index: {}]   ;;  %s3208_s15 = inlined_call_operand.vmem [shape: f32[1,1,64], index: 15, kind: input, shape index: {}]   ;;  %s3209_s16 = inlined_call_operand.vmem [shape: f32[2,16,64], index: 16, kind: output, shape index: {}]  }
   0x1   :  { %3210 = sst [smem:[#allocation2_spill]] %s3193_s0  ;;  %s2869_s23 = smov 0  }
   0x2 LB: > { %s38_s24 = sadd.s32 1, %s2764_s22  ;;  %p2400_p0 = scmp.ge.s32.totalorder %s2768_s23, 1  ;;  %s2768_s23 = sphi %s2869_s23, %s26_s23   ;;  %s2764_s22 = sphi %s2867_s22, %s3213_s22   ;;  %s2760_s21 = sphi %s2865_s21, %s3212_s21  }
   0x3   : > { %p40_p1 = scmp.ge.s32.totalorder %s38_s24, 2  ;;  %p587_p2 = scmp.lt.s32.totalorder %s2768_s23, 3 }
   0x5   : > { %s3215_s24 = smov (%p40_p1, %s38_s24), 0  ;;  %p588_p3 = pnand %p2400_p0, %p587_p2 }
   0x6   : > { %p685_p4 = scmp.lt.s32.totalorder (!%p588_p3), %s2760_s21, 1  ;;  %s3211_s28 = sld [smem:[#allocation2_spill]] (!%p588_p3) }
   0x7   : > { %591 = sbr.rel (%p588_p3) target bundleno = 3792 (0xed0), region = 84  ;;  %s2771_s19 = smov (!%p588_p3), 64  }
   0x8   : > { %s2775_s30 = smov (!%p588_p3), 96   ;;  %s2776_s0 = smov (!%p588_p3), 16  }
   0xc   : > { %s3217_s21 = smov (!%p685_p4, %s2760_s21), 1  ;;  %vm752_vm0 = vcmask 523264   ;;  %v2670_v14 = vld [vmem:[%s3197_s4 + $0x34] ss:$8 sps:$4 sm:$0xff]   ;;  %v2672_v15 = vld [vmem:[%s3197_s4 + $0x30] ss:$8 sps:$4 sm:$0xff]   ;;  %v812_v42 = vlaneseq }
   0xd   : > { %s2468_s25 = sshll.u32 %s3217_s21, 4  ;;  %874 = vmatprep.subr.bf16.mxu0 %v2670_v14  ;;  %v2673_v16 = vld [vmem:[%s3197_s4 + $0x24] ss:$8 sps:$4 sm:$0xff]   ;;  %v2675_v17 = vld [vmem:[%s3197_s4 + $0x20] ss:$8 sps:$4 sm:$0xff]   ;;  %v2770_v21 = vmov 0   ;;  %s692_s27 = scalar_lea.vmem %s3194_s1, %s3217_s21 }
   0xe   : > { %s689_s29 = scalar_lea.vmem %s3211_s28, %s2468_s25  ;;  %875 = vmatpush1.bf16.msra.mxu0 %v2672_v15  ;;  %v2676_v18 = vld [vmem:[%s3197_s4 + $0x14] ss:$8 sps:$4 sm:$0xff]   ;;  %v2678_v19 = vld [vmem:[%s3197_s4 + $0x10] ss:$8 sps:$4 sm:$0xff]   ;;  %v2679_v20 = vld [vmem:[%s3197_s4 + $0x4] ss:$8 sps:$4 sm:$0xff]   ;;  %898 = vmatprep.mubr.bf16.mxu0 %v2770_v21  ;;  %s2930_s17 = scalar_lea.vmem %s3209_s16, %s2468_s25 }
   0xf   : > { %v748_v0 = vld [vmem:[%s689_s29] sm:$0xff]  ;;  %v749_v1 = vld [vmem:[%s689_s29 + $0x8] sm:$0xff]  ;;  %876 = vmatprep.subr.bf16.mxu0 %v2673_v16  ;;  %v813_v43 = vshrl.u32 %v812_v42, 7  ;;  %vm915_vm1 = vcmask 130048   ;;  %s2772_s21 = smov 48   ;;  %s2773_s28 = smov 112  }
  0x10   : > { %v753_v2 = vsel %vm752_vm0, %v748_v0, 0.0  ;;  %v756_v3 = vsel %vm752_vm0, %v749_v1, 0.0  ;;  %v2681_v22 = vld [vmem:[%s3197_s4] ss:$8 sps:$4 sm:$0xff]   ;;  %s2774_s29 = smov 32   ;;  %s2777_s25 = smov 80  }
  0x11   : > { %754 = vadd.xlane.f32.xlu0 %v753_v2  ;;  %v2405_v30 = vld [vmem:[%s3195_s2] ss:$0 sm:$0xff]  ;;  %v814_v44 = vsub.s32 0, %v813_v43  ;;  %v818_v52 = vsub.s32 1, %v813_v43  ;;  %vm2779_vm2 = vmmov 0   ;;  %vm1752_vm3 = vcmask 261120  }
  0x12   : > { %877 = vmatpush1.bf16.msra.mxu0 %v2675_v17  ;;  %v2406_v32 = vld [vmem:[%s3196_s3] ss:$0 sm:$0xff]  ;;  %vm1755_vm4 = vcmask 392192  }
  0x13   : > { %878 = vmatprep.subr.bf16.mxu0 %v2676_v18  ;;  %v810_v45 = vld [vmem:[%s3198_s5] sm:$0x3] }
  0x14   : > { %v815_v46 = vrot.slane %v810_v45, %v814_v44  ;;  %v819_v56 = vrot.slane %v810_v45, %v818_v52  ;;  %v2974_v59 = vld [vmem:[%s692_s27] ss:$0 sm:$0xff] }
  0x15   : > { %757 = vadd.xlane.f32.xlu0 %v756_v3 }
  0x16   : > { %879 = vmatpush1.bf16.msra.mxu0 %v2678_v19 }
  0x17   : > { %880 = vmatprep.subr.bf16.mxu0 %v2679_v20 }
  0x1a   : > { %881 = vmatpush1.bf16.msra.mxu0 %v2681_v22 }
  0x9a   : > { %v755_v4 = vpop.xlane.xlu0 %754 }
  0x9b   : > { %v760_v5 = vmul.f32 0.015625, %v755_v4 }
  0x9d   : > { %v762_v6 = vsub.f32 %v748_v0, %v760_v5 }
  0x9e   : > { %v758_v7 = vpop.xlane.xlu0 %757 }
  0x9f   : > { %v761_v8 = vmul.f32 0.015625, %v758_v7  ;;  %v764_v9 = vmul.f32 %v762_v6, %v762_v6 }
  0xa1   : > { %v763_v10 = vsub.f32 %v749_v1, %v761_v8  ;;  %v766_v11 = vsel %vm752_vm0, %v764_v9, 0.0 }
  0xa2   : > { %767 = vadd.xlane.f32.xlu1 %v766_v11 }
  0xa3   : > { %v765_v12 = vmul.f32 %v763_v10, %v763_v10 }
  0xa5   : > { %v769_v13 = vsel %vm752_vm0, %v765_v12, 0.0 }
  0xa6   : > { %770 = vadd.xlane.f32.xlu1 %v769_v13 }
 0x12b   : > { %v768_v23 = vpop.xlane.xlu1 %767 }
 0x12c   : > { %v772_v24 = vmul.f32 0.015625, %v768_v23 }
 0x12e   : > { %v774_v25 = vadd.f32 1e-05, %v772_v24 }
 0x12f   : > { %v771_v26 = vpop.xlane.xlu1 %770 }
 0x130   : > { %2698 = vrsqrt.f32 %v774_v25  ;;  %v773_v27 = vmul.f32 0.015625, %v771_v26 }
 0x132   : > { %v775_v28 = vadd.f32 1e-05, %v773_v27 }
 0x134   : > { %2700 = vrsqrt.f32 %v775_v28 }
 0x13d   : > { %v2699_v29 = vpop.eup %2698 }
 0x13e   : > { %v778_v31 = vmul.f32 %v2699_v29, %v762_v6 }
 0x140   : > { %v786_v33 = vmul.f32 %v2405_v30, %v778_v31 }
 0x141   : > { %v2701_v34 = vpop.eup %2700 }
 0x142   : > { %v794_v35 = vadd.f32 %v2406_v32, %v786_v33  ;;  %v779_v36 = vmul.f32 %v2701_v34, %v763_v10 }
 0x144   : > { %796 = vst.msk [vmem:[%s2930_s17] sm:$0xff] %vm752_vm0, %v794_v35  ;;  %v787_v37 = vmul.f32 %v2405_v30, %v779_v36 }
 0x146   : > { %v795_v38 = vadd.f32 %v2406_v32, %v787_v37 }
 0x148   : > { %797 = vst.msk [vmem:[%s2930_s17 + $0x8] sm:$0xff] %vm752_vm0, %v795_v38 }
 0x14b   : > { %v2937_v39 = vld [vmem:[%s2930_s17] sm:$0xff] }
 0x14f   : > { %v2940_v40 = vld [vmem:[%s2930_s17 + $0x8] sm:$0xff] }
 0x150   : > { %v801_v41 = vpack.c.bf16 %v2940_v40, %v2937_v39 }
 0x152   : > { %2415 = vmatmul.mubr.msk.bf16.vlgmr.msra.gmra.mxu0 %vm752_vm0, %v801_v41 }
 0x212   : > { %v900_v47 = vpop.f32.mrf.mxu0 }
 0x213   : > { %v2948_v48 = vadd.f32 %v900_v47, %v815_v46 }
 0x214   : > { %v902_v49 = vpop.f32.mrf.mxu0 }
 0x215   : > { %911 = vrot.lane.b32.xlu1 %v2948_v48, %s2771_s19  ;;  %2525 = vmatprep.mubr.msk.f32.mxu1 %vm915_vm1, %v2948_v48  ;;  %v2963_v58 = vadd.f32 %v902_v49, %v819_v56 }
 0x216   : > { %v904_v50 = vpop.f32.mrf.mxu0 }
 0x217   : > { %v2953_v51 = vadd.f32 %v904_v50, %v815_v46 }
 0x218   : > { %v906_v54 = vpop.f32.mrf.mxu0 }
 0x219   : > { %913 = vrot.lane.b32.xlu0 %v2953_v51, %s2771_s19  ;;  %v2959_v57 = vadd.f32 %v906_v54, %v819_v56 }
 0x287   : > { %v912_v55 = vpop.permute.xlu1 %911 }
 0x28b   : > { %v914_v53 = vpop.permute.xlu0 %913 }
 0x28c   : > { %2521 = vmatprep.subr.msk.mxu1 %vm915_vm1, %v914_v53 }
 0x28d   : > { %2522 = vmatpush3.xpose.msk.msra.mxu1 %vm915_vm1, %v914_v53 }
 0x28e   : > { %2523 = vmatprep.subr.msk.mxu1 %vm915_vm1, %v912_v55 }
 0x291   : > { %2524 = vmatpush3.xpose.msk.msra.mxu1 %vm915_vm1, %v912_v55 }
 0x292   : > { %2528 = vmatprep.subr.mxu1 %v2959_v57 }
 0x294   : > { %2526 = vmatmul.mubr.msk.f32.vlgmr.msra.gmra.mxu1 %vm915_vm1, %v2953_v51 }
 0x295   : > { %2529 = vmatpush3.msra.mxu1 %v2959_v57 }
 0x296   : > { %2530 = vmatprep.subr.mxu1 %v2963_v58 }
 0x297   : > { %2531 = vmatpush3.msra.mxu1 %v2963_v58 }
 0x354   : > { %v2527_v60 = vpop.f32.mrf.mxu1 }
 0x355   : > { %v1000_v61 = vmul.f32 0.25, %v2527_v60 }
 0x356   : > { %v990_v62 = vpop.f32.mrf.mxu1 }
 0x357   : > { %v999_v63 = vmul.f32 0.25, %v990_v62  ;;  %v1008_v0 = vadd.f32 %v2974_v59, %v1000_v61 }
 0x359   : > { %v1012_v1 = vsel %vm915_vm1, %v1008_v0, -inf  ;;  %v1007_v2 = vadd.f32 %v2974_v59, %v999_v63 }
 0x35a   : > { %1013 = vmax.xlane.f32.xlu0 %v1012_v1 }
 0x35b   : > { %v1009_v3 = vsel %vm915_vm1, %v1007_v2, -inf }
 0x35c   : > { %1010 = vmax.xlane.f32.xlu1 %v1009_v3 }
 0x3e3   : > { %v1014_v4 = vpop.xlane.xlu0 %1013 }
 0x3e4   : > { %v1016_v5 = vsub.f32 %v1008_v0, %v1014_v4 }
 0x3e5   : > { %v1011_v6 = vpop.xlane.xlu1 %1010 }
 0x3e6   : > { %v1019_v7 = vmul.f32 1.442695, %v1016_v5  ;;  %v1015_v8 = vsub.f32 %v1007_v2, %v1011_v6 }
 0x3e8   : > { %2702 = vpow2.f32 %v1019_v7  ;;  %v1017_v9 = vmul.f32 1.442695, %v1015_v8 }
 0x3ea   : > { %2704 = vpow2.f32 %v1017_v9 }
 0x3f5   : > { %v2703_v10 = vpop.eup %2702 }
 0x3f6   : > { %v1024_v11 = vsel %vm915_vm1, %v2703_v10, 0.0 }
 0x3f7   : > { %v2705_v12 = vpop.eup %2704  ;;  %1025 = vadd.xlane.f32.xlu1 %v1024_v11 }
 0x3f8   : > { %v1021_v13 = vsel %vm915_vm1, %v2705_v12, 0.0 }
 0x3f9   : > { %1022 = vadd.xlane.f32.xlu0 %v1021_v13 }
 0x408   : > { %1116 = vrot.lane.b32.xlu1 %v2948_v48, %s2772_s21 }
 0x40c   : > { %1112 = vrot.lane.b32.xlu1 %v2948_v48, %s2773_s28 }
 0x40f   : > { %1118 = vrot.lane.b32.xlu0 %v2953_v51, %s2772_s21 }
 0x410   : > { %1324 = vrot.lane.b32.xlu1 %v2953_v51, %s2774_s29 }
 0x413   : > { %1114 = vrot.lane.b32.xlu0 %v2953_v51, %s2773_s28 }
 0x414   : > { %1322 = vrot.lane.b32.xlu1 %v2948_v48, %s2774_s29 }
 0x417   : > { %1318 = vrot.lane.b32.xlu0 %v2948_v48, %s2775_s30 }
 0x418   : > { %1320 = vrot.lane.b32.xlu1 %v2953_v51, %s2775_s30 }
 0x480   : > { %v1026_v14 = vpop.xlane.xlu1 %1025 }
 0x481   : > { %2706 = vrcp.f32 %v1026_v14 }
 0x482   : > { %v1023_v15 = vpop.xlane.xlu0 %1022 }
 0x483   : > { %2708 = vrcp.f32 %v1023_v15 }
 0x484   : > { %v1117_v17 = vpop.permute.xlu1 %1116 }
 0x486   : > { %v1119_v16 = vpop.permute.xlu0 %1118 }
 0x487   : > { %2535 = vmatprep.subr.msk.mxu1 %vm915_vm1, %v1119_v16 }
 0x488   : > { %v1113_v20 = vpop.permute.xlu1 %1112 }
 0x48a   : > { %v1115_v23 = vpop.permute.xlu0 %1114 }
 0x48c   : > { %v1325_v24 = vpop.permute.xlu1 %1324 }
 0x48e   : > { %v2707_v18 = vpop.eup %2706  ;;  %v1319_v25 = vpop.permute.xlu0 %1318 }
 0x48f   : > { %v1030_v22 = vmul.f32 %v2707_v18, %v2703_v10 }
 0x490   : > { %v2709_v19 = vpop.eup %2708  ;;  %v1323_v26 = vpop.permute.xlu1 %1322 }
 0x491   : > { %v1029_v21 = vmul.f32 %v2709_v19, %v2705_v12 }
 0x493   : > { %2532 = vmatprep.mubr.msk.f32.mxu1 %vm915_vm1, %v1029_v21 }
 0x494   : > { %2533 = vmatmul.mubr.msk.f32.vlgmr.msra.gmra.mxu1 %vm915_vm1, %v1030_v22  ;;  %v1321_v27 = vpop.permute.xlu1 %1320 }
 0x495   : > { %2536 = vmatpush3.xpose.msk.msra.mxu1 %vm915_vm1, %v1119_v16  ;;  %2539 = vmatprep.mubr.msk.f32.mxu1 %vm915_vm1, %v1113_v20 }
 0x496   : > { %2537 = vmatprep.subr.msk.mxu1 %vm915_vm1, %v1117_v17 }
 0x499   : > { %2538 = vmatpush3.xpose.msk.msra.mxu1 %vm915_vm1, %v1117_v17 }
 0x49a   : > { %2549 = vmatprep.subr.msk.mxu1 %vm915_vm1, %v1325_v24 }
 0x49c   : > { %2540 = vmatmul.mubr.msk.f32.vlgmr.msra.gmra.mxu1 %vm915_vm1, %v1115_v23 }
 0x49d   : > { %2550 = vmatpush3.xpose.msk.msra.mxu1 %vm915_vm1, %v1325_v24  ;;  %2553 = vmatprep.mubr.msk.f32.mxu1 %vm915_vm1, %v1319_v25 }
 0x49e   : > { %2551 = vmatprep.subr.msk.mxu1 %vm915_vm1, %v1323_v26 }
 0x4a1   : > { %2552 = vmatpush3.xpose.msk.msra.mxu1 %vm915_vm1, %v1323_v26 }
 0x4a4   : > { %2554 = vmatmul.mubr.msk.f32.vlgmr.msra.gmra.mxu1 %vm915_vm1, %v1321_v27 }
 0x554   : > { %v3012_v28 = vpop.f32.mrf.mxu1 }
 0x556   : > { %v3014_v29 = vpop.f32.mrf.mxu1 }
 0x55c   : > { %v2541_v30 = vpop.f32.mrf.mxu1 }
 0x55d   : > { %v1204_v31 = vmul.f32 0.25, %v2541_v30 }
 0x55e   : > { %v1194_v32 = vpop.f32.mrf.mxu1 }
 0x55f   : > { %v1203_v33 = vmul.f32 0.25, %v1194_v32  ;;  %v1206_v34 = vadd.f32 %v2974_v59, %v1204_v31 }
 0x561   : > { %v1210_v35 = vsel %vm915_vm1, %v1206_v34, -inf  ;;  %v1205_v36 = vadd.f32 %v2974_v59, %v1203_v33 }
 0x562   : > { %1211 = vmax.xlane.f32.xlu1 %v1210_v35 }
 0x563   : > { %v1207_v37 = vsel %vm915_vm1, %v1205_v36, -inf }
 0x564   : > { %1208 = vmax.xlane.f32.xlu0 %v1207_v37  ;;  %v2555_v38 = vpop.f32.mrf.mxu1 }
 0x565   : > { %v1410_v42 = vmul.f32 0.25, %v2555_v38 }
 0x566   : > { %v1400_v41 = vpop.f32.mrf.mxu1 }
 0x567   : > { %v1409_v43 = vmul.f32 0.25, %v1400_v41  ;;  %v1412_v46 = vadd.f32 %v2974_v59, %v1410_v42 }
 0x569   : > { %v1411_v44 = vadd.f32 %v2974_v59, %v1409_v43  ;;  %v1416_v47 = vsel %vm915_vm1, %v1412_v46, -inf }
 0x56b   : > { %v1413_v45 = vsel %vm915_vm1, %v1411_v44, -inf }
 0x56c   : > { %1414 = vmax.xlane.f32.xlu0 %v1413_v45 }
 0x570   : > { %1417 = vmax.xlane.f32.xlu0 %v1416_v47 }
 0x573   : > { %1231 = vrot.lane.b32.xlu1 %v2963_v58, %s2773_s28 }
 0x577   : > { %1437 = vrot.lane.b32.xlu1 %v2959_v57, %s2775_s30 }
 0x57b   : > { %1435 = vrot.lane.b32.xlu1 %v2963_v58, %s2775_s30 }
 0x586   : > { %1233 = vrot.lane.b32.xlu0 %v2959_v57, %s2773_s28 }
 0x5eb   : > { %v1212_v49 = vpop.xlane.xlu1 %1211 }
 0x5ec   : > { %v1214_v50 = vsub.f32 %v1206_v34, %v1212_v49 }
 0x5ed   : > { %v1209_v52 = vpop.xlane.xlu0 %1208 }
 0x5ee   : > { %v1217_v53 = vmul.f32 1.442695, %v1214_v50  ;;  %v1213_v54 = vsub.f32 %v1205_v36, %v1209_v52 }
 0x5ef   : > { %v1232_v0 = vpop.permute.xlu1 %1231 }
 0x5f0   : > { %2710 = vpow2.f32 %v1217_v53  ;;  %v1215_v55 = vmul.f32 1.442695, %v1213_v54 }
 0x5f2   : > { %2712 = vpow2.f32 %v1215_v55 }
 0x5f3   : > { %v1438_v7 = vpop.permute.xlu1 %1437 }
 0x5f5   : > { %v1415_v56 = vpop.xlane.xlu0 %1414 }
 0x5f6   : > { %v1419_v60 = vsub.f32 %v1411_v44, %v1415_v56 }
 0x5f7   : > { %v1436_v12 = vpop.permute.xlu1 %1435 }
 0x5f8   : > { %v1421_v61 = vmul.f32 1.442695, %v1419_v60 }
 0x5f9   : > { %v1418_v62 = vpop.xlane.xlu0 %1417 }
 0x5fa   : > { %2714 = vpow2.f32 %v1421_v61  ;;  %v1420_v63 = vsub.f32 %v1412_v46, %v1418_v62 }
 0x5fc   : > { %v1423_v1 = vmul.f32 1.442695, %v1420_v63 }
 0x5fd   : > { %v2711_v2 = vpop.eup %2710  ;;  %v1234_v3 = vpop.permute.xlu0 %1233 }
 0x5fe   : > { %2716 = vpow2.f32 %v1423_v1  ;;  %2542 = vmatprep.subr.mxu0 %v1234_v3  ;;  %v1222_v4 = vsel %vm915_vm1, %v2711_v2, 0.0 }
 0x5ff   : > { %v2713_v5 = vpop.eup %2712  ;;  %2543 = vmatpush3.msra.mxu0 %v1234_v3  ;;  %1223 = vadd.xlane.f32.xlu1 %v1222_v4  ;;  %v2683_v3 = vld [vmem:[%s3199_s6 + $0x10] sm:$0xff]   ;;  %v2684_v4 = vld [vmem:[%s3199_s6 + $0x8] sm:$0xff]  }
 0x600   : > { %2544 = vmatprep.subr.mxu0 %v1232_v0  ;;  %v1219_v6 = vsel %vm915_vm1, %v2713_v5, 0.0 }
 0x601   : > { %1220 = vadd.xlane.f32.xlu0 %v1219_v6  ;;  %2545 = vmatpush3.msra.mxu0 %v1232_v0 }
 0x602   : > { %2556 = vmatprep.subr.mxu0 %v1438_v7 }
 0x607   : > { %v2715_v8 = vpop.eup %2714 }
 0x608   : > { %v1425_v9 = vsel %vm915_vm1, %v2715_v8, 0.0 }
 0x609   : > { %1426 = vadd.xlane.f32.xlu0 %v1425_v9 }
 0x60b   : > { %v2717_v10 = vpop.eup %2716 }
 0x60c   : > { %v1428_v11 = vsel %vm915_vm1, %v2717_v10, 0.0 }
 0x60d   : > { %1429 = vadd.xlane.f32.xlu1 %v1428_v11 }
 0x61e   : > { %1526 = vrot.lane.b32.xlu1 %v2948_v48, %s2776_s0 }
 0x61f   : > { %1528 = vrot.lane.b32.xlu0 %v2953_v51, %s2776_s0 }
 0x622   : > { %1524 = vrot.lane.b32.xlu1 %v2953_v51, %s2777_s25 }
 0x623   : > { %1522 = vrot.lane.b32.xlu0 %v2948_v48, %s2777_s25 }
 0x688   : > { %v1224_v13 = vpop.xlane.xlu1 %1223 }
 0x689   : > { %2718 = vrcp.f32 %v1224_v13 }
 0x68a   : > { %v1221_v14 = vpop.xlane.xlu0 %1220 }
 0x68b   : > { %2720 = vrcp.f32 %v1221_v14 }
 0x692   : > { %v1427_v15 = vpop.xlane.xlu0 %1426 }
 0x693   : > { %2722 = vrcp.f32 %v1427_v15 }
 0x696   : > { %v1430_v16 = vpop.xlane.xlu1 %1429  ;;  %v2719_v17 = vpop.eup %2718 }
 0x697   : > { %2724 = vrcp.f32 %v1430_v16  ;;  %v1228_v20 = vmul.f32 %v2719_v17, %v2711_v2  ;;  %v1529_v48 = vpop.permute.xlu0 %1528  ;;  %v2778_v2 = vmov 0.0  }
 0x698   : > { %v2721_v18 = vpop.eup %2720 }
 0x699   : > { %v1227_v19 = vmul.f32 %v2721_v18, %v2713_v5  ;;  %v2685_v5 = vld [vmem:[%s3199_s6] sm:$0xff]  }
 0x69a   : > { %v1527_v25 = vpop.permute.xlu1 %1526 }
 0x69b   : > { %2546 = vmatprep.mubr.msk.f32.mxu0 %vm915_vm1, %v1227_v19  ;;  %v1523_v24 = vpop.permute.xlu0 %1522 }
 0x69c   : > { %2547 = vmatmul.mubr.msk.f32.vlgmr.msra.gmra.mxu0 %vm915_vm1, %v1228_v20 }
 0x69d   : > { %2557 = vmatpush3.msra.mxu0 %v1438_v7 }
 0x69e   : > { %2558 = vmatprep.subr.mxu0 %v1436_v12  ;;  %v1525_v26 = vpop.permute.xlu1 %1524 }
 0x69f   : > { %2559 = vmatpush3.msra.mxu0 %v1436_v12 }
 0x6a0   : > { %v2723_v51 = vpop.eup %2722  ;;  %2563 = vmatprep.subr.msk.mxu0 %vm915_vm1, %v1529_v48 }
 0x6a1   : > { %v1433_v21 = vmul.f32 %v2723_v51, %v2715_v8 }
 0x6a3   : > { %2560 = vmatprep.mubr.msk.f32.mxu0 %vm915_vm1, %v1433_v21 }
 0x6a4   : > { %v2725_v22 = vpop.eup %2724 }
 0x6a5   : > { %v1434_v23 = vmul.f32 %v2725_v22, %v2717_v10 }
 0x6a7   : > { %2561 = vmatmul.mubr.msk.f32.vlgmr.msra.gmra.mxu0 %vm915_vm1, %v1434_v23  ;;  %v2441_v23 = vld [vmem:[%s3200_s7] ss:$0 sm:$0xff] }
 0x6a8   : > { %2564 = vmatpush3.xpose.msk.msra.mxu0 %vm915_vm1, %v1529_v48  ;;  %2567 = vmatprep.mubr.msk.f32.mxu0 %vm915_vm1, %v1523_v24 }
 0x6a9   : > { %2565 = vmatprep.subr.msk.mxu0 %vm915_vm1, %v1527_v25 }
 0x6ac   : > { %2566 = vmatpush3.xpose.msk.msra.mxu0 %vm915_vm1, %v1527_v25 }
 0x6ad   : > { %2577 = vmatprep.subr.bf16.mxu0 %v2778_v2 }
 0x6af   : > { %2568 = vmatmul.mubr.msk.f32.vlgmr.msra.gmra.mxu0 %vm915_vm1, %v1525_v26 }
 0x6b0   : > { %2585 = vmatprep.mubr.msk.bf16.mxu0 %vm2779_vm2, %v2778_v2 }
 0x75c   : > { %v2548_v27 = vpop.f32.mrf.mxu0 }
 0x75e   : > { %v1309_v30 = vpop.f32.mrf.mxu0 }
 0x75f   : > { %v2655_v43 = vpack.i.bf16 %v2548_v27, %v1309_v30 }
 0x767   : > { %v2562_v31 = vpop.f32.mrf.mxu0 }
 0x769   : > { %v1513_v32 = vpop.f32.mrf.mxu0 }
 0x76a   : > { %v2660_v44 = vpack.i.bf16 %v2562_v31, %v1513_v32 }
 0x76f   : > { %v2569_v33 = vpop.f32.mrf.mxu0 }
 0x770   : > { %v1614_v34 = vmul.f32 0.25, %v2569_v33 }
 0x771   : > { %v1604_v35 = vpop.f32.mrf.mxu0 }
 0x772   : > { %v1613_v36 = vmul.f32 0.25, %v1604_v35  ;;  %v1616_v37 = vadd.f32 %v2974_v59, %v1614_v34 }
 0x774   : > { %v1620_v38 = vsel %vm915_vm1, %v1616_v37, -inf  ;;  %v1615_v41 = vadd.f32 %v2974_v59, %v1613_v36 }
 0x775   : > { %1621 = vmax.xlane.f32.xlu1 %v1620_v38 }
 0x776   : > { %v1617_v42 = vsel %vm915_vm1, %v1615_v41, -inf }
 0x777   : > { %1618 = vmax.xlane.f32.xlu0 %v1617_v42 }
 0x786   : > { %1639 = vrot.lane.b32.xlu1 %v2963_v58, %s2777_s25 }
 0x78a   : > { %2656 = vrot.lane.b32.xlu1 %v2655_v43, %s2776_s0 }
 0x78e   : > { %2661 = vrot.lane.b32.xlu1 %v2660_v44, %s2774_s29 }
 0x7fe   : > { %v1622_v45 = vpop.xlane.xlu1 %1621 }
 0x7ff   : > { %v1624_v46 = vsub.f32 %v1616_v37, %v1622_v45  ;;  %v2687_v45 = vld [vmem:[%s3203_s10 + $0x10] sm:$0xff]  }
 0x800   : > { %v1619_v47 = vpop.xlane.xlu0 %1618 }
 0x801   : > { %v1627_v49 = vmul.f32 1.442695, %v1624_v46  ;;  %v1623_v50 = vsub.f32 %v1615_v41, %v1619_v47  ;;  %v2688_v46 = vld [vmem:[%s3203_s10 + $0x8] sm:$0xff]   ;;  %v2689_v47 = vld [vmem:[%s3203_s10] sm:$0xff]  }
 0x802   : > { %v1640_v61 = vpop.permute.xlu1 %1639 }
 0x803   : > { %2726 = vpow2.f32 %v1627_v49  ;;  %v1625_v59 = vmul.f32 1.442695, %v1623_v50 }
 0x805   : > { %2728 = vpow2.f32 %v1625_v59 }
 0x806   : > { %v2657_v9 = vpop.permute.xlu1 %2656 }
 0x807   : > { %v2659_v11 = vunpack.i.h.bf16 %v2657_v9  ;;  %v2658_v12 = vunpack.i.l.bf16 %v2657_v9  ;;  %v2695_v9 = vld [vmem:[%s3205_s12 + $0x10] sm:$0xff]  }
 0x809   : > { %v1751_v16 = vsel %vm915_vm1, %v3012_v28, %v2659_v11  ;;  %v1750_v17 = vsel %vm915_vm1, %v3014_v29, %v2658_v12  ;;  %v2697_v11 = vld [vmem:[%s3205_s12] sm:$0xff]  }
 0x80a   : > { %v2662_v10 = vpop.permute.xlu1 %2661  ;;  %v2449_v12 = vld [vmem:[%s3204_s11] ss:$0 sm:$0xff] }
 0x80b   : > { %v2664_v13 = vunpack.i.h.bf16 %v2662_v10  ;;  %v2663_v14 = vunpack.i.l.bf16 %v2662_v10  ;;  %v2696_v10 = vld [vmem:[%s3205_s12 + $0x8] sm:$0xff]  }
 0x80d   : > { %v1753_v20 = vsel %vm1752_vm3, %v1750_v17, %v2663_v14  ;;  %v1754_v48 = vsel %vm1752_vm3, %v1751_v16, %v2664_v13 }
 0x810   : > { %v2727_v52 = vpop.eup %2726 }
 0x811   : > { %v1632_v53 = vsel %vm915_vm1, %v2727_v52, 0.0 }
 0x812   : > { %v2729_v54 = vpop.eup %2728  ;;  %1633 = vadd.xlane.f32.xlu0 %v1632_v53 }
 0x813   : > { %v1629_v58 = vsel %vm915_vm1, %v2729_v54, 0.0 }
 0x816   : > { %1630 = vadd.xlane.f32.xlu0 %v1629_v58 }
 0x82c   : > { %1641 = vrot.lane.b32.xlu0 %v2959_v57, %s2777_s25  ;;  %v2682_v57 = vld [vmem:[%s3199_s6 + $0x18] sm:$0xff]  }
 0x82d   : > { %2578 = vmatpush3.bf16.msra.mxu0 %v2682_v57 }
 0x82e   : > { %2579 = vmatprep.subr.bf16.mxu0 %v2778_v2 }
 0x831   : > { %2580 = vmatpush3.bf16.msra.mxu0 %v2683_v3 }
 0x832   : > { %2581 = vmatprep.subr.bf16.mxu0 %v2778_v2 }
 0x835   : > { %2582 = vmatpush3.bf16.msra.mxu0 %v2684_v4  ;;  %v2690_v4 = vld [vmem:[%s3205_s12 + $0x38] sm:$0xff]  }
 0x836   : > { %2583 = vmatprep.subr.bf16.mxu0 %v2778_v2 }
 0x839   : > { %2584 = vmatpush3.bf16.msra.mxu0 %v2685_v5  ;;  %v2691_v5 = vld [vmem:[%s3205_s12 + $0x30] sm:$0xff]  }
 0x83a   : > { %2589 = vmatprep.subr.bf16.mxu0 %v2778_v2 }
 0x89b   : > { %v1634_v55 = vpop.xlane.xlu0 %1633 }
 0x89c   : > { %2730 = vrcp.f32 %v1634_v55 }
 0x89f   : > { %v1631_v56 = vpop.xlane.xlu0 %1630 }
 0x8a0   : > { %2732 = vrcp.f32 %v1631_v56  ;;  %v2447_v56 = vld [vmem:[%s3201_s8] ss:$0 sm:$0xff] }
 0x8a3   : > { %v1642_v60 = vpop.permute.xlu0 %1641 }
 0x8a4   : > { %2570 = vmatprep.subr.mxu1 %v1642_v60 }
 0x8a5   : > { %2571 = vmatpush3.msra.mxu1 %v1642_v60 }
 0x8a6   : > { %2572 = vmatprep.subr.mxu1 %v1640_v61 }
 0x8a7   : > { %2573 = vmatpush3.msra.mxu1 %v1640_v61 }
 0x8a8   : > { %2601 = vmatprep.subr.bf16.mxu1 %v2778_v2 }
 0x8a9   : > { %v2731_v62 = vpop.eup %2730 }
 0x8aa   : > { %v1638_v1 = vmul.f32 %v2731_v62, %v2727_v52 }
 0x8ad   : > { %v2733_v63 = vpop.eup %2732 }
 0x8ae   : > { %v1637_v0 = vmul.f32 %v2733_v63, %v2729_v54  ;;  %v2448_v63 = vld [vmem:[%s3202_s9] ss:$0 sm:$0xff] }
 0x8b0   : > { %2574 = vmatprep.mubr.msk.f32.mxu1 %vm915_vm1, %v1637_v0 }
 0x8b1   : > { %2575 = vmatmul.mubr.msk.f32.vlgmr.msra.gmra.mxu1 %vm915_vm1, %v1638_v1 }
 0x8b2   : > { %2617 = vmatprep.mubr.msk.bf16.mxu1 %vm2779_vm2, %v2778_v2  ;;  %2602 = vmatpush3.bf16.msra.mxu1 %v2690_v4  ;;  %v2465_v4 = vld [vmem:[%s3208_s15] ss:$0 sm:$0xff] }
 0x8b3   : > { %2603 = vmatprep.subr.bf16.mxu1 %v2778_v2 }
 0x8b6   : > { %2604 = vmatpush3.bf16.msra.mxu1 %v2691_v5 }
 0x8b7   : > { %2605 = vmatprep.subr.bf16.mxu1 %v2778_v2 }
 0x971   : > { %v2576_v6 = vpop.f32.mrf.mxu1 }
 0x973   : > { %v1717_v7 = vpop.f32.mrf.mxu1 }
 0x974   : > { %v2665_v8 = vpack.i.bf16 %v2576_v6, %v1717_v7  ;;  %v2692_v6 = vld [vmem:[%s3205_s12 + $0x28] sm:$0xff]   ;;  %v2693_v7 = vld [vmem:[%s3205_s12 + $0x20] sm:$0xff]  }
 0x975   : > { %2606 = vmatpush3.bf16.msra.mxu1 %v2692_v6 }
 0x976   : > { %2666 = vrot.lane.b32.xlu0 %v2665_v8, %s2772_s21  ;;  %2607 = vmatprep.subr.bf16.mxu1 %v2778_v2  ;;  %v2694_v8 = vld [vmem:[%s3205_s12 + $0x18] sm:$0xff]  }
 0x979   : > { %2608 = vmatpush3.bf16.msra.mxu1 %v2693_v7 }
 0x97a   : > { %2609 = vmatprep.subr.bf16.mxu1 %v2778_v2 }
 0x97d   : > { %2610 = vmatpush3.bf16.msra.mxu1 %v2694_v8 }
 0x97e   : > { %2611 = vmatprep.subr.bf16.mxu1 %v2778_v2 }
 0x981   : > { %2612 = vmatpush3.bf16.msra.mxu1 %v2695_v9 }
 0x982   : > { %2613 = vmatprep.subr.bf16.mxu1 %v2778_v2 }
 0x985   : > { %2614 = vmatpush3.bf16.msra.mxu1 %v2696_v10 }
 0x986   : > { %2615 = vmatprep.subr.bf16.mxu1 %v2778_v2 }
 0x989   : > { %2616 = vmatpush3.bf16.msra.mxu1 %v2697_v11 }
 0x9e8   : > { %v2667_v15 = vpop.permute.xlu0 %2666 }
 0x9e9   : > { %v2669_v18 = vunpack.i.h.bf16 %v2667_v15  ;;  %v2668_v19 = vunpack.i.l.bf16 %v2667_v15 }
 0x9eb   : > { %v1757_v51 = vsel %vm1755_vm4, %v1754_v48, %v2669_v18  ;;  %v1756_v21 = vsel %vm1755_vm4, %v1753_v20, %v2668_v19 }
 0x9ec   : > { %v1758_v22 = vpack.c.bf16 %v1757_v51, %v1756_v21 }
 0x9ee   : > { %2586 = vmatmul.mubr.msk.bf16.vlgmr.msra.gmra.mxu0 %vm752_vm0, %v1758_v22 }
 0x9ef   : > { %2597 = vmatprep.mubr.msk.bf16.mxu0 %vm2779_vm2, %v2778_v2 }
 0xaae   : > { %v1835_v28 = vpop.f32.mrf.mxu0 }
 0xaaf   : > { %v1836_v24 = vadd.f32 %v2441_v23, %v1835_v28 }
 0xab0   : > { %v2587_v25 = vpop.f32.mrf.mxu0 }
 0xab1   : > { %v1842_v29 = vadd.f32 %v1836_v24, %v2937_v39 }
 0xab2   : > { %v1838_v26 = vpop.f32.mrf.mxu0 }
 0xab3   : > { %v1839_v27 = vadd.f32 %v2441_v23, %v1838_v26  ;;  %v1846_v30 = vsel %vm752_vm0, %v1842_v29, 0.0 }
 0xab4   : > { %1847 = vadd.xlane.f32.xlu1 %v1846_v30  ;;  %v2588_v31 = vpop.f32.mrf.mxu0 }
 0xab5   : > { %v1843_v32 = vadd.f32 %v1839_v27, %v2940_v40  ;;  %v2686_v40 = vld [vmem:[%s3203_s10 + $0x18] sm:$0xff]  }
 0xab6   : > { %2590 = vmatpush3.bf16.msra.mxu0 %v2686_v40 }
 0xab7   : > { %v1849_v33 = vsel %vm752_vm0, %v1843_v32, 0.0  ;;  %2591 = vmatprep.subr.bf16.mxu0 %v2778_v2 }
 0xab8   : > { %1850 = vadd.xlane.f32.xlu0 %v1849_v33 }
 0xaba   : > { %2592 = vmatpush3.bf16.msra.mxu0 %v2687_v45 }
 0xabb   : > { %2593 = vmatprep.subr.bf16.mxu0 %v2778_v2 }
 0xabe   : > { %2594 = vmatpush3.bf16.msra.mxu0 %v2688_v46 }
 0xabf   : > { %2595 = vmatprep.subr.bf16.mxu0 %v2778_v2 }
 0xac2   : > { %2596 = vmatpush3.bf16.msra.mxu0 %v2689_v47 }
 0xb3d   : > { %v1848_v34 = vpop.xlane.xlu1 %1847 }
 0xb3e   : > { %v1853_v35 = vmul.f32 0.015625, %v1848_v34 }
 0xb40   : > { %v1855_v36 = vsub.f32 %v1842_v29, %v1853_v35  ;;  %v2455_v35 = vld [vmem:[%s3206_s13] ss:$0 sm:$0xff] }
 0xb41   : > { %v1851_v37 = vpop.xlane.xlu0 %1850 }
 0xb42   : > { %v1854_v38 = vmul.f32 0.015625, %v1851_v37  ;;  %v1857_v41 = vmul.f32 %v1855_v36, %v1855_v36 }
 0xb44   : > { %v1856_v42 = vsub.f32 %v1843_v32, %v1854_v38  ;;  %v1859_v39 = vsel %vm752_vm0, %v1857_v41, 0.0 }
 0xb45   : > { %1860 = vadd.xlane.f32.xlu0 %v1859_v39 }
 0xb46   : > { %v1858_v43 = vmul.f32 %v1856_v42, %v1856_v42 }
 0xb48   : > { %v1862_v44 = vsel %vm752_vm0, %v1858_v43, 0.0 }
 0xb49   : > { %1863 = vadd.xlane.f32.xlu0 %v1862_v44 }
 0xbce   : > { %v1861_v49 = vpop.xlane.xlu0 %1860 }
 0xbcf   : > { %v1865_v50 = vmul.f32 0.015625, %v1861_v49 }
 0xbd1   : > { %v1867_v59 = vadd.f32 1e-05, %v1865_v50 }
 0xbd2   : > { %v1864_v52 = vpop.xlane.xlu0 %1863 }
 0xbd3   : > { %2734 = vrsqrt.f32 %v1867_v59  ;;  %v1866_v53 = vmul.f32 0.015625, %v1864_v52 }
 0xbd5   : > { %v1868_v54 = vadd.f32 1e-05, %v1866_v53 }
 0xbd7   : > { %2736 = vrsqrt.f32 %v1868_v54 }
 0xbe0   : > { %v2735_v58 = vpop.eup %2734 }
 0xbe1   : > { %v1871_v55 = vmul.f32 %v2735_v58, %v1855_v36 }
 0xbe3   : > { %v1879_v62 = vmul.f32 %v2447_v56, %v1871_v55 }
 0xbe4   : > { %v2737_v60 = vpop.eup %2736 }
 0xbe5   : > { %v1872_v61 = vmul.f32 %v2737_v60, %v1856_v42  ;;  %v1887_v1 = vadd.f32 %v2448_v63, %v1879_v62 }
 0xbe7   : > { %v1880_v0 = vmul.f32 %v2447_v56, %v1872_v61 }
 0xbe9   : > { %v3128_v57 = vadd.f32 %v2448_v63, %v1880_v0 }
 0xbeb   : > { %v1889_v3 = vpack.c.bf16 %v3128_v57, %v1887_v1 }
 0xbed   : > { %2598 = vmatmul.mubr.msk.bf16.vlgmr.msra.gmra.mxu0 %vm752_vm0, %v1889_v3 }
 0xcad   : > { %v1966_v13 = vpop.f32.mrf.mxu0 }
 0xcae   : > { %v1967_v14 = vadd.f32 %v2449_v12, %v1966_v13 }
 0xcaf   : > { %v2599_v15 = vpop.f32.mrf.mxu0 }
 0xcb0   : > { %v1975_v16 = vmul.f32 0.044715, %v1967_v14  ;;  %v1973_v27 = vmul.f32 0.5, %v1967_v14 }
 0xcb1   : > { %v1969_v17 = vpop.f32.mrf.mxu0 }
 0xcb2   : > { %v1977_v18 = vmul.f32 %v1975_v16, %v1967_v14  ;;  %v1970_v19 = vadd.f32 %v2449_v12, %v1969_v17 }
 0xcb3   : > { %v2600_v20 = vpop.f32.mrf.mxu0 }
 0xcb4   : > { %v1979_v48 = vmul.f32 %v1977_v18, %v1967_v14  ;;  %v1976_v51 = vmul.f32 0.044715, %v1970_v19  ;;  %v1974_v30 = vmul.f32 0.5, %v1970_v19 }
 0xcb6   : > { %v1981_v21 = vadd.f32 %v1979_v48, %v1967_v14  ;;  %v1978_v22 = vmul.f32 %v1976_v51, %v1970_v19 }
 0xcb8   : > { %v1983_v23 = vmul.f32 0.7978846, %v1981_v21  ;;  %v1980_v28 = vmul.f32 %v1978_v22, %v1970_v19 }
 0xcba   : > { %2738 = vtanh.f32 %v1983_v23  ;;  %v1982_v2 = vadd.f32 %v1980_v28, %v1970_v19 }
 0xcbc   : > { %v1984_v24 = vmul.f32 0.7978846, %v1982_v2 }
 0xcbe   : > { %2740 = vtanh.f32 %v1984_v24 }
 0xcc7   : > { %v2739_v25 = vpop.eup %2738 }
 0xcc8   : > { %v1987_v29 = vadd.f32 1.0, %v2739_v25 }
 0xcca   : > { %v1989_v32 = vmul.f32 %v1987_v29, %v1973_v27 }
 0xccb   : > { %v2741_v26 = vpop.eup %2740 }
 0xccc   : > { %v1988_v31 = vadd.f32 1.0, %v2741_v26 }
 0xcce   : > { %v1990_v33 = vmul.f32 %v1988_v31, %v1974_v30 }
 0xcd0   : > { %v1991_v34 = vpack.c.bf16 %v1990_v33, %v1989_v32 }
 0xcd2   : > { %2618 = vmatmul.mubr.bf16.vlgmr.msra.gmra.mxu1 %v1991_v34 }
 0xd92   : > { %v2097_v36 = vpop.f32.mrf.mxu1 }
 0xd93   : > { %v2098_v37 = vadd.f32 %v2455_v35, %v2097_v36 }
 0xd94   : > { %v2619_v38 = vpop.f32.mrf.mxu1 }
 0xd95   : > { %v2104_v41 = vadd.f32 %v2098_v37, %v1887_v1 }
 0xd96   : > { %v2100_v42 = vpop.f32.mrf.mxu1 }
 0xd97   : > { %v2101_v39 = vadd.f32 %v2455_v35, %v2100_v42  ;;  %v2108_v43 = vsel %vm752_vm0, %v2104_v41, 0.0 }
 0xd98   : > { %2109 = vadd.xlane.f32.xlu1 %v2108_v43  ;;  %v2620_v44 = vpop.f32.mrf.mxu1 }
 0xd99   : > { %v2105_v40 = vadd.f32 %v2101_v39, %v3128_v57  ;;  %v2464_v57 = vld [vmem:[%s3207_s14] ss:$0 sm:$0xff] }
 0xd9b   : > { %v2111_v45 = vsel %vm752_vm0, %v2105_v40, 0.0 }
 0xd9c   : > { %2112 = vadd.xlane.f32.xlu0 %v2111_v45 }
 0xe21   : > { %v2110_v46 = vpop.xlane.xlu1 %2109 }
 0xe22   : > { %v2114_v47 = vmul.f32 0.015625, %v2110_v46 }
 0xe24   : > { %v2116_v49 = vsub.f32 %v2104_v41, %v2114_v47 }
 0xe25   : > { %v2113_v50 = vpop.xlane.xlu0 %2112 }
 0xe26   : > { %v2115_v59 = vmul.f32 0.015625, %v2113_v50  ;;  %v2118_v52 = vmul.f32 %v2116_v49, %v2116_v49 }
 0xe28   : > { %v2117_v53 = vsub.f32 %v2105_v40, %v2115_v59  ;;  %v2120_v54 = vsel %vm752_vm0, %v2118_v52, 0.0 }
 0xe29   : > { %2121 = vadd.xlane.f32.xlu1 %v2120_v54 }
 0xe2a   : > { %v2119_v58 = vmul.f32 %v2117_v53, %v2117_v53 }
 0xe2c   : > { %v2123_v55 = vsel %vm752_vm0, %v2119_v58, 0.0 }
 0xe2d   : > { %2124 = vadd.xlane.f32.xlu0 %v2123_v55 }
 0xeb2   : > { %v2122_v56 = vpop.xlane.xlu1 %2121 }
 0xeb3   : > { %v2126_v60 = vmul.f32 0.015625, %v2122_v56 }
 0xeb5   : > { %v2128_v61 = vadd.f32 1e-05, %v2126_v60 }
 0xeb6   : > { %v2125_v62 = vpop.xlane.xlu0 %2124 }
 0xeb7   : > { %2742 = vrsqrt.f32 %v2128_v61  ;;  %v2127_v63 = vmul.f32 0.015625, %v2125_v62 }
 0xeb9   : > { %v2129_v0 = vadd.f32 1e-05, %v2127_v63 }
 0xebb   : > { %2744 = vrsqrt.f32 %v2129_v0 }
 0xec4   : > { %v2743_v1 = vpop.eup %2742 }
 0xec5   : > { %v2132_v3 = vmul.f32 %v2743_v1, %v2116_v49 }
 0xec7   : > { %v2140_v5 = vmul.f32 %v2464_v57, %v2132_v3 }
 0xec8   : > { %v2745_v6 = vpop.eup %2744 }
 0xec9   : > { %v2148_v7 = vadd.f32 %v2465_v4, %v2140_v5  ;;  %v2133_v8 = vmul.f32 %v2745_v6, %v2117_v53 }
 0xecb   : > { %2150 = vst.msk [vmem:[%s2930_s17] sm:$0xff] %vm752_vm0, %v2148_v7  ;;  %v2141_v9 = vmul.f32 %v2464_v57, %v2133_v8 }
 0xecd   : > { %v2149_v10 = vadd.f32 %v2465_v4, %v2141_v9 }
 0xecf   : > { %2151 = vst.msk [vmem:[%s2930_s17 + $0x8] sm:$0xff] %vm752_vm0, %v2149_v10 }
 0xed0 PF: > { %s26_s23 = sadd.s32 1, %s2768_s23   ;;  %s3212_s21 = smov %s2764_s22 }
 0xed1   : > { %p23_p5 = scmp.ge.s32.totalorder %s26_s23, 4   ;;  %s3213_s22 = smov %s3215_s24 }
 0xed3   :  { %25 = sbr.rel (!%p23_p5) target bundleno = 2 (0x2), region = 157 }

// kernel: fwd.25
= control target key start
LH: loop header
LB: loop body
LE: loop exit
PB: predicated region body
PF: predicated region fallthrough
CT: control target
= control target key end

     0   :  { %v192_v0 = vmov 0.0   ;;  %vm193_vm0 = vmmov 0   ;;  %vm45_vm1 = vcmask 261120   ;;  %s251_s3 = inlined_call_operand.vmem [shape: bf16[32,32], index: 3, kind: input, shape index: {}]   ;;  %s252_s2 = inlined_call_operand.vmem [shape: bf16[32,32], index: 2, kind: input, shape index: {}]   ;;  %s253_s1 = inlined_call_operand.vmem [shape: f32[8,32], index: 1, kind: input, shape index: {}]   ;;  %s254_s0 = inlined_call_operand.vmem [shape: f32[8,32], index: 0, kind: input, shape index: {}]   ;;  %s255_s4 = inlined_call_operand.vmem [shape: f32[1,32], index: 4, kind: input, shape index: {}]   ;;  %s256_s5 = inlined_call_operand.vmem [shape: f32[8,32], index: 5, kind: output, shape index: {}]  }
   0x1   :  { %170 = vmatprep.subr.bf16.mxu0 %v192_v0  ;;  %178 = vmatprep.subr.bf16.mxu1 %v192_v0  ;;  %v188_v1 = vld [vmem:[%s251_s3 + $0x8] sm:$0xff]   ;;  %v190_v3 = vld [vmem:[%s251_s3] sm:$0xff]  }
   0x2   :  { %v189_v2 = vld [vmem:[%s252_s2 + $0x8] sm:$0xff]   ;;  %174 = vmatprep.mubr.msk.bf16.mxu0 %vm193_vm0, %v192_v0  ;;  %182 = vmatprep.mubr.msk.bf16.mxu1 %vm193_vm0, %v192_v0  ;;  %v191_v4 = vld [vmem:[%s252_s2] sm:$0xff]  }
   0x3   :  { %171 = vmatpush3.bf16.msra.mxu0 %v188_v1  ;;  %179 = vmatpush3.bf16.msra.mxu1 %v189_v2  ;;  %v27_v5 = vld [vmem:[%s253_s1] sm:$0xff] }
   0x4   :  { %172 = vmatprep.subr.bf16.mxu0 %v192_v0  ;;  %180 = vmatprep.subr.bf16.mxu1 %v192_v0  ;;  %v21_v6 = vld [vmem:[%s254_s0] sm:$0xff]  ;;  %v28_v7 = vpack.c.bf16 %v27_v5, %v27_v5 }
   0x5   :  { %v22_v8 = vpack.c.bf16 %v21_v6, %v21_v6  ;;  %v163_v11 = vld [vmem:[%s255_s4] ss:$0 sm:$0xff] }
   0x7   :  { %173 = vmatpush3.bf16.msra.mxu0 %v190_v3  ;;  %181 = vmatpush3.bf16.msra.mxu1 %v191_v4 }
   0xa   :  { %175 = vmatmul.mubr.msk.bf16.vlgmr.msra.gmra.mxu0 %vm45_vm1, %v28_v7  ;;  %183 = vmatmul.mubr.msk.bf16.vlgmr.msra.gmra.mxu1 %vm45_vm1, %v22_v8 }
  0xca   :  { %v83_v9 = vpop.f32.mrf.mxu0  ;;  %v138_v10 = vpop.f32.mrf.mxu1 }
  0xcb   :  { %v139_v12 = vadd.f32 %v138_v10, %v83_v9 }
  0xcc   :  { %v176_v13 = vpop.f32.mrf.mxu0  ;;  %v184_v14 = vpop.f32.mrf.mxu1 }
  0xcd   :  { %v151_v15 = vadd.f32 %v163_v11, %v139_v12 }
  0xce   :  { %v86_v16 = vpop.f32.mrf.mxu0  ;;  %v141_v17 = vpop.f32.mrf.mxu1 }
  0xcf   :  { %152 = vst.msk [vmem:[%s256_s5] sm:$0xff] %vm45_vm1, %v151_v15 }
  0xd0   :  { %v177_v18 = vpop.f32.mrf.mxu0  ;;  %v185_v19 = vpop.f32.mrf.mxu1 }

// kernel: fwd.29
= control target key start
LH: loop header
LB: loop body
LE: loop exit
PB: predicated region body
PF: predicated region fallthrough
CT: control target
= control target key end

     0   :  { %v109_v0 = vmov 0.0   ;;  %vm110_vm0 = vmmov 0   ;;  %vm40_vm1 = vcmask 261120   ;;  %vm84_vm2 = vcmask 30720   ;;  %s146_s1 = inlined_call_operand.vmem [shape: bf16[32,4], index: 1, kind: input, shape index: {}]   ;;  %s147_s0 = inlined_call_operand.vmem [shape: f32[7,32], index: 0, kind: input, shape index: {}]   ;;  %s148_s2 = inlined_call_operand.vmem [shape: f32[1,4], index: 2, kind: input, shape index: {}]   ;;  %s149_s3 = inlined_call_operand.vmem [shape: f32[7,4], index: 3, kind: output, shape index: {}]  }
   0x1   :  { %97 = vmatprep.subr.bf16.mxu0 %v109_v0  ;;  %v107_v1 = vld [vmem:[%s146_s1 + $0x8] sm:$0xff]   ;;  %101 = vmatprep.mubr.msk.bf16.mxu0 %vm110_vm0, %v109_v0  ;;  %v108_v2 = vld [vmem:[%s146_s1] sm:$0xff]  }
   0x2   :  { %98 = vmatpush3.bf16.msra.mxu0 %v107_v1  ;;  %v15_v3 = vld [vmem:[%s147_s0] sm:$0x7f] }
   0x3   :  { %99 = vmatprep.subr.bf16.mxu0 %v109_v0  ;;  %v16_v4 = vpack.c.bf16 %v15_v3, %v15_v3  ;;  %v90_v5 = vld [vmem:[%s148_s2] ss:$0 sm:$0xff] }
   0x6   :  { %100 = vmatpush3.bf16.msra.mxu0 %v108_v2 }
   0x9   :  { %102 = vmatmul.mubr.msk.bf16.vlgmr.msra.gmra.mxu0 %vm40_vm1, %v16_v4 }
  0xc9   :  { %v78_v6 = vpop.f32.mrf.mxu0 }
  0xca   :  { %v79_v7 = vadd.f32 %v90_v5, %v78_v6 }
  0xcb   :  { %v103_v8 = vpop.f32.mrf.mxu0 }
  0xcc   :  { %85 = vst.msk [vmem:[%s149_s3] sm:$0x7f] %vm84_vm2, %v79_v7 }
  0xcd   :  { %v81_v9 = vpop.f32.mrf.mxu0 }
  0xcf   :  { %v104_v10 = vpop.f32.mrf.mxu0 }

// kernel: fwd.23
= control target key start
LH: loop header
LB: loop body
LE: loop exit
PB: predicated region body
PF: predicated region fallthrough
CT: control target
= control target key end

     0   :  { %s2634_s27 = smov 0   ;;  %s2636_s28 = smov 0   ;;  %s2847_s0 = inlined_call_operand.vmem [shape: f32[2,4,32], index: 0, kind: input, shape index: {}]   ;;  %s2848_s1 = inlined_call_operand.vmem [shape: f32[2,4,32], index: 1, kind: input, shape index: {}]   ;;  %s2849_s2 = inlined_call_operand.vmem [shape: f32[1,32], index: 2, kind: input, shape index: {}]   ;;  %s2850_s3 = inlined_call_operand.vmem [shape: f32[1,32], index: 3, kind: input, shape index: {}]   ;;  %s2851_s4 = inlined_call_operand.vmem [shape: bf16[1,32,32], index: 4, kind: input, shape index: {}]   ;;  %s2852_s5 = inlined_call_operand.vmem [shape: f32[1,1,32], index: 5, kind: input, shape index: {}]   ;;  %s2853_s6 = inlined_call_operand.vmem [shape: bf16[1,32,64], index: 6, kind: input, shape index: {}]   ;;  %s2854_s7 = inlined_call_operand.vmem [shape: f32[1,1,64], index: 7, kind: input, shape index: {}]   ;;  %s2855_s8 = inlined_call_operand.vmem [shape: bf16[1,32,32], index: 8, kind: input, shape index: {}]   ;;  %s2856_s9 = inlined_call_operand.vmem [shape: f32[1,1,32], index: 9, kind: input, shape index: {}]   ;;  %s2857_s10 = inlined_call_operand.vmem [shape: f32[1,1,32], index: 10, kind: input, shape index: {}]   ;;  %s2858_s11 = inlined_call_operand.vmem [shape: f32[1,1,32], index: 11, kind: input, shape index: {}]   ;;  %s2859_s12 = inlined_call_operand.vmem [shape: bf16[1,32,64], index: 12, kind: input, shape index: {}]   ;;  %s2860_s13 = inlined_call_operand.vmem [shape: f32[1,1,64], index: 13, kind: input, shape index: {}]   ;;  %s2861_s14 = inlined_call_operand.vmem [shape: bf16[1,64,32], index: 14, kind: input, shape index: {}]   ;;  %s2862_s15 = inlined_call_operand.vmem [shape: f32[1,1,32], index: 15, kind: input, shape index: {}]   ;;  %s2863_s16 = inlined_call_operand.vmem [shape: f32[1,1,32], index: 16, kind: input, shape index: {}]   ;;  %s2864_s17 = inlined_call_operand.vmem [shape: f32[1,1,32], index: 17, kind: input, shape index: {}]   ;;  %s2865_s18 = inlined_call_operand.vmem [shape: f32[2,4,32], index: 18, kind: output, shape index: {}]  }
   0x1   :  { %2866 = sst [smem:[#allocation3_spill]] %s2847_s0  ;;  %s2638_s29 = smov 0  }
   0x2   :  { %2867 = sst [smem:[#allocation4_spill]] %s2848_s1 }
   0x3   :  { %2868 = sst [smem:[#allocation5_spill]] %s2849_s2 }
   0x4 LB: > { %s40_s30 = sadd.s32 1, %s2521_s28  ;;  %p2264_p0 = scmp.ge.s32.totalorder %s2525_s29, 1  ;;  %s2525_s29 = sphi %s2638_s29, %s28_s29   ;;  %s2521_s28 = sphi %s2636_s28, %s2875_s28   ;;  %s2517_s27 = sphi %s2634_s27, %s2874_s27  }
   0x5   : > { %p42_p1 = scmp.ge.s32.totalorder %s40_s30, 2  ;;  %p654_p2 = scmp.lt.s32.totalorder %s2525_s29, 3 }
   0x7   : > { %s2877_s30 = smov (%p42_p1, %s40_s30), 0  ;;  %p655_p3 = pnand %p2264_p0, %p654_p2 }
   0x8   : > { %2869 = sst [smem:[#allocation2_spill]] %s2877_s30  ;;  %p762_p4 = scmp.lt.s32.totalorder (!%p655_p3), %s2517_s27, 1 }
   0x9   : > { %658 = sbr.rel (%p655_p3) target bundleno = 2752 (0xac0), region = 92  ;;  %s2870_s20 = sld [smem:[#allocation3_spill]] (!%p655_p3) }
   0xa   : > { %s2871_s26 = sld [smem:[#allocation4_spill]] (!%p655_p3)  ;;  %s2532_s22 = smov (!%p655_p3), 88  }
   0xb   : > { %s2533_s2 = smov (!%p655_p3), 80   ;;  %s2534_s24 = smov (!%p655_p3), 96  }
   0xc   : > { %s2535_s25 = smov (!%p655_p3), 72  }
   0xe   : > { %s2879_s27 = smov (!%p762_p4, %s2517_s27), 1  ;;  %vm832_vm0 = vcmask 257024   ;;  %v2467_v15 = vld [vmem:[%s2851_s4 + $0x8] sm:$0xff]   ;;  %v2527_v16 = vmov 0.0   ;;  %vm2528_vm1 = vmmov 0   ;;  %v2468_v17 = vld [vmem:[%s2851_s4] sm:$0xff]  }
   0xf   : > { %s2265_s0 = sshll.u32 %s2879_s27, 2  ;;  %2347 = vmatprep.subr.bf16.mxu1 %v2527_v16  ;;  %2351 = vmatprep.mubr.msk.bf16.mxu1 %vm2528_vm1, %v2527_v16  ;;  %v2268_v25 = vld [vmem:[%s2857_s10] ss:$0 sm:$0xff]  ;;  %vm906_vm2 = vcmask 261120   ;;  %v2469_v32 = vld [vmem:[%s2853_s6 + $0x8] sm:$0xff]   ;;  %vm1017_vm3 = vcmask 64512  }
  0x10   : > { %s765_s21 = scalar_lea.vmem %s2870_s20, %s2265_s0  ;;  %s2658_s23 = scalar_lea.vmem %s2865_s18, %s2265_s0  ;;  %2348 = vmatpush3.bf16.msra.mxu1 %v2467_v15  ;;  %2363 = vmatprep.subr.mxu0 %v2527_v16  ;;  %v2269_v27 = vld [vmem:[%s2858_s11] ss:$0 sm:$0xff]  ;;  %vm1095_vm4 = vcmask 27648   ;;  %vm1113_vm5 = vcmask 1043456   ;;  %vm1109_vm6 = vcmask 31744   ;;  %vm1700_vm7 = vcmask 130048  }
  0x11   : > { %v831_v0 = vld [vmem:[%s765_s21] sm:$0xf]  ;;  %s769_s30 = scalar_lea.vmem %s2871_s26, %s2265_s0  ;;  %2349 = vmatprep.subr.bf16.mxu1 %v2527_v16  ;;  %2365 = vmatprep.mubr.msk.f32.mxu0 %vm2528_vm1, %v2527_v16  ;;  %s2529_s0 = smov 120   ;;  %vm1702_vm8 = vcmask 195584   ;;  %vm1909_vm9 = vcmask 523264  }
  0x12   : > { %833 = vst.msk [vmem:[%s2658_s23] sm:$0xf] %vm832_vm0, %v831_v0  ;;  %v835_v2 = vld [vmem:[%s769_s30] sm:$0xf]  ;;  %s2530_s20 = smov 112   ;;  %s2531_s21 = smov 104  }
  0x13   : > { %v867_v4 = vsel %vm832_vm0, %v835_v2, 0.0  ;;  %v2470_v35 = vld [vmem:[%s2853_s6] sm:$0xff]   ;;  %s2536_s30 = smov 8  }
  0x14   : > { %2350 = vmatpush3.bf16.msra.mxu1 %v2468_v17  ;;  %v2270_v38 = vld [vmem:[%s2852_s5] ss:$0 sm:$0xff] }
  0x15   : > { %2355 = vmatprep.subr.bf16.mxu1 %v2527_v16  ;;  %v2274_v44 = vld [vmem:[%s2854_s7] ss:$0 sm:$0xff] }
  0x19   : > { %v2666_v1 = vld [vmem:[%s2658_s23] sm:$0xf] }
  0x1a   : > { %v839_v3 = vsel %vm832_vm0, %v2666_v1, 0.0 }
  0x1b   : > { %840 = vadd.xlane.f32.xlu0 %v839_v3 }
  0x1f   : > { %868 = vadd.xlane.f32.xlu0 %v867_v4 }
  0xa4   : > { %v841_v5 = vpop.xlane.xlu0 %840 }
  0xa5   : > { %v843_v6 = vmul.f32 0.03125, %v841_v5 }
  0xa7   : > { %v844_v7 = vsub.f32 %v2666_v1, %v843_v6 }
  0xa8   : > { %v869_v8 = vpop.xlane.xlu0 %868 }
  0xa9   : > { %v870_v9 = vmul.f32 0.03125, %v869_v8  ;;  %v845_v10 = vmul.f32 %v844_v7, %v844_v7 }
  0xab   : > { %v871_v11 = vsub.f32 %v835_v2, %v870_v9  ;;  %v846_v12 = vsel %vm832_vm0, %v845_v10, 0.0 }
  0xac   : > { %847 = vadd.xlane.f32.xlu1 %v846_v12 }
  0xad   : > { %v872_v13 = vmul.f32 %v871_v11, %v871_v11 }
  0xaf   : > { %v873_v14 = vsel %vm832_vm0, %v872_v13, 0.0 }
  0xb0   : > { %874 = vadd.xlane.f32.xlu1 %v873_v14 }
 0x135   : > { %v848_v18 = vpop.xlane.xlu1 %847 }
 0x136   : > { %v849_v19 = vmul.f32 0.03125, %v848_v18 }
 0x138   : > { %v850_v20 = vadd.f32 1e-05, %v849_v19 }
 0x139   : > { %v875_v21 = vpop.xlane.xlu1 %874 }
 0x13a   : > { %2479 = vrsqrt.f32 %v850_v20  ;;  %v876_v22 = vmul.f32 0.03125, %v875_v21 }
 0x13c   : > { %v877_v23 = vadd.f32 1e-05, %v876_v22 }
 0x13e   : > { %2481 = vrsqrt.f32 %v877_v23 }
 0x147   : > { %v2480_v24 = vpop.eup %2479 }
 0x148   : > { %v852_v26 = vmul.f32 %v2480_v24, %v844_v7 }
 0x14a   : > { %v859_v28 = vmul.f32 %v2268_v25, %v852_v26 }
 0x14b   : > { %v2482_v29 = vpop.eup %2481 }
 0x14c   : > { %v866_v30 = vadd.f32 %v2269_v27, %v859_v28  ;;  %v879_v31 = vmul.f32 %v2482_v29, %v871_v11 }
 0x14e   : > { %v880_v33 = vmul.f32 %v2268_v25, %v879_v31  ;;  %v882_v34 = vpack.c.bf16 %v866_v30, %v866_v30 }
 0x150   : > { %2352 = vmatmul.mubr.msk.bf16.vlgmr.msra.gmra.mxu1 %vm906_vm2, %v882_v34  ;;  %v881_v36 = vadd.f32 %v2269_v27, %v880_v33 }
 0x151   : > { %2356 = vmatpush3.bf16.msra.mxu1 %v2469_v32  ;;  %2359 = vmatprep.mubr.msk.bf16.mxu1 %vm2528_vm1, %v2527_v16 }
 0x152   : > { %2357 = vmatprep.subr.bf16.mxu1 %v2527_v16  ;;  %v950_v37 = vpack.c.bf16 %v881_v36, %v881_v36 }
 0x155   : > { %2358 = vmatpush3.bf16.msra.mxu1 %v2470_v35 }
 0x156   : > { %2368 = vmatprep.subr.mxu1 %v2527_v16 }
 0x158   : > { %2360 = vmatmul.mubr.msk.bf16.vlgmr.msra.gmra.mxu1 %vm906_vm2, %v950_v37 }
 0x159   : > { %2370 = vmatprep.mubr.msk.f32.mxu1 %vm2528_vm1, %v2527_v16 }
 0x210   : > { %v944_v39 = vpop.f32.mrf.mxu1 }
 0x211   : > { %v945_v40 = vadd.f32 %v2270_v38, %v944_v39 }
 0x212   : > { %v2353_v41 = vpop.f32.mrf.mxu1 }
 0x213   : > { %1186 = vrot.lane.b32.xlu1 %v945_v40, %s2529_s0 }
 0x214   : > { %v947_v42 = vpop.f32.mrf.mxu1 }
 0x216   : > { %v2354_v43 = vpop.f32.mrf.mxu1 }
 0x218   : > { %v1011_v45 = vpop.f32.mrf.mxu1 }
 0x219   : > { %v2714_v46 = vadd.f32 %v2274_v44, %v1011_v45 }
 0x21a   : > { %v2361_v47 = vpop.f32.mrf.mxu1 }
 0x21b   : > { %1355 = vrot.lane.b32.xlu1 %v2714_v46, %s2530_s20  ;;  %1188 = vrot.lane.b32.xlu0 %v2714_v46, %s2529_s0  ;;  %s2537_s0 = smov 16  }
 0x21c   : > { %2364 = vmatpush3.xpose.msk.msra.mxu0 %vm1017_vm3, %v2714_v46  ;;  %v1014_v48 = vpop.f32.mrf.mxu1 }
 0x21d   : > { %2373 = vmatprep.subr.mxu0 %v2527_v16 }
 0x21e   : > { %v2362_v49 = vpop.f32.mrf.mxu1 }
 0x21f   : > { %2366 = vmatmul.mubr.msk.f32.vlgmr.msra.gmra.mxu0 %vm1017_vm3, %v945_v40  ;;  %1353 = vrot.lane.b32.xlu1 %v945_v40, %s2530_s20  ;;  %s2538_s20 = smov 24  }
 0x220   : > { %1522 = vrot.lane.b32.xlu0 %v2714_v46, %s2531_s21  ;;  %2375 = vmatprep.mubr.msk.f32.mxu0 %vm2528_vm1, %v2527_v16 }
 0x223   : > { %1520 = vrot.lane.b32.xlu1 %v945_v40, %s2531_s21  ;;  %s2872_s21 = sld [smem:[#allocation5_spill]] }
 0x285   : > { %v1187_v50 = vpop.permute.xlu1 %1186 }
 0x28d   : > { %v1189_v51 = vpop.permute.xlu0 %1188  ;;  %v1356_v52 = vpop.permute.xlu1 %1355 }
 0x28e   : > { %2374 = vmatpush3.xpose.msk.msra.mxu0 %vm1017_vm3, %v1189_v51 }
 0x28f   : > { %2383 = vmatprep.subr.mxu0 %v2527_v16 }
 0x291   : > { %2376 = vmatmul.mubr.msk.f32.vlgmr.msra.gmra.mxu0 %vm1017_vm3, %v1187_v50  ;;  %v1354_v53 = vpop.permute.xlu1 %1353 }
 0x292   : > { %2384 = vmatpush3.xpose.msk.msra.mxu0 %vm1017_vm3, %v1356_v52  ;;  %2385 = vmatprep.mubr.msk.f32.mxu0 %vm2528_vm1, %v2527_v16  ;;  %v1523_v54 = vpop.permute.xlu0 %1522 }
 0x293   : > { %2393 = vmatprep.subr.mxu0 %v2527_v16 }
 0x295   : > { %2386 = vmatmul.mubr.msk.f32.vlgmr.msra.gmra.mxu0 %vm1017_vm3, %v1354_v53  ;;  %v1521_v55 = vpop.permute.xlu1 %1520  ;;  %v2472_v53 = vld [vmem:[%s2855_s8] sm:$0xff]  }
 0x296   : > { %2394 = vmatpush3.xpose.msk.msra.mxu0 %vm1017_vm3, %v1523_v54  ;;  %2395 = vmatprep.mubr.msk.f32.mxu0 %vm2528_vm1, %v2527_v16 }
 0x297   : > { %2403 = vmatprep.subr.bf16.mxu0 %v2527_v16 }
 0x299   : > { %2396 = vmatmul.mubr.msk.f32.vlgmr.msra.gmra.mxu0 %vm1017_vm3, %v1521_v55 }
 0x29a   : > { %2407 = vmatprep.mubr.msk.bf16.mxu0 %vm2528_vm1, %v2527_v16 }
 0x2df   : > { %v1090_v56 = vpop.f32.mrf.mxu0 }
 0x2e0   : > { %v1094_v57 = vmul.f32 0.35355338, %v1090_v56 }
 0x2e1   : > { %v2367_v58 = vpop.f32.mrf.mxu0 }
 0x2e2   : > { %v1096_v59 = vsel %vm1095_vm4, %v1094_v57, -inf }
 0x2e3   : > { %1097 = vmax.xlane.f32.xlu0 %v1096_v59 }
 0x351   : > { %v1260_v60 = vpop.f32.mrf.mxu0 }
 0x352   : > { %v1264_v61 = vmul.f32 0.35355338, %v1260_v60 }
 0x353   : > { %v2377_v62 = vpop.f32.mrf.mxu0 }
 0x354   : > { %v1265_v63 = vsel %vm1095_vm4, %v1264_v61, -inf }
 0x355   : > { %1266 = vmax.xlane.f32.xlu1 %v1265_v63  ;;  %v1427_v0 = vpop.f32.mrf.mxu0  ;;  %v2294_v63 = vld [vmem:[%s2856_s9] ss:$0 sm:$0xff] }
 0x356   : > { %v1431_v2 = vmul.f32 0.35355338, %v1427_v0 }
 0x357   : > { %v2387_v3 = vpop.f32.mrf.mxu0 }
 0x358   : > { %v1432_v4 = vsel %vm1095_vm4, %v1431_v2, -inf }
 0x359   : > { %1433 = vmax.xlane.f32.xlu0 %v1432_v4  ;;  %v1594_v5 = vpop.f32.mrf.mxu0 }
 0x35a   : > { %v1598_v6 = vmul.f32 0.35355338, %v1594_v5 }
 0x35b   : > { %v2397_v7 = vpop.f32.mrf.mxu0 }
 0x35c   : > { %v1599_v8 = vsel %vm1095_vm4, %v1598_v6, -inf }
 0x35d   : > { %1600 = vmax.xlane.f32.xlu0 %v1599_v8 }
 0x36c   : > { %v1098_v9 = vpop.xlane.xlu0 %1097 }
 0x36d   : > { %v1099_v10 = vsub.f32 %v1094_v57, %v1098_v9 }
 0x36f   : > { %v1100_v11 = vmul.f32 1.442695, %v1099_v10 }
 0x371   : > { %2483 = vpow2.f32 %v1100_v11 }
 0x37e   : > { %v2484_v12 = vpop.eup %2483 }
 0x37f   : > { %v1102_v13 = vsel %vm1095_vm4, %v2484_v12, 0.0 }
 0x380   : > { %1103 = vadd.xlane.f32.xlu0 %v1102_v13  ;;  %v2473_v13 = vld [vmem:[%s2859_s12 + $0x8] sm:$0xff]  }
 0x3de   : > { %v1267_v14 = vpop.xlane.xlu1 %1266 }
 0x3df   : > { %v1268_v15 = vsub.f32 %v1264_v61, %v1267_v14  ;;  %v2475_v14 = vld [vmem:[%s2861_s14 + $0x18] sm:$0xff]  }
 0x3e1   : > { %v1269_v17 = vmul.f32 1.442695, %v1268_v15  ;;  %v2476_v15 = vld [vmem:[%s2861_s14 + $0x10] sm:$0xff]  }
 0x3e2   : > { %v1434_v18 = vpop.xlane.xlu0 %1433 }
 0x3e3   : > { %2485 = vpow2.f32 %v1269_v17  ;;  %v1435_v19 = vsub.f32 %v1431_v2, %v1434_v18 }
 0x3e5   : > { %v1436_v20 = vmul.f32 1.442695, %v1435_v19 }
 0x3e6   : > { %v1601_v25 = vpop.xlane.xlu0 %1600 }
 0x3e7   : > { %2487 = vpow2.f32 %v1436_v20  ;;  %v1602_v26 = vsub.f32 %v1598_v6, %v1601_v25 }
 0x3e9   : > { %v1603_v27 = vmul.f32 1.442695, %v1602_v26 }
 0x3eb   : > { %2489 = vpow2.f32 %v1603_v27  ;;  %v2477_v27 = vld [vmem:[%s2861_s14 + $0x8] sm:$0xff]  }
 0x3f0   : > { %v2486_v21 = vpop.eup %2485 }
 0x3f1   : > { %v1271_v22 = vsel %vm1095_vm4, %v2486_v21, 0.0 }
 0x3f2   : > { %1272 = vadd.xlane.f32.xlu1 %v1271_v22 }
 0x3f4   : > { %v2488_v23 = vpop.eup %2487 }
 0x3f5   : > { %v1438_v24 = vsel %vm1095_vm4, %v2488_v23, 0.0 }
 0x3f6   : > { %1439 = vadd.xlane.f32.xlu0 %v1438_v24 }
 0x3f8   : > { %v2490_v28 = vpop.eup %2489 }
 0x3f9   : > { %v1605_v29 = vsel %vm1095_vm4, %v2490_v28, 0.0 }
 0x403   : > { %1276 = vrot.lane.b32.xlu1 %v2714_v46, %s2532_s22 }
 0x407   : > { %1443 = vrot.lane.b32.xlu1 %v2714_v46, %s2533_s2 }
 0x409   : > { %v1104_v30 = vpop.xlane.xlu0 %1103 }
 0x40a   : > { %2491 = vrcp.f32 %v1104_v30 }
 0x40c   : > { %1107 = vrot.lane.b32.xlu0 %v2714_v46, %s2534_s24 }
 0x417   : > { %v2492_v33 = vpop.eup %2491 }
 0x418   : > { %v1106_v35 = vmul.f32 %v2492_v33, %v2484_v12 }
 0x42b   : > { %1606 = vadd.xlane.f32.xlu1 %v1605_v29  ;;  %v2300_v29 = vld [vmem:[%s2860_s13] ss:$0 sm:$0xff] }
 0x43c   : > { %1610 = vrot.lane.b32.xlu1 %v2714_v46, %s2535_s25  ;;  %v2471_v46 = vld [vmem:[%s2855_s8 + $0x8] sm:$0xff]  }
 0x43d   : > { %2404 = vmatpush3.bf16.msra.mxu0 %v2471_v46 }
 0x43e   : > { %2405 = vmatprep.subr.bf16.mxu0 %v2527_v16 }
 0x441   : > { %2406 = vmatpush3.bf16.msra.mxu0 %v2472_v53 }
 0x442   : > { %2419 = vmatprep.subr.bf16.mxu0 %v2527_v16 }
 0x47b   : > { %v1273_v31 = vpop.xlane.xlu1 %1272 }
 0x47c   : > { %2493 = vrcp.f32 %v1273_v31 }
 0x47f   : > { %v1440_v32 = vpop.xlane.xlu0 %1439  ;;  %v1277_v36 = vpop.permute.xlu1 %1276 }
 0x480   : > { %2495 = vrcp.f32 %v1440_v32 }
 0x483   : > { %v1108_v34 = vpop.permute.xlu0 %1107  ;;  %v1444_v39 = vpop.permute.xlu1 %1443 }
 0x484   : > { %2369 = vmatpush3.msk.msra.mxu1 %vm1113_vm5, %v1108_v34 }
 0x485   : > { %2371 = vmatmul.mubr.msk.f32.vlgmr.msra.gmra.mxu1 %vm1109_vm6, %v1106_v35  ;;  %2378 = vmatprep.subr.mxu1 %v2527_v16 }
 0x486   : > { %2379 = vmatpush3.msk.msra.mxu1 %vm1113_vm5, %v1277_v36  ;;  %2380 = vmatprep.mubr.msk.f32.mxu1 %vm2528_vm1, %v2527_v16 }
 0x487   : > { %2388 = vmatprep.subr.mxu1 %v2527_v16 }
 0x489   : > { %v2494_v37 = vpop.eup %2493 }
 0x48a   : > { %v1275_v38 = vmul.f32 %v2494_v37, %v2486_v21  ;;  %v2298_v21 = vld [vmem:[%s2863_s16] ss:$0 sm:$0xff] }
 0x48c   : > { %2381 = vmatmul.mubr.msk.f32.vlgmr.msra.gmra.mxu1 %vm1109_vm6, %v1275_v38 }
 0x48d   : > { %v2496_v40 = vpop.eup %2495  ;;  %2389 = vmatpush3.msk.msra.mxu1 %vm1113_vm5, %v1444_v39  ;;  %2390 = vmatprep.mubr.msk.f32.mxu1 %vm2528_vm1, %v2527_v16 }
 0x48e   : > { %v1442_v41 = vmul.f32 %v2496_v40, %v2488_v23  ;;  %2398 = vmatprep.subr.mxu1 %v2527_v16  ;;  %v2299_v23 = vld [vmem:[%s2864_s17] ss:$0 sm:$0xff] }
 0x490   : > { %2391 = vmatmul.mubr.msk.f32.vlgmr.msra.gmra.mxu1 %vm1109_vm6, %v1442_v41 }
 0x491   : > { %2400 = vmatprep.mubr.msk.f32.mxu1 %vm2528_vm1, %v2527_v16 }
 0x4b4   : > { %v1607_v42 = vpop.xlane.xlu1 %1606 }
 0x4b5   : > { %2497 = vrcp.f32 %v1607_v42 }
 0x4b8   : > { %v1611_v43 = vpop.permute.xlu1 %1610 }
 0x4b9   : > { %2399 = vmatpush3.msk.msra.mxu1 %vm1113_vm5, %v1611_v43 }
 0x4ba   : > { %2411 = vmatprep.subr.bf16.mxu1 %v2527_v16 }
 0x4c2   : > { %v2498_v44 = vpop.eup %2497 }
 0x4c3   : > { %v1609_v45 = vmul.f32 %v2498_v44, %v2490_v28  ;;  %v2478_v28 = vld [vmem:[%s2861_s14] sm:$0xff]  }
 0x4c5   : > { %2401 = vmatmul.mubr.msk.f32.vlgmr.msra.gmra.mxu1 %vm1109_vm6, %v1609_v45 }
 0x4c6   : > { %2415 = vmatprep.mubr.msk.bf16.mxu1 %vm2528_vm1, %v2527_v16  ;;  %2412 = vmatpush3.bf16.msra.mxu1 %v2473_v13 }
 0x4c7   : > { %2413 = vmatprep.subr.bf16.mxu1 %v2527_v16 }
 0x545   : > { %v1182_v47 = vpop.f32.mrf.mxu1 }
 0x547   : > { %v2372_v48 = vpop.f32.mrf.mxu1 }
 0x54c   : > { %v1349_v49 = vpop.f32.mrf.mxu1 }
 0x54d   : > { %1688 = vrot.lane.b32.xlu0 %v1349_v49, %s2536_s30 }
 0x54e   : > { %v2382_v50 = vpop.f32.mrf.mxu1 }
 0x550   : > { %v1516_v51 = vpop.f32.mrf.mxu1 }
 0x551   : > { %1692 = vrot.lane.b32.xlu1 %v1516_v51, %s2537_s0 }
 0x552   : > { %v2392_v52 = vpop.f32.mrf.mxu1 }
 0x585   : > { %v1683_v54 = vpop.f32.mrf.mxu1 }
 0x586   : > { %1696 = vrot.lane.b32.xlu0 %v1683_v54, %s2538_s20  ;;  %v2310_v54 = vld [vmem:[%s2872_s21] ss:$0 sm:$0xff] }
 0x587   : > { %v2402_v55 = vpop.f32.mrf.mxu1 }
 0x5bf   : > { %v1689_v56 = vpop.permute.xlu0 %1688 }
 0x5c0   : > { %v1699_v58 = vsel %vm1017_vm3, %v1182_v47, %v1689_v56  ;;  %v2311_v56 = vld [vmem:[%s2850_s3] ss:$0 sm:$0xff] }
 0x5c3   : > { %v1693_v57 = vpop.permute.xlu1 %1692 }
 0x5c4   : > { %v1701_v59 = vsel %vm1700_vm7, %v1699_v58, %v1693_v57 }
 0x5f8   : > { %v1697_v60 = vpop.permute.xlu0 %1696 }
 0x5f9   : > { %v1703_v61 = vsel %vm1702_vm8, %v1701_v59, %v1697_v60 }
 0x5fa   : > { %v1704_v62 = vpack.c.bf16 %v1703_v61, %v1703_v61 }
 0x5fc   : > { %2408 = vmatmul.mubr.msk.bf16.vlgmr.msra.gmra.mxu0 %vm906_vm2, %v1704_v62 }
 0x5fd   : > { %2427 = vmatprep.mubr.msk.bf16.mxu0 %vm2528_vm1, %v2527_v16  ;;  %2420 = vmatpush3.bf16.msra.mxu0 %v2475_v14 }
 0x5fe   : > { %2421 = vmatprep.subr.bf16.mxu0 %v2527_v16 }
 0x601   : > { %2422 = vmatpush3.bf16.msra.mxu0 %v2476_v15 }
 0x602   : > { %2423 = vmatprep.subr.bf16.mxu0 %v2527_v16 }
 0x605   : > { %2424 = vmatpush3.bf16.msra.mxu0 %v2477_v27 }
 0x606   : > { %2425 = vmatprep.subr.bf16.mxu0 %v2527_v16  ;;  %v2304_v16 = vld [vmem:[%s2862_s15] ss:$0 sm:$0xff] }
 0x609   : > { %2426 = vmatpush3.bf16.msra.mxu0 %v2478_v28 }
 0x6bc   : > { %v1765_v0 = vpop.f32.mrf.mxu0 }
 0x6bd   : > { %v1766_v2 = vadd.f32 %v2294_v63, %v1765_v0 }
 0x6be   : > { %v2409_v3 = vpop.f32.mrf.mxu0 }
 0x6bf   : > { %v1771_v4 = vadd.f32 %v1766_v2, %v2666_v1  ;;  %v2474_v1 = vld [vmem:[%s2859_s12] sm:$0xff]  }
 0x6c0   : > { %v1768_v5 = vpop.f32.mrf.mxu0  ;;  %2414 = vmatpush3.bf16.msra.mxu1 %v2474_v1 }
 0x6c1   : > { %v1774_v6 = vsel %vm832_vm0, %v1771_v4, 0.0 }
 0x6c2   : > { %1775 = vadd.xlane.f32.xlu1 %v1774_v6  ;;  %v2410_v7 = vpop.f32.mrf.mxu0 }
 0x74b   : > { %v1776_v8 = vpop.xlane.xlu1 %1775 }
 0x74c   : > { %v1777_v9 = vmul.f32 0.03125, %v1776_v8 }
 0x74e   : > { %v1778_v10 = vsub.f32 %v1771_v4, %v1777_v9 }
 0x750   : > { %v1779_v11 = vmul.f32 %v1778_v10, %v1778_v10 }
 0x752   : > { %v1780_v12 = vsel %vm832_vm0, %v1779_v11, 0.0 }
 0x753   : > { %1781 = vadd.xlane.f32.xlu0 %v1780_v12 }
 0x7dc   : > { %v1782_v17 = vpop.xlane.xlu0 %1781 }
 0x7dd   : > { %v1783_v18 = vmul.f32 0.03125, %v1782_v17 }
 0x7df   : > { %v1784_v19 = vadd.f32 1e-05, %v1783_v18 }
 0x7e1   : > { %2499 = vrsqrt.f32 %v1784_v19 }
 0x7ee   : > { %v2500_v20 = vpop.eup %2499 }
 0x7ef   : > { %v1786_v22 = vmul.f32 %v2500_v20, %v1778_v10 }
 0x7f1   : > { %v1793_v24 = vmul.f32 %v2298_v21, %v1786_v22 }
 0x7f3   : > { %v1800_v25 = vadd.f32 %v2299_v23, %v1793_v24 }
 0x7f5   : > { %v1801_v26 = vpack.c.bf16 %v1800_v25, %v1800_v25 }
 0x7f7   : > { %2416 = vmatmul.mubr.msk.bf16.vlgmr.msra.gmra.mxu1 %vm906_vm2, %v1801_v26 }
 0x8b7   : > { %v1862_v30 = vpop.f32.mrf.mxu1 }
 0x8b8   : > { %v1863_v31 = vadd.f32 %v2300_v29, %v1862_v30 }
 0x8b9   : > { %v2417_v32 = vpop.f32.mrf.mxu1 }
 0x8ba   : > { %v1868_v33 = vmax.f32 %v1863_v31, 0.0 }
 0x8bb   : > { %v1865_v34 = vpop.f32.mrf.mxu1 }
 0x8bc   : > { %v1869_v35 = vpack.c.bf16 %v1868_v33, %v1868_v33 }
 0x8bd   : > { %v2418_v36 = vpop.f32.mrf.mxu1 }
 0x8be   : > { %2428 = vmatmul.mubr.msk.bf16.vlgmr.msra.gmra.mxu0 %vm1909_vm9, %v1869_v35 }
 0x97e   : > { %v1947_v37 = vpop.f32.mrf.mxu0 }
 0x97f   : > { %v1948_v38 = vadd.f32 %v2304_v16, %v1947_v37 }
 0x980   : > { %v2429_v39 = vpop.f32.mrf.mxu0 }
 0x981   : > { %v1953_v40 = vadd.f32 %v1948_v38, %v1771_v4 }
 0x982   : > { %v1950_v41 = vpop.f32.mrf.mxu0 }
 0x983   : > { %1954 = vst.msk [vmem:[%s2658_s23] sm:$0xf] %vm832_vm0, %v1953_v40 }
 0x984   : > { %v2430_v42 = vpop.f32.mrf.mxu0 }
 0x98a   : > { %v1958_v43 = vld [vmem:[%s2658_s23] sm:$0xf] }
 0x98b   : > { %v1961_v44 = vsel %vm832_vm0, %v1958_v43, 0.0 }
 0x98c   : > { %1962 = vadd.xlane.f32.xlu0 %v1961_v44 }
 0xa15   : > { %v1963_v45 = vpop.xlane.xlu0 %1962 }
 0xa16   : > { %v1964_v46 = vmul.f32 0.03125, %v1963_v45 }
 0xa18   : > { %v1965_v47 = vsub.f32 %v1958_v43, %v1964_v46 }
 0xa1a   : > { %v1966_v48 = vmul.f32 %v1965_v47, %v1965_v47 }
 0xa1c   : > { %v1967_v49 = vsel %vm832_vm0, %v1966_v48, 0.0 }
 0xa1d   : > { %1968 = vadd.xlane.f32.xlu0 %v1967_v49 }
 0xaa6   : > { %v1969_v50 = vpop.xlane.xlu0 %1968 }
 0xaa7   : > { %v1970_v51 = vmul.f32 0.03125, %v1969_v50 }
 0xaa9   : > { %v1971_v52 = vadd.f32 1e-05, %v1970_v51 }
 0xaab   : > { %2501 = vrsqrt.f32 %v1971_v52 }
 0xab8   : > { %v2502_v53 = vpop.eup %2501 }
 0xab9   : > { %v1973_v55 = vmul.f32 %v2502_v53, %v1965_v47 }
 0xabb   : > { %v1980_v57 = vmul.f32 %v2310_v54, %v1973_v55 }
 0xabd   : > { %v1987_v58 = vadd.f32 %v2311_v56, %v1980_v57 }
 0xabf   : > { %1988 = vst.msk [vmem:[%s2658_s23] sm:$0xf] %vm832_vm0, %v1987_v58 }
 0xac0 PF: > { %s28_s29 = sadd.s32 1, %s2525_s29   ;;  %s2873_s24 = sld [smem:[#allocation2_spill]] }
 0xac1   : > { %p25_p5 = scmp.ge.s32.totalorder %s28_s29, 4   ;;  %s2874_s27 = smov %s2521_s28 }
 0xac3   :  { %27 = sbr.rel (!%p25_p5) target bundleno = 4 (0x4), region = 175 }
 0xac6   : > { %s2875_s28 = smov %s2873_s24 }

</bundles_post_ra>
